<compile_context>
chip_gen: v7x
topology: tpu7x:2x2x1
jax: 0.10.0
libtpu: 0.0.40
codegen_flags: <defaults>
</compile_context>

<pallas_src>
import jax
import jax.numpy as jnp
from jax.experimental import pallas as pl
from jax.experimental.pallas import tpu as pltpu


def se_tail_kernel(xsq_ref, w1_ref, b1_ref, x_ref, w2_ref, o_ref):
    # --- SE projection (1x1 conv with bias), channel-major ---
    # s[Cmid, 1] = w1[Cmid, Cin] @ xsq[Cin, 1]   (bf16 operands, f32 accumulation)
    s = jnp.dot(w1_ref[...], xsq_ref[...].astype(jnp.bfloat16),
                preferred_element_type=jnp.float32)
    s = s + b1_ref[...]                                           # [Cmid, 1] f32

    # Sigmoid in f32: exp + approximate reciprocal, both on the EUP slot.
    gate = pl.reciprocal(1.0 + jnp.exp(-s), approx=True)          # [Cmid, 1] f32

    # --- channel gate: broadcast over the HW lane axis (f32 math, bf16 MXU feed) ---
    gated = (x_ref[...] * gate).astype(jnp.bfloat16)              # [Cmid, HW]

    # --- second 1x1 conv (no bias): this grid step's Cout slice ---
    # o[tn, HW] = w2_blk[tn, Cmid] @ gated[Cmid, HW]
    o_ref[...] = jnp.dot(w2_ref[...], gated,
                         preferred_element_type=jnp.float32).astype(o_ref.dtype)


def se_tail(x503, x500, w1, b1, w2, *, cout_blocks=2):
    """x503: [1, Cin, 1, 1], x500: [1, Cmid, H, W]  (NCHW, like PyTorch).

    w1: [Cmid, Cin, 1, 1] conv weight (any float dtype; used as bf16),
    b1: [Cmid] (f32), w2: [Cout, Cmid, 1, 1] (any float dtype; used as bf16).
    Returns [1, Cout, H, W] in x500.dtype.
    """
    N, Cin, _, _ = x503.shape
    _, Cmid, H, W = x500.shape
    Cout = w2.shape[0]
    assert N == 1
    HW = H * W
    assert Cout % cout_blocks == 0
    tn = Cout // cout_blocks
    assert tn % 8 == 0, "Cout block must be a multiple of 8 sublanes"

    # Native-layout, contiguous reshapes only -- no transposes, no extra HBM traffic.
    xsq = x503.reshape(Cin, 1)                            # [Cin, 1]     (f32)
    x_cm = x500.reshape(Cmid, HW)                         # [Cmid, HW]   (f32, channel-major)
    w1_m = w1.reshape(Cmid, Cin).astype(jnp.bfloat16)     # [Cmid, Cin]  (no-op if already bf16)
    b1_m = b1.reshape(Cmid, 1)                            # [Cmid, 1]    (f32)
    w2_m = w2.reshape(Cout, Cmid).astype(jnp.bfloat16)    # [Cout, Cmid] (no-op if already bf16)

    out_cm = pl.pallas_call(
        se_tail_kernel,
        out_shape=jax.ShapeDtypeStruct((Cout, HW), x500.dtype),
        grid=(cout_blocks,),
        in_specs=[
            pl.BlockSpec((Cin, 1),    lambda j: (0, 0)),   # squeeze vector (resident)
            pl.BlockSpec((Cmid, Cin), lambda j: (0, 0)),   # w1             (resident)
            pl.BlockSpec((Cmid, 1),   lambda j: (0, 0)),   # b1             (resident)
            pl.BlockSpec((Cmid, HW),  lambda j: (0, 0)),   # activations    (resident)
            pl.BlockSpec((tn, Cmid),  lambda j: (j, 0)),   # w2 streamed over Cout
        ],
        out_specs=pl.BlockSpec((tn, HW), lambda j: (j, 0)),
        compiler_params=pltpu.CompilerParams(
            dimension_semantics=("parallel",)),            # lets v7x's 2 TCs split Cout
    )(xsq, w1_m, b1_m, x_cm, w2_m)

    # Channel-major [Cout, HW] output is already in NCHW order: plain reshape.
    return out_cm.reshape(1, Cout, H, W)


def se_tail_reference(x503, x500, w1, b1, w2):
    """Pure-JAX f32 reference mirroring the PyTorch forward."""
    Cin = x503.shape[1]
    _, Cmid, H, W = x500.shape
    Cout = w2.shape[0]
    xsq = x503.reshape(1, Cin).astype(jnp.float32)
    w1f = w1.reshape(Cmid, Cin).astype(jnp.float32)
    w2f = w2.reshape(Cout, Cmid).astype(jnp.float32)
    s = xsq @ w1f.T + b1.reshape(1, Cmid)                          # [1, Cmid]
    s = jax.nn.sigmoid(s)
    gated = x500 * s.reshape(1, Cmid, 1, 1)                        # [1, Cmid, H, W]
    return jnp.einsum('oc,nchw->nohw', w2f, gated)                 # [1, Cout, H, W]


if __name__ == "__main__":
    # Module-defined channel counts; spatial size from the forward (7x7).
    Cin, Cmid, Cout, H, W = 76, 1824, 304, 7, 7

    key = jax.random.PRNGKey(0)
    k1, k2, k3, k4, k5 = jax.random.split(key, 5)

    # Deterministic synthetic parameters (PyTorch conv weight layout [out, in, 1, 1]).
    w1_f32 = jax.random.normal(k1, (Cmid, Cin, 1, 1), jnp.float32) * 0.05
    b1 = jax.random.normal(k2, (Cmid,), jnp.float32) * 0.05
    w2_f32 = jax.random.normal(k3, (Cout, Cmid, 1, 1), jnp.float32) * 0.02

    # Weights stored once in bf16 at init (outside the hot path); kernel accumulates in f32.
    w1 = w1_f32.astype(jnp.bfloat16)
    w2 = w2_f32.astype(jnp.bfloat16)

    # Example inputs (NCHW, as in the PyTorch module).
    x503 = jax.random.normal(k4, (1, Cin, 1, 1), jnp.float32)
    x500 = jax.random.normal(k5, (1, Cmid, H, W), jnp.float32)

    out = jax.jit(se_tail)(x503, x500, w1, b1, w2)
    out = jax.block_until_ready(out)

    ref = se_tail_reference(x503, x500, w1_f32, b1, w2_f32)
    assert out.shape == (1, Cout, H, W), out.shape
    max_err = float(jnp.max(jnp.abs(out - ref)))
    # bf16 weights / bf16 MXU feed with f32 accumulation -> loosened tolerance.
    assert jnp.allclose(out, ref, atol=5e-2, rtol=5e-2), f"mismatch vs reference, max_err={max_err}"

    print("KERNEL_OK")
</pallas_src>

<mosaic_0001>
module attributes {stable_mosaic.version = 11 : i64} {
  func.func @se_tail_kernel(%arg0: i32, %arg1: memref<76x1xf32, #tpu.memory_space<vmem>>, %arg2: memref<1824x76xbf16, #tpu.memory_space<vmem>>, %arg3: memref<1824x1xf32, #tpu.memory_space<vmem>>, %arg4: memref<1824x49xf32, #tpu.memory_space<vmem>>, %arg5: memref<152x1824xbf16, #tpu.memory_space<vmem>>, %arg6: memref<152x49xf32, #tpu.memory_space<vmem>>) attributes {dimension_semantics = [#tpu.dimension_semantics<parallel>], iteration_bounds = array<i64: 2>, scalar_prefetch = 0 : i64, scratch_operands = 0 : i64, tpu.core_type = #tpu.core_type<tc>, window_params = [{pipeline_mode = #tpu.pipeline_mode<synchronous>, transform_indices = @transform_0, window_bounds = array<i64: 76, 1>}, {pipeline_mode = #tpu.pipeline_mode<synchronous>, transform_indices = @transform_1, window_bounds = array<i64: 1824, 76>}, {pipeline_mode = #tpu.pipeline_mode<synchronous>, transform_indices = @transform_2, window_bounds = array<i64: 1824, 1>}, {pipeline_mode = #tpu.pipeline_mode<synchronous>, transform_indices = @transform_3, window_bounds = array<i64: 1824, 49>}, {transform_indices = @transform_4, window_bounds = array<i64: 152, 1824>}, {transform_indices = @transform_5, window_bounds = array<i64: 152, 49>}]} {
    %c0 = arith.constant 0 : index
    %c0_0 = arith.constant 0 : index
    %0 = vector.load %arg2[%c0, %c0_0] : memref<1824x76xbf16, #tpu.memory_space<vmem>>, vector<1824x76xbf16>
    %c0_1 = arith.constant 0 : index
    %c0_2 = arith.constant 0 : index
    %1 = vector.load %arg1[%c0_1, %c0_2] : memref<76x1xf32, #tpu.memory_space<vmem>>, vector<76x1xf32>
    %2 = arith.truncf %1 : vector<76x1xf32> to vector<76x1xbf16>
    %cst = arith.constant dense<0.000000e+00> : vector<1824x1xf32>
    %3 = tpu.matmul %0, %2, %cst {dimension_numbers = #tpu.dot_dimension_numbers<[1], [0], [0], [1], [0, 0, 1, 1], [], []>} : vector<1824x76xbf16>, vector<76x1xbf16>, vector<1824x1xf32> -> vector<1824x1xf32>
    %c0_3 = arith.constant 0 : index
    %c0_4 = arith.constant 0 : index
    %4 = vector.load %arg3[%c0_3, %c0_4] : memref<1824x1xf32, #tpu.memory_space<vmem>>, vector<1824x1xf32>
    %5 = arith.addf %3, %4 : vector<1824x1xf32>
    %cst_5 = arith.constant 0.000000e+00 : f32
    %6 = vector.broadcast %cst_5 : f32 to vector<1824x1xf32>
    %7 = arith.subf %6, %5 : vector<1824x1xf32>
    %8 = math.exp %7 : vector<1824x1xf32>
    %cst_6 = arith.constant 1.000000e+00 : f32
    %9 = vector.broadcast %cst_6 : f32 to vector<1824x1xf32>
    %10 = arith.addf %9, %8 : vector<1824x1xf32>
    %11 = tpu.reciprocal %10 {approx = true} : vector<1824x1xf32> -> vector<1824x1xf32>
    %c0_7 = arith.constant 0 : index
    %c0_8 = arith.constant 0 : index
    %12 = vector.load %arg4[%c0_7, %c0_8] : memref<1824x49xf32, #tpu.memory_space<vmem>>, vector<1824x49xf32>
    %13 = vector.broadcast %11 : vector<1824x1xf32> to vector<1824x49xf32>
    %14 = arith.mulf %12, %13 : vector<1824x49xf32>
    %15 = arith.truncf %14 : vector<1824x49xf32> to vector<1824x49xbf16>
    %c0_9 = arith.constant 0 : index
    %c0_10 = arith.constant 0 : index
    %16 = vector.load %arg5[%c0_9, %c0_10] : memref<152x1824xbf16, #tpu.memory_space<vmem>>, vector<152x1824xbf16>
    %cst_11 = arith.constant dense<0.000000e+00> : vector<152x49xf32>
    %17 = tpu.matmul %16, %15, %cst_11 {dimension_numbers = #tpu.dot_dimension_numbers<[1], [0], [0], [1], [0, 0, 1, 1], [], []>} : vector<152x1824xbf16>, vector<1824x49xbf16>, vector<152x49xf32> -> vector<152x49xf32>
    %c0_12 = arith.constant 0 : index
    %c0_13 = arith.constant 0 : index
    %18 = vector.load %arg6[%c0_12, %c0_13] : memref<152x49xf32, #tpu.memory_space<vmem>>, vector<152x49xf32>
    tpu.vector_store %arg6[%c0_12, %c0_13], %17 {strides = array<i32>} : memref<152x49xf32, #tpu.memory_space<vmem>>, vector<152x49xf32>,
    return
  }
  func.func @transform_0(%arg0: i32) -> (i32, i32) {
    %c0_i32 = arith.constant 0 : i32
    %c0_i32_0 = arith.constant 0 : i32
    %c0_i32_1 = arith.constant 0 : i32
    return %c0_i32, %c0_i32_0 : i32, i32
  }
  func.func @transform_1(%arg0: i32) -> (i32, i32) {
    %c0_i32 = arith.constant 0 : i32
    %c0_i32_0 = arith.constant 0 : i32
    %c0_i32_1 = arith.constant 0 : i32
    return %c0_i32, %c0_i32_0 : i32, i32
  }
  func.func @transform_2(%arg0: i32) -> (i32, i32) {
    %c0_i32 = arith.constant 0 : i32
    %c0_i32_0 = arith.constant 0 : i32
    %c0_i32_1 = arith.constant 0 : i32
    return %c0_i32, %c0_i32_0 : i32, i32
  }
  func.func @transform_3(%arg0: i32) -> (i32, i32) {
    %c0_i32 = arith.constant 0 : i32
    %c0_i32_0 = arith.constant 0 : i32
    %c0_i32_1 = arith.constant 0 : i32
    return %c0_i32, %c0_i32_0 : i32, i32
  }
  func.func @transform_4(%arg0: i32) -> (i32, i32) {
    %c0_i32 = arith.constant 0 : i32
    %c0_i32_0 = arith.constant 0 : i32
    return %arg0, %c0_i32 : i32, i32
  }
  func.func @transform_5(%arg0: i32) -> (i32, i32) {
    %c0_i32 = arith.constant 0 : i32
    %c0_i32_0 = arith.constant 0 : i32
    return %arg0, %c0_i32 : i32, i32
  }
}

</mosaic_0001>

<bundles_post_ra>
// kernel: se_tail.1
= control target key start
LH: loop header
LB: loop body
LE: loop exit
PB: predicated region body
PF: predicated region fallthrough
CT: control target
= control target key end

     0   :  { %s9910_s18 = smov 0   ;;  %s13269_s0 = inlined_call_operand.vmem [shape: f32[76,1], index: 0, kind: input, shape index: {}]   ;;  %s13270_s1 = inlined_call_operand.vmem [shape: bf16[1824,76], index: 1, kind: input, shape index: {}]   ;;  %s13271_s2 = inlined_call_operand.vmem [shape: f32[1824,1], index: 2, kind: input, shape index: {}]   ;;  %s13272_s3 = inlined_call_operand.vmem [shape: f32[1824,49], index: 3, kind: input, shape index: {}]   ;;  %s13273_s4 = inlined_call_operand.vmem [shape: bf16[304,1824], index: 4, kind: input, shape index: {}]   ;;  %s13274_s5 = inlined_call_operand.vmem [shape: f32[304,49], index: 5, kind: output, shape index: {}]  }
   0x1 LB: > { %s7297_s19 = sadd.s32 4294967295, %s9877_s18   ;;  %p7301_p0 = scmp.ge.s32.totalorder %s9877_s18, 1  ;;  %s9877_s18 = sphi %s9910_s18, %s15_s18  }
   0x2   : > { %p189_p1 = scmp.lt.s32.totalorder %s9877_s18, 3 }
   0x4   : > { %p190_p2 = pnand %p7301_p0, %p189_p1 }
   0x6   : > { %193 = sbr.rel (%p190_p2) target bundleno = 1212 (0x4bc), region = 40 }
   0xd   : > { %v460_v0 = vld [vmem:[%s13269_s0] sm:$0xff]  ;;  %v461_v1 = vld [vmem:[%s13269_s0 + $0x8] sm:$0xff]  ;;  %v462_v2 = vld [vmem:[%s13269_s0 + $0x10] sm:$0xff]  ;;  %vm1273_vm0 = vcmask 621568   ;;  %vm1616_vm1 = vcmask 1045504   ;;  %v9879_v47 = vmov 0  }
   0xe   : > { %v470_v3 = vpack.c.bf16 %v461_v1, %v460_v0  ;;  %v463_v4 = vld [vmem:[%s13269_s0 + $0x18] sm:$0xff]  ;;  %v464_v6 = vld [vmem:[%s13269_s0 + $0x20] sm:$0xff]  ;;  %v465_v7 = vld [vmem:[%s13269_s0 + $0x28] sm:$0xff]  ;;  %8630 = vset.pattern.permute.xlu1 %v9879_v47  ;;  %8631 = vset.pattern.permute.xlu0 %v9879_v47  ;;  %s218_s28 = smul.u32 19, %s7297_s19  ;;  %vm6294_vm2 = vcmask 261120   ;;  %vm7221_vm3 = vcmask 400384  }
   0xf   : > { %v471_v5 = vpack.c.bf16 %v463_v4, %v462_v2  ;;  %v8632_v8 = vld [vmem:[%s13270_s1] sm:$0xff]   ;;  %v472_v9 = vpack.c.bf16 %v465_v7, %v464_v6  ;;  %v466_v10 = vld [vmem:[%s13269_s0 + $0x30] sm:$0xff]  ;;  %v467_v11 = vld [vmem:[%s13269_s0 + $0x38] sm:$0xff] }
  0x10   : > { %8357 = vmatprep.subr.bf16.mxu0 %v470_v3  ;;  %8367 = vmatprep.mubr.msk.bf16.mxu0 %vm1273_vm0, %v8632_v8  ;;  %v473_v12 = vpack.c.bf16 %v467_v11, %v466_v10  ;;  %v468_v13 = vld [vmem:[%s13269_s0 + $0x40] sm:$0xff]  ;;  %v469_v14 = vld [vmem:[%s13269_s0 + $0x48] sm:$0xf]  ;;  %v8634_v18 = vld [vmem:[%s13270_s1 + $0x10] sm:$0xff]   ;;  %p219_p3 = scmp.lt.s32.totalorder %s218_s28, 37 }
  0x11   : > { %8358 = vmatpush3.bf16.msra.mxu0 %v470_v3  ;;  %v474_v15 = vpack.c.bf16 %v469_v14, %v468_v13  ;;  %v8633_v17 = vld [vmem:[%s13270_s1 + $0x8] sm:$0xff]   ;;  %v8635_v19 = vld [vmem:[%s13270_s1 + $0x18] sm:$0xff]   ;;  %v8636_v20 = vld [vmem:[%s13270_s1 + $0x20] sm:$0xff]  }
  0x12   : > { %8359 = vmatprep.subr.bf16.mxu0 %v471_v5  ;;  %v8637_v21 = vld [vmem:[%s13270_s1 + $0x28] sm:$0xff]   ;;  %v8638_v22 = vld [vmem:[%s13270_s1 + $0x30] sm:$0xff]   ;;  %v8639_v23 = vld [vmem:[%s13270_s1 + $0x38] sm:$0xff]   ;;  %s13284_s28 = smov (!%p219_p3, %s218_s28), 37 }
  0x13   : > { %v1618_v16 = vsel %vm1616_vm1, %v474_v15, 0  ;;  %v8640_v24 = vld [vmem:[%s13270_s1 + $0x40] sm:$0xff]   ;;  %v8641_v25 = vld [vmem:[%s13270_s1 + $0x48] sm:$0xff]   ;;  %v8642_v26 = vld [vmem:[%s13270_s1 + $0x50] sm:$0xff]   ;;  %s8620_s9 = smul.u32 60, %s13284_s28 }
  0x14   : > { %v8643_v27 = vld [vmem:[%s13270_s1 + $0x58] sm:$0xff]   ;;  %v8644_v28 = vld [vmem:[%s13270_s1 + $0x60] sm:$0xff]   ;;  %v8645_v29 = vld [vmem:[%s13270_s1 + $0x68] sm:$0xff]  }
  0x15   : > { %8360 = vmatpush3.bf16.msra.mxu0 %v471_v5  ;;  %v8646_v30 = vld [vmem:[%s13270_s1 + $0x70] sm:$0xff]   ;;  %v8647_v31 = vld [vmem:[%s13270_s1 + $0x78] sm:$0xff]   ;;  %v8648_v32 = vld [vmem:[%s13270_s1 + $0x80] sm:$0xff]   ;;  %s10454_s22 = scalar_lea.vmem %s13273_s4, %s8620_s9 }
  0x16   : > { %8361 = vmatprep.subr.bf16.mxu0 %v472_v9  ;;  %v8649_v33 = vld [vmem:[%s13270_s1 + $0x88] sm:$0xff]   ;;  %v8650_v34 = vld [vmem:[%s13270_s1 + $0x90] sm:$0xff]   ;;  %v8651_v35 = vld [vmem:[%s13270_s1 + $0x98] sm:$0xff]  }
  0x17   : > { %v8652_v36 = vld [vmem:[%s13270_s1 + $0xa0] sm:$0xff]   ;;  %v8653_v37 = vld [vmem:[%s13270_s1 + $0xa8] sm:$0xff]   ;;  %v8654_v38 = vld [vmem:[%s13270_s1 + $0xb0] sm:$0xff]  }
  0x18   : > { %v8655_v39 = vld [vmem:[%s13270_s1 + $0xb8] sm:$0xff]   ;;  %v8656_v40 = vld [vmem:[%s13270_s1 + $0xc0] sm:$0xff]   ;;  %v8657_v41 = vld [vmem:[%s13270_s1 + $0xc8] sm:$0xff]  }
  0x19   : > { %8362 = vmatpush3.bf16.msra.mxu0 %v472_v9  ;;  %v8658_v42 = vld [vmem:[%s13270_s1 + $0xd0] sm:$0xff]   ;;  %v8659_v43 = vld [vmem:[%s13270_s1 + $0xd8] sm:$0xff]   ;;  %v8660_v44 = vld [vmem:[%s13270_s1 + $0xe0] sm:$0xff]  }
  0x1a   : > { %8363 = vmatprep.subr.bf16.mxu0 %v473_v12  ;;  %v8661_v45 = vld [vmem:[%s13270_s1 + $0xe8] sm:$0xff]   ;;  %v8662_v46 = vld [vmem:[%s13270_s1 + $0xf0] sm:$0xff]   ;;  %v8663_v48 = vld [vmem:[%s13270_s1 + $0xf8] sm:$0xff]  }
  0x1b   : > { %v8664_v49 = vld [vmem:[%s13270_s1 + $0x100] sm:$0xff]   ;;  %v8665_v50 = vld [vmem:[%s13270_s1 + $0x108] sm:$0xff]   ;;  %v8666_v51 = vld [vmem:[%s13270_s1 + $0x110] sm:$0xff]  }
  0x1c   : > { %v8667_v52 = vld [vmem:[%s13270_s1 + $0x118] sm:$0xff]   ;;  %v8668_v53 = vld [vmem:[%s13270_s1 + $0x120] sm:$0xff]   ;;  %v8669_v54 = vld [vmem:[%s13270_s1 + $0x128] sm:$0xff]  }
  0x1d   : > { %8364 = vmatpush3.bf16.msra.mxu0 %v473_v12  ;;  %v8670_v55 = vld [vmem:[%s13270_s1 + $0x130] sm:$0xff]   ;;  %v8671_v56 = vld [vmem:[%s13270_s1 + $0x138] sm:$0xff]   ;;  %v8672_v57 = vld [vmem:[%s13270_s1 + $0x140] sm:$0xff]  }
  0x1e   : > { %8619 = vmatprep.subr.msk.bf16.mxu0 %vm1616_vm1, %v474_v15  ;;  %v8673_v58 = vld [vmem:[%s13270_s1 + $0x148] sm:$0xff]   ;;  %v8674_v59 = vld [vmem:[%s13270_s1 + $0x150] sm:$0xff]   ;;  %v8675_v60 = vld [vmem:[%s13270_s1 + $0x158] sm:$0xff]  }
  0x1f   : > { %v8676_v61 = vld [vmem:[%s13270_s1 + $0x160] sm:$0xff]   ;;  %v8677_v62 = vld [vmem:[%s13270_s1 + $0x168] sm:$0xff]   ;;  %v8678_v63 = vld [vmem:[%s13270_s1 + $0x170] sm:$0xff]  }
  0x20   : > { %v8679_v0 = vld [vmem:[%s13270_s1 + $0x178] sm:$0xff]   ;;  %v8680_v1 = vld [vmem:[%s13270_s1 + $0x180] sm:$0xff]   ;;  %v8681_v2 = vld [vmem:[%s13270_s1 + $0x188] sm:$0xff]  }
  0x21   : > { %8366 = vmatpush3.bf16.msra.mxu0 %v1618_v16  ;;  %v8682_v3 = vld [vmem:[%s13270_s1 + $0x190] sm:$0xff]   ;;  %v8683_v4 = vld [vmem:[%s13270_s1 + $0x198] sm:$0xff]   ;;  %v8684_v5 = vld [vmem:[%s13270_s1 + $0x1a0] sm:$0xff]  }
  0x22   : > { %v8685_v6 = vld [vmem:[%s13270_s1 + $0x1a8] sm:$0xff]   ;;  %v8686_v7 = vld [vmem:[%s13270_s1 + $0x1b0] sm:$0xff]   ;;  %v475_v9 = vld [vmem:[%s13271_s2] sm:$0xff] }
  0x23   : > { %v477_v8 = vld [vmem:[%s13271_s2 + $0x10] sm:$0xff]  ;;  %v478_v11 = vld [vmem:[%s13271_s2 + $0x18] sm:$0xff]  ;;  %v476_v14 = vld [vmem:[%s13271_s2 + $0x8] sm:$0xff] }
  0x24   : > { %8368 = vmatmul.mubr.msk.bf16.vlgmr.msra.gmra.mrb[0].mxu0 %vm1273_vm0, %v8633_v17  ;;  %v8687_v15 = vld [vmem:[%s13270_s1 + $0x1b8] sm:$0xff]  }
  0x25   : > { %8371 = vmatprep.mubr.msk.bf16.mxu0 %vm1273_vm0, %v8634_v18  ;;  %v8688_v18 = vld [vmem:[%s13270_s1 + $0x1c0] sm:$0xff]  }
  0x2c   : > { %8372 = vmatmul.mubr.msk.bf16.gmra.mrb[4].mxu0 %vm1273_vm0, %v8635_v19 }
  0x2d   : > { %8375 = vmatprep.mubr.msk.bf16.mxu0 %vm1273_vm0, %v8636_v20 }
  0x34   : > { %8376 = vmatmul.mubr.msk.bf16.gmra.mrb[8].mxu0 %vm1273_vm0, %v8637_v21 }
  0x35   : > { %8379 = vmatprep.mubr.msk.bf16.mxu0 %vm1273_vm0, %v8638_v22 }
  0x3c   : > { %8380 = vmatmul.mubr.msk.bf16.gmra.mrb[12].mxu0 %vm1273_vm0, %v8639_v23 }
  0x3d   : > { %8383 = vmatprep.mubr.msk.bf16.mxu0 %vm1273_vm0, %v8640_v24 }
  0x44   : > { %8384 = vmatmul.mubr.msk.bf16.gmra.mrb[16].mxu0 %vm1273_vm0, %v8641_v25 }
  0x45   : > { %8387 = vmatprep.mubr.msk.bf16.mxu0 %vm1273_vm0, %v8642_v26 }
  0x4c   : > { %8388 = vmatmul.mubr.msk.bf16.gmra.mrb[20].mxu0 %vm1273_vm0, %v8643_v27 }
  0x4d   : > { %8391 = vmatprep.mubr.msk.bf16.mxu0 %vm1273_vm0, %v8644_v28  ;;  %v481_v28 = vld [vmem:[%s13271_s2 + $0x30] sm:$0xff] }
  0x54   : > { %8392 = vmatmul.mubr.msk.bf16.gmra.mrb[24].mxu0 %vm1273_vm0, %v8645_v29 }
  0x55   : > { %8395 = vmatprep.mubr.msk.bf16.mxu0 %vm1273_vm0, %v8646_v30  ;;  %v479_v30 = vld [vmem:[%s13271_s2 + $0x20] sm:$0xff] }
  0x5c   : > { %8396 = vmatmul.mubr.msk.bf16.gmra.mrb[28].mxu0 %vm1273_vm0, %v8647_v31 }
  0x5d   : > { %8399 = vmatprep.mubr.msk.bf16.mxu0 %vm1273_vm0, %v8648_v32 }
  0x64   : > { %8400 = vmatmul.mubr.msk.bf16.gmra.mrb[32].mxu0 %vm1273_vm0, %v8649_v33  ;;  %v482_v33 = vld [vmem:[%s13271_s2 + $0x38] sm:$0xff] }
  0x65   : > { %8403 = vmatprep.mubr.msk.bf16.mxu0 %vm1273_vm0, %v8650_v34 }
  0x6c   : > { %8404 = vmatmul.mubr.msk.bf16.gmra.mrb[36].mxu0 %vm1273_vm0, %v8651_v35 }
  0x6d   : > { %8407 = vmatprep.mubr.msk.bf16.mxu0 %vm1273_vm0, %v8652_v36  ;;  %v480_v36 = vld [vmem:[%s13271_s2 + $0x28] sm:$0xff] }
  0x74   : > { %8408 = vmatmul.mubr.msk.bf16.gmra.mrb[40].mxu0 %vm1273_vm0, %v8653_v37  ;;  %v8689_v37 = vld [vmem:[%s13270_s1 + $0x1c8] sm:$0xff]  }
  0x75   : > { %8411 = vmatprep.mubr.msk.bf16.mxu0 %vm1273_vm0, %v8654_v38 }
  0x7c   : > { %8412 = vmatmul.mubr.msk.bf16.gmra.mrb[44].mxu0 %vm1273_vm0, %v8655_v39 }
  0x7d   : > { %8415 = vmatprep.mubr.msk.bf16.mxu0 %vm1273_vm0, %v8656_v40  ;;  %v8690_v40 = vld [vmem:[%s13270_s1 + $0x1d0] sm:$0xff]  }
  0x84   : > { %8416 = vmatmul.mubr.msk.bf16.gmra.mrb[48].mxu0 %vm1273_vm0, %v8657_v41 }
  0x85   : > { %8419 = vmatprep.mubr.msk.bf16.mxu0 %vm1273_vm0, %v8658_v42 }
  0x8c   : > { %8420 = vmatmul.mubr.msk.bf16.gmra.mrb[52].mxu0 %vm1273_vm0, %v8659_v43 }
  0x8d   : > { %8423 = vmatprep.mubr.msk.bf16.mxu0 %vm1273_vm0, %v8660_v44 }
  0x94   : > { %8424 = vmatmul.mubr.msk.bf16.gmra.mrb[56].mxu0 %vm1273_vm0, %v8661_v45 }
  0x95   : > { %8427 = vmatprep.mubr.msk.bf16.mxu0 %vm1273_vm0, %v8662_v46 }
  0x9c   : > { %8428 = vmatmul.mubr.msk.bf16.gmra.mrb[60].mxu0 %vm1273_vm0, %v8663_v48 }
  0x9d   : > { %8431 = vmatprep.mubr.msk.bf16.mxu0 %vm1273_vm0, %v8664_v49 }
  0xa4   : > { %8432 = vmatmul.mubr.msk.bf16.gmra.mrb[64].mxu0 %vm1273_vm0, %v8665_v50  ;;  %v485_v50 = vld [vmem:[%s13271_s2 + $0x50] sm:$0xff] }
  0xa5   : > { %8435 = vmatprep.mubr.msk.bf16.mxu0 %vm1273_vm0, %v8666_v51 }
  0xac   : > { %8436 = vmatmul.mubr.msk.bf16.gmra.mrb[68].mxu0 %vm1273_vm0, %v8667_v52  ;;  %v483_v52 = vld [vmem:[%s13271_s2 + $0x40] sm:$0xff] }
  0xad   : > { %8439 = vmatprep.mubr.msk.bf16.mxu0 %vm1273_vm0, %v8668_v53 }
  0xb4   : > { %8440 = vmatmul.mubr.msk.bf16.gmra.mrb[72].mxu0 %vm1273_vm0, %v8669_v54 }
  0xb5   : > { %8443 = vmatprep.mubr.msk.bf16.mxu0 %vm1273_vm0, %v8670_v55  ;;  %v486_v55 = vld [vmem:[%s13271_s2 + $0x58] sm:$0xff] }
  0xbc   : > { %8444 = vmatmul.mubr.msk.bf16.gmra.mrb[76].mxu0 %vm1273_vm0, %v8671_v56 }
  0xbd   : > { %8447 = vmatprep.mubr.msk.bf16.mxu0 %vm1273_vm0, %v8672_v57 }
  0xc4   : > { %8448 = vmatmul.mubr.msk.bf16.gmra.mrb[80].mxu0 %vm1273_vm0, %v8673_v58 }
  0xc5   : > { %8451 = vmatprep.mubr.msk.bf16.mxu0 %vm1273_vm0, %v8674_v59  ;;  %v484_v59 = vld [vmem:[%s13271_s2 + $0x48] sm:$0xff] }
  0xcc   : > { %8452 = vmatmul.mubr.msk.bf16.gmra.mrb[84].mxu0 %vm1273_vm0, %v8675_v60  ;;  %v8691_v60 = vld [vmem:[%s13270_s1 + $0x1d8] sm:$0xff]  }
  0xcd   : > { %8455 = vmatprep.mubr.msk.bf16.mxu0 %vm1273_vm0, %v8676_v61 }
  0xd4   : > { %8456 = vmatmul.mubr.msk.bf16.gmra.mrb[88].mxu0 %vm1273_vm0, %v8677_v62 }
  0xd5   : > { %8459 = vmatprep.mubr.msk.bf16.mxu0 %vm1273_vm0, %v8678_v63 }
  0xdc   : > { %8460 = vmatmul.mubr.msk.bf16.gmra.mrb[92].mxu0 %vm1273_vm0, %v8679_v0 }
  0xdd   : > { %8463 = vmatprep.mubr.msk.bf16.mxu0 %vm1273_vm0, %v8680_v1  ;;  %v8692_v1 = vld [vmem:[%s13270_s1 + $0x1e0] sm:$0xff]  }
  0xe4   : > { %8464 = vmatmul.mubr.msk.bf16.gmra.mrb[96].mxu0 %vm1273_vm0, %v8681_v2 }
  0xe5   : > { %8467 = vmatprep.mubr.msk.bf16.mxu0 %vm1273_vm0, %v8682_v3 }
  0xec   : > { %8468 = vmatmul.mubr.msk.bf16.gmra.mrb[100].mxu0 %vm1273_vm0, %v8683_v4 }
  0xed   : > { %8471 = vmatprep.mubr.msk.bf16.mxu0 %vm1273_vm0, %v8684_v5 }
  0xf4   : > { %8472 = vmatmul.mubr.msk.bf16.gmra.mrb[104].mxu0 %vm1273_vm0, %v8685_v6 }
  0xf5   : > { %8475 = vmatprep.mubr.msk.bf16.mxu0 %vm1273_vm0, %v8686_v7 }
  0xf7   : > { %v8369_v10 = vpop.f32.mrb[0].mxu0 }
  0xf8   : > { %v1663_v12 = vadd.f32 %v8369_v10, %v477_v8  ;;  %v1654_v13 = vpop.f32.mrb[1].mxu0 }
  0xf9   : > { %v1655_v16 = vadd.f32 %v1654_v13, %v475_v9  ;;  %v8370_v17 = vpop.f32.mrb[2].mxu0 }
  0xfa   : > { %v2567_v19 = vsub.f32 0.0, %v1663_v12  ;;  %v1666_v20 = vadd.f32 %v8370_v17, %v478_v11  ;;  %v1657_v21 = vpop.f32.mrb[3].mxu0 }
  0xfb   : > { %v2565_v22 = vsub.f32 0.0, %v1655_v16  ;;  %v1658_v23 = vadd.f32 %v1657_v21, %v476_v14  ;;  %v489_v16 = vld [vmem:[%s13271_s2 + $0x70] sm:$0xff]  ;;  %v490_v21 = vld [vmem:[%s13271_s2 + $0x78] sm:$0xff] }
  0xfc   : > { %v2797_v24 = vmul.f32 1.442695, %v2567_v19  ;;  %v2568_v25 = vsub.f32 0.0, %v1666_v20  ;;  %8476 = vmatmul.mubr.msk.bf16.gmra.mrb[108].mxu0 %vm1273_vm0, %v8687_v15 }
  0xfd   : > { %v2793_v26 = vmul.f32 1.442695, %v2565_v22  ;;  %v2566_v27 = vsub.f32 0.0, %v1658_v23  ;;  %8479 = vmatprep.mubr.msk.bf16.mxu0 %vm1273_vm0, %v8688_v18  ;;  %v487_v18 = vld [vmem:[%s13271_s2 + $0x60] sm:$0xff] }
  0xfe   : > { %8959 = vpow2.f32 %v2797_v24  ;;  %v2799_v29 = vmul.f32 1.442695, %v2568_v25  ;;  %v488_v25 = vld [vmem:[%s13271_s2 + $0x68] sm:$0xff] }
  0xff   : > { %8961 = vpow2.f32 %v2793_v26  ;;  %v2795_v31 = vmul.f32 1.442695, %v2566_v27  ;;  %v8373_v32 = vpop.f32.mrb[4].mxu0  ;;  %v8693_v26 = vld [vmem:[%s13270_s1 + $0x1e8] sm:$0xff]  }
 0x100   : > { %8963 = vpow2.f32 %v2799_v29  ;;  %v1679_v34 = vadd.f32 %v8373_v32, %v481_v28  ;;  %v1670_v35 = vpop.f32.mrb[5].mxu0 }
 0x101   : > { %8965 = vpow2.f32 %v2795_v31  ;;  %v1671_v38 = vadd.f32 %v1670_v35, %v479_v30  ;;  %v8374_v39 = vpop.f32.mrb[6].mxu0  ;;  %v8694_v31 = vld [vmem:[%s13270_s1 + $0x1f0] sm:$0xff]  }
 0x102   : > { %v2571_v41 = vsub.f32 0.0, %v1679_v34  ;;  %v1682_v42 = vadd.f32 %v8374_v39, %v482_v33  ;;  %v1673_v43 = vpop.f32.mrb[7].mxu0 }
 0x103   : > { %v2569_v44 = vsub.f32 0.0, %v1671_v38  ;;  %v1674_v45 = vadd.f32 %v1673_v43, %v480_v36 }
 0x104   : > { %v2805_v46 = vmul.f32 1.442695, %v2571_v41  ;;  %v2572_v47 = vsub.f32 0.0, %v1682_v42  ;;  %8480 = vmatmul.mubr.msk.bf16.gmra.mrb[112].mxu0 %vm1273_vm0, %v8689_v37 }
 0x105   : > { %v2801_v48 = vmul.f32 1.442695, %v2569_v44  ;;  %v2570_v49 = vsub.f32 0.0, %v1674_v45  ;;  %8483 = vmatprep.mubr.msk.bf16.mxu0 %vm1273_vm0, %v8690_v40 }
 0x106   : > { %8967 = vpow2.f32 %v2805_v46  ;;  %v2807_v51 = vmul.f32 1.442695, %v2572_v47  ;;  %v493_v47 = vld [vmem:[%s13271_s2 + $0x90] sm:$0xff] }
 0x107   : > { %8969 = vpow2.f32 %v2801_v48  ;;  %v2803_v53 = vmul.f32 1.442695, %v2570_v49  ;;  %v8377_v54 = vpop.f32.mrb[8].mxu0 }
 0x108   : > { %v8960_v56 = vpop.eup %8959  ;;  %8971 = vpow2.f32 %v2807_v51  ;;  %v1695_v57 = vadd.f32 %v8377_v54, %v485_v50  ;;  %v1686_v58 = vpop.f32.mrb[9].mxu0  ;;  %v491_v50 = vld [vmem:[%s13271_s2 + $0x80] sm:$0xff]  ;;  %v494_v54 = vld [vmem:[%s13271_s2 + $0x98] sm:$0xff] }
 0x109   : > { %v8962_v61 = vpop.eup %8961  ;;  %v3251_v62 = vadd.f32 1.0, %v8960_v56  ;;  %8973 = vpow2.f32 %v2803_v53  ;;  %v1687_v63 = vadd.f32 %v1686_v58, %v483_v52  ;;  %v8378_v0 = vpop.f32.mrb[10].mxu0  ;;  %v492_v58 = vld [vmem:[%s13271_s2 + $0x88] sm:$0xff] }
 0x10a   : > { %v8964_v2 = vpop.eup %8963  ;;  %v3249_v3 = vadd.f32 1.0, %v8962_v61  ;;  %v2575_v4 = vsub.f32 0.0, %v1695_v57  ;;  %v1698_v5 = vadd.f32 %v8378_v0, %v486_v55  ;;  %v1689_v6 = vpop.f32.mrb[11].mxu0 }
 0x10b   : > { %v8966_v7 = vpop.eup %8965  ;;  %8975 = vrcp.f32 %v3251_v62  ;;  %v3252_v8 = vadd.f32 1.0, %v8964_v2  ;;  %v2573_v9 = vsub.f32 0.0, %v1687_v63  ;;  %v1690_v10 = vadd.f32 %v1689_v6, %v484_v59  ;;  %v8695_v59 = vld [vmem:[%s13270_s1 + $0x1f8] sm:$0xff]   ;;  %v8696_v63 = vld [vmem:[%s13270_s1 + $0x200] sm:$0xff]  }
 0x10c   : > { %8977 = vrcp.f32 %v3249_v3  ;;  %v3250_v11 = vadd.f32 1.0, %v8966_v7  ;;  %v2813_v12 = vmul.f32 1.442695, %v2575_v4  ;;  %v2576_v13 = vsub.f32 0.0, %v1698_v5  ;;  %8484 = vmatmul.mubr.msk.bf16.gmra.mrb[116].mxu0 %vm1273_vm0, %v8691_v60 }
 0x10d   : > { %8979 = vrcp.f32 %v3252_v8  ;;  %v2809_v14 = vmul.f32 1.442695, %v2573_v9  ;;  %v2574_v15 = vsub.f32 0.0, %v1690_v10  ;;  %8487 = vmatprep.mubr.msk.bf16.mxu0 %vm1273_vm0, %v8692_v1 }
 0x10e   : > { %8981 = vrcp.f32 %v3250_v11  ;;  %v2815_v17 = vmul.f32 1.442695, %v2576_v13 }
 0x10f   : > { %8983 = vpow2.f32 %v2813_v12  ;;  %v2811_v19 = vmul.f32 1.442695, %v2574_v15  ;;  %v8381_v20 = vpop.f32.mrb[12].mxu0 }
 0x110   : > { %v8968_v22 = vpop.eup %8967  ;;  %8985 = vpow2.f32 %v2809_v14  ;;  %v1711_v23 = vadd.f32 %v8381_v20, %v489_v16  ;;  %v1702_v24 = vpop.f32.mrb[13].mxu0  ;;  %v495_v20 = vld [vmem:[%s13271_s2 + $0xa0] sm:$0xff] }
 0x111   : > { %v8970_v27 = vpop.eup %8969  ;;  %v3255_v28 = vadd.f32 1.0, %v8968_v22  ;;  %8987 = vpow2.f32 %v2815_v17  ;;  %v1703_v29 = vadd.f32 %v1702_v24, %v487_v18  ;;  %v8382_v30 = vpop.f32.mrb[14].mxu0  ;;  %v497_v17 = vld [vmem:[%s13271_s2 + $0xb0] sm:$0xff]  ;;  %v498_v24 = vld [vmem:[%s13271_s2 + $0xb8] sm:$0xff] }
 0x112   : > { %v8972_v32 = vpop.eup %8971  ;;  %v3253_v33 = vadd.f32 1.0, %v8970_v27  ;;  %8989 = vpow2.f32 %v2811_v19  ;;  %v2579_v34 = vsub.f32 0.0, %v1711_v23  ;;  %v1714_v35 = vadd.f32 %v8382_v30, %v490_v21  ;;  %v1705_v36 = vpop.f32.mrb[15].mxu0 }
 0x113   : > { %v8974_v37 = vpop.eup %8973  ;;  %8991 = vrcp.f32 %v3255_v28  ;;  %v3256_v38 = vadd.f32 1.0, %v8972_v32  ;;  %v2577_v39 = vsub.f32 0.0, %v1703_v29  ;;  %v1706_v40 = vadd.f32 %v1705_v36, %v488_v25  ;;  %v496_v28 = vld [vmem:[%s13271_s2 + $0xa8] sm:$0xff] }
 0x114   : > { %8993 = vrcp.f32 %v3253_v33  ;;  %v3254_v41 = vadd.f32 1.0, %v8974_v37  ;;  %v2821_v42 = vmul.f32 1.442695, %v2579_v34  ;;  %v2580_v43 = vsub.f32 0.0, %v1714_v35  ;;  %8488 = vmatmul.mubr.msk.bf16.gmra.mrb[120].mxu0 %vm1273_vm0, %v8693_v26  ;;  %v8697_v29 = vld [vmem:[%s13270_s1 + $0x208] sm:$0xff]   ;;  %v8698_v33 = vld [vmem:[%s13270_s1 + $0x210] sm:$0xff]  }
 0x115   : > { %v8976_v44 = vpop.eup %8975  ;;  %8995 = vrcp.f32 %v3256_v38  ;;  %v2817_v45 = vmul.f32 1.442695, %v2577_v39  ;;  %v2578_v46 = vsub.f32 0.0, %v1706_v40  ;;  %8491 = vmatprep.mubr.msk.bf16.mxu0 %vm1273_vm0, %v8694_v31 }
 0x116   : > { %v8978_v48 = vpop.eup %8977  ;;  %8997 = vrcp.f32 %v3254_v41  ;;  %v2823_v49 = vmul.f32 1.442695, %v2580_v43  ;;  %3945 = vperm.xlu1 %8630, %v8976_v44  }
 0x117   : > { %v8980_v51 = vpop.eup %8979  ;;  %8999 = vpow2.f32 %v2821_v42  ;;  %v2819_v52 = vmul.f32 1.442695, %v2578_v46  ;;  %v8385_v53 = vpop.f32.mrb[16].mxu0  ;;  %3935 = vperm.xlu0 %8631, %v8978_v48  }
 0x118   : > { %v8982_v55 = vpop.eup %8981  ;;  %9001 = vpow2.f32 %v2817_v45  ;;  %v1727_v56 = vadd.f32 %v8385_v53, %v493_v47  ;;  %v1718_v57 = vpop.f32.mrb[17].mxu0  ;;  %v499_v53 = vld [vmem:[%s13271_s2 + $0xc0] sm:$0xff] }
 0x119   : > { %v8984_v60 = vpop.eup %8983  ;;  %9003 = vpow2.f32 %v2823_v49  ;;  %v1719_v61 = vadd.f32 %v1718_v57, %v491_v50  ;;  %v8386_v62 = vpop.f32.mrb[18].mxu0  ;;  %v501_v50 = vld [vmem:[%s13271_s2 + $0xd0] sm:$0xff]  ;;  %v502_v57 = vld [vmem:[%s13271_s2 + $0xd8] sm:$0xff] }
 0x11a   : > { %v8986_v0 = vpop.eup %8985  ;;  %v3259_v1 = vadd.f32 1.0, %v8984_v60  ;;  %9005 = vpow2.f32 %v2819_v52  ;;  %v2583_v2 = vsub.f32 0.0, %v1727_v56  ;;  %v1730_v3 = vadd.f32 %v8386_v62, %v494_v54  ;;  %3950 = vperm.xlu1 %8630, %v8980_v51   ;;  %v1721_v4 = vpop.f32.mrb[19].mxu0  ;;  %v8699_v62 = vld [vmem:[%s13270_s1 + $0x218] sm:$0xff]  }
 0x11b   : > { %v8988_v5 = vpop.eup %8987  ;;  %v3257_v6 = vadd.f32 1.0, %v8986_v0  ;;  %v2581_v7 = vsub.f32 0.0, %v1719_v61  ;;  %v1722_v8 = vadd.f32 %v1721_v4, %v492_v58  ;;  %3940 = vperm.xlu0 %8631, %v8982_v55   ;;  %v500_v61 = vld [vmem:[%s13271_s2 + $0xc8] sm:$0xff] }
 0x11c   : > { %v8990_v9 = vpop.eup %8989  ;;  %9007 = vrcp.f32 %v3259_v1  ;;  %v3260_v10 = vadd.f32 1.0, %v8988_v5  ;;  %v2829_v11 = vmul.f32 1.442695, %v2583_v2  ;;  %v2584_v12 = vsub.f32 0.0, %v1730_v3  ;;  %8492 = vmatmul.mubr.msk.bf16.gmra.mrb[124].mxu0 %vm1273_vm0, %v8695_v59  ;;  %v8700_v2 = vld [vmem:[%s13270_s1 + $0x220] sm:$0xff]  }
 0x11d   : > { %v8992_v13 = vpop.eup %8991  ;;  %9009 = vrcp.f32 %v3257_v6  ;;  %v3258_v14 = vadd.f32 1.0, %v8990_v9  ;;  %v2825_v15 = vmul.f32 1.442695, %v2581_v7  ;;  %v2582_v16 = vsub.f32 0.0, %v1722_v8  ;;  %8495 = vmatprep.mubr.msk.bf16.mxu0 %vm1273_vm0, %v8696_v63 }
 0x11e   : > { %v8994_v18 = vpop.eup %8993  ;;  %9011 = vrcp.f32 %v3260_v10  ;;  %v2831_v19 = vmul.f32 1.442695, %v2584_v12 }
 0x11f   : > { %v8996_v21 = vpop.eup %8995  ;;  %9013 = vrcp.f32 %v3258_v14  ;;  %v2827_v22 = vmul.f32 1.442695, %v2582_v16  ;;  %v8389_v23 = vpop.f32.mrb[20].mxu0  ;;  %3965 = vperm.xlu0 %8631, %v8992_v13  }
 0x120   : > { %v8998_v25 = vpop.eup %8997  ;;  %9015 = vpow2.f32 %v2829_v11  ;;  %v1743_v26 = vadd.f32 %v8389_v23, %v497_v17  ;;  %3970 = vperm.xlu1 %8630, %v8996_v21   ;;  %v1734_v27 = vpop.f32.mrb[21].mxu0 }
 0x121   : > { %v9000_v30 = vpop.eup %8999  ;;  %9017 = vpow2.f32 %v2825_v15  ;;  %v1735_v31 = vadd.f32 %v1734_v27, %v495_v20  ;;  %v8390_v32 = vpop.f32.mrb[22].mxu0 }
 0x122   : > { %v9002_v34 = vpop.eup %9001  ;;  %v3263_v35 = vadd.f32 1.0, %v9000_v30  ;;  %9019 = vpow2.f32 %v2831_v19  ;;  %v2587_v36 = vsub.f32 0.0, %v1743_v26  ;;  %v1746_v37 = vadd.f32 %v8390_v32, %v498_v24  ;;  %v1737_v38 = vpop.f32.mrb[23].mxu0  ;;  %v506_v26 = vld [vmem:[%s13271_s2 + $0xf8] sm:$0xff]  ;;  %v8701_v32 = vld [vmem:[%s13270_s1 + $0x228] sm:$0xff]  }
 0x123   : > { %v9004_v39 = vpop.eup %9003  ;;  %v3261_v40 = vadd.f32 1.0, %v9002_v34  ;;  %9021 = vpow2.f32 %v2827_v22  ;;  %v2585_v41 = vsub.f32 0.0, %v1735_v31  ;;  %v1738_v42 = vadd.f32 %v1737_v38, %v496_v28  ;;  %3955 = vperm.xlu0 %8631, %v8994_v18   ;;  %v505_v18 = vld [vmem:[%s13271_s2 + $0xf0] sm:$0xff]  ;;  %v503_v22 = vld [vmem:[%s13271_s2 + $0xe0] sm:$0xff]  ;;  %v504_v31 = vld [vmem:[%s13271_s2 + $0xe8] sm:$0xff] }
 0x124   : > { %v9006_v43 = vpop.eup %9005  ;;  %9023 = vrcp.f32 %v3263_v35  ;;  %v3264_v44 = vadd.f32 1.0, %v9004_v39  ;;  %v2837_v45 = vmul.f32 1.442695, %v2587_v36  ;;  %v2588_v46 = vsub.f32 0.0, %v1746_v37  ;;  %8496 = vmatmul.mubr.msk.bf16.gmra.mrb[128].mxu0 %vm1273_vm0, %v8697_v29  ;;  %3960 = vperm.xlu1 %8630, %v8998_v25   ;;  %v8702_v36 = vld [vmem:[%s13270_s1 + $0x230] sm:$0xff]  }
 0x125   : > { %9025 = vrcp.f32 %v3261_v40  ;;  %v3262_v47 = vadd.f32 1.0, %v9006_v43  ;;  %v2833_v48 = vmul.f32 1.442695, %v2585_v41  ;;  %v2586_v49 = vsub.f32 0.0, %v1738_v42  ;;  %8499 = vmatprep.mubr.msk.bf16.mxu0 %vm1273_vm0, %v8698_v33 }
 0x126   : > { %v9008_v51 = vpop.eup %9007  ;;  %9027 = vrcp.f32 %v3264_v44  ;;  %v2839_v52 = vmul.f32 1.442695, %v2588_v46 }
 0x127   : > { %v9010_v54 = vpop.eup %9009  ;;  %9029 = vrcp.f32 %v3262_v47  ;;  %v2835_v55 = vmul.f32 1.442695, %v2586_v49  ;;  %v8393_v56 = vpop.f32.mrb[24].mxu0  ;;  %3985 = vperm.xlu0 %8631, %v9008_v51  }
 0x128   : > { %v9012_v58 = vpop.eup %9011  ;;  %9031 = vpow2.f32 %v2837_v45  ;;  %v1759_v59 = vadd.f32 %v8393_v56, %v501_v50  ;;  %v1750_v60 = vpop.f32.mrb[25].mxu0 }
 0x129   : > { %v9014_v63 = vpop.eup %9013  ;;  %9033 = vpow2.f32 %v2833_v48  ;;  %v1751_v0 = vadd.f32 %v1750_v60, %v499_v53  ;;  %3990 = vperm.xlu1 %8630, %v9012_v58   ;;  %v8394_v1 = vpop.f32.mrb[26].mxu0 }
 0x12a   : > { %v9016_v3 = vpop.eup %9015  ;;  %9035 = vpow2.f32 %v2839_v52  ;;  %v2591_v4 = vsub.f32 0.0, %v1759_v59  ;;  %v1762_v5 = vadd.f32 %v8394_v1, %v502_v57  ;;  %v1753_v6 = vpop.f32.mrb[27].mxu0  ;;  %v509_v52 = vld [vmem:[%s13271_s2 + $0x110] sm:$0xff]  ;;  %v510_v59 = vld [vmem:[%s13271_s2 + $0x118] sm:$0xff] }
 0x12b   : > { %v9018_v7 = vpop.eup %9017  ;;  %v3267_v8 = vadd.f32 1.0, %v9016_v3  ;;  %9037 = vpow2.f32 %v2835_v55  ;;  %v2589_v9 = vsub.f32 0.0, %v1751_v0  ;;  %v1754_v10 = vadd.f32 %v1753_v6, %v500_v61  ;;  %3975 = vperm.xlu0 %8631, %v9010_v54   ;;  %v507_v55 = vld [vmem:[%s13271_s2 + $0x100] sm:$0xff]  ;;  %v508_v0 = vld [vmem:[%s13271_s2 + $0x108] sm:$0xff]  ;;  %v8703_v1 = vld [vmem:[%s13270_s1 + $0x238] sm:$0xff]  }
 0x12c   : > { %v9020_v11 = vpop.eup %9019  ;;  %v3265_v12 = vadd.f32 1.0, %v9018_v7  ;;  %v2592_v13 = vsub.f32 0.0, %v1762_v5  ;;  %8500 = vmatmul.mubr.msk.bf16.gmra.mrb[132].mxu0 %vm1273_vm0, %v8699_v62  ;;  %v2845_v16 = vmul.f32 1.442695, %v2591_v4  ;;  %v8704_v5 = vld [vmem:[%s13270_s1 + $0x240] sm:$0xff]  }
 0x12d   : > { %v9022_v14 = vpop.eup %9021  ;;  %9039 = vrcp.f32 %v3267_v8  ;;  %v3268_v15 = vadd.f32 1.0, %v9020_v11  ;;  %v2590_v17 = vsub.f32 0.0, %v1754_v10  ;;  %3980 = vperm.xlu1 %8630, %v9014_v63   ;;  %8503 = vmatprep.mubr.msk.bf16.mxu0 %vm1273_vm0, %v8700_v2  ;;  %v2841_v21 = vmul.f32 1.442695, %v2589_v9 }
 0x12e   : > { %v9024_v19 = vpop.eup %9023  ;;  %9041 = vrcp.f32 %v3265_v12  ;;  %v3266_v20 = vadd.f32 1.0, %v9022_v14  ;;  %v2847_v24 = vmul.f32 1.442695, %v2592_v13 }
 0x12f   : > { %v9026_v23 = vpop.eup %9025  ;;  %9043 = vrcp.f32 %v3268_v15  ;;  %v8397_v25 = vpop.f32.mrb[28].mxu0  ;;  %4005 = vperm.xlu0 %8631, %v9024_v19   ;;  %v2843_v28 = vmul.f32 1.442695, %v2590_v17  ;;  %v513_v19 = vld [vmem:[%s13271_s2 + $0x130] sm:$0xff] }
 0x130   : > { %v9028_v27 = vpop.eup %9027  ;;  %9045 = vrcp.f32 %v3266_v20  ;;  %v1775_v29 = vadd.f32 %v8397_v25, %v505_v18  ;;  %v1766_v30 = vpop.f32.mrb[29].mxu0 }
 0x131   : > { %v9030_v33 = vpop.eup %9029  ;;  %9047 = vpow2.f32 %v2845_v16  ;;  %v1767_v34 = vadd.f32 %v1766_v30, %v503_v22  ;;  %4010 = vperm.xlu1 %8630, %v9028_v27   ;;  %v8398_v35 = vpop.f32.mrb[30].mxu0 }
 0x132   : > { %v9032_v37 = vpop.eup %9031  ;;  %9049 = vpow2.f32 %v2841_v21  ;;  %v2595_v38 = vsub.f32 0.0, %v1775_v29  ;;  %v1778_v39 = vadd.f32 %v8398_v35, %v506_v26  ;;  %v1769_v40 = vpop.f32.mrb[31].mxu0 }
 0x133   : > { %v9034_v41 = vpop.eup %9033  ;;  %v3271_v42 = vadd.f32 1.0, %v9032_v37  ;;  %9051 = vpow2.f32 %v2847_v24  ;;  %v2593_v43 = vsub.f32 0.0, %v1767_v34  ;;  %v1770_v44 = vadd.f32 %v1769_v40, %v504_v31  ;;  %3995 = vperm.xlu0 %8631, %v9026_v23   ;;  %v511_v23 = vld [vmem:[%s13271_s2 + $0x120] sm:$0xff]  ;;  %v8705_v34 = vld [vmem:[%s13270_s1 + $0x248] sm:$0xff]  }
 0x134   : > { %v9036_v45 = vpop.eup %9035  ;;  %v3269_v46 = vadd.f32 1.0, %v9034_v41  ;;  %9053 = vpow2.f32 %v2843_v28  ;;  %v2596_v47 = vsub.f32 0.0, %v1778_v39  ;;  %8504 = vmatmul.mubr.msk.bf16.gmra.mrb[136].mxu0 %vm1273_vm0, %v8701_v32  ;;  %v2853_v50 = vmul.f32 1.442695, %v2595_v38  ;;  %v514_v28 = vld [vmem:[%s13271_s2 + $0x138] sm:$0xff]  ;;  %v8706_v39 = vld [vmem:[%s13270_s1 + $0x250] sm:$0xff]  }
 0x135   : > { %v9038_v48 = vpop.eup %9037  ;;  %9055 = vrcp.f32 %v3271_v42  ;;  %v3272_v49 = vadd.f32 1.0, %v9036_v45  ;;  %v2594_v51 = vsub.f32 0.0, %v1770_v44  ;;  %4000 = vperm.xlu1 %8630, %v9030_v33   ;;  %8507 = vmatprep.mubr.msk.bf16.mxu0 %vm1273_vm0, %v8702_v36  ;;  %v2849_v54 = vmul.f32 1.442695, %v2593_v43  ;;  %v512_v33 = vld [vmem:[%s13271_s2 + $0x128] sm:$0xff] }
 0x136   : > { %9057 = vrcp.f32 %v3269_v46  ;;  %v3270_v53 = vadd.f32 1.0, %v9038_v48  ;;  %v2855_v57 = vmul.f32 1.442695, %v2596_v47 }
 0x137   : > { %v9040_v56 = vpop.eup %9039  ;;  %9059 = vrcp.f32 %v3272_v49  ;;  %v8401_v58 = vpop.f32.mrb[32].mxu0  ;;  %v2851_v61 = vmul.f32 1.442695, %v2594_v51 }
 0x138   : > { %v9042_v60 = vpop.eup %9041  ;;  %9061 = vrcp.f32 %v3270_v53  ;;  %v1791_v62 = vadd.f32 %v8401_v58, %v509_v52  ;;  %v1782_v63 = vpop.f32.mrb[33].mxu0  ;;  %v517_v53 = vld [vmem:[%s13271_s2 + $0x150] sm:$0xff] }
 0x139   : > { %v9044_v2 = vpop.eup %9043  ;;  %9063 = vpow2.f32 %v2853_v50  ;;  %4015 = vperm.xlu0 %8631, %v9042_v60   ;;  %v1783_v3 = vadd.f32 %v1782_v63, %v507_v55  ;;  %v8402_v4 = vpop.f32.mrb[34].mxu0 }
 0x13a   : > { %v9046_v6 = vpop.eup %9045  ;;  %9065 = vpow2.f32 %v2849_v54  ;;  %v2599_v7 = vsub.f32 0.0, %v1791_v62  ;;  %v1794_v8 = vadd.f32 %v8402_v4, %v510_v59  ;;  %v1785_v9 = vpop.f32.mrb[35].mxu0 }
 0x13b   : > { %v9048_v10 = vpop.eup %9047  ;;  %9067 = vpow2.f32 %v2855_v57  ;;  %v2597_v11 = vsub.f32 0.0, %v1783_v3  ;;  %4020 = vperm.xlu1 %8630, %v9046_v6   ;;  %v1786_v12 = vadd.f32 %v1785_v9, %v508_v0  ;;  %v515_v57 = vld [vmem:[%s13271_s2 + $0x140] sm:$0xff]  ;;  %v8707_v3 = vld [vmem:[%s13270_s1 + $0x258] sm:$0xff]  }
 0x13c   : > { %v9050_v13 = vpop.eup %9049  ;;  %v3275_v14 = vadd.f32 1.0, %v9048_v10  ;;  %9069 = vpow2.f32 %v2851_v61  ;;  %v2600_v15 = vsub.f32 0.0, %v1794_v8  ;;  %8508 = vmatmul.mubr.msk.bf16.gmra.mrb[140].mxu0 %vm1273_vm0, %v8703_v1  ;;  %v2861_v22 = vmul.f32 1.442695, %v2599_v7  ;;  %v518_v61 = vld [vmem:[%s13271_s2 + $0x158] sm:$0xff]  ;;  %v8708_v8 = vld [vmem:[%s13270_s1 + $0x260] sm:$0xff]  }
 0x13d   : > { %v9052_v16 = vpop.eup %9051  ;;  %v3273_v17 = vadd.f32 1.0, %v9050_v13  ;;  %v2598_v18 = vsub.f32 0.0, %v1786_v12  ;;  %4025 = vperm.xlu0 %8631, %v9040_v56   ;;  %8511 = vmatprep.mubr.msk.bf16.mxu0 %vm1273_vm0, %v8704_v5  ;;  %v2857_v26 = vmul.f32 1.442695, %v2597_v11 }
 0x13e   : > { %v9054_v20 = vpop.eup %9053  ;;  %9071 = vrcp.f32 %v3275_v14  ;;  %v3276_v21 = vadd.f32 1.0, %v9052_v16  ;;  %v2863_v30 = vmul.f32 1.442695, %v2600_v15 }
 0x13f   : > { %v9056_v24 = vpop.eup %9055  ;;  %9073 = vrcp.f32 %v3273_v17  ;;  %v3274_v25 = vadd.f32 1.0, %v9054_v20  ;;  %4030 = vperm.xlu1 %8630, %v9044_v2   ;;  %v8405_v27 = vpop.f32.mrb[36].mxu0  ;;  %v2859_v36 = vmul.f32 1.442695, %v2598_v18  ;;  %v516_v2 = vld [vmem:[%s13271_s2 + $0x148] sm:$0xff] }
 0x140   : > { %v9058_v29 = vpop.eup %9057  ;;  %9075 = vrcp.f32 %v3276_v21  ;;  %v1807_v31 = vadd.f32 %v8405_v27, %v513_v19  ;;  %v1798_v32 = vpop.f32.mrb[37].mxu0 }
 0x141   : > { %v9060_v35 = vpop.eup %9059  ;;  %9077 = vrcp.f32 %v3274_v25  ;;  %4035 = vperm.xlu0 %8631, %v9058_v29   ;;  %v1799_v37 = vadd.f32 %v1798_v32, %v511_v23  ;;  %v8406_v38 = vpop.f32.mrb[38].mxu0  ;;  %v519_v25 = vld [vmem:[%s13271_s2 + $0x160] sm:$0xff] }
 0x142   : > { %v9062_v40 = vpop.eup %9061  ;;  %9079 = vpow2.f32 %v2861_v22  ;;  %v2603_v41 = vsub.f32 0.0, %v1807_v31  ;;  %v1810_v42 = vadd.f32 %v8406_v38, %v514_v28  ;;  %v1801_v43 = vpop.f32.mrb[39].mxu0  ;;  %v521_v22 = vld [vmem:[%s13271_s2 + $0x170] sm:$0xff] }
 0x143   : > { %v9064_v44 = vpop.eup %9063  ;;  %9081 = vpow2.f32 %v2857_v26  ;;  %v2601_v45 = vsub.f32 0.0, %v1799_v37  ;;  %4040 = vperm.xlu1 %8630, %v9062_v40   ;;  %v1802_v46 = vadd.f32 %v1801_v43, %v512_v33  ;;  %v8709_v37 = vld [vmem:[%s13270_s1 + $0x268] sm:$0xff]  }
 0x144   : > { %v9066_v47 = vpop.eup %9065  ;;  %v3279_v48 = vadd.f32 1.0, %v9064_v44  ;;  %9083 = vpow2.f32 %v2863_v30  ;;  %v2604_v49 = vsub.f32 0.0, %v1810_v42  ;;  %8512 = vmatmul.mubr.msk.bf16.gmra.mrb[144].mxu0 %vm1273_vm0, %v8705_v34  ;;  %v2869_v56 = vmul.f32 1.442695, %v2603_v41  ;;  %v522_v30 = vld [vmem:[%s13271_s2 + $0x178] sm:$0xff]  ;;  %v8710_v42 = vld [vmem:[%s13270_s1 + $0x270] sm:$0xff]  }
 0x145   : > { %v9068_v50 = vpop.eup %9067  ;;  %v3277_v51 = vadd.f32 1.0, %v9066_v47  ;;  %9085 = vpow2.f32 %v2859_v36  ;;  %v2602_v52 = vsub.f32 0.0, %v1802_v46  ;;  %4045 = vperm.xlu0 %8631, %v9056_v24   ;;  %8515 = vmatprep.mubr.msk.bf16.mxu0 %vm1273_vm0, %v8706_v39  ;;  %v2865_v59 = vmul.f32 1.442695, %v2601_v45  ;;  %v520_v36 = vld [vmem:[%s13271_s2 + $0x168] sm:$0xff] }
 0x146   : > { %v9070_v54 = vpop.eup %9069  ;;  %9087 = vrcp.f32 %v3279_v48  ;;  %v3280_v55 = vadd.f32 1.0, %v9068_v50  ;;  %v2871_v63 = vmul.f32 1.442695, %v2604_v49 }
 0x147   : > { %9089 = vrcp.f32 %v3277_v51  ;;  %v3278_v58 = vadd.f32 1.0, %v9070_v54  ;;  %4050 = vperm.xlu1 %8630, %v9060_v35   ;;  %v8409_v60 = vpop.f32.mrb[40].mxu0  ;;  %v2867_v5 = vmul.f32 1.442695, %v2602_v52 }
 0x148   : > { %v9072_v62 = vpop.eup %9071  ;;  %9091 = vrcp.f32 %v3280_v55  ;;  %v1823_v0 = vadd.f32 %v8409_v60, %v517_v53  ;;  %v1814_v1 = vpop.f32.mrb[41].mxu0  ;;  %v525_v55 = vld [vmem:[%s13271_s2 + $0x190] sm:$0xff] }
 0x149   : > { %v9074_v4 = vpop.eup %9073  ;;  %9093 = vrcp.f32 %v3278_v58  ;;  %v1815_v6 = vadd.f32 %v1814_v1, %v515_v57  ;;  %v8410_v7 = vpop.f32.mrb[42].mxu0 }
 0x14a   : > { %v9076_v9 = vpop.eup %9075  ;;  %9095 = vpow2.f32 %v2869_v56  ;;  %v2607_v10 = vsub.f32 0.0, %v1823_v0  ;;  %4055 = vperm.xlu0 %8631, %v9074_v4   ;;  %v1826_v11 = vadd.f32 %v8410_v7, %v518_v61  ;;  %v1817_v12 = vpop.f32.mrb[43].mxu0  ;;  %v8711_v0 = vld [vmem:[%s13270_s1 + $0x278] sm:$0xff]  }
 0x14b   : > { %v9078_v13 = vpop.eup %9077  ;;  %9097 = vpow2.f32 %v2865_v59  ;;  %v2605_v14 = vsub.f32 0.0, %v1815_v6  ;;  %v1818_v15 = vadd.f32 %v1817_v12, %v516_v2  ;;  %v523_v59 = vld [vmem:[%s13271_s2 + $0x180] sm:$0xff]  ;;  %v524_v6 = vld [vmem:[%s13271_s2 + $0x188] sm:$0xff] }
 0x14c   : > { %v9080_v16 = vpop.eup %9079  ;;  %9099 = vpow2.f32 %v2871_v63  ;;  %v2877_v17 = vmul.f32 1.442695, %v2607_v10  ;;  %v2608_v18 = vsub.f32 0.0, %v1826_v11  ;;  %4060 = vperm.xlu1 %8630, %v9078_v13   ;;  %8516 = vmatmul.mubr.msk.bf16.gmra.mrb[148].mxu0 %vm1273_vm0, %v8707_v3  ;;  %v526_v63 = vld [vmem:[%s13271_s2 + $0x198] sm:$0xff]  ;;  %v8712_v12 = vld [vmem:[%s13270_s1 + $0x280] sm:$0xff]  }
 0x14d   : > { %v9082_v19 = vpop.eup %9081  ;;  %v3283_v20 = vadd.f32 1.0, %v9080_v16  ;;  %9101 = vpow2.f32 %v2867_v5  ;;  %v2606_v21 = vsub.f32 0.0, %v1818_v15  ;;  %8519 = vmatprep.mubr.msk.bf16.mxu0 %vm1273_vm0, %v8708_v8  ;;  %v2873_v28 = vmul.f32 1.442695, %v2605_v14 }
 0x14e   : > { %v9084_v23 = vpop.eup %9083  ;;  %v3281_v24 = vadd.f32 1.0, %v9082_v19  ;;  %9103 = vpow2.f32 %v2877_v17  ;;  %4065 = vperm.xlu0 %8631, %v9072_v62   ;;  %v2879_v33 = vmul.f32 1.442695, %v2608_v18 }
 0x14f   : > { %v9086_v26 = vpop.eup %9085  ;;  %9105 = vrcp.f32 %v3283_v20  ;;  %v3284_v27 = vadd.f32 1.0, %v9084_v23  ;;  %v8413_v29 = vpop.f32.mrb[44].mxu0  ;;  %v2875_v39 = vmul.f32 1.442695, %v2606_v21 }
 0x150   : > { %v9088_v31 = vpop.eup %9087  ;;  %9107 = vrcp.f32 %v3281_v24  ;;  %v3282_v32 = vadd.f32 1.0, %v9086_v26  ;;  %4070 = vperm.xlu1 %8630, %v9076_v9   ;;  %v1839_v34 = vadd.f32 %v8413_v29, %v521_v22  ;;  %v1830_v35 = vpop.f32.mrb[45].mxu0  ;;  %v527_v29 = vld [vmem:[%s13271_s2 + $0x1a0] sm:$0xff] }
 0x151   : > { %v9090_v38 = vpop.eup %9089  ;;  %9109 = vrcp.f32 %v3284_v27  ;;  %v1831_v40 = vadd.f32 %v1830_v35, %v519_v25  ;;  %v8414_v41 = vpop.f32.mrb[46].mxu0  ;;  %v529_v25 = vld [vmem:[%s13271_s2 + $0x1b0] sm:$0xff] }
 0x152   : > { %v9092_v43 = vpop.eup %9091  ;;  %9111 = vrcp.f32 %v3282_v32  ;;  %v2611_v44 = vsub.f32 0.0, %v1839_v34  ;;  %4075 = vperm.xlu0 %8631, %v9090_v38   ;;  %v1842_v45 = vadd.f32 %v8414_v41, %v522_v30  ;;  %v1833_v46 = vpop.f32.mrb[47].mxu0  ;;  %v8713_v34 = vld [vmem:[%s13270_s1 + $0x288] sm:$0xff]   ;;  %v8714_v41 = vld [vmem:[%s13270_s1 + $0x290] sm:$0xff]  }
 0x153   : > { %v9094_v47 = vpop.eup %9093  ;;  %9113 = vpow2.f32 %v2873_v28  ;;  %v1834_v48 = vadd.f32 %v1833_v46, %v520_v36  ;;  %v2609_v51 = vsub.f32 0.0, %v1831_v40  ;;  %v528_v40 = vld [vmem:[%s13271_s2 + $0x1a8] sm:$0xff] }
 0x154   : > { %v9096_v49 = vpop.eup %9095  ;;  %9115 = vpow2.f32 %v2879_v33  ;;  %v2885_v50 = vmul.f32 1.442695, %v2611_v44  ;;  %4080 = vperm.xlu1 %8630, %v9094_v47   ;;  %8520 = vmatmul.mubr.msk.bf16.gmra.mrb[152].mxu0 %vm1273_vm0, %v8709_v37  ;;  %v2612_v54 = vsub.f32 0.0, %v1842_v45  ;;  %v530_v33 = vld [vmem:[%s13271_s2 + $0x1b8] sm:$0xff] }
 0x155   : > { %v9098_v52 = vpop.eup %9097  ;;  %v3287_v53 = vadd.f32 1.0, %v9096_v49  ;;  %9117 = vpow2.f32 %v2875_v39  ;;  %8523 = vmatprep.mubr.msk.bf16.mxu0 %vm1273_vm0, %v8710_v42  ;;  %v2610_v58 = vsub.f32 0.0, %v1834_v48  ;;  %v2881_v3 = vmul.f32 1.442695, %v2609_v51 }
 0x156   : > { %v9100_v56 = vpop.eup %9099  ;;  %v3285_v57 = vadd.f32 1.0, %v9098_v52  ;;  %9119 = vpow2.f32 %v2885_v50  ;;  %4085 = vperm.xlu0 %8631, %v9088_v31   ;;  %v2887_v9 = vmul.f32 1.442695, %v2612_v54  ;;  %v8744_v52 = vld [vmem:[%s10454_s22 + $0x4] ss:$60 sps:$4 sm:$0xff]  }
 0x157   : > { %v9102_v60 = vpop.eup %9101  ;;  %9121 = vrcp.f32 %v3287_v53  ;;  %v3288_v61 = vadd.f32 1.0, %v9100_v56  ;;  %v8417_v62 = vpop.f32.mrb[48].mxu0  ;;  %v2883_v14 = vmul.f32 1.442695, %v2610_v58  ;;  %6357 = vmatprep.mubr.bf16.mxu1 %v8744_v52 }
 0x158   : > { %v9104_v1 = vpop.eup %9103  ;;  %9123 = vrcp.f32 %v3285_v57  ;;  %v3286_v2 = vadd.f32 1.0, %v9102_v60  ;;  %4090 = vperm.xlu1 %8630, %v9092_v43   ;;  %v1855_v4 = vadd.f32 %v8417_v62, %v525_v55  ;;  %v1846_v5 = vpop.f32.mrb[49].mxu0  ;;  %v533_v62 = vld [vmem:[%s13271_s2 + $0x1d0] sm:$0xff] }
 0x159   : > { %v9106_v7 = vpop.eup %9105  ;;  %9125 = vrcp.f32 %v3288_v61  ;;  %v3291_v8 = vadd.f32 1.0, %v9104_v1  ;;  %v1847_v10 = vadd.f32 %v1846_v5, %v523_v59  ;;  %v8418_v11 = vpop.f32.mrb[50].mxu0  ;;  %v532_v5 = vld [vmem:[%s13271_s2 + $0x1c8] sm:$0xff] }
 0x15a   : > { %v9108_v13 = vpop.eup %9107  ;;  %9127 = vrcp.f32 %v3286_v2  ;;  %v2615_v15 = vsub.f32 0.0, %v1855_v4  ;;  %4105 = vperm.xlu0 %8631, %v9106_v7   ;;  %v1858_v16 = vadd.f32 %v8418_v11, %v526_v63  ;;  %v1849_v17 = vpop.f32.mrb[51].mxu0  ;;  %v534_v4 = vld [vmem:[%s13271_s2 + $0x1d8] sm:$0xff] }
 0x15b   : > { %v9110_v18 = vpop.eup %9109  ;;  %9129 = vrcp.f32 %v3291_v8  ;;  %v1850_v19 = vadd.f32 %v1849_v17, %v524_v6  ;;  %v2613_v22 = vsub.f32 0.0, %v1847_v10  ;;  %v8715_v6 = vld [vmem:[%s13270_s1 + $0x298] sm:$0xff]  }
 0x15c   : > { %v9112_v20 = vpop.eup %9111  ;;  %9131 = vpow2.f32 %v2881_v3  ;;  %v2893_v21 = vmul.f32 1.442695, %v2615_v15  ;;  %4110 = vperm.xlu1 %8630, %v9110_v18   ;;  %8524 = vmatmul.mubr.msk.bf16.gmra.mrb[156].mxu0 %vm1273_vm0, %v8711_v0  ;;  %v2616_v24 = vsub.f32 0.0, %v1858_v16  ;;  %v531_v0 = vld [vmem:[%s13271_s2 + $0x1c0] sm:$0xff] }
 0x15d   : > { %v9114_v23 = vpop.eup %9113  ;;  %9133 = vpow2.f32 %v2887_v9  ;;  %8527 = vmatprep.mubr.msk.bf16.mxu0 %vm1273_vm0, %v8712_v12  ;;  %v2614_v28 = vsub.f32 0.0, %v1850_v19  ;;  %v2889_v37 = vmul.f32 1.442695, %v2613_v22  ;;  %v8716_v12 = vld [vmem:[%s13270_s1 + $0x2a0] sm:$0xff]  }
 0x15e   : > { %v9116_v26 = vpop.eup %9115  ;;  %v3289_v27 = vadd.f32 1.0, %v9114_v23  ;;  %9135 = vpow2.f32 %v2883_v14  ;;  %4095 = vperm.xlu0 %8631, %v9108_v13   ;;  %v2895_v44 = vmul.f32 1.442695, %v2616_v24 }
 0x15f   : > { %v9118_v30 = vpop.eup %9117  ;;  %v3292_v31 = vadd.f32 1.0, %v9116_v26  ;;  %9137 = vpow2.f32 %v2893_v21  ;;  %v8421_v32 = vpop.f32.mrb[52].mxu0  ;;  %v2891_v48 = vmul.f32 1.442695, %v2614_v28 }
 0x160   : > { %v9120_v35 = vpop.eup %9119  ;;  %9139 = vrcp.f32 %v3289_v27  ;;  %v3290_v36 = vadd.f32 1.0, %v9118_v30  ;;  %4100 = vperm.xlu1 %8630, %v9112_v20   ;;  %v1871_v38 = vadd.f32 %v8421_v32, %v529_v25  ;;  %v1862_v39 = vpop.f32.mrb[53].mxu0 }
 0x161   : > { %v9122_v42 = vpop.eup %9121  ;;  %9141 = vrcp.f32 %v3292_v31  ;;  %v3295_v43 = vadd.f32 1.0, %v9120_v35  ;;  %v1863_v45 = vadd.f32 %v1862_v39, %v527_v29  ;;  %v8422_v46 = vpop.f32.mrb[54].mxu0  ;;  %v537_v29 = vld [vmem:[%s13271_s2 + $0x1f0] sm:$0xff]  ;;  %v8717_v39 = vld [vmem:[%s13270_s1 + $0x2a8] sm:$0xff]  }
 0x162   : > { %v9124_v47 = vpop.eup %9123  ;;  %9143 = vrcp.f32 %v3290_v36  ;;  %v2619_v49 = vsub.f32 0.0, %v1871_v38  ;;  %4125 = vperm.xlu0 %8631, %v9122_v42   ;;  %v1874_v50 = vadd.f32 %v8422_v46, %v530_v33  ;;  %v1865_v51 = vpop.f32.mrb[55].mxu0  ;;  %v538_v38 = vld [vmem:[%s13271_s2 + $0x1f8] sm:$0xff]  ;;  %v8718_v46 = vld [vmem:[%s13270_s1 + $0x2b0] sm:$0xff]  }
 0x163   : > { %v9126_v53 = vpop.eup %9125  ;;  %9145 = vrcp.f32 %v3295_v43  ;;  %v2617_v54 = vsub.f32 0.0, %v1863_v45  ;;  %v1866_v55 = vadd.f32 %v1865_v51, %v528_v40  ;;  %v536_v45 = vld [vmem:[%s13271_s2 + $0x1e8] sm:$0xff] }
 0x164   : > { %v9128_v56 = vpop.eup %9127  ;;  %9147 = vpow2.f32 %v2889_v37  ;;  %v2901_v57 = vmul.f32 1.442695, %v2619_v49  ;;  %v2620_v58 = vsub.f32 0.0, %v1874_v50  ;;  %4130 = vperm.xlu1 %8630, %v9126_v53   ;;  %8528 = vmatmul.mubr.msk.bf16.gmra.mrb[160].mxu0 %vm1273_vm0, %v8713_v34  ;;  %v535_v34 = vld [vmem:[%s13271_s2 + $0x1e0] sm:$0xff] }
 0x165   : > { %v9130_v59 = vpop.eup %9129  ;;  %9149 = vpow2.f32 %v2895_v44  ;;  %v2897_v60 = vmul.f32 1.442695, %v2617_v54  ;;  %v2618_v61 = vsub.f32 0.0, %v1866_v55  ;;  %8531 = vmatprep.mubr.msk.bf16.mxu0 %vm1273_vm0, %v8714_v41 }
 0x166   : > { %v9132_v63 = vpop.eup %9131  ;;  %9151 = vpow2.f32 %v2891_v48  ;;  %4115 = vperm.xlu0 %8631, %v9124_v47   ;;  %v2903_v9 = vmul.f32 1.442695, %v2620_v58 }
 0x167   : > { %v9134_v1 = vpop.eup %9133  ;;  %v3293_v2 = vadd.f32 1.0, %v9132_v63  ;;  %9153 = vpow2.f32 %v2901_v57  ;;  %v8425_v3 = vpop.f32.mrb[56].mxu0  ;;  %v2899_v15 = vmul.f32 1.442695, %v2618_v61  ;;  %v541_v61 = vld [vmem:[%s13271_s2 + $0x210] sm:$0xff] }
 0x168   : > { %v9136_v7 = vpop.eup %9135  ;;  %v3296_v8 = vadd.f32 1.0, %v9134_v1  ;;  %9155 = vpow2.f32 %v2897_v60  ;;  %4120 = vperm.xlu1 %8630, %v9128_v56   ;;  %v1887_v10 = vadd.f32 %v8425_v3, %v533_v62  ;;  %v1878_v11 = vpop.f32.mrb[57].mxu0  ;;  %v539_v1 = vld [vmem:[%s13271_s2 + $0x200] sm:$0xff] }
 0x169   : > { %v9138_v13 = vpop.eup %9137  ;;  %9157 = vrcp.f32 %v3293_v2  ;;  %v3294_v14 = vadd.f32 1.0, %v9136_v7  ;;  %v1879_v16 = vadd.f32 %v1878_v11, %v531_v0  ;;  %v8426_v17 = vpop.f32.mrb[58].mxu0  ;;  %v540_v7 = vld [vmem:[%s13271_s2 + $0x208] sm:$0xff]  ;;  %v8720_v11 = vld [vmem:[%s13270_s1 + $0x2c0] sm:$0xff]  }
 0x16a   : > { %v9140_v18 = vpop.eup %9139  ;;  %9159 = vrcp.f32 %v3296_v8  ;;  %v3299_v19 = vadd.f32 1.0, %v9138_v13  ;;  %v2623_v20 = vsub.f32 0.0, %v1887_v10  ;;  %4145 = vperm.xlu0 %8631, %v9130_v59   ;;  %v1890_v21 = vadd.f32 %v8426_v17, %v534_v4  ;;  %v1881_v22 = vpop.f32.mrb[59].mxu0  ;;  %v8719_v8 = vld [vmem:[%s13270_s1 + $0x2b8] sm:$0xff]  }
 0x16b   : > { %v9142_v23 = vpop.eup %9141  ;;  %9161 = vrcp.f32 %v3294_v14  ;;  %v2621_v24 = vsub.f32 0.0, %v1879_v16  ;;  %v1882_v25 = vadd.f32 %v1881_v22, %v532_v5  ;;  %v542_v5 = vld [vmem:[%s13271_s2 + $0x218] sm:$0xff] }
 0x16c   : > { %v9144_v26 = vpop.eup %9143  ;;  %9163 = vrcp.f32 %v3299_v19  ;;  %v2909_v27 = vmul.f32 1.442695, %v2623_v20  ;;  %v2624_v28 = vsub.f32 0.0, %v1890_v21  ;;  %4150 = vperm.xlu1 %8630, %v9142_v23   ;;  %8532 = vmatmul.mubr.msk.bf16.gmra.mrb[164].mxu0 %vm1273_vm0, %v8715_v6 }
 0x16d   : > { %v10481_v30 = vpop.eup %9145  ;;  %9165 = vpow2.f32 %v2903_v9  ;;  %v2905_v31 = vmul.f32 1.442695, %v2621_v24  ;;  %v2622_v32 = vsub.f32 0.0, %v1882_v25  ;;  %8535 = vmatprep.mubr.msk.bf16.mxu0 %vm1273_vm0, %v8716_v12 }
 0x16e   : > { %v9148_v33 = vpop.eup %9147  ;;  %9167 = vpow2.f32 %v2899_v15  ;;  %4135 = vperm.xlu0 %8631, %v9140_v18   ;;  %v2911_v42 = vmul.f32 1.442695, %v2624_v28 }
 0x16f   : > { %v9150_v35 = vpop.eup %9149  ;;  %v3297_v36 = vadd.f32 1.0, %v9148_v33  ;;  %9169 = vpow2.f32 %v2909_v27  ;;  %v8429_v37 = vpop.f32.mrb[60].mxu0  ;;  %v2907_v49 = vmul.f32 1.442695, %v2622_v32  ;;  %v545_v32 = vld [vmem:[%s13271_s2 + $0x230] sm:$0xff] }
 0x170   : > { %v9152_v40 = vpop.eup %9151  ;;  %v3300_v41 = vadd.f32 1.0, %v9150_v35  ;;  %9171 = vpow2.f32 %v2905_v31  ;;  %4140 = vperm.xlu1 %8630, %v9144_v26   ;;  %v1903_v43 = vadd.f32 %v8429_v37, %v537_v29  ;;  %v1894_v44 = vpop.f32.mrb[61].mxu0 }
 0x171   : > { %v9154_v47 = vpop.eup %9153  ;;  %9173 = vrcp.f32 %v3297_v36  ;;  %v3298_v48 = vadd.f32 1.0, %v9152_v40  ;;  %v1895_v50 = vadd.f32 %v1894_v44, %v535_v34  ;;  %v8430_v51 = vpop.f32.mrb[62].mxu0  ;;  %v546_v44 = vld [vmem:[%s13271_s2 + $0x238] sm:$0xff] }
 0x172   : > { %v9156_v52 = vpop.eup %9155  ;;  %9175 = vrcp.f32 %v3300_v41  ;;  %v3303_v53 = vadd.f32 1.0, %v9154_v47  ;;  %v2627_v54 = vsub.f32 0.0, %v1903_v43  ;;  %v1906_v55 = vadd.f32 %v8430_v51, %v538_v38  ;;  %v1897_v56 = vpop.f32.mrb[63].mxu0 }
 0x173   : > { %v10499_v57 = vpop.eup %9157  ;;  %9177 = vrcp.f32 %v3298_v48  ;;  %v3301_v58 = vadd.f32 1.0, %v9156_v52  ;;  %v2625_v59 = vsub.f32 0.0, %v1895_v50  ;;  %v1898_v60 = vadd.f32 %v1897_v56, %v536_v45  ;;  %v8721_v45 = vld [vmem:[%s13270_s1 + $0x2c8] sm:$0xff]  }
 0x174   : > { %v10504_v62 = vpop.eup %9159  ;;  %9179 = vrcp.f32 %v3303_v53  ;;  %v2917_v63 = vmul.f32 1.442695, %v2627_v54  ;;  %v2628_v0 = vsub.f32 0.0, %v1906_v55  ;;  %8536 = vmatmul.mubr.msk.bf16.gmra.mrb[168].mxu0 %vm1273_vm0, %v8717_v39  ;;  %v543_v39 = vld [vmem:[%s13271_s2 + $0x220] sm:$0xff]  ;;  %v8722_v55 = vld [vmem:[%s13270_s1 + $0x2d0] sm:$0xff]  }
 0x175   : > { %v10510_v2 = vpop.eup %9161  ;;  %9181 = vrcp.f32 %v3301_v58  ;;  %v2913_v3 = vmul.f32 1.442695, %v2625_v59  ;;  %v2626_v4 = vsub.f32 0.0, %v1898_v60  ;;  %8539 = vmatprep.mubr.msk.bf16.mxu0 %vm1273_vm0, %v8718_v46 }
 0x176   : > { %v9164_v6 = vpop.eup %9163  ;;  %9183 = vpow2.f32 %v2911_v42  ;;  %v2919_v14 = vmul.f32 1.442695, %v2628_v0 }
 0x177   : > { %v9166_v9 = vpop.eup %9165  ;;  %9185 = vpow2.f32 %v2907_v49  ;;  %4185 = vperm.xlu1 %8630, %v9164_v6   ;;  %v8433_v10 = vpop.f32.mrb[64].mxu0  ;;  %v2915_v19 = vmul.f32 1.442695, %v2626_v4  ;;  %v544_v49 = vld [vmem:[%s13271_s2 + $0x228] sm:$0xff]  ;;  %v549_v4 = vld [vmem:[%s13271_s2 + $0x250] sm:$0xff] }
 0x178   : > { %v9168_v12 = vpop.eup %9167  ;;  %v3304_v13 = vadd.f32 1.0, %v9166_v9  ;;  %9187 = vpow2.f32 %v2917_v63  ;;  %v1919_v15 = vadd.f32 %v8433_v10, %v541_v61  ;;  %v1910_v16 = vpop.f32.mrb[65].mxu0 }
 0x179   : > { %v9170_v17 = vpop.eup %9169  ;;  %v3302_v18 = vadd.f32 1.0, %v9168_v12  ;;  %9189 = vpow2.f32 %v2913_v3  ;;  %v1911_v20 = vadd.f32 %v1910_v16, %v539_v1  ;;  %v8434_v21 = vpop.f32.mrb[66].mxu0 }
 0x17a   : > { %v9172_v22 = vpop.eup %9171  ;;  %9191 = vrcp.f32 %v3304_v13  ;;  %v3307_v23 = vadd.f32 1.0, %v9170_v17  ;;  %v2631_v24 = vsub.f32 0.0, %v1919_v15  ;;  %v1922_v25 = vadd.f32 %v8434_v21, %v542_v5  ;;  %v1913_v26 = vpop.f32.mrb[67].mxu0  ;;  %v550_v17 = vld [vmem:[%s13271_s2 + $0x258] sm:$0xff] }
 0x17b   : > { %v9174_v27 = vpop.eup %9173  ;;  %9193 = vrcp.f32 %v3302_v18  ;;  %v3305_v28 = vadd.f32 1.0, %v9172_v22  ;;  %v2629_v29 = vsub.f32 0.0, %v1911_v20  ;;  %v1914_v31 = vadd.f32 %v1913_v26, %v540_v7  ;;  %v8723_v21 = vld [vmem:[%s13270_s1 + $0x2d8] sm:$0xff]   ;;  %v548_v26 = vld [vmem:[%s13271_s2 + $0x248] sm:$0xff] }
 0x17c   : > { %v9176_v33 = vpop.eup %9175  ;;  %9195 = vrcp.f32 %v3307_v23  ;;  %v2925_v34 = vmul.f32 1.442695, %v2631_v24  ;;  %v2632_v35 = vsub.f32 0.0, %v1922_v25  ;;  %4175 = vperm.xlu1 %8630, %v9174_v27   ;;  %8540 = vmatmul.mubr.msk.bf16.gmra.mrb[172].mxu0 %vm1273_vm0, %v8719_v8  ;;  %v8724_v27 = vld [vmem:[%s13270_s1 + $0x2e0] sm:$0xff]  }
 0x17d   : > { %v9178_v36 = vpop.eup %9177  ;;  %9197 = vrcp.f32 %v3305_v28  ;;  %v2921_v37 = vmul.f32 1.442695, %v2629_v29  ;;  %4190 = vperm.xlu0 %8631, %v9176_v33   ;;  %v2630_v38 = vsub.f32 0.0, %v1914_v31  ;;  %8543 = vmatprep.mubr.msk.bf16.mxu0 %vm1273_vm0, %v8720_v11  ;;  %v547_v11 = vld [vmem:[%s13271_s2 + $0x240] sm:$0xff] }
 0x17e   : > { %v9180_v40 = vpop.eup %9179  ;;  %9199 = vpow2.f32 %v2919_v14  ;;  %v2927_v41 = vmul.f32 1.442695, %v2632_v35 }
 0x17f   : > { %v9182_v42 = vpop.eup %9181  ;;  %9201 = vpow2.f32 %v2915_v19  ;;  %v8437_v43 = vpop.f32.mrb[68].mxu0  ;;  %v2923_v52 = vmul.f32 1.442695, %v2630_v38 }
 0x180   : > { %v9184_v46 = vpop.eup %9183  ;;  %9203 = vpow2.f32 %v2925_v34  ;;  %4205 = vperm.xlu1 %8630, %v9180_v40   ;;  %v1935_v47 = vadd.f32 %v8437_v43, %v545_v32  ;;  %v1926_v48 = vpop.f32.mrb[69].mxu0 }
 0x181   : > { %v9186_v50 = vpop.eup %9185  ;;  %v3308_v51 = vadd.f32 1.0, %v9184_v46  ;;  %9205 = vpow2.f32 %v2921_v37  ;;  %4180 = vperm.xlu0 %8631, %v9178_v36   ;;  %v1927_v53 = vadd.f32 %v1926_v48, %v543_v39  ;;  %v8438_v54 = vpop.f32.mrb[70].mxu0  ;;  %v551_v46 = vld [vmem:[%s13271_s2 + $0x260] sm:$0xff] }
 0x182   : > { %v9188_v56 = vpop.eup %9187  ;;  %v3306_v58 = vadd.f32 1.0, %v9186_v50  ;;  %9207 = vpow2.f32 %v2927_v41  ;;  %v2635_v59 = vsub.f32 0.0, %v1935_v47  ;;  %v1938_v60 = vadd.f32 %v8438_v54, %v546_v44  ;;  %v1929_v61 = vpop.f32.mrb[71].mxu0 }
 0x183   : > { %v9190_v63 = vpop.eup %9189  ;;  %9209 = vrcp.f32 %v3308_v51  ;;  %v3311_v0 = vadd.f32 1.0, %v9188_v56  ;;  %v2633_v1 = vsub.f32 0.0, %v1927_v53  ;;  %v1930_v3 = vadd.f32 %v1929_v61, %v544_v49 }
 0x184   : > { %v9192_v5 = vpop.eup %9191  ;;  %9211 = vrcp.f32 %v3306_v58  ;;  %v3309_v6 = vadd.f32 1.0, %v9190_v63  ;;  %v2933_v7 = vmul.f32 1.442695, %v2635_v59  ;;  %v2636_v8 = vsub.f32 0.0, %v1938_v60  ;;  %4195 = vperm.xlu1 %8630, %v9182_v42   ;;  %8544 = vmatmul.mubr.msk.bf16.gmra.mrb[176].mxu0 %vm1273_vm0, %v8721_v45  ;;  %v553_v45 = vld [vmem:[%s13271_s2 + $0x270] sm:$0xff]  ;;  %v552_v58 = vld [vmem:[%s13271_s2 + $0x268] sm:$0xff] }
 0x185   : > { %v9194_v9 = vpop.eup %9193  ;;  %9213 = vrcp.f32 %v3311_v0  ;;  %v2929_v10 = vmul.f32 1.442695, %v2633_v1  ;;  %4210 = vperm.xlu0 %8631, %v9192_v5   ;;  %8547 = vmatprep.mubr.msk.bf16.mxu0 %vm1273_vm0, %v8722_v55  ;;  %v2634_v15 = vsub.f32 0.0, %v1930_v3  ;;  %v8725_v59 = vld [vmem:[%s13270_s1 + $0x2e8] sm:$0xff]   ;;  %v8726_v0 = vld [vmem:[%s13270_s1 + $0x2f0] sm:$0xff]  }
 0x186   : > { %v9196_v12 = vpop.eup %9195  ;;  %9215 = vrcp.f32 %v3309_v6  ;;  %v2935_v13 = vmul.f32 1.442695, %v2636_v8 }
 0x187   : > { %v9198_v14 = vpop.eup %9197  ;;  %9217 = vpow2.f32 %v2923_v52  ;;  %v8441_v16 = vpop.f32.mrb[72].mxu0  ;;  %v2931_v36 = vmul.f32 1.442695, %v2634_v15  ;;  %v554_v52 = vld [vmem:[%s13271_s2 + $0x278] sm:$0xff]  ;;  %v557_v15 = vld [vmem:[%s13271_s2 + $0x290] sm:$0xff] }
 0x188   : > { %v9200_v18 = vpop.eup %9199  ;;  %9219 = vpow2.f32 %v2933_v7  ;;  %v1951_v19 = vadd.f32 %v8441_v16, %v549_v4  ;;  %4215 = vperm.xlu1 %8630, %v9198_v14   ;;  %v1942_v20 = vpop.f32.mrb[73].mxu0 }
 0x189   : > { %v9202_v22 = vpop.eup %9201  ;;  %v3312_v23 = vadd.f32 1.0, %v9200_v18  ;;  %9221 = vpow2.f32 %v2929_v10  ;;  %4200 = vperm.xlu0 %8631, %v9194_v9   ;;  %v1943_v24 = vadd.f32 %v1942_v20, %v547_v11  ;;  %v8442_v25 = vpop.f32.mrb[74].mxu0  ;;  %v555_v20 = vld [vmem:[%s13271_s2 + $0x280] sm:$0xff] }
 0x18a   : > { %v9204_v28 = vpop.eup %9203  ;;  %v3310_v29 = vadd.f32 1.0, %v9202_v22  ;;  %9223 = vpow2.f32 %v2935_v13  ;;  %v2639_v31 = vsub.f32 0.0, %v1951_v19  ;;  %v1954_v32 = vadd.f32 %v8442_v25, %v550_v17  ;;  %v1945_v33 = vpop.f32.mrb[75].mxu0 }
 0x18b   : > { %v9206_v34 = vpop.eup %9205  ;;  %9225 = vrcp.f32 %v3312_v23  ;;  %v3315_v35 = vadd.f32 1.0, %v9204_v28  ;;  %v2637_v37 = vsub.f32 0.0, %v1943_v24  ;;  %v1946_v41 = vadd.f32 %v1945_v33, %v548_v26  ;;  %v558_v26 = vld [vmem:[%s13271_s2 + $0x298] sm:$0xff] }
 0x18c   : > { %v9208_v38 = vpop.eup %9207  ;;  %9227 = vrcp.f32 %v3310_v29  ;;  %v3313_v39 = vadd.f32 1.0, %v9206_v34  ;;  %v2640_v40 = vsub.f32 0.0, %v1954_v32  ;;  %8548 = vmatmul.mubr.msk.bf16.gmra.mrb[180].mxu0 %vm1273_vm0, %v8723_v21  ;;  %v2941_v44 = vmul.f32 1.442695, %v2639_v31  ;;  %v556_v32 = vld [vmem:[%s13271_s2 + $0x288] sm:$0xff]  ;;  %v8727_v33 = vld [vmem:[%s13270_s1 + $0x2f8] sm:$0xff]  }
 0x18d   : > { %v9210_v42 = vpop.eup %9209  ;;  %9229 = vrcp.f32 %v3315_v35  ;;  %v3316_v43 = vadd.f32 1.0, %v9208_v38  ;;  %4225 = vperm.xlu0 %8631, %v9196_v12   ;;  %8551 = vmatprep.mubr.msk.bf16.mxu0 %vm1273_vm0, %v8724_v27  ;;  %v2937_v48 = vmul.f32 1.442695, %v2637_v37  ;;  %v2638_v54 = vsub.f32 0.0, %v1946_v41  ;;  %v8728_v37 = vld [vmem:[%s13270_s1 + $0x300] sm:$0xff]  }
 0x18e   : > { %v9212_v47 = vpop.eup %9211  ;;  %9231 = vrcp.f32 %v3313_v39  ;;  %4230 = vperm.xlu1 %8630, %v9210_v42   ;;  %v2943_v50 = vmul.f32 1.442695, %v2640_v40 }
 0x18f   : > { %v10573_v49 = vpop.eup %9213  ;;  %9233 = vrcp.f32 %v3316_v43  ;;  %v8445_v51 = vpop.f32.mrb[76].mxu0  ;;  %v2939_v13 = vmul.f32 1.442695, %v2638_v54 }
 0x190   : > { %v9216_v53 = vpop.eup %9215  ;;  %9235 = vpow2.f32 %v2931_v36  ;;  %v1967_v55 = vadd.f32 %v8445_v51, %v553_v45  ;;  %v1958_v56 = vpop.f32.mrb[77].mxu0 }
 0x191   : > { %v9218_v60 = vpop.eup %9217  ;;  %9237 = vpow2.f32 %v2941_v44  ;;  %4220 = vperm.xlu0 %8631, %v9212_v47   ;;  %v1959_v61 = vadd.f32 %v1958_v56, %v551_v46  ;;  %v8446_v63 = vpop.f32.mrb[78].mxu0 }
 0x192   : > { %v9220_v1 = vpop.eup %9219  ;;  %v3314_v3 = vadd.f32 1.0, %v9218_v60  ;;  %9239 = vpow2.f32 %v2937_v48  ;;  %v2643_v4 = vsub.f32 0.0, %v1967_v55  ;;  %4160 = vperm.xlu1 %8630, %v10510_v2   ;;  %v1970_v5 = vadd.f32 %v8446_v63, %v554_v52  ;;  %v1961_v6 = vpop.f32.mrb[79].mxu0  ;;  %v561_v52 = vld [vmem:[%s13271_s2 + $0x2b0] sm:$0xff] }
 0x193   : > { %v9222_v7 = vpop.eup %9221  ;;  %v3319_v8 = vadd.f32 1.0, %v9220_v1  ;;  %9241 = vpow2.f32 %v2943_v50  ;;  %v2641_v9 = vsub.f32 0.0, %v1959_v61  ;;  %v1962_v10 = vadd.f32 %v1961_v6, %v552_v58  ;;  %v559_v58 = vld [vmem:[%s13271_s2 + $0x2a0] sm:$0xff] }
 0x194   : > { %v9224_v11 = vpop.eup %9223  ;;  %9243 = vrcp.f32 %v3314_v3  ;;  %v3317_v12 = vadd.f32 1.0, %v9222_v7  ;;  %v2644_v14 = vsub.f32 0.0, %v1970_v5  ;;  %8552 = vmatmul.mubr.msk.bf16.gmra.mrb[184].mxu0 %vm1273_vm0, %v8725_v59  ;;  %v2949_v17 = vmul.f32 1.442695, %v2643_v4  ;;  %v562_v4 = vld [vmem:[%s13271_s2 + $0x2b8] sm:$0xff] }
 0x195   : > { %v9226_v16 = vpop.eup %9225  ;;  %9245 = vrcp.f32 %v3319_v8  ;;  %v3320_v2 = vadd.f32 1.0, %v9224_v11  ;;  %4155 = vperm.xlu0 %8631, %v10499_v57   ;;  %v2642_v18 = vsub.f32 0.0, %v1962_v10  ;;  %v10593_v19 = vpop.permute.xlu1 %3945  ;;  %8555 = vmatprep.mubr.msk.bf16.mxu0 %vm1273_vm0, %v8726_v0  ;;  %v2945_v22 = vmul.f32 1.442695, %v2641_v9  ;;  %v560_v9 = vld [vmem:[%s13271_s2 + $0x2a8] sm:$0xff] }
 0x196   : > { %v9228_v21 = vpop.eup %9227  ;;  %9247 = vrcp.f32 %v3317_v12  ;;  %v10599_v23 = vpop.permute.xlu0 %3935  ;;  %v2951_v25 = vmul.f32 1.442695, %v2644_v14 }
 0x197   : > { %v10601_v24 = vpop.eup %9229  ;;  %9249 = vrcp.f32 %v3320_v2  ;;  %4240 = vperm.xlu1 %8630, %v9228_v21   ;;  %v8449_v57 = vpop.f32.mrb[80].mxu0  ;;  %v2947_v28 = vmul.f32 1.442695, %v2642_v18 }
 0x198   : > { %v10606_v27 = vpop.eup %9231  ;;  %9251 = vpow2.f32 %v2939_v13  ;;  %v1983_v29 = vadd.f32 %v8449_v57, %v557_v15  ;;  %v1974_v31 = vpop.f32.mrb[81].mxu0  ;;  %v8730_v13 = vld [vmem:[%s13270_s1 + $0x310] sm:$0xff]  }
 0x199   : > { %v10614_v34 = vpop.eup %9233  ;;  %9253 = vpow2.f32 %v2949_v17  ;;  %4235 = vperm.xlu0 %8631, %v9216_v53   ;;  %v1975_v35 = vadd.f32 %v1974_v31, %v555_v20  ;;  %v8450_v36 = vpop.f32.mrb[82].mxu0 }
 0x19a   : > { %v9236_v38 = vpop.eup %9235  ;;  %9255 = vpow2.f32 %v2945_v22  ;;  %v2647_v39 = vsub.f32 0.0, %v1983_v29  ;;  %v1986_v40 = vadd.f32 %v8450_v36, %v558_v26  ;;  %v1977_v41 = vpop.f32.mrb[83].mxu0 }
 0x19b   : > { %v10619_v42 = vpop.permute.xlu0 %3940  ;;  %v9238_v43 = vpop.eup %9237  ;;  %v3318_v44 = vadd.f32 1.0, %v9236_v38  ;;  %9257 = vpow2.f32 %v2951_v25  ;;  %4250 = vperm.xlu1 %8630, %v9226_v16   ;;  %v2645_v45 = vsub.f32 0.0, %v1975_v35  ;;  %v1978_v47 = vadd.f32 %v1977_v41, %v556_v32  ;;  %v565_v32 = vld [vmem:[%s13271_s2 + $0x2d0] sm:$0xff]  ;;  %v566_v41 = vld [vmem:[%s13271_s2 + $0x2d8] sm:$0xff] }
 0x19c   : > { %v10621_v46 = vpop.permute.xlu1 %3950  ;;  %v9240_v48 = vpop.eup %9239  ;;  %v3323_v50 = vadd.f32 1.0, %v9238_v43  ;;  %9259 = vpow2.f32 %v2947_v28  ;;  %v2957_v51 = vmul.f32 1.442695, %v2647_v39  ;;  %8556 = vmatmul.mubr.msk.bf16.gmra.mrb[188].mxu0 %vm1273_vm0, %v8727_v33  ;;  %v2648_v56 = vsub.f32 0.0, %v1986_v40  ;;  %v563_v33 = vld [vmem:[%s13271_s2 + $0x2c0] sm:$0xff] }
 0x19d   : > { %v9242_v53 = vpop.eup %9241  ;;  %9261 = vrcp.f32 %v3318_v44  ;;  %v3321_v54 = vadd.f32 1.0, %v9240_v48  ;;  %v2953_v55 = vmul.f32 1.442695, %v2645_v45  ;;  %4245 = vperm.xlu0 %8631, %v10573_v49   ;;  %8559 = vmatprep.mubr.msk.bf16.mxu0 %vm1273_vm0, %v8728_v37  ;;  %v2646_v61 = vsub.f32 0.0, %v1978_v47  ;;  %v3708_v44 = vld [vmem:[%s13272_s3 + $0x18] sm:$0xff] }
 0x19e   : > { %v9244_v59 = vpop.eup %9243  ;;  %9263 = vrcp.f32 %v3323_v50  ;;  %v3324_v60 = vadd.f32 1.0, %v9242_v53  ;;  %v2959_v1 = vmul.f32 1.442695, %v2648_v56 }
 0x19f   : > { %v10632_v63 = vpop.permute.xlu0 %3965  ;;  %v10634_v0 = vpop.eup %9245  ;;  %9265 = vrcp.f32 %v3321_v54  ;;  %4170 = vperm.xlu1 %8630, %v10504_v62   ;;  %v2955_v6 = vmul.f32 1.442695, %v2646_v61  ;;  %v8729_v62 = vld [vmem:[%s13270_s1 + $0x308] sm:$0xff]  }
 0x1a0   : > { %v10637_v49 = vpop.permute.xlu1 %3970  ;;  %v8453_v3 = vpop.f32.mrb[84].mxu0  ;;  %9267 = vrcp.f32 %v3324_v60 }
 0x1a1   : > { %v10642_v5 = vpop.eup %9247  ;;  %v1999_v7 = vadd.f32 %v8453_v3, %v561_v52  ;;  %v1990_v8 = vpop.f32.mrb[85].mxu0  ;;  %9269 = vpow2.f32 %v2957_v51  ;;  %4165 = vperm.xlu0 %8631, %v10481_v30   ;;  %v564_v51 = vld [vmem:[%s13271_s2 + $0x2c8] sm:$0xff]  ;;  %v8731_v52 = vld [vmem:[%s13270_s1 + $0x318] sm:$0xff]  }
 0x1a2   : > { %v10650_v10 = vpop.eup %9249  ;;  %v1991_v11 = vadd.f32 %v1990_v8, %v559_v58  ;;  %v8454_v12 = vpop.f32.mrb[86].mxu0  ;;  %9271 = vpow2.f32 %v2953_v55  ;;  %v8732_v58 = vld [vmem:[%s13270_s1 + $0x320] sm:$0xff]  }
 0x1a3   : > { %v9252_v14 = vpop.eup %9251  ;;  %v2651_v15 = vsub.f32 0.0, %v1999_v7  ;;  %v2002_v16 = vadd.f32 %v8454_v12, %v562_v4  ;;  %v1993_v2 = vpop.f32.mrb[87].mxu0  ;;  %9273 = vpow2.f32 %v2959_v1  ;;  %4270 = vperm.xlu1 %8630, %v10614_v34  }
 0x1a4   : > { %v10656_v17 = vpop.permute.xlu0 %3955  ;;  %v9254_v18 = vpop.eup %9253  ;;  %v3322_v20 = vadd.f32 1.0, %v9252_v14  ;;  %v2649_v21 = vsub.f32 0.0, %v1991_v11  ;;  %v1994_v30 = vadd.f32 %v1993_v2, %v560_v9  ;;  %9275 = vpow2.f32 %v2955_v6  ;;  %8560 = vmatmul.mubr.msk.bf16.gmra.mrb[192].mxu0 %vm1273_vm0, %v8729_v62  ;;  %v3707_v6 = vld [vmem:[%s13272_s3 + $0x10] sm:$0xff]  ;;  %v3705_v9 = vld [vmem:[%s13272_s3] sm:$0xff]  ;;  %v3706_v11 = vld [vmem:[%s13272_s3 + $0x8] sm:$0xff] }
 0x1a5   : > { %v10659_v22 = vpop.permute.xlu1 %3960  ;;  %v9256_v25 = vpop.eup %9255  ;;  %v3327_v57 = vadd.f32 1.0, %v9254_v18  ;;  %v2652_v26 = vsub.f32 0.0, %v2002_v16  ;;  %4265 = vperm.xlu0 %8631, %v10601_v24   ;;  %8563 = vmatprep.mubr.msk.bf16.mxu0 %vm1273_vm0, %v8730_v13  ;;  %v2965_v36 = vmul.f32 1.442695, %v2651_v15  ;;  %v10714_v15 = vmul.f32 %v10621_v46, %v3708_v44  ;;  %v3711_v16 = vld [vmem:[%s13272_s3 + $0x30] sm:$0xff] }
 0x1a6   : > { %v9258_v28 = vpop.eup %9257  ;;  %9277 = vrcp.f32 %v3322_v20  ;;  %v3325_v29 = vadd.f32 1.0, %v9256_v25  ;;  %v2650_v31 = vsub.f32 0.0, %v1994_v30  ;;  %v2961_v39 = vmul.f32 1.442695, %v2649_v21  ;;  %v569_v18 = vld [vmem:[%s13271_s2 + $0x2f0] sm:$0xff]  ;;  %v567_v20 = vld [vmem:[%s13271_s2 + $0x2e0] sm:$0xff] }
 0x1a7   : > { %v9260_v34 = vpop.eup %9259  ;;  %9279 = vrcp.f32 %v3327_v57  ;;  %v3328_v35 = vadd.f32 1.0, %v9258_v28  ;;  %4260 = vperm.xlu1 %8630, %v9244_v59   ;;  %v8457_v40 = vpop.f32.mrb[88].mxu0  ;;  %v2967_v45 = vmul.f32 1.442695, %v2652_v26  ;;  %v10728_v21 = vmul.f32 %v10593_v19, %v3707_v6 }
 0x1a8   : > { %v10670_v37 = vpop.permute.xlu0 %3985  ;;  %v10672_v38 = vpop.eup %9261  ;;  %9281 = vrcp.f32 %v3325_v29  ;;  %v3326_v24 = vadd.f32 1.0, %v9260_v34  ;;  %v2015_v47 = vadd.f32 %v8457_v40, %v565_v32  ;;  %v2963_v54 = vmul.f32 1.442695, %v2650_v31  ;;  %v3712_v29 = vld [vmem:[%s13272_s3 + $0x38] sm:$0xff] }
 0x1a9   : > { %v10677_v43 = vpop.eup %9263  ;;  %9283 = vrcp.f32 %v3328_v35  ;;  %v10682_v48 = vpop.permute.xlu1 %3990  ;;  %4255 = vperm.xlu0 %8631, %v10606_v27   ;;  %v10735_v26 = vmul.f32 %v10599_v23, %v3705_v9  ;;  %v570_v32 = vld [vmem:[%s13271_s2 + $0x2f8] sm:$0xff]  ;;  %v10747_v23 = vmul.f32 %v10619_v42, %v3706_v11  ;;  %v3709_v42 = vld [vmem:[%s13272_s3 + $0x20] sm:$0xff] }
 0x1aa   : > { %v2006_v50 = vpop.f32.mrb[89].mxu0  ;;  %v10690_v53 = vpop.eup %9265  ;;  %9285 = vrcp.f32 %v3326_v24  ;;  %v2655_v60 = vsub.f32 0.0, %v2015_v47 }
 0x1ab   : > { %v2007_v55 = vadd.f32 %v2006_v50, %v563_v33  ;;  %v8458_v56 = vpop.f32.mrb[90].mxu0  ;;  %v10696_v59 = vpop.eup %9267  ;;  %9287 = vpow2.f32 %v2965_v36  ;;  %4290 = vperm.xlu1 %8630, %v10650_v10   ;;  %v8734_v50 = vld [vmem:[%s13270_s1 + $0x330] sm:$0xff]   ;;  %v5301_v9 = vpack.c.bf16 %v10747_v23, %v10735_v26 }
 0x1ac   : > { %v2018_v61 = vadd.f32 %v8458_v56, %v566_v41  ;;  %v2009_v1 = vpop.f32.mrb[91].mxu0  ;;  %v10698_v3 = vpop.permute.xlu0 %3975  ;;  %9289 = vpow2.f32 %v2961_v39  ;;  %8564 = vmatmul.mubr.msk.bf16.gmra.mrb[196].mxu0 %vm1273_vm0, %v8731_v52  ;;  %v2973_v25 = vmul.f32 1.442695, %v2655_v60  ;;  %v8733_v39 = vld [vmem:[%s13270_s1 + $0x328] sm:$0xff]   ;;  %v5302_v41 = vpack.c.bf16 %v10714_v15, %v10728_v21 }
 0x1ad   : > { %v9270_v4 = vpop.eup %9269  ;;  %v2653_v27 = vsub.f32 0.0, %v2007_v55  ;;  %v2010_v7 = vadd.f32 %v2009_v1, %v564_v51  ;;  %9291 = vpow2.f32 %v2967_v45  ;;  %v10710_v13 = vpop.permute.xlu1 %3980  ;;  %4285 = vperm.xlu0 %8631, %v10634_v0   ;;  %8567 = vmatprep.mubr.msk.bf16.mxu0 %vm1273_vm0, %v8732_v58  ;;  %v10771_v52 = vmul.f32 %v10632_v63, %v3711_v16  ;;  %v3715_v63 = vld [vmem:[%s13272_s3 + $0x50] sm:$0xff] }
 0x1ae   : > { %v9272_v8 = vpop.eup %9271  ;;  %v3331_v62 = vadd.f32 1.0, %v9270_v4  ;;  %v2656_v12 = vsub.f32 0.0, %v2018_v61  ;;  %9293 = vpow2.f32 %v2963_v54  ;;  %v3710_v61 = vld [vmem:[%s13272_s3 + $0x28] sm:$0xff] }
 0x1af   : > { %v9274_v14 = vpop.eup %9273  ;;  %v3329_v10 = vadd.f32 1.0, %v9272_v8  ;;  %v2654_v2 = vsub.f32 0.0, %v2010_v7  ;;  %v2969_v31 = vmul.f32 1.442695, %v2653_v27  ;;  %4280 = vperm.xlu1 %8630, %v10672_v38   ;;  %v8461_v19 = vpop.f32.mrb[92].mxu0  ;;  %v568_v38 = vld [vmem:[%s13271_s2 + $0x2e8] sm:$0xff] }
 0x1b0   : > { %v9276_v46 = vpop.eup %9275  ;;  %9295 = vrcp.f32 %v3331_v62  ;;  %v3332_v30 = vadd.f32 1.0, %v9274_v14  ;;  %v10730_v57 = vpop.permute.xlu0 %4005  ;;  %v2975_v34 = vmul.f32 1.442695, %v2656_v12  ;;  %v2031_v35 = vadd.f32 %v8461_v19, %v569_v18  ;;  %v3716_v27 = vld [vmem:[%s13272_s3 + $0x58] sm:$0xff]  ;;  %v573_v14 = vld [vmem:[%s13271_s2 + $0x310] sm:$0xff] }
 0x1b1   : > { %v10732_v0 = vpop.eup %9277  ;;  %9297 = vrcp.f32 %v3329_v10  ;;  %v3330_v28 = vadd.f32 1.0, %v9276_v46  ;;  %v10749_v36 = vpop.permute.xlu1 %4010  ;;  %v2971_v44 = vmul.f32 1.442695, %v2654_v2  ;;  %4275 = vperm.xlu0 %8631, %v10642_v5   ;;  %v10778_v5 = vmul.f32 %v10637_v49, %v3712_v29 }
 0x1b2   : > { %v10744_v33 = vpop.eup %9279  ;;  %9299 = vrcp.f32 %v3332_v30  ;;  %v2022_v24 = vpop.f32.mrb[93].mxu0  ;;  %v2659_v54 = vsub.f32 0.0, %v2031_v35  ;;  %v10804_v2 = vmul.f32 %v10659_v22, %v3710_v61  ;;  %v10807_v18 = vmul.f32 %v10670_v37, %v3715_v63  ;;  %v3722_v22 = vld [vmem:[%s13272_s3 + $0x88] sm:$0xff]  ;;  %v574_v37 = vld [vmem:[%s13271_s2 + $0x318] sm:$0xff] }
 0x1b3   : > { %v10757_v40 = vpop.eup %9281  ;;  %9301 = vrcp.f32 %v3330_v28  ;;  %v2023_v45 = vadd.f32 %v2022_v24, %v567_v20  ;;  %v8462_v47 = vpop.f32.mrb[94].mxu0  ;;  %4310 = vperm.xlu1 %8630, %v10696_v59   ;;  %v10796_v59 = vmul.f32 %v10656_v17, %v3709_v42  ;;  %v571_v17 = vld [vmem:[%s13271_s2 + $0x300] sm:$0xff]  ;;  %v10813_v46 = vmul.f32 %v10682_v48, %v3716_v27 }
 0x1b4   : > { %v10768_v51 = vpop.eup %9283  ;;  %9303 = vpow2.f32 %v2973_v25  ;;  %v2034_v55 = vadd.f32 %v8462_v47, %v570_v32  ;;  %v2025_v56 = vpop.f32.mrb[95].mxu0  ;;  %v2981_v49 = vmul.f32 1.442695, %v2659_v54  ;;  %8568 = vmatmul.mubr.msk.bf16.gmra.mrb[200].mxu0 %vm1273_vm0, %v8733_v39  ;;  %v5304_v24 = vpack.c.bf16 %v10778_v5, %v10771_v52  ;;  %v3734_v52 = vld [vmem:[%s13272_s3 + $0xe8] sm:$0xff]  ;;  %v586_v5 = vld [vmem:[%s13271_s2 + $0x378] sm:$0xff] }
 0x1b5   : > { %v10773_v58 = vpop.permute.xlu0 %3995  ;;  %v10775_v60 = vpop.eup %9285  ;;  %9305 = vpow2.f32 %v2969_v31  ;;  %v2657_v1 = vsub.f32 0.0, %v2023_v45  ;;  %v2026_v4 = vadd.f32 %v2025_v56, %v568_v38  ;;  %4305 = vperm.xlu0 %8631, %v10677_v43   ;;  %8571 = vmatprep.mubr.msk.bf16.mxu0 %vm1273_vm0, %v8734_v50  ;;  %v5303_v47 = vpack.c.bf16 %v10804_v2, %v10796_v59 }
 0x1b6   : > { %v9288_v6 = vpop.eup %9287  ;;  %9307 = vpow2.f32 %v2975_v34  ;;  %v2660_v7 = vsub.f32 0.0, %v2034_v55  ;;  %v10790_v8 = vpop.permute.xlu1 %4000  ;;  %v8735_v34 = vld [vmem:[%s13270_s1 + $0x338] sm:$0xff]   ;;  %v5306_v63 = vpack.c.bf16 %v10813_v46, %v10807_v18 }
 0x1b7   : > { %v9290_v62 = vpop.eup %9289  ;;  %v3335_v11 = vadd.f32 1.0, %v9288_v6  ;;  %9309 = vpow2.f32 %v2971_v44  ;;  %v2658_v12 = vsub.f32 0.0, %v2026_v4  ;;  %v2977_v30 = vmul.f32 1.442695, %v2657_v1  ;;  %4300 = vperm.xlu1 %8630, %v10732_v0   ;;  %v8465_v25 = vpop.f32.mrb[96].mxu0  ;;  %v572_v0 = vld [vmem:[%s13271_s2 + $0x308] sm:$0xff] }
 0x1b8   : > { %v9292_v10 = vpop.eup %9291  ;;  %v3333_v16 = vadd.f32 1.0, %v9290_v62  ;;  %9311 = vpow2.f32 %v2981_v49  ;;  %v2983_v31 = vmul.f32 1.442695, %v2660_v7  ;;  %v2047_v32 = vadd.f32 %v8465_v25, %v573_v14  ;;  %v2038_v48 = vpop.f32.mrb[97].mxu0  ;;  %v8736_v44 = vld [vmem:[%s13270_s1 + $0x340] sm:$0xff]   ;;  %v3723_v6 = vld [vmem:[%s13272_s3 + $0x90] sm:$0xff] }
 0x1b9   : > { %v9294_v43 = vpop.eup %9293  ;;  %9313 = vrcp.f32 %v3335_v11  ;;  %v3336_v20 = vadd.f32 1.0, %v9292_v10  ;;  %v4016_v19 = vpop.permute.xlu0 %4015  ;;  %v2979_v38 = vmul.f32 1.442695, %v2658_v12  ;;  %4295 = vperm.xlu0 %8631, %v10690_v53   ;;  %v2039_v39 = vadd.f32 %v2038_v48, %v571_v17  ;;  %v3721_v53 = vld [vmem:[%s13272_s3 + $0x80] sm:$0xff]  ;;  %v3724_v12 = vld [vmem:[%s13272_s3 + $0x98] sm:$0xff] }
 0x1ba   : > { %v9296_v28 = vpop.eup %9295  ;;  %9315 = vrcp.f32 %v3333_v16  ;;  %v3334_v29 = vadd.f32 1.0, %v9294_v43  ;;  %v8466_v42 = vpop.f32.mrb[98].mxu0  ;;  %v2663_v50 = vsub.f32 0.0, %v2047_v32  ;;  %v577_v43 = vld [vmem:[%s13271_s2 + $0x330] sm:$0xff]  ;;  %v5089_v25 = vmul.f32 %v4016_v19, %v3721_v53  ;;  %v578_v19 = vld [vmem:[%s13271_s2 + $0x338] sm:$0xff] }
 0x1bb   : > { %v10828_v35 = vpop.eup %9297  ;;  %9317 = vrcp.f32 %v3336_v20  ;;  %v4021_v54 = vpop.permute.xlu1 %4020  ;;  %v2050_v55 = vadd.f32 %v8466_v42, %v574_v37  ;;  %v2661_v1 = vsub.f32 0.0, %v2039_v39  ;;  %v3713_v42 = vld [vmem:[%s13272_s3 + $0x40] sm:$0xff]  ;;  %v590_v46 = vld [vmem:[%s13271_s2 + $0x398] sm:$0xff] }
 0x1bc   : > { %v9300_v45 = vpop.eup %9299  ;;  %9319 = vrcp.f32 %v3334_v29  ;;  %v2041_v56 = vpop.f32.mrb[99].mxu0  ;;  %v2989_v49 = vmul.f32 1.442695, %v2663_v50  ;;  %v5090_v7 = vmul.f32 %v4021_v54, %v3722_v22  ;;  %8572 = vmatmul.mubr.msk.bf16.gmra.mrb[204].mxu0 %vm1273_vm0, %v8735_v34  ;;  %v575_v34 = vld [vmem:[%s13271_s2 + $0x320] sm:$0xff] }
 0x1bd   : > { %v9302_v61 = vpop.eup %9301  ;;  %9321 = vpow2.f32 %v2977_v30  ;;  %4350 = vperm.xlu1 %8630, %v9300_v45   ;;  %v2042_v4 = vadd.f32 %v2041_v56, %v572_v0  ;;  %v2664_v62 = vsub.f32 0.0, %v2050_v55  ;;  %v4026_v11 = vpop.permute.xlu0 %4025  ;;  %v2985_v16 = vmul.f32 1.442695, %v2661_v1  ;;  %4345 = vperm.xlu0 %8631, %v9296_v28   ;;  %v3725_v28 = vld [vmem:[%s13272_s3 + $0xa0] sm:$0xff]  ;;  %v3726_v56 = vld [vmem:[%s13272_s3 + $0xa8] sm:$0xff] }
 0x1be   : > { %v9304_v27 = vpop.eup %9303  ;;  %9323 = vpow2.f32 %v2983_v31  ;;  %8575 = vmatprep.mubr.msk.bf16.mxu0 %vm1273_vm0, %v8736_v44  ;;  %v5091_v32 = vmul.f32 %v4026_v11, %v3723_v6  ;;  %v3714_v44 = vld [vmem:[%s13272_s3 + $0x48] sm:$0xff]  ;;  %v5309_v45 = vpack.c.bf16 %v5090_v7, %v5089_v25  ;;  %v8738_v7 = vld [vmem:[%s13270_s1 + $0x350] sm:$0xff]  }
 0x1bf   : > { %v9306_v14 = vpop.eup %9305  ;;  %v3339_v10 = vadd.f32 1.0, %v9304_v27  ;;  %9325 = vpow2.f32 %v2979_v38  ;;  %v2662_v17 = vsub.f32 0.0, %v2042_v4  ;;  %v2991_v22 = vmul.f32 1.442695, %v2664_v62  ;;  %v4031_v37 = vpop.permute.xlu1 %4030  ;;  %v3727_v25 = vld [vmem:[%s13272_s3 + $0xb0] sm:$0xff] }
 0x1c0   : > { %v9308_v20 = vpop.eup %9307  ;;  %v3337_v30 = vadd.f32 1.0, %v9306_v14  ;;  %9327 = vpow2.f32 %v2989_v49  ;;  %v5092_v48 = vmul.f32 %v4031_v37, %v3724_v12  ;;  %v8469_v0 = vpop.f32.mrb[100].mxu0  ;;  %v8737_v49 = vld [vmem:[%s13270_s1 + $0x348] sm:$0xff]   ;;  %7813 = vmatprep.subr.bf16.mxu1 %v5309_v45  ;;  %v3728_v37 = vld [vmem:[%s13272_s3 + $0xb8] sm:$0xff] }
 0x1c1   : > { %v9310_v29 = vpop.eup %9309  ;;  %9329 = vrcp.f32 %v3339_v10  ;;  %v3340_v31 = vadd.f32 1.0, %v9308_v20  ;;  %4340 = vperm.xlu1 %8630, %v9302_v61   ;;  %v4036_v50 = vpop.permute.xlu0 %4035  ;;  %v2063_v54 = vadd.f32 %v8469_v0, %v577_v43  ;;  %v576_v61 = vld [vmem:[%s13271_s2 + $0x328] sm:$0xff]  ;;  %v2987_v4 = vmul.f32 1.442695, %v2662_v17  ;;  %4335 = vperm.xlu0 %8631, %v10828_v35  }
 0x1c2   : > { %v9312_v38 = vpop.eup %9311  ;;  %9331 = vrcp.f32 %v3337_v30  ;;  %v3338_v39 = vadd.f32 1.0, %v9310_v29  ;;  %v2054_v55 = vpop.f32.mrb[101].mxu0  ;;  %v5310_v6 = vpack.c.bf16 %v5092_v48, %v5091_v32  ;;  %7814 = vmatpush3.bf16.msra.mxu1 %v5301_v9  ;;  %v5093_v35 = vmul.f32 %v4036_v50, %v3725_v28 }
 0x1c3   : > { %v9314_v53 = vpop.eup %9313  ;;  %9333 = vrcp.f32 %v3340_v31  ;;  %v3343_v1 = vadd.f32 1.0, %v9312_v38  ;;  %v8470_v27 = vpop.f32.mrb[102].mxu0  ;;  %v2667_v11 = vsub.f32 0.0, %v2063_v54  ;;  %v2055_v12 = vadd.f32 %v2054_v55, %v575_v34  ;;  %v3729_v54 = vld [vmem:[%s13272_s3 + $0xc0] sm:$0xff] }
 0x1c4   : > { %v10882_v62 = vpop.eup %9315  ;;  %9335 = vrcp.f32 %v3338_v39  ;;  %v4041_v14 = vpop.permute.xlu1 %4040  ;;  %v2066_v10 = vadd.f32 %v8470_v27, %v578_v19  ;;  %7815 = vmatprep.subr.bf16.mxu1 %v5310_v6  ;;  %v10894_v9 = vmul.f32 %v10698_v3, %v3713_v42  ;;  %v10897_v28 = vmul.f32 %v10710_v13, %v3714_v44  ;;  %8576 = vmatmul.mubr.msk.bf16.gmra.mrb[208].mxu0 %vm1273_vm0, %v8737_v49  ;;  %v3719_v19 = vld [vmem:[%s13272_s3 + $0x70] sm:$0xff] }
 0x1c5   : > { %v2057_v17 = vpop.f32.mrb[103].mxu0  ;;  %v9318_v43 = vpop.eup %9317  ;;  %9337 = vrcp.f32 %v3343_v1  ;;  %v5094_v20 = vmul.f32 %v4041_v14, %v3726_v56  ;;  %v2997_v31 = vmul.f32 1.442695, %v2667_v11  ;;  %v2665_v32 = vsub.f32 0.0, %v2055_v12  ;;  %4365 = vperm.xlu0 %8631, %v9314_v53   ;;  %8579 = vmatprep.mubr.msk.bf16.mxu0 %vm1273_vm0, %v8738_v7  ;;  %v582_v56 = vld [vmem:[%s13271_s2 + $0x358] sm:$0xff]  ;;  %v3730_v11 = vld [vmem:[%s13272_s3 + $0xc8] sm:$0xff] }
 0x1c6   : > { %v2058_v30 = vadd.f32 %v2057_v17, %v576_v61  ;;  %v9320_v29 = vpop.eup %9319  ;;  %9339 = vpow2.f32 %v2985_v16  ;;  %4370 = vperm.xlu1 %8630, %v9318_v43   ;;  %v2668_v48 = vsub.f32 0.0, %v2066_v10  ;;  %v4046_v26 = vpop.permute.xlu0 %4045  ;;  %v581_v16 = vld [vmem:[%s13271_s2 + $0x350] sm:$0xff]  ;;  %7816 = vmatpush3.bf16.msra.mxu1 %v5302_v41  ;;  %v580_v61 = vld [vmem:[%s13271_s2 + $0x348] sm:$0xff]  ;;  %v8739_v14 = vld [vmem:[%s13270_s1 + $0x358] sm:$0xff]   ;;  %v5305_v2 = vpack.c.bf16 %v10897_v28, %v10894_v9 }
 0x1c7   : > { %v9322_v23 = vpop.eup %9321  ;;  %9341 = vpow2.f32 %v2991_v22  ;;  %v5311_v0 = vpack.c.bf16 %v5094_v20, %v5093_v35  ;;  %v5095_v39 = vmul.f32 %v4046_v26, %v3727_v25  ;;  %v579_v22 = vld [vmem:[%s13271_s2 + $0x340] sm:$0xff]  ;;  %v2993_v45 = vmul.f32 1.442695, %v2665_v32  ;;  %v8473_v55 = vpop.f32.mrb[104].mxu0  ;;  %v3718_v26 = vld [vmem:[%s13272_s3 + $0x68] sm:$0xff] }
 0x1c8   : > { %v9324_v34 = vpop.eup %9323  ;;  %v3341_v38 = vadd.f32 1.0, %v9322_v23  ;;  %9343 = vpow2.f32 %v2987_v4  ;;  %v2666_v3 = vsub.f32 0.0, %v2058_v30  ;;  %v4051_v13 = vpop.permute.xlu1 %4050  ;;  %v2999_v4 = vmul.f32 1.442695, %v2668_v48  ;;  %v8740_v10 = vld [vmem:[%s13270_s1 + $0x360] sm:$0xff]  }
 0x1c9   : > { %v9326_v42 = vpop.eup %9325  ;;  %v3344_v44 = vadd.f32 1.0, %v9324_v34  ;;  %9345 = vpow2.f32 %v2997_v31  ;;  %v5096_v50 = vmul.f32 %v4051_v13, %v3728_v37  ;;  %7817 = vmatprep.subr.bf16.mxu1 %v5311_v0  ;;  %v2079_v15 = vadd.f32 %v8473_v55, %v581_v16  ;;  %v2070_v21 = vpop.f32.mrb[105].mxu0  ;;  %4355 = vperm.xlu0 %8631, %v10882_v62   ;;  %v3717_v37 = vld [vmem:[%s13272_s3 + $0x60] sm:$0xff]  ;;  %v3731_v16 = vld [vmem:[%s13272_s3 + $0xd0] sm:$0xff] }
 0x1ca   : > { %v9328_v53 = vpop.eup %9327  ;;  %9347 = vrcp.f32 %v3341_v38  ;;  %v3342_v1 = vadd.f32 1.0, %v9326_v42  ;;  %4360 = vperm.xlu1 %8630, %v9320_v29   ;;  %v4056_v49 = vpop.permute.xlu0 %4055  ;;  %v2071_v7 = vadd.f32 %v2070_v21, %v579_v22  ;;  %v2995_v43 = vmul.f32 1.442695, %v2666_v3  ;;  %7818 = vmatpush3.bf16.msra.mxu1 %v5303_v47  ;;  %v3732_v38 = vld [vmem:[%s13272_s3 + $0xd8] sm:$0xff]  ;;  %v585_v3 = vld [vmem:[%s13271_s2 + $0x370] sm:$0xff]  ;;  %v583_v22 = vld [vmem:[%s13271_s2 + $0x360] sm:$0xff] }
 0x1cb   : > { %v9330_v41 = vpop.eup %9329  ;;  %9349 = vrcp.f32 %v3344_v44  ;;  %v3347_v6 = vadd.f32 1.0, %v9328_v53  ;;  %v5312_v27 = vpack.c.bf16 %v5096_v50, %v5095_v39  ;;  %v8474_v12 = vpop.f32.mrb[106].mxu0  ;;  %v2671_v35 = vsub.f32 0.0, %v2079_v15 }
 0x1cc   : > { %v9332_v17 = vpop.eup %9331  ;;  %9351 = vrcp.f32 %v3342_v1  ;;  %v2082_v62 = vadd.f32 %v8474_v12, %v582_v56  ;;  %v2073_v20 = vpop.f32.mrb[107].mxu0  ;;  %v10933_v25 = vmul.f32 %v10730_v57, %v3719_v19  ;;  %v2669_v29 = vsub.f32 0.0, %v2071_v7  ;;  %8580 = vmatmul.mubr.msk.bf16.gmra.mrb[212].mxu0 %vm1273_vm0, %v8739_v14 }
 0x1cd   : > { %v9334_v30 = vpop.eup %9333  ;;  %9353 = vrcp.f32 %v3347_v6  ;;  %v4061_v31 = vpop.permute.xlu1 %4060  ;;  %v2074_v32 = vadd.f32 %v2073_v20, %v580_v61  ;;  %v5097_v57 = vmul.f32 %v4056_v49, %v3729_v54  ;;  %v3005_v23 = vmul.f32 1.442695, %v2671_v35  ;;  %7819 = vmatprep.subr.bf16.mxu1 %v5312_v27  ;;  %4385 = vperm.xlu0 %8631, %v9330_v41   ;;  %v584_v27 = vld [vmem:[%s13271_s2 + $0x368] sm:$0xff]  ;;  %v3720_v35 = vld [vmem:[%s13272_s3 + $0x78] sm:$0xff] }
 0x1ce   : > { %v9336_v48 = vpop.eup %9335  ;;  %9355 = vpow2.f32 %v2993_v45  ;;  %4390 = vperm.xlu1 %8630, %v9334_v30   ;;  %v5098_v0 = vmul.f32 %v4061_v31, %v3730_v11  ;;  %v3001_v47 = vmul.f32 1.442695, %v2669_v29  ;;  %v2672_v34 = vsub.f32 0.0, %v2082_v62  ;;  %v4066_v19 = vpop.permute.xlu0 %4065  ;;  %8583 = vmatprep.mubr.msk.bf16.mxu0 %vm1273_vm0, %v8740_v10  ;;  %v8741_v49 = vld [vmem:[%s13270_s1 + $0x368] sm:$0xff]  }
 0x1cf   : > { %v10947_v59 = vpop.eup %9337  ;;  %9357 = vpow2.f32 %v2999_v4  ;;  %v10959_v13 = vmul.f32 %v10773_v58, %v3717_v37  ;;  %v2670_v28 = vsub.f32 0.0, %v2074_v32  ;;  %v10966_v44 = vmul.f32 %v10790_v8, %v3718_v26  ;;  %7820 = vmatpush3.bf16.msra.mxu1 %v5304_v24  ;;  %v8477_v54 = vpop.f32.mrb[108].mxu0  ;;  %v3733_v8 = vld [vmem:[%s13272_s3 + $0xe0] sm:$0xff]  ;;  %v3735_v26 = vld [vmem:[%s13272_s3 + $0xf0] sm:$0xff] }
 0x1d0   : > { %v9340_v39 = vpop.eup %9339  ;;  %9359 = vpow2.f32 %v2995_v43  ;;  %v5313_v9 = vpack.c.bf16 %v5098_v0, %v5097_v57  ;;  %v5099_v58 = vmul.f32 %v4066_v19, %v3731_v16  ;;  %v2095_v53 = vadd.f32 %v8477_v54, %v585_v3  ;;  %v2086_v1 = vpop.f32.mrb[109].mxu0  ;;  %v589_v3 = vld [vmem:[%s13271_s2 + $0x390] sm:$0xff] }
 0x1d1   : > { %v9342_v42 = vpop.eup %9341  ;;  %v3345_v45 = vadd.f32 1.0, %v9340_v39  ;;  %9361 = vpow2.f32 %v3005_v23  ;;  %v4071_v50 = vpop.permute.xlu1 %4070  ;;  %v3007_v15 = vmul.f32 1.442695, %v2672_v34  ;;  %4375 = vperm.xlu0 %8631, %v9332_v17   ;;  %v2087_v41 = vadd.f32 %v2086_v1, %v583_v22  ;;  %v8745_v17 = vld [vmem:[%s13270_s1 + $0x370] sm:$0xff]  }
 0x1d2   : > { %v9344_v55 = vpop.eup %9343  ;;  %v3348_v56 = vadd.f32 1.0, %v9342_v42  ;;  %9363 = vpow2.f32 %v3001_v47  ;;  %4380 = vperm.xlu1 %8630, %v9336_v48   ;;  %v5100_v61 = vmul.f32 %v4071_v50, %v3732_v38  ;;  %7821 = vmatprep.subr.bf16.mxu1 %v5313_v9  ;;  %v4076_v21 = vpop.permute.xlu0 %4075  ;;  %v3003_v12 = vmul.f32 1.442695, %v2670_v28 }
 0x1d3   : > { %v9346_v24 = vpop.eup %9345  ;;  %9365 = vrcp.f32 %v3345_v45  ;;  %v3346_v4 = vadd.f32 1.0, %v9344_v55  ;;  %v8478_v6 = vpop.f32.mrb[110].mxu0  ;;  %7822 = vmatpush3.bf16.msra.mxu1 %v5305_v2  ;;  %v2675_v62 = vsub.f32 0.0, %v2095_v53  ;;  %v2673_v20 = vsub.f32 0.0, %v2087_v41  ;;  %v8746_v53 = vld [vmem:[%s13270_s1 + $0x378] sm:$0xff]  }
 0x1d4   : > { %v9348_v7 = vpop.eup %9347  ;;  %9367 = vrcp.f32 %v3348_v56  ;;  %v3351_v11 = vadd.f32 1.0, %v9346_v24  ;;  %v5314_v14 = vpack.c.bf16 %v5100_v61, %v5099_v58  ;;  %v2089_v10 = vpop.f32.mrb[111].mxu0  ;;  %v2098_v37 = vadd.f32 %v8478_v6, %v586_v5  ;;  %8584 = vmatmul.mubr.msk.bf16.gmra.mrb[216].mxu0 %vm1273_vm0, %v8741_v49 }
 0x1d5   : > { %v10989_v43 = vpop.eup %9349  ;;  %9369 = vrcp.f32 %v3346_v4  ;;  %v4081_v30 = vpop.permute.xlu1 %4080  ;;  %v5101_v31 = vmul.f32 %v4076_v21, %v3733_v8  ;;  %v2090_v48 = vadd.f32 %v2089_v10, %v584_v27  ;;  %v3013_v23 = vmul.f32 1.442695, %v2675_v62  ;;  %4315 = vperm.xlu0 %8631, %v10757_v40   ;;  %v587_v40 = vld [vmem:[%s13271_s2 + $0x380] sm:$0xff]  ;;  %8587 = vmatprep.mubr.msk.bf16.mxu0 %vm1273_vm0, %v8745_v17  ;;  %v588_v8 = vld [vmem:[%s13271_s2 + $0x388] sm:$0xff] }
 0x1d6   : > { %v9352_v29 = vpop.eup %9351  ;;  %9371 = vrcp.f32 %v3351_v11  ;;  %4320 = vperm.xlu1 %8630, %v10775_v60   ;;  %v5102_v32 = vmul.f32 %v4081_v30, %v3734_v52  ;;  %7823 = vmatprep.subr.bf16.mxu1 %v5314_v14  ;;  %v3009_v0 = vmul.f32 1.442695, %v2673_v20  ;;  %v2676_v16 = vsub.f32 0.0, %v2098_v37  ;;  %v4086_v2 = vpop.permute.xlu0 %4085  ;;  %v3736_v60 = vld [vmem:[%s13272_s3 + $0xf8] sm:$0xff]  ;;  %v593_v37 = vld [vmem:[%s13271_s2 + $0x3b0] sm:$0xff] }
 0x1d7   : > { %v10998_v57 = vpop.eup %9353  ;;  %9373 = vpow2.f32 %v3007_v15  ;;  %v11006_v34 = vmul.f32 %v10749_v36, %v3720_v35  ;;  %v2674_v38 = vsub.f32 0.0, %v2090_v48  ;;  %v5307_v9 = vpack.c.bf16 %v10966_v44, %v10959_v13  ;;  %7824 = vmatpush3.bf16.msra.mxu1 %v5306_v63  ;;  %v8481_v42 = vpop.f32.mrb[112].mxu0  ;;  %v8750_v15 = vld [vmem:[%s13270_s1 + $0x380] sm:$0xff]   ;;  %v8747_v48 = vld [vmem:[%s10454_s22 + $0x7c] ss:$60 sps:$4 sm:$0xff]  }
 0x1d8   : > { %v9356_v47 = vpop.eup %9355  ;;  %9375 = vpow2.f32 %v3003_v12  ;;  %v5315_v19 = vpack.c.bf16 %v5102_v32, %v5101_v31  ;;  %v5103_v36 = vmul.f32 %v4086_v2, %v3735_v26  ;;  %v3015_v50 = vmul.f32 1.442695, %v2676_v16  ;;  %v2102_v55 = vpop.f32.mrb[113].mxu0  ;;  %v8742_v30 = vld [vmem:[%s10454_s22] ss:$60 sps:$4 sm:$0xff]  }
 0x1d9   : > { %v9358_v39 = vpop.eup %9357  ;;  %v3349_v28 = vadd.f32 1.0, %v9356_v47  ;;  %9377 = vpow2.f32 %v3013_v23  ;;  %v4091_v22 = vpop.permute.xlu1 %4090  ;;  %4395 = vperm.xlu0 %8631, %v9348_v7   ;;  %v2111_v61 = vadd.f32 %v8481_v42, %v589_v3  ;;  %v2103_v18 = vadd.f32 %v2102_v55, %v587_v40  ;;  %v591_v32 = vld [vmem:[%s13271_s2 + $0x3a0] sm:$0xff]  ;;  %v594_v47 = vld [vmem:[%s13271_s2 + $0x3b8] sm:$0xff] }
 0x1da   : > { %v9360_v45 = vpop.eup %9359  ;;  %v3352_v58 = vadd.f32 1.0, %v9358_v39  ;;  %9379 = vpow2.f32 %v3009_v0  ;;  %4400 = vperm.xlu1 %8630, %v9352_v29   ;;  %v5104_v54 = vmul.f32 %v4091_v22, %v3736_v60  ;;  %7825 = vmatprep.subr.bf16.mxu1 %v5315_v19  ;;  %v11020_v44 = vpop.permute.xlu0 %4105  ;;  %v3011_v5 = vmul.f32 1.442695, %v2674_v38  ;;  %v8751_v19 = vld [vmem:[%s13270_s1 + $0x388] sm:$0xff]  }
 0x1db   : > { %v9362_v56 = vpop.eup %9361  ;;  %9381 = vrcp.f32 %v3349_v28  ;;  %v3350_v13 = vadd.f32 1.0, %v9360_v45  ;;  %v8482_v63 = vpop.f32.mrb[114].mxu0  ;;  %7826 = vmatpush3.bf16.msra.mxu1 %v5307_v9  ;;  %v2679_v6 = vsub.f32 0.0, %v2111_v61  ;;  %v2677_v27 = vsub.f32 0.0, %v2103_v18  ;;  %v597_v61 = vld [vmem:[%s13271_s2 + $0x3d0] sm:$0xff] }
 0x1dc   : > { %v9364_v1 = vpop.eup %9363  ;;  %9383 = vrcp.f32 %v3352_v58  ;;  %v3355_v52 = vadd.f32 1.0, %v9362_v56  ;;  %v5316_v24 = vpack.c.bf16 %v5104_v54, %v5103_v36  ;;  %v2105_v4 = vpop.f32.mrb[115].mxu0  ;;  %v2114_v11 = vadd.f32 %v8482_v63, %v590_v46  ;;  %8588 = vmatmul.mubr.msk.bf16.gmra.mrb[220].mxu0 %vm1273_vm0, %v8746_v53  ;;  %v595_v53 = vld [vmem:[%s13271_s2 + $0x3c0] sm:$0xff] }
 0x1dd   : > { %v11034_v21 = vpop.eup %9365  ;;  %9385 = vrcp.f32 %v3350_v13  ;;  %v3353_v41 = vadd.f32 1.0, %v9364_v1  ;;  %v11036_v49 = vpop.permute.xlu1 %4110  ;;  %v2106_v12 = vadd.f32 %v2105_v4, %v588_v8  ;;  %v5308_v10 = vpack.c.bf16 %v11006_v34, %v10933_v25  ;;  %4405 = vperm.xlu0 %8631, %v10947_v59   ;;  %8591 = vmatprep.mubr.msk.bf16.mxu0 %vm1273_vm0, %v8750_v15  ;;  %v8749_v8 = vld [vmem:[%s10454_s22 + $0x78] ss:$60 sps:$4 sm:$0xff]  }
 0x1de   : > { %v9368_v7 = vpop.eup %9367  ;;  %9387 = vrcp.f32 %v3355_v52  ;;  %4410 = vperm.xlu1 %8630, %v10989_v43   ;;  %7827 = vmatprep.subr.bf16.mxu1 %v5316_v24  ;;  %v3021_v17 = vmul.f32 1.442695, %v2679_v6  ;;  %v3017_v35 = vmul.f32 1.442695, %v2677_v27  ;;  %v2680_v43 = vsub.f32 0.0, %v2114_v11  ;;  %v11047_v20 = vpop.permute.xlu0 %4095 }
 0x1df   : > { %v11039_v14 = vpop.eup %9369  ;;  %9389 = vrcp.f32 %v3353_v41  ;;  %v2678_v29 = vsub.f32 0.0, %v2106_v12  ;;  %7828 = vmatpush3.bf16.msra.mxu1 %v5308_v10  ;;  %v8485_v31 = vpop.f32.mrb[116].mxu0  ;;  %v8752_v24 = vld [vmem:[%s10454_s22 + $0xf4] ss:$60 sps:$4 sm:$0xff]   ;;  %v598_v12 = vld [vmem:[%s13271_s2 + $0x3d8] sm:$0xff] }
 0x1e0   : > { %v11045_v62 = vpop.eup %9371  ;;  %9391 = vpow2.f32 %v3015_v50  ;;  %v2118_v0 = vpop.f32.mrb[117].mxu0  ;;  %v2127_v60 = vadd.f32 %v8485_v31, %v593_v37 }
 0x1e1   : > { %v9374_v25 = vpop.eup %9373  ;;  %9393 = vpow2.f32 %v3011_v5  ;;  %v11054_v59 = vpop.permute.xlu1 %4100  ;;  %4325 = vperm.xlu0 %8631, %v10744_v33   ;;  %v2119_v40 = vadd.f32 %v2118_v0, %v591_v32  ;;  %v592_v33 = vld [vmem:[%s13271_s2 + $0x3a8] sm:$0xff]  ;;  %v3019_v36 = vmul.f32 1.442695, %v2678_v29  ;;  %v3739_v32 = vld [vmem:[%s13272_s3 + $0x110] sm:$0xff] }
 0x1e2   : > { %v9376_v26 = vpop.eup %9375  ;;  %v3356_v23 = vadd.f32 1.0, %v9374_v25  ;;  %9395 = vpow2.f32 %v3021_v17  ;;  %4330 = vperm.xlu1 %8630, %v10768_v51   ;;  %v8486_v34 = vpop.f32.mrb[118].mxu0  ;;  %v3023_v51 = vmul.f32 1.442695, %v2680_v43  ;;  %6358 = vmatmul.mubr.bf16.vlgmr.msra.gmra.mrb[0].mxu1 %v8742_v30  ;;  %v2683_v22 = vsub.f32 0.0, %v2127_v60 }
 0x1e3   : > { %v9378_v16 = vpop.eup %9377  ;;  %v3354_v2 = vadd.f32 1.0, %v9376_v26  ;;  %9397 = vpow2.f32 %v3017_v35  ;;  %v2121_v39 = vpop.f32.mrb[119].mxu0  ;;  %6365 = vmatprep.mubr.bf16.mxu1 %v8747_v48  ;;  %v2681_v58 = vsub.f32 0.0, %v2119_v40  ;;  %v2130_v50 = vadd.f32 %v8486_v34, %v594_v47  ;;  %v3740_v26 = vld [vmem:[%s13272_s3 + $0x118] sm:$0xff]  ;;  %v601_v34 = vld [vmem:[%s13271_s2 + $0x3f0] sm:$0xff]  ;;  %v599_v40 = vld [vmem:[%s13271_s2 + $0x3e0] sm:$0xff] }
 0x1e4   : > { %v9380_v38 = vpop.eup %9379  ;;  %9399 = vrcp.f32 %v3356_v23  ;;  %v3359_v3 = vadd.f32 1.0, %v9378_v16  ;;  %v11077_v55 = vpop.permute.xlu0 %4125  ;;  %v3029_v56 = vmul.f32 1.442695, %v2683_v22  ;;  %v2122_v13 = vadd.f32 %v2121_v39, %v592_v33  ;;  %8592 = vmatmul.mubr.msk.bf16.gmra.mrb[224].mxu0 %vm1273_vm0, %v8751_v19  ;;  %v8755_v22 = vld [vmem:[%s10454_s22 + $0x16c] ss:$60 sps:$4 sm:$0xff]  }
 0x1e5   : > { %v11071_v9 = vpop.eup %9381  ;;  %9401 = vrcp.f32 %v3354_v2  ;;  %v3357_v28 = vadd.f32 1.0, %v9380_v38  ;;  %v11073_v42 = vpop.permute.xlu1 %4130  ;;  %4425 = vperm.xlu0 %8631, %v10998_v57   ;;  %v3025_v46 = vmul.f32 1.442695, %v2681_v58  ;;  %v2684_v63 = vsub.f32 0.0, %v2130_v50  ;;  %v3738_v38 = vld [vmem:[%s13272_s3 + $0x108] sm:$0xff] }
 0x1e6   : > { %v9384_v45 = vpop.eup %9383  ;;  %9403 = vrcp.f32 %v3359_v3  ;;  %4430 = vperm.xlu1 %8630, %v9368_v7   ;;  %v2682_v57 = vsub.f32 0.0, %v2122_v13  ;;  %v11138_v33 = vmul.f32 %v11036_v49, %v3740_v26  ;;  %v603_v26 = vld [vmem:[%s13271_s2 + $0x400] sm:$0xff] }
 0x1e7   : > { %v11075_v54 = vpop.eup %9385  ;;  %9405 = vrcp.f32 %v3357_v28  ;;  %v8489_v5 = vpop.f32.mrb[120].mxu0  ;;  %v3031_v15 = vmul.f32 1.442695, %v2684_v63  ;;  %v3744_v28 = vld [vmem:[%s13272_s3 + $0x138] sm:$0xff] }
 0x1e8   : > { %v11084_v18 = vpop.eup %9387  ;;  %9407 = vpow2.f32 %v3023_v51  ;;  %v2143_v41 = vadd.f32 %v8489_v5, %v597_v61  ;;  %v2134_v6 = vpop.f32.mrb[121].mxu0  ;;  %v3027_v37 = vmul.f32 1.442695, %v2682_v57  ;;  %v8754_v51 = vld [vmem:[%s10454_s22 + $0xf0] ss:$60 sps:$4 sm:$0xff]  }
 0x1e9   : > { %v11090_v1 = vpop.eup %9389  ;;  %9409 = vpow2.f32 %v3019_v36  ;;  %v11092_v52 = vpop.permute.xlu1 %4120  ;;  %4415 = vperm.xlu0 %8631, %v11034_v21   ;;  %v2135_v11 = vadd.f32 %v2134_v6, %v595_v53 }
 0x1ea   : > { %v9392_v4 = vpop.eup %9391  ;;  %9411 = vpow2.f32 %v3029_v56  ;;  %4420 = vperm.xlu1 %8630, %v11039_v14   ;;  %v8490_v10 = vpop.f32.mrb[122].mxu0  ;;  %6366 = vmatmul.mubr.bf16.gmra.mrb[4].mxu1 %v8749_v8  ;;  %v596_v14 = vld [vmem:[%s13271_s2 + $0x3c8] sm:$0xff]  ;;  %v2687_v21 = vsub.f32 0.0, %v2143_v41 }
 0x1eb   : > { %v11096_v27 = vpop.eup %9393  ;;  %v3360_v7 = vadd.f32 1.0, %v9392_v4  ;;  %9413 = vpow2.f32 %v3025_v46  ;;  %v2137_v35 = vpop.f32.mrb[123].mxu0  ;;  %v2685_v29 = vsub.f32 0.0, %v2135_v11  ;;  %6373 = vmatprep.mubr.bf16.mxu1 %v8752_v24  ;;  %v2146_v0 = vadd.f32 %v8490_v10, %v598_v12 }
 0x1ec   : > { %v9396_v17 = vpop.eup %9395  ;;  %9415 = vpow2.f32 %v3031_v15  ;;  %v11105_v25 = vpop.permute.xlu0 %4115  ;;  %v3037_v2 = vmul.f32 1.442695, %v2687_v21  ;;  %v2138_v47 = vadd.f32 %v2137_v35, %v596_v14  ;;  %v11149_v46 = vmul.f32 %v11054_v59, %v3738_v38  ;;  %v8758_v38 = vld [vmem:[%s10454_s22 + $0x1e4] ss:$60 sps:$4 sm:$0xff]  }
 0x1ed   : > { %v9398_v43 = vpop.eup %9397  ;;  %v3363_v30 = vadd.f32 1.0, %v9396_v17  ;;  %9417 = vrcp.f32 %v3360_v7  ;;  %v11115_v23 = vpop.permute.xlu1 %4150  ;;  %v3033_v60 = vmul.f32 1.442695, %v2685_v29  ;;  %4445 = vperm.xlu0 %8631, %v11045_v62   ;;  %v2688_v3 = vsub.f32 0.0, %v2146_v0 }
 0x1ee   : > { %v11107_v31 = vpop.eup %9399  ;;  %v3361_v48 = vadd.f32 1.0, %v9398_v43  ;;  %4450 = vperm.xlu1 %8630, %v9384_v45   ;;  %v11135_v62 = vmul.f32 %v11020_v44, %v3739_v32  ;;  %v2686_v50 = vsub.f32 0.0, %v2138_v47  ;;  %v602_v44 = vld [vmem:[%s13271_s2 + $0x3f8] sm:$0xff]  ;;  %v11158_v24 = vmul.f32 %v11073_v42, %v3744_v28  ;;  %v3743_v42 = vld [vmem:[%s13272_s3 + $0x130] sm:$0xff] }
 0x1ef   : > { %v11117_v16 = vpop.eup %9401  ;;  %9419 = vrcp.f32 %v3363_v30  ;;  %v8493_v36 = vpop.f32.mrb[124].mxu0  ;;  %v3039_v58 = vmul.f32 1.442695, %v2688_v3 }
 0x1f0   : > { %v11123_v19 = vpop.eup %9403  ;;  %9421 = vrcp.f32 %v3361_v48  ;;  %v2159_v56 = vadd.f32 %v8493_v36, %v601_v34  ;;  %v2150_v13 = vpop.f32.mrb[125].mxu0  ;;  %v3035_v17 = vmul.f32 1.442695, %v2686_v50  ;;  %v606_v34 = vld [vmem:[%s13271_s2 + $0x418] sm:$0xff] }
 0x1f1   : > { %v11132_v39 = vpop.eup %9405  ;;  %9423 = vpow2.f32 %v3027_v37  ;;  %v11151_v63 = vpop.permute.xlu0 %4145  ;;  %4435 = vperm.xlu0 %8631, %v11071_v9   ;;  %v2151_v8 = vadd.f32 %v2150_v13, %v599_v40  ;;  %v3737_v9 = vld [vmem:[%s13272_s3 + $0x100] sm:$0xff]  ;;  %v605_v37 = vld [vmem:[%s13271_s2 + $0x410] sm:$0xff] }
 0x1f2   : > { %v9408_v45 = vpop.eup %9407  ;;  %9425 = vpow2.f32 %v3037_v2  ;;  %4440 = vperm.xlu1 %8630, %v11075_v54   ;;  %v8494_v53 = vpop.f32.mrb[126].mxu0  ;;  %v600_v54 = vld [vmem:[%s13271_s2 + $0x3e8] sm:$0xff]  ;;  %6374 = vmatmul.mubr.bf16.gmra.mrb[8].mxu1 %v8754_v51  ;;  %v2691_v59 = vsub.f32 0.0, %v2159_v56  ;;  %v11176_v29 = vmul.f32 %v11047_v20, %v3737_v9  ;;  %v5318_v2 = vpack.c.bf16 %v11138_v33, %v11135_v62 }
 0x1f3   : > { %v9410_v49 = vpop.eup %9409  ;;  %v3364_v61 = vadd.f32 1.0, %v9408_v45  ;;  %9427 = vpow2.f32 %v3033_v60  ;;  %v11160_v4 = vpop.permute.xlu1 %4140  ;;  %v2689_v7 = vsub.f32 0.0, %v2151_v8  ;;  %v2162_v11 = vadd.f32 %v8494_v53, %v602_v44  ;;  %6381 = vmatprep.mubr.bf16.mxu1 %v8755_v22  ;;  %v604_v22 = vld [vmem:[%s13271_s2 + $0x408] sm:$0xff] }
 0x1f4   : > { %v9412_v57 = vpop.eup %9411  ;;  %v3362_v5 = vadd.f32 1.0, %v9410_v49  ;;  %9429 = vpow2.f32 %v3039_v58  ;;  %v2153_v15 = vpop.f32.mrb[127].mxu0  ;;  %v3045_v43 = vmul.f32 1.442695, %v2691_v59  ;;  %v11190_v20 = vmul.f32 %v11077_v55, %v3743_v42  ;;  %v3742_v49 = vld [vmem:[%s13272_s3 + $0x128] sm:$0xff]  ;;  %v3753_v42 = vld [vmem:[%s13272_s3 + $0x180] sm:$0xff] }
 0x1f5   : > { %v9414_v41 = vpop.eup %9413  ;;  %9431 = vrcp.f32 %v3364_v61  ;;  %v3367_v6 = vadd.f32 1.0, %v9412_v57  ;;  %v2154_v35 = vadd.f32 %v2153_v15, %v600_v54  ;;  %4465 = vperm.xlu0 %8631, %v11084_v18   ;;  %v2692_v30 = vsub.f32 0.0, %v2162_v11  ;;  %v8757_v18 = vld [vmem:[%s10454_s22 + $0x168] ss:$60 sps:$4 sm:$0xff]   ;;  %v11200_v40 = vpop.permute.xlu0 %4135 }
 0x1f6   : > { %v9416_v12 = vpop.eup %9415  ;;  %9433 = vrcp.f32 %v3362_v5  ;;  %v3365_v10 = vadd.f32 1.0, %v9414_v41  ;;  %4470 = vperm.xlu1 %8630, %v11107_v31   ;;  %v3741_v31 = vld [vmem:[%s13272_s3 + $0x120] sm:$0xff]  ;;  %v3041_v32 = vmul.f32 1.442695, %v2689_v7  ;;  %v5317_v51 = vpack.c.bf16 %v11149_v46, %v11176_v29  ;;  %v3756_v7 = vld [vmem:[%s13272_s3 + $0x198] sm:$0xff] }
 0x1f7   : > { %9435 = vrcp.f32 %v3367_v6  ;;  %v3368_v14 = vadd.f32 1.0, %v9416_v12  ;;  %v11173_v21 = vpop.eup %9417  ;;  %v11181_v48 = vpop.permute.xlu1 %4185  ;;  %v3047_v60 = vmul.f32 1.442695, %v2692_v30  ;;  %v2690_v28 = vsub.f32 0.0, %v2154_v35  ;;  %v8760_v30 = vld [vmem:[%s10454_s22 + $0x1e0] ss:$60 sps:$4 sm:$0xff]  }
 0x1f8   : > { %9437 = vrcp.f32 %v3365_v10  ;;  %v8497_v47 = vpop.f32.mrb[128].mxu0  ;;  %v5320_v58 = vpack.c.bf16 %v11158_v24, %v11190_v20  ;;  %v11209_v50 = vmul.f32 %v11105_v25, %v3741_v31  ;;  %v3747_v25 = vld [vmem:[%s13272_s3 + $0x150] sm:$0xff]  ;;  %v614_v29 = vld [vmem:[%s13271_s2 + $0x458] sm:$0xff]  ;;  %v8769_v24 = vld [vmem:[%s10454_s22 + $0x348] ss:$60 sps:$4 sm:$0xff]  }
 0x1f9   : > { %v9420_v0 = vpop.eup %9419  ;;  %9439 = vrcp.f32 %v3368_v14  ;;  %v2175_v55 = vadd.f32 %v8497_v47, %v605_v37  ;;  %v2166_v36 = vpop.f32.mrb[129].mxu0  ;;  %4455 = vperm.xlu0 %8631, %v11090_v1   ;;  %v3748_v1 = vld [vmem:[%s13272_s3 + $0x158] sm:$0xff]  ;;  %v3043_v6 = vmul.f32 1.442695, %v2690_v28  ;;  %v3755_v14 = vld [vmem:[%s13272_s3 + $0x190] sm:$0xff]  ;;  %v11247_v47 = vmul.f32 %v11151_v63, %v3747_v25 }
 0x1fa   : > { %v11196_v3 = vpop.eup %9421  ;;  %9441 = vpow2.f32 %v3035_v17  ;;  %4460 = vperm.xlu1 %8630, %v11117_v16   ;;  %v2167_v56 = vadd.f32 %v2166_v36, %v603_v26  ;;  %v8498_v13 = vpop.f32.mrb[130].mxu0  ;;  %6382 = vmatmul.mubr.bf16.gmra.mrb[12].mxu1 %v8757_v18  ;;  %v11228_v17 = vmul.f32 %v11092_v52, %v3742_v49  ;;  %v609_v37 = vld [vmem:[%s13271_s2 + $0x430] sm:$0xff]  ;;  %v3754_v26 = vld [vmem:[%s13272_s3 + $0x188] sm:$0xff]  ;;  %v8761_v36 = vld [vmem:[%s10454_s22 + $0x25c] ss:$60 sps:$4 sm:$0xff]   ;;  %v5123_v25 = vmul.f32 %v11181_v48, %v3755_v14 }
 0x1fb   : > { %v9424_v45 = vpop.eup %9423  ;;  %9443 = vpow2.f32 %v3045_v43  ;;  %v2695_v61 = vsub.f32 0.0, %v2175_v55  ;;  %v2178_v8 = vadd.f32 %v8498_v13, %v606_v34  ;;  %v2169_v53 = vpop.f32.mrb[131].mxu0  ;;  %6389 = vmatprep.mubr.bf16.mxu1 %v8758_v38  ;;  %v11250_v34 = vmul.f32 %v11115_v23, %v3748_v1  ;;  %v610_v55 = vld [vmem:[%s13271_s2 + $0x438] sm:$0xff] }
 0x1fc   : > { %v9426_v44 = vpop.eup %9425  ;;  %v3366_v16 = vadd.f32 1.0, %v9424_v45  ;;  %9445 = vpow2.f32 %v3041_v32  ;;  %v2693_v5 = vsub.f32 0.0, %v2167_v56  ;;  %v4176_v59 = vpop.permute.xlu1 %4175  ;;  %v2170_v15 = vadd.f32 %v2169_v53, %v604_v22 }
 0x1fd   : > { %v9428_v54 = vpop.eup %9427  ;;  %v3371_v57 = vadd.f32 1.0, %v9426_v44  ;;  %9447 = vpow2.f32 %v3047_v60  ;;  %v4191_v11 = vpop.permute.xlu0 %4190  ;;  %v2696_v12 = vsub.f32 0.0, %v2178_v8  ;;  %v3053_v43 = vmul.f32 1.442695, %v2695_v61  ;;  %4505 = vperm.xlu0 %8631, %v9420_v0   ;;  %v607_v0 = vld [vmem:[%s13271_s2 + $0x420] sm:$0xff] }
 0x1fe   : > { %v9430_v41 = vpop.eup %9429  ;;  %9449 = vrcp.f32 %v3366_v16  ;;  %v3369_v9 = vadd.f32 1.0, %v9428_v54  ;;  %v11238_v32 = vadd.f32 1.0, %v11096_v27  ;;  %v3049_v52 = vmul.f32 1.442695, %v2693_v5  ;;  %v3746_v16 = vld [vmem:[%s13272_s3 + $0x148] sm:$0xff] }
 0x1ff   : > { %v9432_v10 = vpop.eup %9431  ;;  %9451 = vrcp.f32 %v3371_v57  ;;  %v3372_v35 = vadd.f32 1.0, %v9430_v41  ;;  %v2694_v18 = vsub.f32 0.0, %v2170_v15  ;;  %v3055_v27 = vmul.f32 1.442695, %v2696_v12  ;;  %v8501_v28 = vpop.f32.mrb[132].mxu0 }
 0x200   : > { %v9434_v31 = vpop.eup %9433  ;;  %9453 = vrcp.f32 %v3369_v9  ;;  %4510 = vperm.xlu1 %8630, %v9432_v10   ;;  %v11252_v38 = vpop.permute.xlu1 %4205  ;;  %v5124_v45 = vmul.f32 %v4191_v11, %v3756_v7  ;;  %v2191_v13 = vadd.f32 %v8501_v28, %v609_v37  ;;  %v5121_v49 = vmul.f32 %v4176_v59, %v3753_v42  ;;  %v3745_v59 = vld [vmem:[%s13272_s3 + $0x140] sm:$0xff]  ;;  %v608_v10 = vld [vmem:[%s13271_s2 + $0x428] sm:$0xff]  ;;  %v3760_v37 = vld [vmem:[%s13272_s3 + $0x1b8] sm:$0xff] }
 0x201   : > { %v9436_v60 = vpop.eup %9435  ;;  %9455 = vrcp.f32 %v3372_v35  ;;  %v3051_v56 = vmul.f32 1.442695, %v2694_v18  ;;  %v4181_v63 = vpop.permute.xlu0 %4180  ;;  %4495 = vperm.xlu0 %8631, %v11196_v3   ;;  %v11269_v48 = vmul.f32 %v11160_v4, %v3746_v16  ;;  %v3757_v4 = vld [vmem:[%s13272_s3 + $0x1a0] sm:$0xff]  ;;  %v5319_v18 = vpack.c.bf16 %v11228_v17, %v11209_v50  ;;  %v616_v50 = vld [vmem:[%s13271_s2 + $0x468] sm:$0xff] }
 0x202   : > { %v11258_v22 = vpop.eup %9437  ;;  %9457 = vpow2.f32 %v3043_v6  ;;  %v2182_v44 = vpop.f32.mrb[133].mxu0  ;;  %v5122_v61 = vmul.f32 %v4181_v63, %v3754_v26  ;;  %6390 = vmatmul.mubr.bf16.gmra.mrb[16].mxu1 %v8760_v30  ;;  %v2699_v57 = vsub.f32 0.0, %v2191_v13  ;;  %v11287_v26 = vmul.f32 %v11200_v40, %v3745_v59  ;;  %v612_v59 = vld [vmem:[%s13271_s2 + $0x448] sm:$0xff] }
 0x203   : > { %v9440_v23 = vpop.eup %9439  ;;  %9459 = vpow2.f32 %v3053_v43  ;;  %v2183_v8 = vadd.f32 %v2182_v44, %v607_v0  ;;  %v8502_v53 = vpop.f32.mrb[134].mxu0  ;;  %6397 = vmatprep.mubr.bf16.mxu1 %v8761_v36  ;;  %v5326_v43 = vpack.c.bf16 %v5124_v45, %v5123_v25  ;;  %v5322_v40 = vpack.c.bf16 %v11250_v34, %v11247_v47  ;;  %v8772_v34 = vld [vmem:[%s10454_s22 + $0x3c0] ss:$60 sps:$4 sm:$0xff]  }
 0x204   : > { %v9442_v54 = vpop.eup %9441  ;;  %9461 = vpow2.f32 %v3049_v52  ;;  %4500 = vperm.xlu1 %8630, %v9434_v31   ;;  %v2194_v1 = vadd.f32 %v8502_v53, %v610_v55  ;;  %v2185_v5 = vpop.f32.mrb[135].mxu0  ;;  %v5325_v9 = vpack.c.bf16 %v5122_v61, %v5121_v49  ;;  %v3061_v30 = vmul.f32 1.442695, %v2699_v57  ;;  %v613_v31 = vld [vmem:[%s13271_s2 + $0x450] sm:$0xff] }
 0x205   : > { %v9444_v15 = vpop.eup %9443  ;;  %v3370_v41 = vadd.f32 1.0, %v9442_v54  ;;  %9463 = vpow2.f32 %v3055_v27  ;;  %v2697_v3 = vsub.f32 0.0, %v2183_v8  ;;  %v4196_v6 = vpop.permute.xlu1 %4195  ;;  %4525 = vperm.xlu0 %8631, %v9436_v60   ;;  %v3758_v60 = vld [vmem:[%s13272_s3 + $0x1a8] sm:$0xff]  ;;  %v8763_v27 = vld [vmem:[%s10454_s22 + $0x258] ss:$60 sps:$4 sm:$0xff]   ;;  %v2186_v36 = vadd.f32 %v2185_v5, %v608_v10 }
 0x206   : > { %v9446_v7 = vpop.eup %9445  ;;  %v3375_v11 = vadd.f32 1.0, %v9444_v15  ;;  %9465 = vpow2.f32 %v3051_v56  ;;  %v4211_v12 = vpop.permute.xlu0 %4210  ;;  %v2700_v42 = vsub.f32 0.0, %v2194_v1  ;;  %7889 = vmatprep.subr.bf16.mxu1 %v5325_v9  ;;  %v5321_v63 = vpack.c.bf16 %v11269_v48, %v11287_v26  ;;  %v3759_v61 = vld [vmem:[%s13272_s3 + $0x1b0] sm:$0xff]  ;;  %v3768_v48 = vld [vmem:[%s13272_s3 + $0x1f8] sm:$0xff] }
 0x207   : > { %v9448_v35 = vpop.eup %9447  ;;  %9467 = vrcp.f32 %v3370_v41  ;;  %v3373_v14 = vadd.f32 1.0, %v9446_v7  ;;  %v3057_v0 = vmul.f32 1.442695, %v2697_v3  ;;  %7890 = vmatpush3.bf16.msra.mxu1 %v5317_v51  ;;  %v8505_v46 = vpop.f32.mrb[136].mxu0  ;;  %v8764_v51 = vld [vmem:[%s10454_s22 + $0x2d4] ss:$60 sps:$4 sm:$0xff]   ;;  %v5125_v8 = vmul.f32 %v4196_v6, %v3757_v4 }
 0x208   : > { %v9450_v52 = vpop.eup %9449  ;;  %9469 = vrcp.f32 %v11238_v32  ;;  %4530 = vperm.xlu1 %8630, %v9440_v23   ;;  %v611_v32 = vld [vmem:[%s13271_s2 + $0x440] sm:$0xff]  ;;  %v3063_v55 = vmul.f32 1.442695, %v2700_v42  ;;  %7891 = vmatprep.subr.bf16.mxu1 %v5326_v43  ;;  %v3376_v13 = vadd.f32 1.0, %v9448_v35  ;;  %v2207_v23 = vadd.f32 %v8505_v46, %v613_v31  ;;  %v2198_v16 = vpop.f32.mrb[137].mxu0  ;;  %v3763_v46 = vld [vmem:[%s13272_s3 + $0x1d0] sm:$0xff] }
 0x209   : > { %v9452_v28 = vpop.eup %9451  ;;  %9471 = vrcp.f32 %v3375_v11  ;;  %v11301_v45 = vpop.permute.xlu1 %4215  ;;  %4515 = vperm.xlu0 %8631, %v11258_v22   ;;  %v2199_v54 = vadd.f32 %v2198_v16, %v611_v32  ;;  %v5128_v1 = vmul.f32 %v4211_v12, %v3760_v37  ;;  %v2698_v5 = vsub.f32 0.0, %v2186_v36  ;;  %v3761_v42 = vld [vmem:[%s13272_s3 + $0x1c0] sm:$0xff]  ;;  %v617_v37 = vld [vmem:[%s13271_s2 + $0x470] sm:$0xff] }
 0x20a   : > { %v11307_v56 = vpop.eup %9453  ;;  %9473 = vrcp.f32 %v3373_v14  ;;  %v4201_v44 = vpop.permute.xlu0 %4200  ;;  %6398 = vmatmul.mubr.bf16.gmra.mrb[20].mxu1 %v8763_v27  ;;  %v2703_v22 = vsub.f32 0.0, %v2207_v23  ;;  %v5127_v12 = vmul.f32 %v11252_v38, %v3759_v61  ;;  %v8766_v38 = vld [vmem:[%s10454_s22 + $0x2d0] ss:$60 sps:$4 sm:$0xff]   ;;  %v618_v61 = vld [vmem:[%s13271_s2 + $0x478] sm:$0xff] }
 0x20b   : > { %v9456_v49 = vpop.eup %9455  ;;  %9475 = vpow2.f32 %v3061_v30  ;;  %v5126_v53 = vmul.f32 %v4201_v44, %v3758_v60  ;;  %v8506_v25 = vpop.f32.mrb[138].mxu0  ;;  %7892 = vmatpush3.bf16.msra.mxu1 %v5318_v2  ;;  %6405 = vmatprep.mubr.bf16.mxu1 %v8764_v51  ;;  %v2701_v35 = vsub.f32 0.0, %v2199_v54  ;;  %v3764_v2 = vld [vmem:[%s13272_s3 + $0x1d8] sm:$0xff]  ;;  %v3762_v60 = vld [vmem:[%s13272_s3 + $0x1c8] sm:$0xff]  ;;  %v615_v51 = vld [vmem:[%s13271_s2 + $0x460] sm:$0xff] }
 0x20c   : > { %v9458_v57 = vpop.eup %9457  ;;  %9477 = vpow2.f32 %v3057_v0  ;;  %4520 = vperm.xlu1 %8630, %v9450_v52   ;;  %v2210_v15 = vadd.f32 %v8506_v25, %v614_v29  ;;  %v2201_v41 = vpop.f32.mrb[139].mxu0  ;;  %v5328_v52 = vpack.c.bf16 %v5128_v1, %v5127_v12  ;;  %v3059_v0 = vmul.f32 1.442695, %v2698_v5  ;;  %v8767_v27 = vld [vmem:[%s10454_s22 + $0x34c] ss:$60 sps:$4 sm:$0xff]  }
 0x20d   : > { %v9460_v9 = vpop.eup %9459  ;;  %v3374_v3 = vadd.f32 1.0, %v9458_v57  ;;  %9479 = vpow2.f32 %v3063_v55  ;;  %v5327_v6 = vpack.c.bf16 %v5126_v53, %v5125_v8  ;;  %4545 = vperm.xlu0 %8631, %v9452_v28   ;;  %v2202_v33 = vadd.f32 %v2201_v41, %v612_v59  ;;  %v4231_v30 = vpop.permute.xlu1 %4230 }
 0x20e   : > { %v9462_v7 = vpop.eup %9461  ;;  %9481 = vrcp.f32 %v3376_v13  ;;  %v3379_v11 = vadd.f32 1.0, %v9460_v9  ;;  %v4226_v10 = vpop.permute.xlu0 %4225  ;;  %v2704_v62 = vsub.f32 0.0, %v2210_v15  ;;  %v5129_v55 = vmul.f32 %v11301_v45, %v3761_v42 }
 0x20f   : > { %v9464_v14 = vpop.eup %9463  ;;  %9483 = vrcp.f32 %v3374_v3  ;;  %v3377_v43 = vadd.f32 1.0, %v9462_v7  ;;  %7893 = vmatprep.subr.bf16.mxu1 %v5327_v6  ;;  %v3069_v36 = vmul.f32 1.442695, %v2703_v22  ;;  %v8509_v29 = vpop.f32.mrb[140].mxu0  ;;  %v3065_v44 = vmul.f32 1.442695, %v2701_v35 }
 0x210   : > { %v9466_v4 = vpop.eup %9465  ;;  %9485 = vrcp.f32 %v3379_v11  ;;  %v3380_v31 = vadd.f32 1.0, %v9464_v14  ;;  %4550 = vperm.xlu1 %8630, %v9456_v49   ;;  %7894 = vmatpush3.bf16.msra.mxu1 %v5319_v18  ;;  %v2702_v23 = vsub.f32 0.0, %v2202_v33  ;;  %v2223_v16 = vadd.f32 %v8509_v29, %v617_v37  ;;  %v2214_v49 = vpop.f32.mrb[141].mxu0  ;;  %v3766_v22 = vld [vmem:[%s13272_s3 + $0x1e8] sm:$0xff]  ;;  %v3749_v14 = vld [vmem:[%s13272_s3 + $0x160] sm:$0xff] }
 0x211   : > { %v9468_v32 = vpop.eup %9467  ;;  %9487 = vrcp.f32 %v3377_v43  ;;  %v3378_v28 = vadd.f32 1.0, %v9466_v4  ;;  %7895 = vmatprep.subr.bf16.mxu1 %v5328_v52  ;;  %v3071_v18 = vmul.f32 1.442695, %v2704_v62  ;;  %v5132_v8 = vmul.f32 %v4231_v30, %v3764_v2  ;;  %4535 = vperm.xlu0 %8631, %v11307_v56   ;;  %v4161_v54 = vpop.permute.xlu1 %4160  ;;  %v3750_v56 = vld [vmem:[%s13272_s3 + $0x168] sm:$0xff]  ;;  %v621_v62 = vld [vmem:[%s13271_s2 + $0x490] sm:$0xff] }
 0x212   : > { %v9470_v13 = vpop.eup %9469  ;;  %9489 = vrcp.f32 %v3380_v31  ;;  %v4221_v45 = vpop.permute.xlu0 %4220  ;;  %v5131_v1 = vmul.f32 %v4226_v10, %v3763_v46  ;;  %6406 = vmatmul.mubr.bf16.gmra.mrb[24].mxu1 %v8766_v38  ;;  %v2707_v5 = vsub.f32 0.0, %v2223_v16  ;;  %v2215_v15 = vadd.f32 %v2214_v49, %v615_v51  ;;  %v8770_v33 = vld [vmem:[%s10454_s22 + $0x3c4] ss:$60 sps:$4 sm:$0xff]   ;;  %v620_v49 = vld [vmem:[%s13271_s2 + $0x488] sm:$0xff] }
 0x213   : > { %v11352_v17 = vpop.eup %9471  ;;  %9491 = vrcp.f32 %v3378_v28  ;;  %v5130_v53 = vmul.f32 %v4221_v45, %v3762_v60  ;;  %v8510_v25 = vpop.f32.mrb[142].mxu0  ;;  %6413 = vmatprep.mubr.bf16.mxu1 %v8767_v27  ;;  %v3067_v12 = vmul.f32 1.442695, %v2702_v23  ;;  %v619_v31 = vld [vmem:[%s13271_s2 + $0x480] sm:$0xff]  ;;  %v622_v28 = vld [vmem:[%s13271_s2 + $0x498] sm:$0xff] }
 0x214   : > { %v11355_v57 = vpop.eup %9473  ;;  %9493 = vpow2.f32 %v3059_v0  ;;  %4540 = vperm.xlu1 %8630, %v9468_v32   ;;  %v2217_v41 = vpop.f32.mrb[143].mxu0  ;;  %7896 = vmatpush3.bf16.msra.mxu1 %v5320_v58  ;;  %v2226_v3 = vadd.f32 %v8510_v25, %v618_v61  ;;  %v2705_v10 = vsub.f32 0.0, %v2215_v15  ;;  %v5330_v35 = vpack.c.bf16 %v5132_v8, %v5131_v1  ;;  %v3767_v8 = vld [vmem:[%s13272_s3 + $0x1f0] sm:$0xff] }
 0x215   : > { %v9476_v59 = vpop.eup %9475  ;;  %9495 = vpow2.f32 %v3069_v36  ;;  %v5329_v9 = vpack.c.bf16 %v5130_v53, %v5129_v55  ;;  %v2218_v6 = vadd.f32 %v2217_v41, %v616_v50  ;;  %4475 = vperm.xlu0 %8631, %v11132_v39   ;;  %v3077_v38 = vmul.f32 1.442695, %v2707_v5  ;;  %v3765_v39 = vld [vmem:[%s13272_s3 + $0x1e0] sm:$0xff]  ;;  %v11392_v55 = vld [vmem:[%s10454_s22 + $0x438] sm:$0xff] }
 0x216   : > { %v9478_v7 = vpop.eup %9477  ;;  %v3383_v11 = vadd.f32 1.0, %v9476_v59  ;;  %9497 = vpow2.f32 %v3065_v44  ;;  %v4156_v42 = vpop.permute.xlu0 %4155  ;;  %v2708_v43 = vsub.f32 0.0, %v2226_v3  ;;  %v11383_v0 = vmul.f32 %v4161_v54, %v3750_v56 }
 0x217   : > { %v9480_v20 = vpop.eup %9479  ;;  %v3381_v58 = vadd.f32 1.0, %v9478_v7  ;;  %9499 = vpow2.f32 %v3071_v18  ;;  %7897 = vmatprep.subr.bf16.mxu1 %v5329_v9  ;;  %v2706_v37 = vsub.f32 0.0, %v2218_v6  ;;  %v4241_v4 = vpop.permute.xlu1 %4240  ;;  %v3073_v60 = vmul.f32 1.442695, %v2705_v10  ;;  %v3752_v6 = vld [vmem:[%s13272_s3 + $0x178] sm:$0xff] }
 0x218   : > { %v11375_v2 = vpop.eup %9481  ;;  %9501 = vrcp.f32 %v3383_v11  ;;  %v3384_v30 = vadd.f32 1.0, %v9480_v20  ;;  %4480 = vperm.xlu1 %8630, %v9470_v13   ;;  %7898 = vmatpush3.bf16.msra.mxu1 %v5321_v63  ;;  %v5134_v27 = vmul.f32 %v4241_v4, %v3766_v22  ;;  %v8513_v32 = vpop.f32.mrb[144].mxu0  ;;  %v5117_v46 = vmul.f32 %v4156_v42, %v3749_v14 }
 0x219   : > { %v9484_v52 = vpop.eup %9483  ;;  %9503 = vrcp.f32 %v3381_v58  ;;  %v3079_v29 = vmul.f32 1.442695, %v2708_v43  ;;  %7899 = vmatprep.subr.bf16.mxu1 %v5330_v35  ;;  %v2239_v26 = vadd.f32 %v8513_v32, %v621_v62  ;;  %v2230_v63 = vpop.f32.mrb[145].mxu0  ;;  %v3075_v44 = vmul.f32 1.442695, %v2706_v37  ;;  %4555 = vperm.xlu0 %8631, %v11355_v57   ;;  %v3751_v58 = vld [vmem:[%s13272_s3 + $0x170] sm:$0xff] }
 0x21a   : > { %v11394_v36 = vpop.eup %9485  ;;  %9505 = vrcp.f32 %v3384_v30  ;;  %v4236_v51 = vpop.permute.xlu0 %4235  ;;  %v2231_v45 = vadd.f32 %v2230_v63, %v619_v31  ;;  %6414 = vmatmul.mubr.bf16.gmra.mrb[28].mxu1 %v8769_v24  ;;  %v7668_v25 = vcombine.high %v11392_v55, %v11392_v55  ;;  %v5323_v11 = vpack.c.bf16 %v11383_v0, %v5117_v46 }
 0x21b   : > { %v11399_v13 = vpop.eup %9487  ;;  %9507 = vpow2.f32 %v3067_v12  ;;  %v5133_v23 = vmul.f32 %v4236_v51, %v3765_v39  ;;  %v8514_v16 = vpop.f32.mrb[146].mxu0  ;;  %v2711_v18 = vsub.f32 0.0, %v2239_v26  ;;  %6421 = vmatprep.mubr.bf16.mxu1 %v8770_v33 }
 0x21c   : > { %v11405_v61 = vpop.eup %9489  ;;  %9509 = vpow2.f32 %v3077_v38  ;;  %4560 = vperm.xlu1 %8630, %v9484_v52   ;;  %v4251_v50 = vpop.permute.xlu1 %4250  ;;  %v2242_v53 = vadd.f32 %v8514_v16, %v622_v28  ;;  %7900 = vmatpush3.bf16.msra.mxu1 %v5322_v40  ;;  %v2709_v15 = vsub.f32 0.0, %v2231_v45  ;;  %v625_v40 = vld [vmem:[%s13271_s2 + $0x4b0] sm:$0xff] }
 0x21d   : > { %v2233_v54 = vpop.f32.mrb[147].mxu0  ;;  %v11412_v57 = vpop.eup %9491  ;;  %9511 = vpow2.f32 %v3073_v60  ;;  %v5331_v1 = vpack.c.bf16 %v5134_v27, %v5133_v23  ;;  %v5136_v5 = vmul.f32 %v4251_v50, %v3768_v48  ;;  %v3085_v59 = vmul.f32 1.442695, %v2711_v18  ;;  %4565 = vperm.xlu0 %8631, %v11352_v17   ;;  %v623_v17 = vld [vmem:[%s13271_s2 + $0x4a0] sm:$0xff]  ;;  %v629_v18 = vld [vmem:[%s13271_s2 + $0x4d0] sm:$0xff] }
 0x21e   : > { %v9494_v41 = vpop.eup %9493  ;;  %9513 = vpow2.f32 %v3079_v29  ;;  %v4246_v9 = vpop.permute.xlu0 %4245  ;;  %v2712_v56 = vsub.f32 0.0, %v2242_v53  ;;  %v2234_v3 = vadd.f32 %v2233_v54, %v620_v49  ;;  %v3081_v10 = vmul.f32 1.442695, %v2709_v15 }
 0x21f   : > { %v9496_v22 = vpop.eup %9495  ;;  %v3382_v7 = vadd.f32 1.0, %v9494_v41  ;;  %9515 = vpow2.f32 %v3075_v44  ;;  %v5135_v47 = vmul.f32 %v4246_v9, %v3767_v8  ;;  %7901 = vmatprep.subr.bf16.mxu1 %v5331_v1  ;;  %v8517_v33 = vpop.f32.mrb[148].mxu0  ;;  %v7667_v50 = vcombine.low %v11392_v55, %v11392_v55  ;;  %v630_v9 = vld [vmem:[%s13271_s2 + $0x4d8] sm:$0xff] }
 0x220   : > { %v9498_v12 = vpop.eup %9497  ;;  %v3387_v42 = vadd.f32 1.0, %v9496_v22  ;;  %9517 = vpow2.f32 %v3085_v59  ;;  %4570 = vperm.xlu1 %8630, %v11375_v2   ;;  %v2710_v24 = vsub.f32 0.0, %v2234_v3  ;;  %v4171_v20 = vpop.permute.xlu1 %4170  ;;  %7902 = vmatpush3.bf16.msra.mxu1 %v5323_v11  ;;  %v626_v2 = vld [vmem:[%s13271_s2 + $0x4b8] sm:$0xff]  ;;  %v3087_v37 = vmul.f32 1.442695, %v2712_v56 }
 0x221   : > { %v9500_v35 = vpop.eup %9499  ;;  %9519 = vrcp.f32 %v3382_v7  ;;  %v3385_v14 = vadd.f32 1.0, %v9498_v12  ;;  %v5332_v43 = vpack.c.bf16 %v5136_v5, %v5135_v47  ;;  %v5120_v62 = vmul.f32 %v4171_v20, %v3752_v6  ;;  %v2246_v31 = vpop.f32.mrb[149].mxu0  ;;  %4485 = vperm.xlu0 %8631, %v11123_v19   ;;  %v624_v19 = vld [vmem:[%s13271_s2 + $0x4a8] sm:$0xff] }
 0x222   : > { %v11436_v30 = vpop.eup %9501  ;;  %9521 = vrcp.f32 %v3387_v42  ;;  %v3388_v38 = vadd.f32 1.0, %v9500_v35  ;;  %v4166_v4 = vpop.permute.xlu0 %4165  ;;  %v2255_v39 = vadd.f32 %v8517_v33, %v625_v40  ;;  %v3083_v0 = vmul.f32 1.442695, %v2710_v24  ;;  %6422 = vmatmul.mubr.bf16.gmra.mrb[32].mxu1 %v8772_v34  ;;  %v8777_v5 = vld [vmem:[%s10454_s22 + $0xc] ss:$60 sps:$4 sm:$0xff]  }
 0x223   : > { %v11438_v52 = vpop.eup %9503  ;;  %9523 = vrcp.f32 %v3385_v14  ;;  %v5119_v60 = vmul.f32 %v4166_v4, %v3751_v58  ;;  %7903 = vmatprep.subr.bf16.mxu1 %v5332_v43  ;;  %v2247_v27 = vadd.f32 %v2246_v31, %v623_v17  ;;  %v8518_v32 = vpop.f32.mrb[150].mxu0  ;;  %6429 = vmatprep.mubr.bf16.mxu1 %v7668_v25  ;;  %v628_v42 = vld [vmem:[%s13271_s2 + $0x4c8] sm:$0xff] }
 0x224   : > { %v11441_v28 = vpop.eup %9505  ;;  %9525 = vrcp.f32 %v3388_v38  ;;  %4490 = vperm.xlu1 %8630, %v11173_v21   ;;  %v11444_v46 = vpop.permute.xlu1 %4270  ;;  %v2258_v29 = vadd.f32 %v8518_v32, %v626_v2  ;;  %v2715_v63 = vsub.f32 0.0, %v2255_v39  ;;  %v8775_v4 = vld [vmem:[%s10454_s22 + $0x8] ss:$60 sps:$4 sm:$0xff]   ;;  %v633_v39 = vld [vmem:[%s13271_s2 + $0x4f0] sm:$0xff] }
 0x225   : > { %v2249_v51 = vpop.f32.mrb[151].mxu0  ;;  %v9508_v48 = vpop.eup %9507  ;;  %9527 = vpow2.f32 %v3081_v10  ;;  %v5324_v26 = vpack.c.bf16 %v5120_v62, %v5119_v60  ;;  %v2713_v49 = vsub.f32 0.0, %v2247_v27  ;;  %4585 = vperm.xlu0 %8631, %v11394_v36   ;;  %v627_v36 = vld [vmem:[%s13271_s2 + $0x4c0] sm:$0xff]  ;;  %v3772_v62 = vld [vmem:[%s13272_s3 + $0x218] sm:$0xff]  ;;  %v3771_v60 = vld [vmem:[%s13272_s3 + $0x210] sm:$0xff] }
 0x226   : > { %v9510_v44 = vpop.eup %9509  ;;  %v3386_v23 = vadd.f32 1.0, %v9508_v48  ;;  %9529 = vpow2.f32 %v3087_v37  ;;  %v11452_v21 = vpop.permute.xlu0 %4265  ;;  %v2716_v54 = vsub.f32 0.0, %v2258_v29  ;;  %v2250_v25 = vadd.f32 %v2249_v51, %v624_v19  ;;  %v8778_v29 = vld [vmem:[%s10454_s22 + $0x84] ss:$60 sps:$4 sm:$0xff]  }
 0x227   : > { %v9512_v45 = vpop.eup %9511  ;;  %v3391_v16 = vadd.f32 1.0, %v9510_v44  ;;  %9531 = vpow2.f32 %v3083_v0  ;;  %7904 = vmatpush3.bf16.msra.mxu1 %v5324_v26  ;;  %v3093_v41 = vmul.f32 1.442695, %v2715_v63  ;;  %v8521_v59 = vpop.f32.mrb[152].mxu0  ;;  %v3089_v34 = vmul.f32 1.442695, %v2713_v49 }
 0x228   : > { %v9514_v8 = vpop.eup %9513  ;;  %9533 = vrcp.f32 %v3386_v23  ;;  %v3389_v53 = vadd.f32 1.0, %v9512_v45  ;;  %4590 = vperm.xlu1 %8630, %v11405_v61   ;;  %v11461_v1 = vpop.permute.xlu1 %4260  ;;  %v2714_v3 = vsub.f32 0.0, %v2250_v25  ;;  %v2271_v22 = vadd.f32 %v8521_v59, %v629_v18  ;;  %v3770_v45 = vld [vmem:[%s13272_s3 + $0x208] sm:$0xff] }
 0x229   : > { %v9516_v15 = vpop.eup %9515  ;;  %9535 = vrcp.f32 %v3391_v16  ;;  %v3392_v55 = vadd.f32 1.0, %v9514_v8  ;;  %v2262_v7 = vpop.f32.mrb[153].mxu0  ;;  %4575 = vperm.xlu0 %8631, %v11399_v13   ;;  %v3095_v24 = vmul.f32 1.442695, %v2716_v54  ;;  %v11508_v26 = vmul.f32 %v11444_v46, %v3772_v62  ;;  %v3769_v46 = vld [vmem:[%s13272_s3 + $0x200] sm:$0xff] }
 0x22a   : > { %v9518_v56 = vpop.eup %9517  ;;  %9537 = vrcp.f32 %v3389_v53  ;;  %v3390_v61 = vadd.f32 1.0, %v9516_v15  ;;  %v11470_v6 = vpop.permute.xlu0 %4255  ;;  %v2263_v40 = vadd.f32 %v2262_v7, %v627_v36  ;;  %6430 = vmatmul.mubr.bf16.gmra.mrb[36].mxu1 %v7667_v50  ;;  %v3091_v13 = vmul.f32 1.442695, %v2714_v3 }
 0x22b   : > { %v11472_v11 = vpop.eup %9519  ;;  %9539 = vrcp.f32 %v3392_v55  ;;  %v3395_v47 = vadd.f32 1.0, %v9518_v56  ;;  %v8522_v12 = vpop.f32.mrb[154].mxu0  ;;  %v2719_v14 = vsub.f32 0.0, %v2271_v22  ;;  %6469 = vmatprep.mubr.bf16.mxu1 %v8777_v5  ;;  %v11526_v53 = vmul.f32 %v11452_v21, %v3771_v60  ;;  %v632_v5 = vld [vmem:[%s13271_s2 + $0x4e8] sm:$0xff] }
 0x22c   : > { %v11478_v10 = vpop.eup %9521  ;;  %9541 = vrcp.f32 %v3390_v61  ;;  %4580 = vperm.xlu1 %8630, %v11412_v57   ;;  %v11481_v20 = vpop.permute.xlu1 %4290  ;;  %v2274_v58 = vadd.f32 %v8522_v12, %v630_v9  ;;  %v2717_v33 = vsub.f32 0.0, %v2263_v40  ;;  %v11543_v61 = vmul.f32 %v11470_v6, %v3769_v46  ;;  %v637_v6 = vld [vmem:[%s13271_s2 + $0x510] sm:$0xff]  ;;  %v3773_v46 = vld [vmem:[%s13272_s3 + $0x220] sm:$0xff] }
 0x22d   : > { %v2265_v17 = vpop.f32.mrb[155].mxu0  ;;  %v11483_v35 = vpop.eup %9523  ;;  %9543 = vrcp.f32 %v3395_v47  ;;  %4605 = vperm.xlu0 %8631, %v11436_v30   ;;  %v631_v30 = vld [vmem:[%s13271_s2 + $0x4e0] sm:$0xff]  ;;  %v3101_v63 = vmul.f32 1.442695, %v2719_v14 }
 0x22e   : > { %v11485_v43 = vpop.eup %9525  ;;  %9545 = vpow2.f32 %v3093_v41  ;;  %v11490_v57 = vpop.permute.xlu0 %4285  ;;  %v2266_v2 = vadd.f32 %v2265_v17, %v628_v42  ;;  %v2720_v37 = vsub.f32 0.0, %v2274_v58  ;;  %v3097_v16 = vmul.f32 1.442695, %v2717_v33  ;;  %v8780_v58 = vld [vmem:[%s10454_s22 + $0x80] ss:$60 sps:$4 sm:$0xff]  }
 0x22f   : > { %v9528_v38 = vpop.eup %9527  ;;  %9547 = vpow2.f32 %v3089_v34  ;;  %v8525_v19 = vpop.f32.mrb[156].mxu0  ;;  %v635_v17 = vld [vmem:[%s13271_s2 + $0x500] sm:$0xff] }
 0x230   : > { %v9530_v31 = vpop.eup %9529  ;;  %v3393_v0 = vadd.f32 1.0, %v9528_v38  ;;  %9549 = vpow2.f32 %v3095_v24  ;;  %4610 = vperm.xlu1 %8630, %v11441_v28   ;;  %v2718_v27 = vsub.f32 0.0, %v2266_v2  ;;  %v11501_v32 = vpop.permute.xlu1 %4280  ;;  %v634_v28 = vld [vmem:[%s13271_s2 + $0x4f8] sm:$0xff]  ;;  %v2287_v50 = vadd.f32 %v8525_v19, %v633_v39  ;;  %v3775_v39 = vld [vmem:[%s13272_s3 + $0x230] sm:$0xff]  ;;  %v636_v19 = vld [vmem:[%s13271_s2 + $0x508] sm:$0xff] }
 0x231   : > { %v9532_v51 = vpop.eup %9531  ;;  %v3396_v48 = vadd.f32 1.0, %v9530_v31  ;;  %9551 = vpow2.f32 %v3091_v13  ;;  %v2278_v18 = vpop.f32.mrb[157].mxu0  ;;  %v3103_v54 = vmul.f32 1.442695, %v2720_v37  ;;  %4595 = vperm.xlu0 %8631, %v11438_v52   ;;  %v11540_v52 = vmul.f32 %v11461_v1, %v3770_v45  ;;  %v8781_v2 = vld [vmem:[%s10454_s22 + $0xfc] ss:$60 sps:$4 sm:$0xff]  }
 0x232   : > { %v11513_v44 = vpop.eup %9533  ;;  %9553 = vrcp.f32 %v3393_v0  ;;  %v3394_v23 = vadd.f32 1.0, %v9532_v51  ;;  %v11521_v49 = vpop.permute.xlu0 %4275  ;;  %v2279_v25 = vadd.f32 %v2278_v18, %v631_v30  ;;  %v3099_v55 = vmul.f32 1.442695, %v2718_v27  ;;  %6470 = vmatmul.mubr.bf16.vlgmr.msra.gmra.mrb[40].mxu1 %v8775_v4  ;;  %v3776_v4 = vld [vmem:[%s13272_s3 + $0x238] sm:$0xff]  ;;  %v3774_v45 = vld [vmem:[%s13272_s3 + $0x228] sm:$0xff] }
 0x233   : > { %v11523_v8 = vpop.eup %9535  ;;  %9555 = vrcp.f32 %v3396_v48  ;;  %v8526_v36 = vpop.f32.mrb[158].mxu0  ;;  %v2723_v21 = vsub.f32 0.0, %v2287_v50  ;;  %6477 = vmatprep.mubr.bf16.mxu1 %v8778_v29  ;;  %v5333_v62 = vpack.c.bf16 %v11540_v52, %v11543_v61 }
 0x234   : > { %v11532_v15 = vpop.eup %9537  ;;  %9557 = vrcp.f32 %v3394_v23  ;;  %4600 = vperm.xlu1 %8630, %v11472_v11   ;;  %v11535_v41 = vpop.permute.xlu1 %4310  ;;  %v2290_v59 = vadd.f32 %v8526_v36, %v634_v28  ;;  %v2721_v3 = vsub.f32 0.0, %v2279_v25  ;;  %v11597_v36 = vmul.f32 %v11481_v20, %v3776_v4  ;;  %v3786_v20 = vld [vmem:[%s13272_s3 + $0x288] sm:$0xff]  ;;  %v642_v4 = vld [vmem:[%s13271_s2 + $0x538] sm:$0xff] }
 0x235   : > { %v2281_v9 = vpop.f32.mrb[159].mxu0  ;;  %v11537_v56 = vpop.eup %9539  ;;  %9559 = vpow2.f32 %v3101_v63  ;;  %v3109_v7 = vmul.f32 1.442695, %v2723_v21  ;;  %4625 = vperm.xlu0 %8631, %v11478_v10   ;;  %v5334_v10 = vpack.c.bf16 %v11508_v26, %v11526_v53  ;;  %v3796_v26 = vld [vmem:[%s13272_s3 + $0x2d8] sm:$0xff]  ;;  %v3795_v53 = vld [vmem:[%s13272_s3 + $0x2d0] sm:$0xff] }
 0x236   : > { %v11545_v22 = vpop.eup %9541  ;;  %9561 = vpow2.f32 %v3097_v16  ;;  %v11547_v11 = vpop.permute.xlu0 %4305  ;;  %v2724_v47 = vsub.f32 0.0, %v2290_v59  ;;  %v2282_v34 = vadd.f32 %v2281_v9, %v632_v5  ;;  %v3105_v1 = vmul.f32 1.442695, %v2721_v3  ;;  %v3788_v16 = vld [vmem:[%s13272_s3 + $0x298] sm:$0xff] }
 0x237   : > { %v11549_v40 = vpop.eup %9543  ;;  %9563 = vpow2.f32 %v3103_v54  ;;  %v8529_v33 = vpop.f32.mrb[160].mxu0  ;;  %v11600_v5 = vmul.f32 %v11490_v57, %v3775_v39 }
 0x238   : > { %v9546_v12 = vpop.eup %9545  ;;  %9565 = vpow2.f32 %v3099_v55  ;;  %4630 = vperm.xlu1 %8630, %v11485_v43   ;;  %v2722_v42 = vsub.f32 0.0, %v2282_v34  ;;  %v11556_v24 = vpop.permute.xlu1 %4300  ;;  %v638_v43 = vld [vmem:[%s13271_s2 + $0x518] sm:$0xff]  ;;  %v3111_v31 = vmul.f32 1.442695, %v2724_v47  ;;  %v2303_v60 = vadd.f32 %v8529_v33, %v637_v6  ;;  %v3785_v6 = vld [vmem:[%s13272_s3 + $0x280] sm:$0xff] }
 0x239   : > { %v9548_v13 = vpop.eup %9547  ;;  %v3399_v14 = vadd.f32 1.0, %v9546_v12  ;;  %9567 = vpow2.f32 %v3109_v7  ;;  %v2294_v27 = vpop.f32.mrb[161].mxu0  ;;  %4615 = vperm.xlu0 %8631, %v11483_v35   ;;  %v11611_v47 = vmul.f32 %v11501_v32, %v3774_v45  ;;  %v11614_v34 = vmul.f32 %v11521_v49, %v3773_v46  ;;  %v8783_v12 = vld [vmem:[%s10454_s22 + $0xf8] ss:$60 sps:$4 sm:$0xff]  }
 0x23a   : > { %v9550_v38 = vpop.eup %9549  ;;  %v3397_v37 = vadd.f32 1.0, %v9548_v13  ;;  %9569 = vpow2.f32 %v3105_v1  ;;  %v11576_v0 = vpop.permute.xlu0 %4295  ;;  %v3107_v51 = vmul.f32 1.442695, %v2722_v42  ;;  %v2295_v48 = vadd.f32 %v2294_v27, %v635_v17  ;;  %6478 = vmatmul.mubr.bf16.gmra.mrb[44].mxu1 %v8780_v58  ;;  %v641_v42 = vld [vmem:[%s13271_s2 + $0x530] sm:$0xff] }
 0x23b   : > { %v9552_v30 = vpop.eup %9551  ;;  %9571 = vrcp.f32 %v3399_v14  ;;  %v3400_v29 = vadd.f32 1.0, %v9550_v38  ;;  %v8530_v63 = vpop.f32.mrb[162].mxu0  ;;  %v2727_v35 = vsub.f32 0.0, %v2303_v60  ;;  %6485 = vmatprep.mubr.bf16.mxu1 %v8781_v2  ;;  %v8784_v14 = vld [vmem:[%s10454_s22 + $0x174] ss:$60 sps:$4 sm:$0xff]  }
 0x23c   : > { %v11582_v28 = vpop.eup %9553  ;;  %9573 = vrcp.f32 %v3397_v37  ;;  %v3398_v23 = vadd.f32 1.0, %v9552_v30  ;;  %4620 = vperm.xlu1 %8630, %v11513_v44   ;;  %v4351_v50 = vpop.permute.xlu1 %4350  ;;  %v2306_v18 = vadd.f32 %v8530_v63, %v638_v43  ;;  %v3787_v44 = vld [vmem:[%s13272_s3 + $0x290] sm:$0xff]  ;;  %v2725_v55 = vsub.f32 0.0, %v2295_v48 }
 0x23d   : > { %v2297_v54 = vpop.f32.mrb[163].mxu0  ;;  %v11594_v25 = vpop.eup %9555  ;;  %9575 = vrcp.f32 %v3400_v29  ;;  %v3117_v59 = vmul.f32 1.442695, %v2727_v35  ;;  %v11616_v1 = vmul.f32 %v4351_v50, %v3788_v16  ;;  %4645 = vperm.xlu0 %8631, %v11523_v8   ;;  %v639_v8 = vld [vmem:[%s13271_s2 + $0x520] sm:$0xff]  ;;  %v640_v50 = vld [vmem:[%s13271_s2 + $0x528] sm:$0xff] }
 0x23e   : > { %v11605_v21 = vpop.eup %9557  ;;  %9577 = vrcp.f32 %v3398_v23  ;;  %v4346_v9 = vpop.permute.xlu0 %4345  ;;  %v2728_v3 = vsub.f32 0.0, %v2306_v18  ;;  %v2298_v7 = vadd.f32 %v2297_v54, %v636_v19  ;;  %v3113_v49 = vmul.f32 1.442695, %v2725_v55 }
 0x23f   : > { %v9560_v57 = vpop.eup %9559  ;;  %9579 = vpow2.f32 %v3111_v31  ;;  %v11626_v17 = vmul.f32 %v4346_v9, %v3787_v44  ;;  %v8533_v37 = vpop.f32.mrb[164].mxu0  ;;  %v3792_v44 = vld [vmem:[%s13272_s3 + $0x2b8] sm:$0xff] }
 0x240   : > { %v9562_v32 = vpop.eup %9561  ;;  %v3403_v58 = vadd.f32 1.0, %v9560_v57  ;;  %9581 = vpow2.f32 %v3107_v51  ;;  %4650 = vperm.xlu1 %8630, %v11537_v56   ;;  %v4341_v13 = vpop.permute.xlu1 %4340  ;;  %v3119_v2 = vmul.f32 1.442695, %v2728_v3  ;;  %v2726_v56 = vsub.f32 0.0, %v2298_v7 }
 0x241   : > { %v9564_v33 = vpop.eup %9563  ;;  %v3401_v43 = vadd.f32 1.0, %v9562_v32  ;;  %9583 = vpow2.f32 %v3117_v59  ;;  %v5154_v38 = vmul.f32 %v4341_v13, %v3786_v20  ;;  %v2319_v27 = vadd.f32 %v8533_v37, %v641_v42  ;;  %v2310_v30 = vpop.f32.mrb[165].mxu0  ;;  %4635 = vperm.xlu0 %8631, %v11532_v15   ;;  %v3789_v13 = vld [vmem:[%s13272_s3 + $0x2a0] sm:$0xff] }
 0x242   : > { %v9566_v39 = vpop.eup %9565  ;;  %9585 = vrcp.f32 %v3403_v58  ;;  %v3404_v31 = vadd.f32 1.0, %v9564_v33  ;;  %v4336_v60 = vpop.permute.xlu0 %4335  ;;  %v2311_v63 = vadd.f32 %v2310_v30, %v639_v8  ;;  %6486 = vmatmul.mubr.bf16.gmra.mrb[48].mxu1 %v8783_v12  ;;  %v5336_v3 = vpack.c.bf16 %v11597_v36, %v11600_v5  ;;  %v3790_v58 = vld [vmem:[%s13272_s3 + $0x2a8] sm:$0xff]  ;;  %v645_v8 = vld [vmem:[%s13271_s2 + $0x550] sm:$0xff]  ;;  %v646_v30 = vld [vmem:[%s13271_s2 + $0x558] sm:$0xff] }
 0x243   : > { %v9568_v29 = vpop.eup %9567  ;;  %9587 = vrcp.f32 %v3401_v43  ;;  %v3402_v51 = vadd.f32 1.0, %v9566_v39  ;;  %v5153_v48 = vmul.f32 %v4336_v60, %v3785_v6  ;;  %v8534_v19 = vpop.f32.mrb[166].mxu0  ;;  %v2731_v46 = vsub.f32 0.0, %v2319_v27  ;;  %6493 = vmatprep.mubr.bf16.mxu1 %v8784_v14  ;;  %v8786_v33 = vld [vmem:[%s10454_s22 + $0x170] ss:$60 sps:$4 sm:$0xff]   ;;  %v643_v43 = vld [vmem:[%s13271_s2 + $0x540] sm:$0xff] }
 0x244   : > { %v9570_v23 = vpop.eup %9569  ;;  %9589 = vrcp.f32 %v3404_v31  ;;  %v3407_v45 = vadd.f32 1.0, %v9568_v29  ;;  %4640 = vperm.xlu1 %8630, %v11545_v22   ;;  %v2322_v35 = vadd.f32 %v8534_v19, %v642_v4  ;;  %v2313_v16 = vpop.f32.mrb[167].mxu0  ;;  %v3791_v22 = vld [vmem:[%s13272_s3 + $0x2b0] sm:$0xff]  ;;  %v2729_v59 = vsub.f32 0.0, %v2311_v63  ;;  %v3781_v36 = vld [vmem:[%s13272_s3 + $0x260] sm:$0xff] }
 0x245   : > { %v11641_v18 = vpop.eup %9571  ;;  %9591 = vrcp.f32 %v3402_v51  ;;  %v3405_v54 = vadd.f32 1.0, %v9570_v23  ;;  %v5341_v15 = vpack.c.bf16 %v5154_v38, %v5153_v48  ;;  %v4371_v55 = vpop.permute.xlu1 %4370  ;;  %v3115_v7 = vmul.f32 1.442695, %v2726_v56  ;;  %4665 = vperm.xlu0 %8631, %v11549_v40   ;;  %v8787_v38 = vld [vmem:[%s10454_s22 + $0x1ec] ss:$60 sps:$4 sm:$0xff]   ;;  %v3780_v51 = vld [vmem:[%s13272_s3 + $0x258] sm:$0xff] }
 0x246   : > { %v11649_v9 = vpop.eup %9573  ;;  %9593 = vrcp.f32 %v3407_v45  ;;  %v4366_v20 = vpop.permute.xlu0 %4365  ;;  %v2732_v57 = vsub.f32 0.0, %v2322_v35  ;;  %v5342_v12 = vpack.c.bf16 %v11616_v1, %v11626_v17  ;;  %v3125_v42 = vmul.f32 1.442695, %v2731_v46  ;;  %v3779_v46 = vld [vmem:[%s13272_s3 + $0x250] sm:$0xff]  ;;  %v3778_v35 = vld [vmem:[%s13272_s3 + $0x248] sm:$0xff] }
 0x247   : > { %v11653_v6 = vpop.eup %9575  ;;  %9595 = vrcp.f32 %v3405_v54  ;;  %7965 = vmatprep.subr.bf16.mxu1 %v5341_v15  ;;  %v2314_v32 = vadd.f32 %v2313_v16, %v640_v50  ;;  %v5335_v1 = vpack.c.bf16 %v11611_v47, %v11614_v34  ;;  %v11671_v40 = vmul.f32 %v4371_v55, %v3792_v44  ;;  %v8537_v56 = vpop.f32.mrb[168].mxu0  ;;  %v650_v34 = vld [vmem:[%s13271_s2 + $0x578] sm:$0xff] }
 0x248   : > { %v11667_v14 = vpop.eup %9577  ;;  %9597 = vpow2.f32 %v3113_v49  ;;  %v11673_v17 = vmul.f32 %v4366_v20, %v3791_v22  ;;  %4670 = vperm.xlu1 %8630, %v11594_v25   ;;  %7966 = vmatpush3.bf16.msra.mxu1 %v5333_v62  ;;  %v3121_v4 = vmul.f32 1.442695, %v2729_v59  ;;  %v3127_v49 = vmul.f32 1.442695, %v2732_v57  ;;  %v2326_v62 = vpop.f32.mrb[169].mxu0  ;;  %v3777_v20 = vld [vmem:[%s13272_s3 + $0x240] sm:$0xff] }
 0x249   : > { %v9580_v37 = vpop.eup %9579  ;;  %9599 = vpow2.f32 %v3119_v2  ;;  %v2730_v39 = vsub.f32 0.0, %v2314_v32  ;;  %7967 = vmatprep.subr.bf16.mxu1 %v5342_v12  ;;  %v4361_v31 = vpop.permute.xlu1 %4360  ;;  %v2335_v61 = vadd.f32 %v8537_v56, %v645_v8  ;;  %v644_v2 = vld [vmem:[%s13271_s2 + $0x548] sm:$0xff]  ;;  %4655 = vperm.xlu0 %8631, %v11582_v28   ;;  %v2327_v54 = vadd.f32 %v2326_v62, %v643_v43  ;;  %v3793_v8 = vld [vmem:[%s13272_s3 + $0x2c0] sm:$0xff] }
 0x24a   : > { %v9582_v60 = vpop.eup %9581  ;;  %v3408_v25 = vadd.f32 1.0, %v9580_v37  ;;  %9601 = vpow2.f32 %v3115_v7  ;;  %v5158_v27 = vmul.f32 %v4361_v31, %v3790_v58  ;;  %v4356_v52 = vpop.permute.xlu0 %4355  ;;  %6494 = vmatmul.mubr.bf16.gmra.mrb[52].mxu1 %v8786_v33  ;;  %v11728_v32 = vmul.f32 %v11556_v24, %v3778_v35  ;;  %v647_v37 = vld [vmem:[%s13271_s2 + $0x560] sm:$0xff] }
 0x24b   : > { %v9584_v29 = vpop.eup %9583  ;;  %v3406_v48 = vadd.f32 1.0, %v9582_v60  ;;  %9603 = vpow2.f32 %v3125_v42  ;;  %v3123_v63 = vmul.f32 1.442695, %v2730_v39  ;;  %v5157_v19 = vmul.f32 %v4356_v52, %v3789_v13  ;;  %v8538_v23 = vpop.f32.mrb[170].mxu0  ;;  %6501 = vmatprep.mubr.bf16.mxu1 %v8787_v38  ;;  %v3794_v13 = vld [vmem:[%s13272_s3 + $0x2c8] sm:$0xff] }
 0x24c   : > { %v11694_v45 = vpop.eup %9585  ;;  %9605 = vrcp.f32 %v3408_v25  ;;  %v3411_v16 = vadd.f32 1.0, %v9584_v29  ;;  %4660 = vperm.xlu1 %8630, %v11605_v21   ;;  %v2735_v50 = vsub.f32 0.0, %v2335_v61  ;;  %v2329_v15 = vpop.f32.mrb[171].mxu0  ;;  %7968 = vmatpush3.bf16.msra.mxu1 %v5334_v10  ;;  %v2338_v22 = vadd.f32 %v8538_v23, %v646_v30  ;;  %v8789_v38 = vld [vmem:[%s10454_s22 + $0x1e8] ss:$60 sps:$4 sm:$0xff]  }
 0x24d   : > { %v11703_v28 = vpop.eup %9587  ;;  %9607 = vrcp.f32 %v3406_v48  ;;  %v5343_v44 = vpack.c.bf16 %v5158_v27, %v5157_v19  ;;  %v4391_v55 = vpop.permute.xlu1 %4390  ;;  %v2330_v59 = vadd.f32 %v2329_v15, %v644_v2  ;;  %v11711_v21 = vmul.f32 %v11535_v41, %v3780_v51  ;;  %4685 = vperm.xlu0 %8631, %v11641_v18   ;;  %v3782_v15 = vld [vmem:[%s13272_s3 + $0x268] sm:$0xff] }
 0x24e   : > { %v11708_v7 = vpop.eup %9589  ;;  %9609 = vrcp.f32 %v3411_v16  ;;  %v3133_v57 = vmul.f32 1.442695, %v2735_v50  ;;  %v4386_v10 = vpop.permute.xlu0 %4385  ;;  %v2733_v12 = vsub.f32 0.0, %v2327_v54  ;;  %v11725_v41 = vmul.f32 %v11547_v11, %v3779_v46  ;;  %v649_v11 = vld [vmem:[%s13271_s2 + $0x570] sm:$0xff]  ;;  %v648_v16 = vld [vmem:[%s13271_s2 + $0x568] sm:$0xff] }
 0x24f   : > { %v11722_v42 = vpop.eup %9591  ;;  %9611 = vpow2.f32 %v3121_v4  ;;  %7969 = vmatprep.subr.bf16.mxu1 %v5343_v44  ;;  %v2736_v58 = vsub.f32 0.0, %v2338_v22  ;;  %v5344_v24 = vpack.c.bf16 %v11671_v40, %v11673_v17  ;;  %v2734_v43 = vsub.f32 0.0, %v2330_v59  ;;  %v8541_v40 = vpop.f32.mrb[172].mxu0  ;;  %v8790_v17 = vld [vmem:[%s10454_s22 + $0x264] ss:$60 sps:$4 sm:$0xff]   ;;  %v3798_v22 = vld [vmem:[%s13272_s3 + $0x2e8] sm:$0xff] }
 0x250   : > { %v11740_v33 = vpop.eup %9593  ;;  %9613 = vpow2.f32 %v3127_v49  ;;  %v3129_v18 = vmul.f32 1.442695, %v2733_v12  ;;  %4690 = vperm.xlu1 %8630, %v11653_v6   ;;  %v11752_v39 = vmul.f32 %v11576_v0, %v3777_v20  ;;  %v11754_v31 = vmul.f32 %v4391_v55, %v3796_v26  ;;  %7970 = vmatpush3.bf16.msra.mxu1 %v5335_v1  ;;  %v2342_v52 = vpop.f32.mrb[173].mxu0 }
 0x251   : > { %v11749_v4 = vpop.eup %9595  ;;  %9615 = vpow2.f32 %v3123_v63  ;;  %v3135_v56 = vmul.f32 1.442695, %v2736_v58  ;;  %v4381_v6 = vpop.permute.xlu1 %4380  ;;  %v11760_v60 = vmul.f32 %v4386_v10, %v3795_v53  ;;  %7971 = vmatprep.subr.bf16.mxu1 %v5344_v24  ;;  %v2351_v0 = vadd.f32 %v8541_v40, %v649_v11  ;;  %4675 = vperm.xlu0 %8631, %v11649_v9   ;;  %v8792_v53 = vld [vmem:[%s10454_s22 + $0x260] ss:$60 sps:$4 sm:$0xff]   ;;  %v653_v10 = vld [vmem:[%s13271_s2 + $0x590] sm:$0xff] }
 0x252   : > { %v9598_v49 = vpop.eup %9597  ;;  %9617 = vpow2.f32 %v3133_v57  ;;  %v5162_v25 = vmul.f32 %v4381_v6, %v3794_v13  ;;  %v4376_v27 = vpop.permute.xlu0 %4375  ;;  %v2343_v47 = vadd.f32 %v2342_v52, %v647_v37  ;;  %v3131_v51 = vmul.f32 1.442695, %v2734_v43  ;;  %6502 = vmatmul.mubr.bf16.gmra.mrb[56].mxu1 %v8789_v38  ;;  %v651_v11 = vld [vmem:[%s13271_s2 + $0x580] sm:$0xff]  ;;  %v8793_v24 = vld [vmem:[%s10454_s22 + $0x2dc] ss:$60 sps:$4 sm:$0xff]  }
 0x253   : > { %v9600_v61 = vpop.eup %9599  ;;  %v3409_v62 = vadd.f32 1.0, %v9598_v49  ;;  %9619 = vpow2.f32 %v3129_v18  ;;  %v5161_v30 = vmul.f32 %v4376_v27, %v3793_v8  ;;  %v8542_v1 = vpop.f32.mrb[174].mxu0  ;;  %v2739_v48 = vsub.f32 0.0, %v2351_v0  ;;  %6509 = vmatprep.mubr.bf16.mxu1 %v8790_v17  ;;  %v3800_v17 = vld [vmem:[%s13272_s3 + $0x2f8] sm:$0xff]  ;;  %v3799_v27 = vld [vmem:[%s13272_s3 + $0x2f0] sm:$0xff] }
 0x254   : > { %v9602_v2 = vpop.eup %9601  ;;  %v3412_v29 = vadd.f32 1.0, %v9600_v61  ;;  %9621 = vpow2.f32 %v3135_v56  ;;  %4680 = vperm.xlu1 %8630, %v11667_v14   ;;  %v2345_v63 = vpop.f32.mrb[175].mxu0  ;;  %7972 = vmatpush3.bf16.msra.mxu1 %v5336_v3  ;;  %v2737_v35 = vsub.f32 0.0, %v2343_v47  ;;  %v2354_v3 = vadd.f32 %v8542_v1, %v650_v34  ;;  %v654_v34 = vld [vmem:[%s13271_s2 + $0x598] sm:$0xff] }
 0x255   : > { %v9604_v19 = vpop.eup %9603  ;;  %9623 = vrcp.f32 %v3409_v62  ;;  %v3410_v23 = vadd.f32 1.0, %v9602_v2  ;;  %v5345_v46 = vpack.c.bf16 %v5162_v25, %v5161_v30  ;;  %v4321_v9 = vpop.permute.xlu1 %4320  ;;  %v3141_v54 = vmul.f32 1.442695, %v2739_v48  ;;  %4705 = vperm.xlu0 %8631, %v11694_v45   ;;  %v3797_v45 = vld [vmem:[%s13272_s3 + $0x2e0] sm:$0xff] }
 0x256   : > { %v11773_v50 = vpop.eup %9605  ;;  %9625 = vrcp.f32 %v3412_v29  ;;  %v3415_v14 = vadd.f32 1.0, %v9604_v19  ;;  %v4316_v5 = vpop.permute.xlu0 %4315  ;;  %v5337_v55 = vpack.c.bf16 %v11728_v32, %v11752_v39  ;;  %v5346_v20 = vpack.c.bf16 %v11754_v31, %v11760_v60 }
 0x257   : > { %v11781_v44 = vpop.eup %9607  ;;  %9627 = vrcp.f32 %v3410_v23  ;;  %7973 = vmatprep.subr.bf16.mxu1 %v5345_v46  ;;  %v3137_v57 = vmul.f32 1.442695, %v2737_v35  ;;  %v2346_v26 = vadd.f32 %v2345_v63, %v648_v16  ;;  %v5338_v32 = vpack.c.bf16 %v11711_v21, %v11725_v41  ;;  %v8545_v8 = vpop.f32.mrb[176].mxu0  ;;  %v8795_v35 = vld [vmem:[%s10454_s22 + $0x2d8] ss:$60 sps:$4 sm:$0xff]  }
 0x258   : > { %v11789_v59 = vpop.eup %9609  ;;  %9629 = vrcp.f32 %v3415_v14  ;;  %4710 = vperm.xlu1 %8630, %v11708_v7   ;;  %v11803_v58 = vmul.f32 %v4321_v9, %v3782_v15  ;;  %v11805_v13 = vmul.f32 %v4316_v5, %v3781_v36  ;;  %7974 = vmatpush3.bf16.msra.mxu1 %v5337_v55  ;;  %v2740_v38 = vsub.f32 0.0, %v2354_v3  ;;  %v2358_v41 = vpop.f32.mrb[177].mxu0  ;;  %v3784_v9 = vld [vmem:[%s13272_s3 + $0x278] sm:$0xff]  ;;  %v3783_v5 = vld [vmem:[%s13272_s3 + $0x270] sm:$0xff]  ;;  %v655_v3 = vld [vmem:[%s13271_s2 + $0x5a0] sm:$0xff] }
 0x259   : > { %v9612_v12 = vpop.eup %9611  ;;  %9631 = vpow2.f32 %v3131_v51  ;;  %v4401_v7 = vpop.permute.xlu1 %4400  ;;  %7975 = vmatprep.subr.bf16.mxu1 %v5346_v20  ;;  %v2738_v56 = vsub.f32 0.0, %v2346_v26  ;;  %4695 = vperm.xlu0 %8631, %v11703_v28   ;;  %v2367_v40 = vadd.f32 %v8545_v8, %v653_v10  ;;  %v2359_v0 = vadd.f32 %v2358_v41, %v651_v11 }
 0x25a   : > { %v9614_v18 = vpop.eup %9613  ;;  %v3413_v43 = vadd.f32 1.0, %v9612_v12  ;;  %9633 = vpow2.f32 %v3141_v54  ;;  %v5166_v37 = vmul.f32 %v4401_v7, %v3798_v22  ;;  %v4396_v21 = vpop.permute.xlu0 %4395  ;;  %6510 = vmatmul.mubr.bf16.gmra.mrb[60].mxu1 %v8792_v53  ;;  %v3143_v2 = vmul.f32 1.442695, %v2740_v38 }
 0x25b   : > { %v9616_v39 = vpop.eup %9615  ;;  %v3416_v31 = vadd.f32 1.0, %v9614_v18  ;;  %v5165_v6 = vmul.f32 %v4396_v21, %v3797_v45  ;;  %v8546_v49 = vpop.f32.mrb[178].mxu0  ;;  %9635 = vpow2.f32 %v3137_v57  ;;  %v2743_v30 = vsub.f32 0.0, %v2367_v40  ;;  %6517 = vmatprep.mubr.bf16.mxu1 %v8793_v24  ;;  %v8796_v45 = vld [vmem:[%s10454_s22 + $0x354] ss:$60 sps:$4 sm:$0xff]  }
 0x25c   : > { %v9618_v60 = vpop.eup %9617  ;;  %v3414_v25 = vadd.f32 1.0, %v9616_v39  ;;  %4700 = vperm.xlu1 %8630, %v11722_v42   ;;  %v2361_v52 = vpop.f32.mrb[179].mxu0  ;;  %9637 = vrcp.f32 %v3413_v43  ;;  %7976 = vmatpush3.bf16.msra.mxu1 %v5338_v32  ;;  %v652_v42 = vld [vmem:[%s13271_s2 + $0x588] sm:$0xff]  ;;  %v2741_v48 = vsub.f32 0.0, %v2359_v0  ;;  %v5339_v19 = vpack.c.bf16 %v11803_v58, %v11805_v13 }
 0x25d   : > { %v9620_v61 = vpop.eup %9619  ;;  %v3419_v28 = vadd.f32 1.0, %v9618_v60  ;;  %v5347_v62 = vpack.c.bf16 %v5166_v37, %v5165_v6  ;;  %v4411_v47 = vpop.permute.xlu1 %4410  ;;  %9639 = vrcp.f32 %v3416_v31  ;;  %v3139_v23 = vmul.f32 1.442695, %v2738_v56  ;;  %4725 = vperm.xlu0 %8631, %v11740_v33   ;;  %v657_v33 = vld [vmem:[%s13271_s2 + $0x5b0] sm:$0xff]  ;;  %v658_v37 = vld [vmem:[%s13271_s2 + $0x5b8] sm:$0xff]  ;;  %v656_v56 = vld [vmem:[%s13271_s2 + $0x5a8] sm:$0xff] }
 0x25e   : > { %v9622_v1 = vpop.eup %9621  ;;  %v5168_v29 = vmul.f32 %v4411_v47, %v3800_v17  ;;  %v4406_v51 = vpop.permute.xlu0 %4405  ;;  %9641 = vrcp.f32 %v3414_v25  ;;  %v3417_v14 = vadd.f32 1.0, %v9620_v61  ;;  %v3149_v54 = vmul.f32 1.442695, %v2743_v30 }
 0x25f   : > { %v11825_v63 = vpop.eup %9623  ;;  %v5167_v46 = vmul.f32 %v4406_v51, %v3799_v27  ;;  %7977 = vmatprep.subr.bf16.mxu1 %v5347_v62  ;;  %v2370_v15 = vadd.f32 %v8546_v49, %v654_v34  ;;  %v2362_v36 = vadd.f32 %v2361_v52, %v652_v42  ;;  %9643 = vrcp.f32 %v3419_v28  ;;  %v8549_v26 = vpop.f32.mrb[180].mxu0  ;;  %v661_v27 = vld [vmem:[%s13271_s2 + $0x5d0] sm:$0xff]  ;;  %v659_v62 = vld [vmem:[%s13271_s2 + $0x5c0] sm:$0xff] }
 0x260   : > { %v9626_v16 = vpop.eup %9625  ;;  %4730 = vperm.xlu1 %8630, %v11773_v50   ;;  %v3420_v22 = vadd.f32 1.0, %v9622_v1  ;;  %v3145_v50 = vmul.f32 1.442695, %v2741_v48  ;;  %7978 = vmatpush3.bf16.msra.mxu1 %v5339_v19  ;;  %9645 = vpow2.f32 %v3143_v2  ;;  %v2374_v13 = vpop.f32.mrb[181].mxu0  ;;  %v2383_v11 = vadd.f32 %v8549_v26, %v657_v33  ;;  %v8798_v28 = vld [vmem:[%s10454_s22 + $0x350] ss:$60 sps:$4 sm:$0xff]  }
 0x261   : > { %v11844_v55 = vpop.eup %9627  ;;  %v5348_v20 = vpack.c.bf16 %v5168_v29, %v5167_v46  ;;  %v4331_v57 = vpop.permute.xlu1 %4330  ;;  %v2744_v10 = vsub.f32 0.0, %v2370_v15  ;;  %v2742_v12 = vsub.f32 0.0, %v2362_v36  ;;  %9647 = vpow2.f32 %v3139_v23  ;;  %4715 = vperm.xlu0 %8631, %v11749_v4   ;;  %v662_v1 = vld [vmem:[%s13271_s2 + $0x5d8] sm:$0xff]  ;;  %v8799_v2 = vld [vmem:[%s10454_s22 + $0x3cc] ss:$60 sps:$4 sm:$0xff]   ;;  %v11893_v26 = vld [vmem:[%s10454_s22 + $0x440] sm:$0xff] }
 0x262   : > { %v11847_v53 = vpop.eup %9629  ;;  %v5152_v32 = vmul.f32 %v4331_v57, %v3784_v9  ;;  %v4326_v58 = vpop.permute.xlu0 %4325  ;;  %v2375_v24 = vadd.f32 %v2374_v13, %v655_v3  ;;  %9649 = vpow2.f32 %v3149_v54  ;;  %6518 = vmatmul.mubr.bf16.gmra.mrb[64].mxu1 %v8795_v35  ;;  %v2747_v31 = vsub.f32 0.0, %v2383_v11  ;;  %v663_v11 = vld [vmem:[%s13271_s2 + $0x5e0] sm:$0xff] }
 0x263   : > { %v9632_v7 = vpop.eup %9631  ;;  %v5151_v8 = vmul.f32 %v4326_v58, %v3783_v5  ;;  %7979 = vmatprep.subr.bf16.mxu1 %v5348_v20  ;;  %v8550_v18 = vpop.f32.mrb[182].mxu0  ;;  %9651 = vpow2.f32 %v3145_v50  ;;  %v3151_v41 = vmul.f32 1.442695, %v2744_v10  ;;  %6525 = vmatprep.mubr.bf16.mxu1 %v8796_v45 }
 0x264   : > { %v9634_v43 = vpop.eup %9633  ;;  %v3418_v38 = vadd.f32 1.0, %v9632_v7  ;;  %4720 = vperm.xlu1 %8630, %v11781_v44   ;;  %v2377_v21 = vpop.f32.mrb[183].mxu0  ;;  %9653 = vrcp.f32 %v3417_v14  ;;  %v3147_v44 = vmul.f32 1.442695, %v2742_v12  ;;  %v2745_v17 = vsub.f32 0.0, %v2375_v24 }
 0x265   : > { %v5340_v39 = vpack.c.bf16 %v5152_v32, %v5151_v8  ;;  %v11854_v4 = vpop.permute.xlu1 %4430  ;;  %v9636_v6 = vpop.eup %9635  ;;  %9655 = vrcp.f32 %v3420_v22  ;;  %v3157_v60 = vmul.f32 1.442695, %v2747_v31  ;;  %4745 = vperm.xlu0 %8631, %v11789_v59   ;;  %v2386_v25 = vadd.f32 %v8550_v18, %v658_v37  ;;  %v8801_v7 = vld [vmem:[%s10454_s22 + $0x3c8] ss:$60 sps:$4 sm:$0xff]   ;;  %v665_v8 = vld [vmem:[%s13271_s2 + $0x5f0] sm:$0xff]  ;;  %v666_v31 = vld [vmem:[%s13271_s2 + $0x5f8] sm:$0xff] }
 0x266   : > { %v11859_v40 = vpop.permute.xlu0 %4425  ;;  %v11861_v49 = vpop.eup %9637  ;;  %9657 = vrcp.f32 %v3418_v38  ;;  %v3153_v52 = vmul.f32 1.442695, %v2745_v17  ;;  %v2378_v61 = vadd.f32 %v2377_v21, %v656_v56  ;;  %v3423_v59 = vadd.f32 1.0, %v9634_v43 }
 0x267   : > { %7980 = vmatpush3.bf16.msra.mxu1 %v5340_v39  ;;  %v9640_v0 = vpop.eup %9639  ;;  %9659 = vpow2.f32 %v3151_v41  ;;  %v2748_v47 = vsub.f32 0.0, %v2386_v25  ;;  %v8553_v42 = vpop.f32.mrb[184].mxu0  ;;  %v3421_v14 = vadd.f32 1.0, %v9636_v6  ;;  %v7670_v38 = vcombine.high %v11893_v26, %v11893_v26 }
 0x268   : > { %4750 = vperm.xlu1 %8630, %v9626_v16   ;;  %v11871_v30 = vpop.eup %9641  ;;  %9661 = vpow2.f32 %v3147_v44  ;;  %v2746_v29 = vsub.f32 0.0, %v2378_v61  ;;  %v2399_v48 = vadd.f32 %v8553_v42, %v661_v27  ;;  %v2390_v19 = vpop.f32.mrb[185].mxu0 }
 0x269   : > { %v11873_v34 = vpop.permute.xlu1 %4420  ;;  %v11881_v23 = vpop.eup %9643  ;;  %9663 = vpow2.f32 %v3157_v60  ;;  %v3159_v46 = vmul.f32 1.442695, %v2748_v47  ;;  %4735 = vperm.xlu0 %8631, %v11825_v63   ;;  %v2391_v9 = vadd.f32 %v2390_v19, %v659_v62  ;;  %v660_v63 = vld [vmem:[%s13271_s2 + $0x5c8] sm:$0xff]  ;;  %v3804_v62 = vld [vmem:[%s13272_s3 + $0x318] sm:$0xff]  ;;  %v3803_v19 = vld [vmem:[%s13272_s3 + $0x310] sm:$0xff] }
 0x26a   : > { %v11879_v51 = vpop.permute.xlu0 %4415  ;;  %v8554_v35 = vpop.f32.mrb[186].mxu0  ;;  %9665 = vpow2.f32 %v3153_v52  ;;  %v3155_v54 = vmul.f32 1.442695, %v2746_v29  ;;  %6526 = vmatmul.mubr.bf16.gmra.mrb[68].mxu1 %v8798_v28  ;;  %v2751_v3 = vsub.f32 0.0, %v2399_v48  ;;  %v664_v29 = vld [vmem:[%s13271_s2 + $0x5e8] sm:$0xff] }
 0x26b   : > { %v9646_v16 = vpop.eup %9645  ;;  %v2402_v15 = vadd.f32 %v8554_v35, %v662_v1  ;;  %v2393_v36 = vpop.f32.mrb[187].mxu0  ;;  %9667 = vrcp.f32 %v3423_v59  ;;  %6533 = vmatprep.mubr.bf16.mxu1 %v8799_v2  ;;  %v2749_v57 = vsub.f32 0.0, %v2391_v9  ;;  %v669_v9 = vld [vmem:[%s13271_s2 + $0x610] sm:$0xff] }
 0x26c   : > { %4740 = vperm.xlu1 %8630, %v11844_v55   ;;  %v9648_v5 = vpop.eup %9647  ;;  %v3424_v33 = vadd.f32 1.0, %v9646_v16  ;;  %9669 = vpow2.f32 %v3159_v46  ;;  %v2394_v13 = vadd.f32 %v2393_v36, %v660_v63  ;;  %v3165_v18 = vmul.f32 1.442695, %v2751_v3  ;;  %v8806_v36 = vld [vmem:[%s10454_s22 + $0x14] ss:$60 sps:$4 sm:$0xff]  }
 0x26d   : > { %v11885_v22 = vpop.permute.xlu1 %4450  ;;  %v9650_v20 = vpop.eup %9649  ;;  %v3422_v50 = vadd.f32 1.0, %v9648_v5  ;;  %9671 = vpow2.f32 %v3155_v54  ;;  %4765 = vperm.xlu0 %8631, %v11847_v53   ;;  %v2752_v58 = vsub.f32 0.0, %v2402_v15  ;;  %v3161_v21 = vmul.f32 1.442695, %v2749_v57  ;;  %v667_v15 = vld [vmem:[%s13271_s2 + $0x600] sm:$0xff] }
 0x26e   : > { %v11890_v55 = vpop.permute.xlu0 %4445  ;;  %v9652_v45 = vpop.eup %9651  ;;  %v3427_v10 = vadd.f32 1.0, %v9650_v20  ;;  %9673 = vrcp.f32 %v3421_v14  ;;  %v11936_v16 = vmul.f32 %v11854_v4, %v3804_v62  ;;  %v7669_v54 = vcombine.low %v11893_v26, %v11893_v26  ;;  %v670_v4 = vld [vmem:[%s13271_s2 + $0x618] sm:$0xff] }
 0x26f   : > { %v11896_v12 = vpop.eup %9653  ;;  %v3425_v32 = vadd.f32 1.0, %v9652_v45  ;;  %9675 = vrcp.f32 %v3424_v33  ;;  %v8557_v43 = vpop.f32.mrb[188].mxu0  ;;  %v3167_v6 = vmul.f32 1.442695, %v2752_v58  ;;  %v11952_v57 = vmul.f32 %v11859_v40, %v3803_v19 }
 0x270   : > { %4770 = vperm.xlu1 %8630, %v9640_v0   ;;  %v9656_v24 = vpop.eup %9655  ;;  %9677 = vrcp.f32 %v3422_v50  ;;  %v2406_v39 = vpop.f32.mrb[189].mxu0  ;;  %v2415_v44 = vadd.f32 %v8557_v43, %v665_v8  ;;  %v2750_v0 = vsub.f32 0.0, %v2394_v13 }
 0x271   : > { %v11905_v53 = vpop.permute.xlu1 %4440  ;;  %v11909_v37 = vpop.eup %9657  ;;  %9679 = vrcp.f32 %v3427_v10  ;;  %4755 = vperm.xlu0 %8631, %v11861_v49   ;;  %v2407_v17 = vadd.f32 %v2406_v39, %v663_v11  ;;  %v3802_v39 = vld [vmem:[%s13272_s3 + $0x308] sm:$0xff]  ;;  %v5350_v62 = vpack.c.bf16 %v11936_v16, %v11952_v57 }
 0x272   : > { %v11911_v41 = vpop.permute.xlu0 %4435  ;;  %v9660_v56 = vpop.eup %9659  ;;  %9681 = vrcp.f32 %v3425_v32  ;;  %6534 = vmatmul.mubr.bf16.gmra.mrb[72].mxu1 %v8801_v7  ;;  %v2755_v59 = vsub.f32 0.0, %v2415_v44  ;;  %v3163_v14 = vmul.f32 1.442695, %v2750_v0 }
 0x273   : > { %v8558_v60 = vpop.f32.mrb[190].mxu0  ;;  %v9662_v25 = vpop.eup %9661  ;;  %v3428_v27 = vadd.f32 1.0, %v9660_v56  ;;  %9683 = vpow2.f32 %v3165_v18  ;;  %6541 = vmatprep.mubr.bf16.mxu1 %v7670_v38 }
 0x274   : > { %4760 = vperm.xlu1 %8630, %v11871_v30   ;;  %v2409_v52 = vpop.f32.mrb[191].mxu0  ;;  %v9664_v61 = vpop.eup %9663  ;;  %v3426_v28 = vadd.f32 1.0, %v9662_v25  ;;  %v2418_v47 = vadd.f32 %v8558_v60, %v666_v31  ;;  %9685 = vpow2.f32 %v3161_v21  ;;  %v2753_v30 = vsub.f32 0.0, %v2407_v17  ;;  %v668_v17 = vld [vmem:[%s13271_s2 + $0x608] sm:$0xff] }
 0x275   : > { %v11921_v49 = vpop.permute.xlu1 %4470  ;;  %v9666_v42 = vpop.eup %9665  ;;  %v3431_v1 = vadd.f32 1.0, %v9664_v61  ;;  %9687 = vpow2.f32 %v3167_v6  ;;  %4785 = vperm.xlu0 %8631, %v11881_v23   ;;  %v3173_v5 = vmul.f32 1.442695, %v2755_v59  ;;  %v2410_v3 = vadd.f32 %v2409_v52, %v664_v29  ;;  %v3819_v52 = vld [vmem:[%s13272_s3 + $0x390] sm:$0xff] }
 0x276   : > { %v11923_v2 = vpop.permute.xlu0 %4465  ;;  %v9668_v48 = vpop.eup %9667  ;;  %v3429_v46 = vadd.f32 1.0, %v9666_v42  ;;  %9689 = vrcp.f32 %v3428_v27  ;;  %v2756_v33 = vsub.f32 0.0, %v2418_v47  ;;  %v3169_v26 = vmul.f32 1.442695, %v2753_v30  ;;  %v3820_v27 = vld [vmem:[%s13272_s3 + $0x398] sm:$0xff]  ;;  %v673_v61 = vld [vmem:[%s13271_s2 + $0x630] sm:$0xff] }
 0x277   : > { %v9670_v35 = vpop.eup %9669  ;;  %9691 = vrcp.f32 %v3426_v28  ;;  %v8561_v20 = vpop.f32.mrb[192].mxu0  ;;  %v2754_v7 = vsub.f32 0.0, %v2410_v3  ;;  %v11985_v59 = vmul.f32 %v11873_v34, %v3802_v39  ;;  %v3818_v42 = vld [vmem:[%s13272_s3 + $0x388] sm:$0xff] }
 0x278   : > { %4790 = vperm.xlu1 %8630, %v9656_v24   ;;  %v9672_v23 = vpop.eup %9671  ;;  %9693 = vrcp.f32 %v3431_v1  ;;  %v2431_v10 = vadd.f32 %v8561_v20, %v669_v9  ;;  %v2422_v32 = vpop.f32.mrb[193].mxu0  ;;  %v3432_v13 = vadd.f32 1.0, %v9670_v35  ;;  %v3817_v1 = vld [vmem:[%s13272_s3 + $0x380] sm:$0xff]  ;;  %v8804_v30 = vld [vmem:[%s10454_s22 + $0x10] ss:$60 sps:$4 sm:$0xff]  }
 0x279   : > { %v11944_v63 = vpop.permute.xlu1 %4460  ;;  %v11949_v50 = vpop.eup %9673  ;;  %9695 = vrcp.f32 %v3429_v46  ;;  %4775 = vperm.xlu0 %8631, %v11896_v12   ;;  %v2423_v8 = vadd.f32 %v2422_v32, %v667_v15  ;;  %v3430_v18 = vadd.f32 1.0, %v9672_v23  ;;  %v3175_v12 = vmul.f32 1.442695, %v2756_v33  ;;  %v671_v9 = vld [vmem:[%s13271_s2 + $0x620] sm:$0xff]  ;;  %v8807_v35 = vld [vmem:[%s10454_s22 + $0x8c] ss:$60 sps:$4 sm:$0xff]  }
 0x27a   : > { %v11954_v45 = vpop.permute.xlu0 %4455  ;;  %v9676_v58 = vpop.eup %9675  ;;  %9697 = vpow2.f32 %v3163_v14  ;;  %6542 = vmatmul.mubr.bf16.gmra.mrb[76].mxu1 %v7669_v54  ;;  %v2759_v40 = vsub.f32 0.0, %v2431_v10  ;;  %v3171_v25 = vmul.f32 1.442695, %v2754_v7 }
 0x27b   : > { %v8562_v11 = vpop.f32.mrb[194].mxu0  ;;  %v11957_v24 = vpop.eup %9677  ;;  %9699 = vpow2.f32 %v3173_v5  ;;  %v2757_v31 = vsub.f32 0.0, %v2423_v8  ;;  %6581 = vmatprep.mubr.bf16.mxu1 %v8806_v36 }
 0x27c   : > { %4780 = vperm.xlu1 %8630, %v11909_v37   ;;  %v2434_v43 = vadd.f32 %v8562_v11, %v670_v4  ;;  %v2425_v38 = vpop.f32.mrb[195].mxu0  ;;  %v11960_v21 = vpop.eup %9679  ;;  %v3801_v37 = vld [vmem:[%s13272_s3 + $0x300] sm:$0xff]  ;;  %9701 = vpow2.f32 %v3169_v26  ;;  %v3181_v47 = vmul.f32 1.442695, %v2759_v40 }
 0x27d   : > { %v11965_v56 = vpop.eup %9681  ;;  %9703 = vrcp.f32 %v3432_v13  ;;  %4805 = vperm.xlu0 %8631, %v9668_v48   ;;  %v11995_v48 = vmul.f32 %v11879_v51, %v3801_v37  ;;  %v3177_v19 = vmul.f32 1.442695, %v2757_v31  ;;  %v2426_v46 = vadd.f32 %v2425_v38, %v668_v17  ;;  %v674_v51 = vld [vmem:[%s13271_s2 + $0x638] sm:$0xff]  ;;  %v3807_v31 = vld [vmem:[%s13272_s3 + $0x330] sm:$0xff] }
 0x27e   : > { %v4506_v6 = vpop.permute.xlu0 %4505  ;;  %v2760_v44 = vsub.f32 0.0, %v2434_v43  ;;  %v9684_v60 = vpop.eup %9683  ;;  %9705 = vrcp.f32 %v3430_v18  ;;  %v3808_v13 = vld [vmem:[%s13272_s3 + $0x338] sm:$0xff] }
 0x27f   : > { %v4511_v0 = vpop.permute.xlu1 %4510  ;;  %v9686_v28 = vpop.eup %9685  ;;  %9707 = vpow2.f32 %v3175_v12  ;;  %v3435_v54 = vadd.f32 1.0, %v9684_v60  ;;  %v12001_v15 = vmul.f32 %v4506_v6, %v3819_v52  ;;  %v2758_v4 = vsub.f32 0.0, %v2426_v46 }
 0x280   : > { %4810 = vperm.xlu1 %8630, %v9676_v58   ;;  %v9688_v29 = vpop.eup %9687  ;;  %v8565_v34 = vpop.f32.mrb[196].mxu0  ;;  %v3183_v36 = vmul.f32 1.442695, %v2760_v44  ;;  %9709 = vpow2.f32 %v3171_v25  ;;  %v12008_v20 = vmul.f32 %v4511_v0, %v3820_v27  ;;  %v3433_v43 = vadd.f32 1.0, %v9686_v28  ;;  %v3806_v25 = vld [vmem:[%s13272_s3 + $0x328] sm:$0xff]  ;;  %v3805_v27 = vld [vmem:[%s13272_s3 + $0x320] sm:$0xff] }
 0x281   : > { %v9690_v14 = vpop.eup %9689  ;;  %v2447_v5 = vadd.f32 %v8565_v34, %v673_v61  ;;  %v2438_v33 = vpop.f32.mrb[197].mxu0  ;;  %4795 = vperm.xlu0 %8631, %v11949_v50   ;;  %9711 = vpow2.f32 %v3181_v47  ;;  %v672_v50 = vld [vmem:[%s13271_s2 + $0x628] sm:$0xff]  ;;  %v3179_v38 = vmul.f32 1.442695, %v2758_v4  ;;  %v3436_v37 = vadd.f32 1.0, %v9688_v29  ;;  %v3823_v61 = vld [vmem:[%s13272_s3 + $0x3b0] sm:$0xff] }
 0x282   : > { %v4496_v23 = vpop.permute.xlu0 %4495  ;;  %v12006_v3 = vpop.eup %9691  ;;  %6582 = vmatmul.mubr.bf16.vlgmr.msra.gmra.mrb[80].mxu1 %v8804_v30  ;;  %v12017_v11 = vadd.f32 %v2438_v33, %v671_v9  ;;  %9713 = vpow2.f32 %v3177_v19  ;;  %v12032_v60 = vmul.f32 %v11885_v22, %v3808_v13  ;;  %v5358_v47 = vpack.c.bf16 %v12008_v20, %v12001_v15  ;;  %v8809_v30 = vld [vmem:[%s10454_s22 + $0x88] ss:$60 sps:$4 sm:$0xff]  }
 0x283   : > { %v4501_v26 = vpop.permute.xlu1 %4500  ;;  %v5185_v10 = vmul.f32 %v4496_v23, %v3817_v1  ;;  %v8566_v32 = vpop.f32.mrb[198].mxu0  ;;  %v2763_v8 = vsub.f32 0.0, %v2447_v5  ;;  %6589 = vmatprep.mubr.bf16.mxu1 %v8807_v35  ;;  %9715 = vpow2.f32 %v3183_v36  ;;  %v3822_v34 = vld [vmem:[%s13272_s3 + $0x3a8] sm:$0xff]  ;;  %v8810_v35 = vld [vmem:[%s10454_s22 + $0x104] ss:$60 sps:$4 sm:$0xff]   ;;  %v5173_v15 = vmul.f32 %v11911_v41, %v3805_v27  ;;  %v677_v23 = vld [vmem:[%s13271_s2 + $0x650] sm:$0xff] }
 0x284   : > { %v12011_v58 = vpop.eup %9693  ;;  %v5186_v7 = vmul.f32 %v4501_v26, %v3818_v42  ;;  %4800 = vperm.xlu1 %8630, %v11957_v24   ;;  %v2441_v18 = vpop.f32.mrb[199].mxu0  ;;  %v12024_v39 = vadd.f32 %v8566_v32, %v674_v51  ;;  %v5349_v24 = vpack.c.bf16 %v11985_v59, %v11995_v48  ;;  %9717 = vpow2.f32 %v3179_v38  ;;  %v3824_v42 = vld [vmem:[%s13272_s3 + $0x3b8] sm:$0xff]  ;;  %v3810_v32 = vld [vmem:[%s13272_s3 + $0x348] sm:$0xff] }
 0x285   : > { %v12022_v40 = vpop.eup %9695  ;;  %v3189_v0 = vmul.f32 1.442695, %v2763_v8  ;;  %4825 = vperm.xlu0 %8631, %v11960_v21   ;;  %v12044_v22 = vadd.f32 %v2441_v18, %v672_v50  ;;  %9719 = vrcp.f32 %v3435_v54  ;;  %v2761_v1 = vsub.f32 0.0, %v12017_v11  ;;  %v3821_v21 = vld [vmem:[%s13272_s3 + $0x3a0] sm:$0xff]  ;;  %v678_v41 = vld [vmem:[%s13271_s2 + $0x658] sm:$0xff] }
 0x286   : > { %v9698_v12 = vpop.eup %9697  ;;  %v5357_v6 = vpack.c.bf16 %v5186_v7, %v5185_v10  ;;  %v4526_v44 = vpop.permute.xlu0 %4525  ;;  %v12059_v48 = vmul.f32 %v11890_v55, %v3807_v31  ;;  %9721 = vrcp.f32 %v3433_v43  ;;  %v2764_v46 = vsub.f32 0.0, %v12024_v39  ;;  %v3809_v50 = vld [vmem:[%s13272_s3 + $0x340] sm:$0xff] }
 0x287   : > { %v9700_v17 = vpop.eup %9699  ;;  %v4531_v52 = vpop.permute.xlu1 %4530  ;;  %v3434_v59 = vadd.f32 1.0, %v9698_v12  ;;  %9723 = vrcp.f32 %v3436_v37  ;;  %v5174_v54 = vmul.f32 %v11905_v53, %v3806_v25  ;;  %v12070_v55 = vmul.f32 %v4526_v44, %v3823_v61  ;;  %v675_v53 = vld [vmem:[%s13271_s2 + $0x640] sm:$0xff] }
 0x288   : > { %v9702_v28 = vpop.eup %9701  ;;  %4830 = vperm.xlu1 %8630, %v9690_v14   ;;  %8041 = vmatprep.subr.bf16.mxu1 %v5357_v6  ;;  %v3439_v19 = vadd.f32 1.0, %v9700_v17  ;;  %v8569_v9 = vpop.f32.mrb[200].mxu0  ;;  %9725 = vpow2.f32 %v3189_v0  ;;  %v2762_v20 = vsub.f32 0.0, %v12044_v22  ;;  %v5192_v13 = vmul.f32 %v4531_v52, %v3824_v42  ;;  %v676_v6 = vld [vmem:[%s13271_s2 + $0x648] sm:$0xff]  ;;  %v8812_v22 = vld [vmem:[%s10454_s22 + $0x100] ss:$60 sps:$4 sm:$0xff]  }
 0x289   : > { %v12056_v29 = vpop.eup %9703  ;;  %8042 = vmatpush3.bf16.msra.mxu1 %v5349_v24  ;;  %v2454_v5 = vpop.f32.mrb[201].mxu0  ;;  %v3437_v51 = vadd.f32 1.0, %v9702_v28  ;;  %4815 = vperm.xlu0 %8631, %v11965_v56   ;;  %9727 = vrcp.f32 %v3434_v59  ;;  %v3185_v7 = vmul.f32 1.442695, %v2761_v1  ;;  %v5352_v18 = vpack.c.bf16 %v12032_v60, %v12059_v48  ;;  %v3826_v42 = vld [vmem:[%s13272_s3 + $0x3c8] sm:$0xff] }
 0x28a   : > { %v12066_v14 = vpop.eup %9705  ;;  %8043 = vmatprep.subr.bf16.mxu1 %v5358_v47  ;;  %v4516_v36 = vpop.permute.xlu0 %4515  ;;  %6590 = vmatmul.mubr.bf16.gmra.mrb[84].mxu1 %v8809_v30  ;;  %9729 = vrcp.f32 %v3439_v19  ;;  %v3191_v43 = vmul.f32 1.442695, %v2764_v46  ;;  %v12095_v38 = vadd.f32 %v8569_v9, %v677_v23  ;;  %v12097_v31 = vadd.f32 %v2454_v5, %v675_v53  ;;  %v3814_v60 = vld [vmem:[%s13272_s3 + $0x368] sm:$0xff] }
 0x28b   : > { %v9708_v33 = vpop.eup %9707  ;;  %v4521_v4 = vpop.permute.xlu1 %4520  ;;  %v5189_v26 = vmul.f32 %v4516_v36, %v3821_v21  ;;  %6597 = vmatprep.mubr.bf16.mxu1 %v8810_v35  ;;  %v5351_v17 = vpack.c.bf16 %v5174_v54, %v5173_v15  ;;  %9731 = vrcp.f32 %v3437_v51  ;;  %v12105_v16 = vmul.f32 %v11944_v63, %v3810_v32  ;;  %v3827_v63 = vld [vmem:[%s13272_s3 + $0x3d0] sm:$0xff]  ;;  %v8813_v21 = vld [vmem:[%s10454_s22 + $0x17c] ss:$60 sps:$4 sm:$0xff]  }
 0x28c   : > { %v8570_v10 = vpop.f32.mrb[202].mxu0  ;;  %v5190_v8 = vmul.f32 %v4521_v4, %v3822_v34  ;;  %4820 = vperm.xlu1 %8630, %v12006_v3   ;;  %v9710_v11 = vpop.eup %9709  ;;  %v3440_v39 = vadd.f32 1.0, %v9708_v33  ;;  %v3187_v57 = vmul.f32 1.442695, %v2762_v20  ;;  %v12112_v52 = vmul.f32 %v11954_v45, %v3809_v50  ;;  %v3811_v15 = vld [vmem:[%s13272_s3 + $0x350] sm:$0xff] }
 0x28d   : > { %v2457_v56 = vpop.f32.mrb[203].mxu0  ;;  %8044 = vmatpush3.bf16.msra.mxu1 %v5350_v62  ;;  %v9712_v3 = vpop.eup %9711  ;;  %v12099_v37 = vadd.f32 %v8570_v10, %v678_v41  ;;  %v3828_v62 = vld [vmem:[%s13272_s3 + $0x3d8] sm:$0xff]  ;;  %4845 = vperm.xlu0 %8631, %v12011_v58   ;;  %v3438_v0 = vadd.f32 1.0, %v9710_v11  ;;  %v5360_v61 = vpack.c.bf16 %v5192_v13, %v12070_v55  ;;  %9733 = vpow2.f32 %v3185_v7  ;;  %v3825_v58 = vld [vmem:[%s13272_s3 + $0x3c0] sm:$0xff] }
 0x28e   : > { %v5359_v12 = vpack.c.bf16 %v5190_v8, %v5189_v26  ;;  %v4546_v24 = vpop.permute.xlu0 %4545  ;;  %v9714_v44 = vpop.eup %9713  ;;  %v3443_v59 = vadd.f32 1.0, %v9712_v3  ;;  %9735 = vpow2.f32 %v3191_v43  ;;  %v2767_v45 = vsub.f32 0.0, %v12095_v38 }
 0x28f   : > { %v4551_v25 = vpop.permute.xlu1 %4550  ;;  %v9716_v27 = vpop.eup %9715  ;;  %v12124_v47 = vadd.f32 %v2457_v56, %v676_v6  ;;  %9737 = vrcp.f32 %v3440_v39  ;;  %v3441_v19 = vadd.f32 1.0, %v9714_v44  ;;  %v2765_v46 = vsub.f32 0.0, %v12097_v31  ;;  %v3829_v39 = vld [vmem:[%s13272_s3 + $0x3e0] sm:$0xff]  ;;  %v3830_v6 = vld [vmem:[%s13272_s3 + $0x3e8] sm:$0xff] }
 0x290   : > { %4850 = vperm.xlu1 %8630, %v12056_v29   ;;  %8045 = vmatprep.subr.bf16.mxu1 %v5359_v12  ;;  %v9718_v28 = vpop.eup %9717  ;;  %v12129_v1 = vpop.f32.mrb[204].mxu0  ;;  %v3812_v29 = vld [vmem:[%s13272_s3 + $0x358] sm:$0xff]  ;;  %v2768_v34 = vsub.f32 0.0, %v12099_v37  ;;  %v3444_v55 = vadd.f32 1.0, %v9716_v27  ;;  %9739 = vpow2.f32 %v3187_v57  ;;  %v5195_v36 = vmul.f32 %v4546_v24, %v3827_v63  ;;  %v685_v24 = vld [vmem:[%s13271_s2 + $0x690] sm:$0xff]  ;;  %v683_v44 = vld [vmem:[%s13271_s2 + $0x680] sm:$0xff] }
 0x291   : > { %8046 = vmatpush3.bf16.msra.mxu1 %v5351_v17  ;;  %v9720_v30 = vpop.eup %9719  ;;  %v2470_v35 = vpop.f32.mrb[205].mxu0  ;;  %4835 = vperm.xlu0 %8631, %v12022_v40   ;;  %9741 = vrcp.f32 %v3438_v0  ;;  %v3442_v20 = vadd.f32 1.0, %v9718_v28  ;;  %v5196_v4 = vmul.f32 %v4551_v25, %v3828_v62  ;;  %v12147_v10 = vmul.f32 %v11921_v49, %v3812_v29  ;;  %v679_v40 = vld [vmem:[%s13271_s2 + $0x660] sm:$0xff]  ;;  %v8815_v12 = vld [vmem:[%s10454_s22 + $0x178] ss:$60 sps:$4 sm:$0xff]  }
 0x292   : > { %8047 = vmatprep.subr.bf16.mxu1 %v5360_v61  ;;  %v4536_v9 = vpop.permute.xlu0 %4535  ;;  %v12137_v54 = vpop.eup %9721  ;;  %6598 = vmatmul.mubr.bf16.gmra.mrb[88].mxu1 %v8812_v22  ;;  %9743 = vrcp.f32 %v3443_v59  ;;  %v3197_v32 = vmul.f32 1.442695, %v2767_v45  ;;  %v2766_v13 = vsub.f32 0.0, %v12124_v47  ;;  %v5179_v7 = vmul.f32 %v11923_v2, %v3811_v15  ;;  %v3813_v2 = vld [vmem:[%s13272_s3 + $0x360] sm:$0xff]  ;;  %v8816_v17 = vld [vmem:[%s10454_s22 + $0x1f4] ss:$60 sps:$4 sm:$0xff]  }
 0x293   : > { %v4541_v23 = vpop.permute.xlu1 %4540  ;;  %v5193_v5 = vmul.f32 %v4536_v9, %v3825_v58  ;;  %v12143_v33 = vpop.f32.mrb[206].mxu0  ;;  %6605 = vmatprep.mubr.bf16.mxu1 %v8813_v21  ;;  %9745 = vrcp.f32 %v3441_v19  ;;  %v3199_v8 = vmul.f32 1.442695, %v2768_v34  ;;  %v5353_v50 = vpack.c.bf16 %v12105_v16, %v12112_v52  ;;  %v686_v52 = vld [vmem:[%s13271_s2 + $0x698] sm:$0xff]  ;;  %v684_v47 = vld [vmem:[%s13271_s2 + $0x688] sm:$0xff]  ;;  %v3831_v29 = vld [vmem:[%s13272_s3 + $0x3f0] sm:$0xff] }
 0x294   : > { %v9724_v51 = vpop.eup %9723  ;;  %v5194_v26 = vmul.f32 %v4541_v23, %v3826_v42  ;;  %4840 = vperm.xlu1 %8630, %v12066_v14   ;;  %v2473_v53 = vpop.f32.mrb[207].mxu0  ;;  %9747 = vrcp.f32 %v3444_v55  ;;  %v5362_v43 = vpack.c.bf16 %v5196_v4, %v5195_v36  ;;  %v3193_v38 = vmul.f32 1.442695, %v2765_v46 }
 0x295   : > { %v9726_v41 = vpop.eup %9725  ;;  %8048 = vmatpush3.bf16.msra.mxu1 %v5352_v18  ;;  %4865 = vperm.xlu0 %8631, %v9720_v30   ;;  %v680_v18 = vld [vmem:[%s13271_s2 + $0x668] sm:$0xff]  ;;  %9749 = vrcp.f32 %v3442_v20  ;;  %v12170_v3 = vadd.f32 %v2470_v35, %v679_v40  ;;  %v3195_v37 = vmul.f32 1.442695, %v2766_v13  ;;  %v5354_v57 = vpack.c.bf16 %v12147_v10, %v5179_v7 }
 0x296   : > { %v9728_v14 = vpop.eup %9727  ;;  %v5361_v49 = vpack.c.bf16 %v5194_v26, %v5193_v5  ;;  %v4476_v56 = vpop.permute.xlu0 %4475  ;;  %9751 = vpow2.f32 %v3197_v32  ;;  %v3447_v62 = vadd.f32 1.0, %v9726_v41  ;;  %v12189_v25 = vadd.f32 %v2473_v53, %v680_v18  ;;  %v690_v18 = vld [vmem:[%s13271_s2 + $0x6b8] sm:$0xff] }
 0x297   : > { %v12157_v11 = vpop.eup %9729  ;;  %v4481_v48 = vpop.permute.xlu1 %4480  ;;  %9753 = vpow2.f32 %v3199_v8  ;;  %v5181_v58 = vmul.f32 %v4476_v56, %v3813_v2  ;;  %v2769_v21 = vsub.f32 0.0, %v12170_v3  ;;  %v3815_v56 = vld [vmem:[%s13272_s3 + $0x370] sm:$0xff]  ;;  %v687_v2 = vld [vmem:[%s13271_s2 + $0x6a0] sm:$0xff] }
 0x298   : > { %4870 = vperm.xlu1 %8630, %v9724_v51   ;;  %8049 = vmatprep.subr.bf16.mxu1 %v5361_v49  ;;  %v12179_v31 = vpop.eup %9731  ;;  %v8577_v0 = vpop.f32.mrb[208].mxu0  ;;  %v5182_v63 = vmul.f32 %v4481_v48, %v3814_v60  ;;  %9755 = vpow2.f32 %v3193_v38  ;;  %v3816_v49 = vld [vmem:[%s13272_s3 + $0x378] sm:$0xff]  ;;  %v8818_v48 = vld [vmem:[%s10454_s22 + $0x1f0] ss:$60 sps:$4 sm:$0xff]   ;;  %v2770_v3 = vsub.f32 0.0, %v12189_v25 }
 0x299   : > { %8050 = vmatpush3.bf16.msra.mxu1 %v5353_v50  ;;  %v9734_v16 = vpop.eup %9733  ;;  %4855 = vperm.xlu0 %8631, %v12137_v54   ;;  %v2495_v59 = vadd.f32 %v8577_v0, %v685_v24  ;;  %v2486_v45 = vpop.f32.mrb[209].mxu0  ;;  %9757 = vpow2.f32 %v3195_v37  ;;  %v3832_v54 = vld [vmem:[%s13272_s3 + $0x3f8] sm:$0xff]  ;;  %v3201_v38 = vmul.f32 1.442695, %v2769_v21  ;;  %v8819_v37 = vld [vmem:[%s10454_s22 + $0x26c] ss:$60 sps:$4 sm:$0xff]  }
 0x29a   : > { %8051 = vmatprep.subr.bf16.mxu1 %v5362_v43  ;;  %v4556_v27 = vpop.permute.xlu0 %4555  ;;  %v9736_v61 = vpop.eup %9735  ;;  %6606 = vmatmul.mubr.bf16.gmra.mrb[92].mxu1 %v8815_v12  ;;  %v2487_v19 = vadd.f32 %v2486_v45, %v683_v44  ;;  %v3445_v9 = vadd.f32 1.0, %v9734_v16  ;;  %v5355_v53 = vpack.c.bf16 %v5182_v63, %v5181_v58  ;;  %9759 = vrcp.f32 %v3447_v62 }
 0x29b   : > { %v4561_v22 = vpop.permute.xlu1 %4560  ;;  %v5197_v28 = vmul.f32 %v4556_v27, %v3829_v39  ;;  %v9738_v42 = vpop.eup %9737  ;;  %v2775_v35 = vsub.f32 0.0, %v2495_v59  ;;  %6613 = vmatprep.mubr.bf16.mxu1 %v8816_v17  ;;  %v3448_v23 = vadd.f32 1.0, %v9736_v61  ;;  %v688_v27 = vld [vmem:[%s13271_s2 + $0x6a8] sm:$0xff] }
 0x29c   : > { %v5198_v30 = vmul.f32 %v4561_v22, %v3830_v6  ;;  %4860 = vperm.xlu1 %8630, %v9728_v14   ;;  %v8578_v46 = vpop.f32.mrb[210].mxu0  ;;  %v9740_v34 = vpop.eup %9739  ;;  %v2773_v20 = vsub.f32 0.0, %v2487_v19 }
 0x29d   : > { %8052 = vmatpush3.bf16.msra.mxu1 %v5354_v57  ;;  %v2498_v15 = vadd.f32 %v8578_v46, %v686_v52  ;;  %v2489_v55 = vpop.f32.mrb[211].mxu0  ;;  %v9742_v36 = vpop.eup %9741  ;;  %v3213_v41 = vmul.f32 1.442695, %v2775_v35  ;;  %4885 = vperm.xlu0 %8631, %v12157_v11   ;;  %v689_v11 = vld [vmem:[%s13271_s2 + $0x6b0] sm:$0xff]  ;;  %v3446_v60 = vadd.f32 1.0, %v9740_v34 }
 0x29e   : > { %v5363_v5 = vpack.c.bf16 %v5198_v30, %v5197_v28  ;;  %v4566_v51 = vpop.permute.xlu0 %4565  ;;  %v2490_v4 = vadd.f32 %v2489_v55, %v684_v47  ;;  %v12205_v26 = vpop.eup %9743  ;;  %v3209_v7 = vmul.f32 1.442695, %v2773_v20  ;;  %v3203_v46 = vmul.f32 1.442695, %v2770_v3  ;;  %v694_v55 = vld [vmem:[%s13271_s2 + $0x6d8] sm:$0xff] }
 0x29f   : > { %v4571_v10 = vpop.permute.xlu1 %4570  ;;  %v5199_v32 = vmul.f32 %v4566_v51, %v3831_v29  ;;  %v2776_v13 = vsub.f32 0.0, %v2498_v15  ;;  %v12208_v40 = vpop.eup %9745  ;;  %9761 = vpow2.f32 %v3213_v41  ;;  %v693_v15 = vld [vmem:[%s13271_s2 + $0x6d0] sm:$0xff] }
 0x2a0   : > { %v5200_v14 = vmul.f32 %v4571_v10, %v3832_v54  ;;  %4890 = vperm.xlu1 %8630, %v9738_v42   ;;  %8053 = vmatprep.subr.bf16.mxu1 %v5363_v5  ;;  %v2774_v8 = vsub.f32 0.0, %v2490_v4  ;;  %v9748_v50 = vpop.eup %9747  ;;  %9763 = vrcp.f32 %v3445_v9  ;;  %v8581_v24 = vpop.f32.mrb[212].mxu0  ;;  %v8821_v54 = vld [vmem:[%s10454_s22 + $0x268] ss:$60 sps:$4 sm:$0xff]  }
 0x2a1   : > { %8054 = vmatpush3.bf16.msra.mxu1 %v5355_v53  ;;  %v12226_v43 = vpop.eup %9749  ;;  %9765 = vrcp.f32 %v3448_v23  ;;  %v3215_v44 = vmul.f32 1.442695, %v2776_v13  ;;  %4875 = vperm.xlu0 %8631, %v12179_v31   ;;  %v2511_v57 = vadd.f32 %v8581_v24, %v689_v11  ;;  %v2502_v62 = vpop.f32.mrb[213].mxu0  ;;  %v691_v4 = vld [vmem:[%s13271_s2 + $0x6c0] sm:$0xff] }
 0x2a2   : > { %v5364_v39 = vpack.c.bf16 %v5200_v14, %v5199_v32  ;;  %v4486_v12 = vpop.permute.xlu0 %4485  ;;  %v9752_v6 = vpop.eup %9751  ;;  %9767 = vpow2.f32 %v3209_v7  ;;  %v3211_v25 = vmul.f32 1.442695, %v2774_v8  ;;  %v2503_v61 = vadd.f32 %v2502_v62, %v687_v2  ;;  %6614 = vmatmul.mubr.bf16.gmra.mrb[96].mxu1 %v8818_v48  ;;  %v692_v32 = vld [vmem:[%s13271_s2 + $0x6c8] sm:$0xff]  ;;  %v8824_v62 = vld [vmem:[%s10454_s22 + $0x2e0] ss:$60 sps:$4 sm:$0xff]  }
 0x2a3   : > { %v4491_v17 = vpop.permute.xlu1 %4490  ;;  %v5183_v16 = vmul.f32 %v4486_v12, %v3815_v56  ;;  %v9754_v0 = vpop.eup %9753  ;;  %9769 = vrcp.f32 %v3446_v60  ;;  %v2779_v58 = vsub.f32 0.0, %v2511_v57  ;;  %v3451_v59 = vadd.f32 1.0, %v9752_v6  ;;  %6621 = vmatprep.mubr.bf16.mxu1 %v8819_v37 }
 0x2a4   : > { %v5184_v52 = vmul.f32 %v4491_v17, %v3816_v49  ;;  %4880 = vperm.xlu1 %8630, %v9742_v36   ;;  %8055 = vmatprep.subr.bf16.mxu1 %v5364_v39  ;;  %v8582_v63 = vpop.f32.mrb[214].mxu0  ;;  %v9756_v31 = vpop.eup %9755  ;;  %9771 = vpow2.f32 %v3201_v38  ;;  %v3452_v30 = vadd.f32 1.0, %v9754_v0  ;;  %v2777_v34 = vsub.f32 0.0, %v2503_v61 }
 0x2a5   : > { %v2514_v22 = vadd.f32 %v8582_v63, %v690_v18  ;;  %v2505_v28 = vpop.f32.mrb[215].mxu0  ;;  %v9758_v21 = vpop.eup %9757  ;;  %9773 = vpow2.f32 %v3215_v44  ;;  %v3221_v29 = vmul.f32 1.442695, %v2779_v58  ;;  %4905 = vperm.xlu0 %8631, %v12205_v26   ;;  %v3449_v9 = vadd.f32 1.0, %v9756_v31  ;;  %v8822_v26 = vld [vmem:[%s10454_s22 + $0x2e4] ss:$60 sps:$4 sm:$0xff]  }
 0x2a6   : > { %v5356_v45 = vpack.c.bf16 %v5184_v52, %v5183_v16  ;;  %v12234_v47 = vpop.permute.xlu0 %4585  ;;  %v2506_v42 = vadd.f32 %v2505_v28, %v688_v27  ;;  %9775 = vpow2.f32 %v3211_v25  ;;  %v9760_v36 = vpop.eup %9759  ;;  %v3450_v23 = vadd.f32 1.0, %v9758_v21  ;;  %v697_v44 = vld [vmem:[%s13271_s2 + $0x6f0] sm:$0xff]  ;;  %v695_v27 = vld [vmem:[%s13271_s2 + $0x6e0] sm:$0xff]  ;;  %v698_v63 = vld [vmem:[%s13271_s2 + $0x6f8] sm:$0xff] }
 0x2a7   : > { %v12236_v19 = vpop.permute.xlu1 %4590  ;;  %9777 = vpow2.f32 %v3221_v29  ;;  %v2780_v35 = vsub.f32 0.0, %v2514_v22  ;;  %v8585_v20 = vpop.f32.mrb[216].mxu0  ;;  %v3217_v7 = vmul.f32 1.442695, %v2777_v34  ;;  %v8825_v58 = vld [vmem:[%s10454_s22 + $0x35c] ss:$60 sps:$4 sm:$0xff]  }
 0x2a8   : > { %4910 = vperm.xlu1 %8630, %v9748_v50   ;;  %8056 = vmatpush3.bf16.msra.mxu1 %v5356_v45  ;;  %9779 = vrcp.f32 %v3451_v59  ;;  %v2778_v51 = vsub.f32 0.0, %v2506_v42  ;;  %v2518_v10 = vpop.f32.mrb[217].mxu0  ;;  %v2527_v8 = vadd.f32 %v8585_v20, %v693_v15  ;;  %v696_v21 = vld [vmem:[%s13271_s2 + $0x6e8] sm:$0xff] }
 0x2a9   : > { %v9762_v53 = vpop.eup %9761  ;;  %9781 = vrcp.f32 %v3452_v30  ;;  %4895 = vperm.xlu0 %8631, %v12208_v40   ;;  %v8586_v49 = vpop.f32.mrb[218].mxu0  ;;  %v3223_v11 = vmul.f32 1.442695, %v2780_v35  ;;  %v2519_v50 = vadd.f32 %v2518_v10, %v691_v4  ;;  %v681_v35 = vld [vmem:[%s13271_s2 + $0x670] sm:$0xff]  ;;  %v682_v10 = vld [vmem:[%s13271_s2 + $0x678] sm:$0xff] }
 0x2aa   : > { %v12246_v5 = vpop.permute.xlu0 %4575  ;;  %v9764_v13 = vpop.eup %9763  ;;  %9783 = vpow2.f32 %v3203_v46  ;;  %v3459_v14 = vadd.f32 1.0, %v9762_v53  ;;  %6622 = vmatmul.mubr.bf16.gmra.mrb[100].mxu1 %v8821_v54  ;;  %v2530_v60 = vadd.f32 %v8586_v49, %v694_v55  ;;  %v3219_v2 = vmul.f32 1.442695, %v2778_v51 }
 0x2ab   : > { %v12252_v41 = vpop.permute.xlu1 %4580  ;;  %v9766_v56 = vpop.eup %9765  ;;  %9785 = vrcp.f32 %v3449_v9  ;;  %v2783_v18 = vsub.f32 0.0, %v2527_v8  ;;  %6629 = vmatprep.mubr.bf16.mxu1 %v8822_v26  ;;  %v2781_v12 = vsub.f32 0.0, %v2519_v50  ;;  %v2479_v49 = vadd.f32 %v12129_v1, %v681_v35  ;;  %v699_v1 = vld [vmem:[%s13271_s2 + $0x700] sm:$0xff] }
 0x2ac   : > { %4900 = vperm.xlu1 %8630, %v12226_v43   ;;  %v2521_v40 = vpop.f32.mrb[219].mxu0  ;;  %v9768_v48 = vpop.eup %9767  ;;  %9787 = vrcp.f32 %v3450_v23  ;;  %v2784_v6 = vsub.f32 0.0, %v2530_v60 }
 0x2ad   : > { %v2522_v3 = vadd.f32 %v2521_v40, %v692_v32  ;;  %v9770_v39 = vpop.eup %9769  ;;  %9789 = vrcp.f32 %v3459_v14  ;;  %4925 = vperm.xlu0 %8631, %v9760_v36   ;;  %v3229_v37 = vmul.f32 1.442695, %v2783_v18  ;;  %v3457_v16 = vadd.f32 1.0, %v9768_v48  ;;  %v8827_v40 = vld [vmem:[%s10454_s22 + $0x358] ss:$60 sps:$4 sm:$0xff]  }
 0x2ae   : > { %v12259_v38 = vpop.permute.xlu0 %4605  ;;  %v12263_v24 = vpop.eup %9771  ;;  %9791 = vpow2.f32 %v3217_v7  ;;  %v3225_v31 = vmul.f32 1.442695, %v2781_v12  ;;  %v3231_v29 = vmul.f32 1.442695, %v2784_v6  ;;  %v8828_v12 = vld [vmem:[%s10454_s22 + $0x3d4] ss:$60 sps:$4 sm:$0xff]  }
 0x2af   : > { %v12261_v43 = vpop.permute.xlu1 %4610  ;;  %v9774_v17 = vpop.eup %9773  ;;  %9793 = vpow2.f32 %v3223_v11  ;;  %v2782_v57 = vsub.f32 0.0, %v2522_v3  ;;  %v2482_v3 = vadd.f32 %v12143_v33, %v682_v10 }
 0x2b0   : > { %4930 = vperm.xlu1 %8630, %v9766_v56   ;;  %v9776_v0 = vpop.eup %9775  ;;  %v3460_v25 = vadd.f32 1.0, %v9774_v17  ;;  %9795 = vpow2.f32 %v3219_v2  ;;  %v8589_v61 = vpop.f32.mrb[220].mxu0 }
 0x2b1   : > { %v9778_v22 = vpop.eup %9777  ;;  %v3458_v28 = vadd.f32 1.0, %v9776_v0  ;;  %9797 = vpow2.f32 %v3229_v37  ;;  %4915 = vperm.xlu0 %8631, %v9764_v13   ;;  %v2543_v45 = vadd.f32 %v8589_v61, %v697_v44  ;;  %v2534_v42 = vpop.f32.mrb[221].mxu0  ;;  %v3227_v54 = vmul.f32 1.442695, %v2782_v57 }
 0x2b2   : > { %v12272_v52 = vpop.permute.xlu0 %4595  ;;  %v9780_v30 = vpop.eup %9779  ;;  %9799 = vrcp.f32 %v3460_v25  ;;  %v2535_v46 = vadd.f32 %v2534_v42, %v695_v27  ;;  %6630 = vmatmul.mubr.bf16.gmra.mrb[104].mxu1 %v8824_v62  ;;  %v3463_v51 = vadd.f32 1.0, %v9778_v22  ;;  %v2771_v27 = vsub.f32 0.0, %v2479_v49  ;;  %v701_v22 = vld [vmem:[%s13271_s2 + $0x710] sm:$0xff] }
 0x2b3   : > { %v12278_v59 = vpop.permute.xlu1 %4600  ;;  %v8590_v34 = vpop.f32.mrb[222].mxu0  ;;  %9801 = vrcp.f32 %v3457_v16  ;;  %v2787_v15 = vsub.f32 0.0, %v2543_v45  ;;  %6637 = vmatprep.mubr.bf16.mxu1 %v8825_v58  ;;  %v700_v45 = vld [vmem:[%s13271_s2 + $0x708] sm:$0xff] }
 0x2b4   : > { %4920 = vperm.xlu1 %8630, %v9770_v39   ;;  %v9782_v9 = vpop.eup %9781  ;;  %v2546_v55 = vadd.f32 %v8590_v34, %v698_v63  ;;  %v2537_v36 = vpop.f32.mrb[223].mxu0  ;;  %9803 = vrcp.f32 %v3458_v28  ;;  %v2785_v4 = vsub.f32 0.0, %v2535_v46 }
 0x2b5   : > { %v12286_v23 = vpop.eup %9783  ;;  %v2538_v26 = vadd.f32 %v2537_v36, %v696_v21  ;;  %9805 = vpow2.f32 %v3225_v31  ;;  %4945 = vperm.xlu0 %8631, %v9780_v30   ;;  %v3237_v13 = vmul.f32 1.442695, %v2787_v15  ;;  %v7829_v7 = vpop.f32.mrb[0].mxu1  ;;  %v2772_v21 = vsub.f32 0.0, %v2482_v3  ;;  %v702_v36 = vld [vmem:[%s13271_s2 + $0x718] sm:$0xff] }
 0x2b6   : > { %v12288_v20 = vpop.permute.xlu0 %4625  ;;  %v9786_v53 = vpop.eup %9785  ;;  %v2788_v14 = vsub.f32 0.0, %v2546_v55  ;;  %9807 = vpow2.f32 %v3231_v29  ;;  %v3233_v56 = vmul.f32 1.442695, %v2785_v4  ;;  %v3205_v15 = vmul.f32 1.442695, %v2771_v27 }
 0x2b7   : > { %v12293_v32 = vpop.permute.xlu1 %4630  ;;  %v9788_v8 = vpop.eup %9787  ;;  %9809 = vpow2.f32 %v3227_v54  ;;  %v2786_v60 = vsub.f32 0.0, %v2538_v26  ;;  %v3207_v49 = vmul.f32 1.442695, %v2772_v21  ;;  %v3453_v27 = vadd.f32 1.0, %v12263_v24  ;;  %v3849_v24 = vld [vmem:[%s13272_s3 + $0x480] sm:$0xff]  ;;  %v3850_v21 = vld [vmem:[%s13272_s3 + $0x488] sm:$0xff] }
 0x2b8   : > { %4950 = vperm.xlu1 %8630, %v9782_v9   ;;  %v7830_v11 = vpop.f32.mrb[1].mxu1  ;;  %v9790_v50 = vpop.eup %9789  ;;  %9811 = vrcp.f32 %v3463_v51  ;;  %v3239_v16 = vmul.f32 1.442695, %v2788_v14  ;;  %v12319_v9 = vld [vmem:[%s10454_s22 + $0x448] sm:$0xff] }
 0x2b9   : > { %v12297_v48 = vadd.f32 %v7830_v11, %v7829_v7  ;;  %v7832_v2 = vpop.f32.mrb[2].mxu1  ;;  %v9792_v18 = vpop.eup %9791  ;;  %9813 = vpow2.f32 %v3237_v13  ;;  %4935 = vperm.xlu0 %8631, %v9786_v53   ;;  %v3235_v58 = vmul.f32 1.442695, %v2786_v60  ;;  %v8830_v53 = vld [vmem:[%s10454_s22 + $0x3d0] ss:$60 sps:$4 sm:$0xff]  }
 0x2ba   : > { %v12300_v39 = vpop.permute.xlu0 %4615  ;;  %v8593_v37 = vpop.f32.mrb[224].mxu0  ;;  %v3461_v44 = vadd.f32 1.0, %v9792_v18  ;;  %9815 = vpow2.f32 %v3233_v56  ;;  %6638 = vmatmul.mubr.bf16.gmra.mrb[108].mxu1 %v8827_v40 }
 0x2bb   : > { %v9794_v6 = vpop.eup %9793  ;;  %v12306_v17 = vpop.permute.xlu1 %4620  ;;  %6645 = vmatprep.mubr.bf16.mxu1 %v8828_v12  ;;  %v2559_v55 = vadd.f32 %v8593_v37, %v701_v22 }
 0x2bc   : > { %v2550_v57 = vpop.f32.mrb[225].mxu0  ;;  %v9796_v62 = vpop.eup %9795  ;;  %v3464_v33 = vadd.f32 1.0, %v9794_v6  ;;  %4940 = vperm.xlu1 %8630, %v9788_v8   ;;  %9817 = vrcp.f32 %v3461_v44 }
 0x2bd   : > { %v8594_v0 = vpop.f32.mrb[226].mxu0  ;;  %v7833_v25 = vpop.f32.mrb[3].mxu1  ;;  %v3462_v63 = vadd.f32 1.0, %v9796_v62  ;;  %v2551_v28 = vadd.f32 %v2550_v57, %v699_v1  ;;  %4985 = vperm.xlu0 %8631, %v9790_v50   ;;  %v7672_v50 = vcombine.high %v12319_v9, %v12319_v9 }
 0x2be   : > { %v9798_v61 = vpop.eup %9797  ;;  %v2553_v31 = vpop.f32.mrb[227].mxu0  ;;  %9819 = vrcp.f32 %v3464_v33  ;;  %v12325_v13 = vadd.f32 %v7833_v25, %v7832_v2  ;;  %v2562_v2 = vadd.f32 %v8594_v0, %v702_v36 }
 0x2bf   : > { %v9800_v42 = vpop.eup %9799  ;;  %v3467_v30 = vadd.f32 1.0, %v9798_v61  ;;  %v12314_v29 = vpop.permute.xlu0 %4645  ;;  %9821 = vpow2.f32 %v3239_v16  ;;  %v2554_v51 = vadd.f32 %v2553_v31, %v700_v45  ;;  %v2789_v10 = vsub.f32 0.0, %v2551_v28 }
 0x2c0   : > { %v9802_v46 = vpop.eup %9801  ;;  %v12316_v34 = vpop.permute.xlu1 %4650  ;;  %9823 = vrcp.f32 %v3462_v63  ;;  %4990 = vperm.xlu1 %8630, %v9800_v42   ;;  %v2791_v16 = vsub.f32 0.0, %v2559_v55  ;;  %v2792_v61 = vsub.f32 0.0, %v2562_v2  ;;  %v3454_v28 = vadd.f32 1.0, %v12286_v23  ;;  %v8835_v55 = vld [vmem:[%s10454_s22 + $0x1c] ss:$60 sps:$4 sm:$0xff]  }
 0x2c1   : > { %v7835_v35 = vpop.f32.mrb[4].mxu1  ;;  %v9804_v54 = vpop.eup %9803  ;;  %9825 = vpow2.f32 %v3235_v58  ;;  %4975 = vperm.xlu0 %8631, %v9802_v46   ;;  %v2790_v12 = vsub.f32 0.0, %v2554_v51  ;;  %v3241_v57 = vmul.f32 1.442695, %v2789_v10 }
 0x2c2   : > { %v7836_v4 = vpop.f32.mrb[5].mxu1  ;;  %v9806_v26 = vpop.eup %9805  ;;  %9827 = vrcp.f32 %v3467_v30  ;;  %6646 = vmatmul.mubr.bf16.gmra.mrb[112].mxu1 %v8830_v53  ;;  %v3245_v42 = vmul.f32 1.442695, %v2791_v16  ;;  %v7671_v30 = vcombine.low %v12319_v9, %v12319_v9 }
 0x2c3   : > { %v12327_v14 = vadd.f32 %v7836_v4, %v7835_v35  ;;  %v7838_v7 = vpop.f32.mrb[6].mxu1  ;;  %v9808_v8 = vpop.eup %9807  ;;  %v3465_v56 = vadd.f32 1.0, %v9806_v26  ;;  %9829 = vpow2.f32 %v3205_v15  ;;  %6653 = vmatprep.mubr.bf16.mxu1 %v7672_v50  ;;  %v3243_v63 = vmul.f32 1.442695, %v2790_v12 }
 0x2c4   : > { %v12329_v11 = vpop.permute.xlu0 %4635  ;;  %v7839_v60 = vpop.f32.mrb[7].mxu1  ;;  %v3468_v18 = vadd.f32 1.0, %v9808_v8  ;;  %4980 = vperm.xlu1 %8630, %v9804_v54   ;;  %v3247_v4 = vmul.f32 1.442695, %v2792_v61 }
 0x2c5   : > { %v9810_v40 = vpop.eup %9809  ;;  %v12333_v3 = vpop.permute.xlu1 %4640  ;;  %v12335_v37 = vadd.f32 %v7839_v60, %v7838_v7 }
 0x2c6   : > { %v9812_v1 = vpop.eup %9811  ;;  %v3466_v6 = vadd.f32 1.0, %v9810_v40  ;;  %9831 = vrcp.f32 %v3468_v18  ;;  %v7841_v58 = vpop.f32.mrb[8].mxu1  ;;  %v3852_v40 = vld [vmem:[%s13272_s3 + $0x498] sm:$0xff]  ;;  %v3851_v18 = vld [vmem:[%s13272_s3 + $0x490] sm:$0xff] }
 0x2c7   : > { %v9814_v44 = vpop.eup %9813  ;;  %9833 = vrcp.f32 %v3465_v56  ;;  %5005 = vperm.xlu0 %8631, %v9812_v1   ;;  %v7842_v31 = vpop.f32.mrb[9].mxu1  ;;  %v3833_v56 = vld [vmem:[%s13272_s3 + $0x400] sm:$0xff] }
 0x2c8   : > { %v9816_v62 = vpop.eup %9815  ;;  %v12338_v33 = vpop.permute.xlu0 %4665  ;;  %9835 = vpow2.f32 %v3207_v49  ;;  %v12351_v46 = vadd.f32 %v7842_v31, %v7841_v58  ;;  %v3834_v49 = vld [vmem:[%s13272_s3 + $0x408] sm:$0xff]  ;;  %v3471_v60 = vadd.f32 1.0, %v9814_v44 }
 0x2c9   : > { %v9818_v0 = vpop.eup %9817  ;;  %v12340_v25 = vpop.permute.xlu1 %4670  ;;  %9837 = vrcp.f32 %v3466_v6  ;;  %v3469_v54 = vadd.f32 1.0, %v9816_v62  ;;  %v3835_v62 = vld [vmem:[%s13272_s3 + $0x410] sm:$0xff] }
 0x2ca   : > { %v9820_v22 = vpop.eup %9819  ;;  %9839 = vpow2.f32 %v3241_v57  ;;  %v7844_v23 = vpop.f32.mrb[10].mxu1  ;;  %6654 = vmatmul.mubr.bf16.gmra.mrb[116].mxu1 %v7671_v30  ;;  %v3836_v57 = vld [vmem:[%s13272_s3 + $0x418] sm:$0xff] }
 0x2cb   : > { %v9822_v45 = vpop.eup %9821  ;;  %5010 = vperm.xlu1 %8630, %v9820_v22   ;;  %9841 = vrcp.f32 %v3453_v27  ;;  %v7845_v36 = vpop.f32.mrb[11].mxu1  ;;  %4995 = vperm.xlu0 %8631, %v9818_v0   ;;  %v5202_v27 = vmul.f32 %v12252_v41, %v3834_v49  ;;  %v5201_v0 = vmul.f32 %v12246_v5, %v3833_v56  ;;  %v5220_v22 = vmul.f32 %v12340_v25, %v3852_v40  ;;  %v3854_v5 = vld [vmem:[%s13272_s3 + $0x4a8] sm:$0xff]  ;;  %v3853_v41 = vld [vmem:[%s13272_s3 + $0x4a0] sm:$0xff]  ;;  %v8836_v25 = vld [vmem:[%s10454_s22 + $0x94] ss:$60 sps:$4 sm:$0xff]  }
 0x2cc   : > { %v9824_v35 = vpop.eup %9823  ;;  %v4656_v15 = vpop.permute.xlu0 %4655  ;;  %9843 = vpow2.f32 %v3243_v63  ;;  %v12354_v10 = vadd.f32 %v7845_v36, %v7844_v23  ;;  %6693 = vmatprep.mubr.bf16.mxu1 %v8835_v55  ;;  %v3472_v61 = vadd.f32 1.0, %v9822_v45  ;;  %v3856_v56 = vld [vmem:[%s13272_s3 + $0x4b8] sm:$0xff] }
 0x2cd   : > { %v9826_v51 = vpop.eup %9825  ;;  %v4661_v26 = vpop.permute.xlu1 %4660  ;;  %v5217_v53 = vmul.f32 %v4656_v15, %v3849_v24  ;;  %9845 = vrcp.f32 %v3454_v28  ;;  %v5219_v28 = vmul.f32 %v12338_v33, %v3851_v18  ;;  %v8833_v24 = vld [vmem:[%s10454_s22 + $0x18] ss:$60 sps:$4 sm:$0xff]  }
 0x2ce   : > { %v9828_v7 = vpop.eup %9827  ;;  %v3470_v9 = vadd.f32 1.0, %v9826_v51  ;;  %v5218_v8 = vmul.f32 %v4661_v26, %v3850_v21  ;;  %9847 = vpow2.f32 %v3245_v42  ;;  %v7847_v44 = vpop.f32.mrb[12].mxu1 }
 0x2cf   : > { %5000 = vperm.xlu1 %8630, %v9824_v35   ;;  %v9830_v50 = vpop.eup %9829  ;;  %9849 = vrcp.f32 %v3469_v54  ;;  %5025 = vperm.xlu0 %8631, %v9828_v7   ;;  %v7848_v63 = vpop.f32.mrb[13].mxu1  ;;  %v5204_v35 = vmul.f32 %v12236_v19, %v3836_v57  ;;  %v5203_v54 = vmul.f32 %v12234_v47, %v3835_v62  ;;  %v3837_v7 = vld [vmem:[%s13272_s3 + $0x420] sm:$0xff]  ;;  %v5374_v19 = vpack.c.bf16 %v5220_v22, %v5219_v28 }
 0x2d0   : > { %v5373_v2 = vpack.c.bf16 %v5218_v8, %v5217_v53  ;;  %v12368_v12 = vpop.permute.xlu0 %4685  ;;  %v9832_v1 = vpop.eup %9831  ;;  %9851 = vpow2.f32 %v3247_v4  ;;  %v12383_v31 = vadd.f32 %v7848_v63, %v7847_v44  ;;  %v3455_v30 = vadd.f32 1.0, %v9830_v50  ;;  %v3838_v53 = vld [vmem:[%s13272_s3 + $0x428] sm:$0xff]  ;;  %v3855_v50 = vld [vmem:[%s13272_s3 + $0x4b0] sm:$0xff]  ;;  %v3840_v63 = vld [vmem:[%s13272_s3 + $0x438] sm:$0xff] }
 0x2d1   : > { %v12370_v6 = vpop.permute.xlu1 %4690  ;;  %v9834_v16 = vpop.eup %9833  ;;  %9853 = vrcp.f32 %v3470_v9  ;;  %v5365_v4 = vpack.c.bf16 %v5202_v27, %v5201_v0  ;;  %v5366_v18 = vpack.c.bf16 %v5204_v35, %v5203_v54  ;;  %v5206_v57 = vmul.f32 %v12278_v59, %v3838_v53 }
 0x2d2   : > { %8117 = vmatprep.subr.bf16.mxu1 %v5373_v2  ;;  %v9836_v58 = vpop.eup %9835  ;;  %v7850_v42 = vpop.f32.mrb[14].mxu1  ;;  %9855 = vrcp.f32 %v3471_v60  ;;  %6694 = vmatmul.mubr.bf16.vlgmr.msra.gmra.mrb[120].mxu1 %v8833_v24  ;;  %v5205_v62 = vmul.f32 %v12272_v52, %v3837_v7  ;;  %v5223_v22 = vmul.f32 %v12368_v12, %v3855_v50  ;;  %v8838_v24 = vld [vmem:[%s10454_s22 + $0x90] ss:$60 sps:$4 sm:$0xff]   ;;  %v5208_v35 = vmul.f32 %v12261_v43, %v3840_v63  ;;  %v3860_v43 = vld [vmem:[%s13272_s3 + $0x4d8] sm:$0xff] }
 0x2d3   : > { %5030 = vperm.xlu1 %8630, %v9832_v1   ;;  %v9838_v21 = vpop.eup %9837  ;;  %v7851_v23 = vpop.f32.mrb[15].mxu1  ;;  %5015 = vperm.xlu0 %8631, %v9834_v16   ;;  %v3456_v51 = vadd.f32 1.0, %v9836_v58  ;;  %9857 = vrcp.f32 %v3472_v61  ;;  %v3839_v16 = vld [vmem:[%s13272_s3 + $0x430] sm:$0xff]  ;;  %v5224_v58 = vmul.f32 %v12370_v6, %v3856_v56  ;;  %v3857_v6 = vld [vmem:[%s13272_s3 + $0x4c0] sm:$0xff]  ;;  %v8839_v12 = vld [vmem:[%s10454_s22 + $0x10c] ss:$60 sps:$4 sm:$0xff]  }
 0x2d4   : > { %v4676_v45 = vpop.permute.xlu0 %4675  ;;  %v9840_v33 = vpop.eup %9839  ;;  %v12394_v55 = vadd.f32 %v7851_v23, %v7850_v42  ;;  %9859 = vrcp.f32 %v3455_v30  ;;  %8118 = vmatpush3.bf16.msra.mxu1 %v5365_v4  ;;  %6701 = vmatprep.mubr.bf16.mxu1 %v8836_v25  ;;  %v3858_v30 = vld [vmem:[%s13272_s3 + $0x4c8] sm:$0xff]  ;;  %v5367_v54 = vpack.c.bf16 %v5206_v57, %v5205_v62  ;;  %v3859_v7 = vld [vmem:[%s13272_s3 + $0x4d0] sm:$0xff] }
 0x2d5   : > { %v4681_v15 = vpop.permute.xlu1 %4680  ;;  %v9842_v36 = vpop.eup %9841  ;;  %v5221_v47 = vmul.f32 %v4676_v45, %v3853_v41  ;;  %v3473_v49 = vadd.f32 1.0, %v9840_v33  ;;  %8119 = vmatprep.subr.bf16.mxu1 %v5374_v19  ;;  %9861 = vrcp.f32 %v3456_v51  ;;  %v5207_v45 = vmul.f32 %v12259_v38, %v3839_v16  ;;  %v3841_v51 = vld [vmem:[%s13272_s3 + $0x440] sm:$0xff] }
 0x2d6   : > { %v9844_v26 = vpop.eup %9843  ;;  %v5222_v9 = vmul.f32 %v4681_v15, %v3854_v5  ;;  %v7853_v1 = vpop.f32.mrb[16].mxu1  ;;  %v5376_v38 = vpack.c.bf16 %v5224_v58, %v5223_v22  ;;  %v5209_v50 = vmul.f32 %v12300_v39, %v3841_v51 }
 0x2d7   : > { %5020 = vperm.xlu1 %8630, %v9838_v21   ;;  %v9846_v8 = vpop.eup %9845  ;;  %4955 = vperm.xlu0 %8631, %v9842_v36   ;;  %v3474_v27 = vadd.f32 1.0, %v9844_v26  ;;  %v7854_v0 = vpop.f32.mrb[17].mxu1  ;;  %9863 = vrcp.f32 %v3473_v49  ;;  %v3842_v36 = vld [vmem:[%s13272_s3 + $0x448] sm:$0xff]  ;;  %v5368_v49 = vpack.c.bf16 %v5208_v35, %v5207_v45 }
 0x2d8   : > { %v12408_v60 = vpop.permute.xlu0 %4705  ;;  %v9848_v40 = vpop.eup %9847  ;;  %v5375_v28 = vpack.c.bf16 %v5222_v9, %v5221_v47  ;;  %v12423_v42 = vadd.f32 %v7854_v0, %v7853_v1  ;;  %8120 = vmatpush3.bf16.msra.mxu1 %v5366_v18  ;;  %v5210_v56 = vmul.f32 %v12306_v17, %v3842_v36  ;;  %v3844_v18 = vld [vmem:[%s13272_s3 + $0x458] sm:$0xff]  ;;  %v3843_v1 = vld [vmem:[%s13272_s3 + $0x450] sm:$0xff]  ;;  %v8841_v17 = vld [vmem:[%s10454_s22 + $0x108] ss:$60 sps:$4 sm:$0xff]  }
 0x2d9   : > { %v12410_v2 = vpop.permute.xlu1 %4710  ;;  %v9850_v44 = vpop.eup %9849  ;;  %v3475_v52 = vadd.f32 1.0, %v9848_v40  ;;  %9865 = vrcp.f32 %v3474_v27  ;;  %v5227_v16 = vmul.f32 %v12408_v60, %v3859_v7  ;;  %v3862_v0 = vld [vmem:[%s13272_s3 + $0x4e8] sm:$0xff]  ;;  %v8844_v7 = vld [vmem:[%s10454_s22 + $0x180] ss:$60 sps:$4 sm:$0xff]  }
 0x2da   : > { %v9852_v61 = vpop.eup %9851  ;;  %v7856_v59 = vpop.f32.mrb[18].mxu1  ;;  %8121 = vmatprep.subr.bf16.mxu1 %v5375_v28  ;;  %6702 = vmatmul.mubr.bf16.gmra.mrb[124].mxu1 %v8838_v24  ;;  %v5212_v24 = vmul.f32 %v12293_v32, %v3844_v18  ;;  %v3864_v32 = vld [vmem:[%s13272_s3 + $0x4f8] sm:$0xff] }
 0x2db   : > { %4960 = vperm.xlu1 %8630, %v9846_v8   ;;  %v9854_v21 = vpop.eup %9853  ;;  %v7857_v41 = vpop.f32.mrb[19].mxu1  ;;  %5035 = vperm.xlu0 %8631, %v9850_v44   ;;  %v3476_v15 = vadd.f32 1.0, %v9852_v61  ;;  %9867 = vrcp.f32 %v3475_v52  ;;  %v5228_v44 = vmul.f32 %v12410_v2, %v3860_v43  ;;  %v3861_v61 = vld [vmem:[%s13272_s3 + $0x4e0] sm:$0xff]  ;;  %v3846_v52 = vld [vmem:[%s13272_s3 + $0x468] sm:$0xff] }
 0x2dc   : > { %v4696_v5 = vpop.permute.xlu0 %4695  ;;  %v12433_v23 = vadd.f32 %v7857_v41, %v7856_v59  ;;  %v9856_v33 = vpop.eup %9855  ;;  %8122 = vmatpush3.bf16.msra.mxu1 %v5367_v54  ;;  %6709 = vmatprep.mubr.bf16.mxu1 %v8839_v12  ;;  %v8842_v2 = vld [vmem:[%s10454_s22 + $0x184] ss:$60 sps:$4 sm:$0xff]   ;;  %v5211_v59 = vmul.f32 %v12288_v20, %v3843_v1  ;;  %v3863_v20 = vld [vmem:[%s13272_s3 + $0x4f0] sm:$0xff] }
 0x2dd   : > { %v4701_v25 = vpop.permute.xlu1 %4700  ;;  %v5225_v26 = vmul.f32 %v4696_v5, %v3857_v6  ;;  %v9858_v53 = vpop.eup %9857  ;;  %8123 = vmatprep.subr.bf16.mxu1 %v5376_v38  ;;  %9869 = vrcp.f32 %v3476_v15  ;;  %v5378_v6 = vpack.c.bf16 %v5228_v44, %v5227_v16  ;;  %v5214_v15 = vmul.f32 %v12333_v3, %v3846_v52  ;;  %v3848_v38 = vld [vmem:[%s13272_s3 + $0x478] sm:$0xff]  ;;  %v8850_v52 = vld [vmem:[%s10454_s22 + $0x270] ss:$60 sps:$4 sm:$0xff]  }
 0x2de   : > { %v5226_v4 = vmul.f32 %v4701_v25, %v3858_v30  ;;  %v7859_v47 = vpop.f32.mrb[20].mxu1  ;;  %v9860_v8 = vpop.eup %9859  ;;  %v3845_v30 = vld [vmem:[%s13272_s3 + $0x460] sm:$0xff]  ;;  %v5370_v54 = vpack.c.bf16 %v5212_v24, %v5211_v59 }
 0x2df   : > { %5040 = vperm.xlu1 %8630, %v9854_v21   ;;  %5045 = vperm.xlu0 %8631, %v9856_v33   ;;  %v7860_v40 = vpop.f32.mrb[21].mxu1  ;;  %v9862_v27 = vpop.eup %9861  ;;  %v5369_v21 = vpack.c.bf16 %v5210_v56, %v5209_v50  ;;  %v5213_v36 = vmul.f32 %v12329_v11, %v3845_v30 }
 0x2e0   : > { %v4726_v19 = vpop.permute.xlu0 %4725  ;;  %v5377_v57 = vpack.c.bf16 %v5226_v4, %v5225_v26  ;;  %v12459_v62 = vadd.f32 %v7860_v40, %v7859_v47  ;;  %v7862_v39 = vpop.f32.mrb[22].mxu1  ;;  %8124 = vmatpush3.bf16.msra.mxu1 %v5368_v49  ;;  %v3847_v4 = vld [vmem:[%s13272_s3 + $0x470] sm:$0xff]  ;;  %v8845_v49 = vld [vmem:[%s10454_s22 + $0x1fc] ss:$60 sps:$4 sm:$0xff]  }
 0x2e1   : > { %v4731_v9 = vpop.permute.xlu1 %4730  ;;  %v7863_v58 = vpop.f32.mrb[23].mxu1  ;;  %v5371_v18 = vpack.c.bf16 %v5214_v15, %v5213_v36  ;;  %v8853_v36 = vld [vmem:[%s10454_s22 + $0x2e8] ss:$60 sps:$4 sm:$0xff]  }
 0x2e2   : > { %8125 = vmatprep.subr.bf16.mxu1 %v5377_v57  ;;  %v12468_v22 = vadd.f32 %v7863_v58, %v7862_v39  ;;  %v9864_v28 = vpop.eup %9863  ;;  %6710 = vmatmul.mubr.bf16.gmra.mrb[128].mxu1 %v8841_v17  ;;  %v5232_v26 = vmul.f32 %v4731_v9, %v3864_v32  ;;  %v5215_v9 = vmul.f32 %v12314_v29, %v3847_v4 }
 0x2e3   : > { %5050 = vperm.xlu1 %8630, %v9858_v53   ;;  %4965 = vperm.xlu0 %8631, %v9860_v8   ;;  %v9866_v41 = vpop.eup %9865  ;;  %v5231_v53 = vmul.f32 %v4726_v19, %v3863_v20  ;;  %v5216_v19 = vmul.f32 %v12316_v34, %v3848_v38 }
 0x2e4   : > { %v4716_v63 = vpop.permute.xlu0 %4715  ;;  %8126 = vmatpush3.bf16.msra.mxu1 %v5369_v21  ;;  %6717 = vmatprep.mubr.bf16.mxu1 %v8842_v2 }
 0x2e5   : > { %v4721_v60 = vpop.permute.xlu1 %4720  ;;  %v5229_v12 = vmul.f32 %v4716_v63, %v3861_v61  ;;  %8127 = vmatprep.subr.bf16.mxu1 %v5378_v6  ;;  %v7865_v33 = vpop.f32.mrb[24].mxu1  ;;  %v5380_v1 = vpack.c.bf16 %v5232_v26, %v5231_v53  ;;  %v5372_v17 = vpack.c.bf16 %v5216_v19, %v5215_v9  ;;  %v8848_v61 = vld [vmem:[%s10454_s22 + $0x274] ss:$60 sps:$4 sm:$0xff]   ;;  %v8854_v26 = vld [vmem:[%s10454_s22 + $0x364] ss:$60 sps:$4 sm:$0xff]   ;;  %v3882_v19 = vld [vmem:[%s13272_s3 + $0x588] sm:$0xff] }
 0x2e6   : > { %v5230_v5 = vmul.f32 %v4721_v60, %v3862_v0  ;;  %v9868_v35 = vpop.eup %9867  ;;  %v7866_v51 = vpop.f32.mrb[25].mxu1  ;;  %v8896_v60 = vld [vmem:[%s10454_s22 + $0x34] ss:$60 sps:$4 sm:$0xff]   ;;  %v8856_v9 = vld [vmem:[%s10454_s22 + $0x360] ss:$60 sps:$4 sm:$0xff]  }
 0x2e7   : > { %4970 = vperm.xlu1 %8630, %v9862_v27   ;;  %5055 = vperm.xlu0 %8631, %v9864_v28   ;;  %v12497_v47 = vadd.f32 %v7866_v51, %v7865_v33  ;;  %v7868_v8 = vpop.f32.mrb[26].mxu1  ;;  %v9870_v3 = vpop.eup %9869  ;;  %v8847_v27 = vld [vmem:[%s10454_s22 + $0x1f8] ss:$60 sps:$4 sm:$0xff]  }
 0x2e8   : > { %v12484_v45 = vpop.permute.xlu0 %4745  ;;  %v5379_v43 = vpack.c.bf16 %v5230_v5, %v5229_v12  ;;  %8128 = vmatpush3.bf16.msra.mxu1 %v5370_v54  ;;  %v7869_v56 = vpop.f32.mrb[27].mxu1  ;;  %7029 = vmatprep.mubr.bf16.mxu0 %v8896_v60  ;;  %v8851_v12 = vld [vmem:[%s10454_s22 + $0x2ec] ss:$60 sps:$4 sm:$0xff]  }
 0x2e9   : > { %v12486_v25 = vpop.permute.xlu1 %4750  ;;  %v12504_v40 = vadd.f32 %v7869_v56, %v7868_v8 }
 0x2ea   : > { %8129 = vmatprep.subr.bf16.mxu1 %v5379_v43  ;;  %6718 = vmatmul.mubr.bf16.gmra.mrb[132].mxu1 %v8844_v7 }
 0x2eb   : > { %5060 = vperm.xlu1 %8630, %v9866_v41   ;;  %5065 = vperm.xlu0 %8631, %v9868_v35  }
 0x2ec   : > { %v12499_v11 = vpop.permute.xlu0 %4735  ;;  %8130 = vmatpush3.bf16.msra.mxu1 %v5371_v18  ;;  %6725 = vmatprep.mubr.bf16.mxu1 %v8845_v49  ;;  %v3881_v49 = vld [vmem:[%s13272_s3 + $0x580] sm:$0xff] }
 0x2ed   : > { %v12502_v50 = vpop.permute.xlu1 %4740  ;;  %8131 = vmatprep.subr.bf16.mxu1 %v5380_v1  ;;  %v7871_v57 = vpop.f32.mrb[28].mxu1 }
 0x2ee   : > { %v7872_v39 = vpop.f32.mrb[29].mxu1 }
 0x2ef   : > { %5070 = vperm.xlu1 %8630, %v9870_v3   ;;  %v12513_v34 = vadd.f32 %v7872_v39, %v7871_v57  ;;  %v7874_v29 = vpop.f32.mrb[30].mxu1 }
 0x2f0   : > { %v12508_v44 = vpop.permute.xlu0 %4765  ;;  %8132 = vmatpush3.bf16.msra.mxu1 %v5372_v17  ;;  %v7875_v63 = vpop.f32.mrb[31].mxu1  ;;  %v8857_v17 = vld [vmem:[%s10454_s22 + $0x3dc] ss:$60 sps:$4 sm:$0xff]  }
 0x2f1   : > { %v12510_v16 = vpop.permute.xlu1 %4770  ;;  %v12520_v58 = vadd.f32 %v7875_v63, %v7874_v29 }
 0x2f2   : > { %6726 = vmatmul.mubr.bf16.gmra.mrb[136].mxu1 %v8847_v27 }
 0x2f3   : > { %6733 = vmatprep.mubr.bf16.mxu1 %v8848_v61 }
 0x2f4   : > { %v12515_v0 = vpop.permute.xlu0 %4755 }
 0x2f5   : > { %v12518_v2 = vpop.permute.xlu1 %4760  ;;  %v7877_v59 = vpop.f32.mrb[32].mxu1 }
 0x2f6   : > { %v7878_v21 = vpop.f32.mrb[33].mxu1 }
 0x2f7   : > { %v12528_v30 = vadd.f32 %v7878_v21, %v7877_v59  ;;  %v7880_v6 = vpop.f32.mrb[34].mxu1 }
 0x2f8   : > { %v12523_v28 = vpop.permute.xlu0 %4785  ;;  %v7881_v41 = vpop.f32.mrb[35].mxu1 }
 0x2f9   : > { %v12525_v24 = vpop.permute.xlu1 %4790  ;;  %v12535_v20 = vadd.f32 %v7881_v41, %v7880_v6 }
 0x2fa   : > { %6734 = vmatmul.mubr.bf16.gmra.mrb[140].mxu1 %v8850_v52 }
 0x2fb   : > { %6741 = vmatprep.mubr.bf16.mxu1 %v8851_v12  ;;  %v5562_v12 = vld [vmem:[%s10454_s22 + $0x450] sm:$0xff] }
 0x2fc   : > { %v12530_v5 = vpop.permute.xlu0 %4775 }
 0x2fd   : > { %v12533_v32 = vpop.permute.xlu1 %4780  ;;  %v7883_v54 = vpop.f32.mrb[36].mxu1 }
 0x2fe   : > { %v7884_v15 = vpop.f32.mrb[37].mxu1 }
 0x2ff   : > { %v12542_v51 = vadd.f32 %v7884_v15, %v7883_v54  ;;  %v7886_v38 = vpop.f32.mrb[38].mxu1  ;;  %v8859_v15 = vld [vmem:[%s10454_s22 + $0x3d8] ss:$60 sps:$4 sm:$0xff]  }
 0x300   : > { %v12537_v33 = vpop.permute.xlu0 %4805  ;;  %v7887_v53 = vpop.f32.mrb[39].mxu1 }
 0x301   : > { %v12539_v35 = vpop.permute.xlu1 %4810 }
 0x302   : > { %6742 = vmatmul.mubr.bf16.gmra.mrb[144].mxu1 %v8853_v36 }
 0x303   : > { %6749 = vmatprep.mubr.bf16.mxu1 %v8854_v26  ;;  %v7674_v26 = vcombine.high %v5562_v12, %v5562_v12 }
 0x304   : > { %v12544_v4 = vpop.permute.xlu0 %4795 }
 0x305   : > { %v12547_v43 = vpop.permute.xlu1 %4800  ;;  %v7905_v3 = vpop.f32.mrb[40].mxu1 }
 0x306   : > { %v7906_v56 = vpop.f32.mrb[41].mxu1 }
 0x307   : > { %v7907_v18 = vadd.f32 %v7906_v56, %v7905_v3  ;;  %v7908_v1 = vpop.f32.mrb[42].mxu1 }
 0x308   : > { %v12549_v7 = vpop.permute.xlu0 %4825  ;;  %v7909_v39 = vpop.f32.mrb[43].mxu1 }
 0x309   : > { %v12551_v8 = vpop.permute.xlu1 %4830  ;;  %v12562_v61 = vadd.f32 %v7907_v18, %v12297_v48  ;;  %v7910_v63 = vadd.f32 %v7909_v39, %v7908_v1 }
 0x30a   : > { %6750 = vmatmul.mubr.bf16.gmra.mrb[148].mxu1 %v8856_v9 }
 0x30b   : > { %v12565_v59 = vadd.f32 %v7910_v63, %v12325_v13  ;;  %6757 = vmatprep.mubr.bf16.mxu1 %v8857_v17 }
 0x30c   : > { %v4816_v57 = vpop.permute.xlu0 %4815 }
 0x30d   : > { %v4821_v27 = vpop.permute.xlu1 %4820  ;;  %v5249_v29 = vmul.f32 %v4816_v57, %v3881_v49  ;;  %v7911_v41 = vpop.f32.mrb[44].mxu1  ;;  %v7673_v57 = vcombine.low %v5562_v12, %v5562_v12  ;;  %v3865_v12 = vld [vmem:[%s13272_s3 + $0x500] sm:$0xff] }
 0x30e   : > { %v5250_v60 = vmul.f32 %v4821_v27, %v3882_v19  ;;  %v7912_v54 = vpop.f32.mrb[45].mxu1 }
 0x30f   : > { %v7913_v36 = vadd.f32 %v7912_v54, %v7911_v41  ;;  %v7914_v48 = vpop.f32.mrb[46].mxu1  ;;  %v3884_v54 = vld [vmem:[%s13272_s3 + $0x598] sm:$0xff] }
 0x310   : > { %v5389_v21 = vpack.c.bf16 %v5250_v60, %v5249_v29  ;;  %v12567_v52 = vpop.permute.xlu0 %4845  ;;  %v7915_v53 = vpop.f32.mrb[47].mxu1  ;;  %v8864_v29 = vld [vmem:[%s10454_s22 + $0x24] ss:$60 sps:$4 sm:$0xff]  }
 0x311   : > { %v12569_v6 = vpop.permute.xlu1 %4850  ;;  %v12574_v13 = vadd.f32 %v7913_v36, %v12327_v14  ;;  %v7916_v49 = vadd.f32 %v7915_v53, %v7914_v48 }
 0x312   : > { %8193 = vmatprep.subr.bf16.mxu1 %v5389_v21  ;;  %6758 = vmatmul.mubr.bf16.gmra.mrb[152].mxu1 %v8859_v15  ;;  %v3866_v21 = vld [vmem:[%s13272_s3 + $0x508] sm:$0xff] }
 0x313   : > { %13275 = vst [vmem:[#allocation2_spill] sm:$0xff] %v12574_v13  ;;  %v12577_v56 = vadd.f32 %v7916_v49, %v12335_v37  ;;  %6765 = vmatprep.mubr.bf16.mxu1 %v7674_v26  ;;  %v5234_v26 = vmul.f32 %v12502_v50, %v3866_v21  ;;  %v3868_v49 = vld [vmem:[%s13272_s3 + $0x518] sm:$0xff]  ;;  %v3885_v50 = vld [vmem:[%s13272_s3 + $0x5a0] sm:$0xff] }
 0x314   : > { %v4836_v38 = vpop.permute.xlu0 %4835 }
 0x315   : > { %v4841_v3 = vpop.permute.xlu1 %4840  ;;  %13276 = vst [vmem:[#allocation3_spill] sm:$0xff] %v12577_v56  ;;  %v7917_v18 = vpop.f32.mrb[48].mxu1  ;;  %v5253_v13 = vmul.f32 %v4836_v38, %v3885_v50 }
 0x316   : > { %v7918_v1 = vpop.f32.mrb[49].mxu1 }
 0x317   : > { %v7919_v17 = vadd.f32 %v7918_v1, %v7917_v18  ;;  %v7920_v39 = vpop.f32.mrb[50].mxu1  ;;  %v3867_v18 = vld [vmem:[%s13272_s3 + $0x510] sm:$0xff]  ;;  %v5252_v1 = vmul.f32 %v12551_v8, %v3884_v54  ;;  %v5236_v54 = vmul.f32 %v12486_v25, %v3868_v49 }
 0x318   : > { %v12579_v19 = vpop.permute.xlu0 %4865  ;;  %v7921_v14 = vpop.f32.mrb[51].mxu1  ;;  %v3887_v25 = vld [vmem:[%s13272_s3 + $0x5b0] sm:$0xff] }
 0x319   : > { %v12581_v9 = vpop.permute.xlu1 %4870  ;;  %v12589_v60 = vadd.f32 %v7919_v17, %v12351_v46  ;;  %v7922_v37 = vadd.f32 %v7921_v14, %v7920_v39  ;;  %v3883_v46 = vld [vmem:[%s13272_s3 + $0x590] sm:$0xff]  ;;  %v8862_v17 = vld [vmem:[%s10454_s22 + $0x20] ss:$60 sps:$4 sm:$0xff]  }
 0x31a   : > { %6766 = vmatmul.mubr.bf16.gmra.mrb[156].mxu1 %v7673_v57  ;;  %v5251_v57 = vmul.f32 %v12549_v7, %v3883_v46  ;;  %v5235_v46 = vmul.f32 %v12484_v45, %v3867_v18  ;;  %v3888_v45 = vld [vmem:[%s13272_s3 + $0x5b8] sm:$0xff] }
 0x31b   : > { %13277 = vst [vmem:[#allocation4_spill] sm:$0xff] %v12589_v60  ;;  %v12598_v41 = vadd.f32 %v7922_v37, %v12354_v10  ;;  %6805 = vmatprep.mubr.bf16.mxu1 %v8864_v29  ;;  %v5233_v10 = vmul.f32 %v12499_v11, %v3865_v12  ;;  %v3886_v11 = vld [vmem:[%s13272_s3 + $0x5a8] sm:$0xff]  ;;  %v8865_v37 = vld [vmem:[%s10454_s22 + $0x9c] ss:$60 sps:$4 sm:$0xff]  }
 0x31c   : > { %v12583_v27 = vpop.permute.xlu0 %4855  ;;  %v5390_v60 = vpack.c.bf16 %v5252_v1, %v5251_v57  ;;  %v5254_v56 = vmul.f32 %v4841_v3, %v3886_v11  ;;  %v3872_v1 = vld [vmem:[%s13272_s3 + $0x538] sm:$0xff]  ;;  %v3871_v57 = vld [vmem:[%s13272_s3 + $0x530] sm:$0xff] }
 0x31d   : > { %v12586_v63 = vpop.permute.xlu1 %4860  ;;  %13278 = vst [vmem:[#allocation5_spill] sm:$0xff] %v12598_v41  ;;  %v7923_v48 = vpop.f32.mrb[52].mxu1  ;;  %v3869_v41 = vld [vmem:[%s13272_s3 + $0x520] sm:$0xff] }
 0x31e   : > { %v7924_v53 = vpop.f32.mrb[53].mxu1  ;;  %v5237_v49 = vmul.f32 %v12515_v0, %v3869_v41  ;;  %v3890_v0 = vld [vmem:[%s13272_s3 + $0x5c8] sm:$0xff] }
 0x31f   : > { %v7925_v39 = vadd.f32 %v7924_v53, %v7923_v48  ;;  %v7926_v29 = vpop.f32.mrb[54].mxu1  ;;  %v5381_v48 = vpack.c.bf16 %v5234_v26, %v5233_v10  ;;  %v3870_v53 = vld [vmem:[%s13272_s3 + $0x528] sm:$0xff]  ;;  %v5382_v10 = vpack.c.bf16 %v5236_v54, %v5235_v46 }
 0x320   : > { %v12606_v15 = vpop.permute.xlu0 %4885  ;;  %v7927_v21 = vpop.f32.mrb[55].mxu1  ;;  %v3874_v46 = vld [vmem:[%s13272_s3 + $0x548] sm:$0xff] }
 0x321   : > { %v12608_v36 = vpop.permute.xlu1 %4890  ;;  %v12633_v8 = vadd.f32 %v7925_v39, %v12383_v31  ;;  %v7928_v7 = vadd.f32 %v7927_v21, %v7926_v29  ;;  %v5391_v39 = vpack.c.bf16 %v5254_v56, %v5253_v13  ;;  %v8867_v29 = vld [vmem:[%s10454_s22 + $0x98] ss:$60 sps:$4 sm:$0xff]   ;;  %v5240_v56 = vmul.f32 %v12510_v16, %v3872_v1 }
 0x322   : > { %6806 = vmatmul.mubr.bf16.vlgmr.msra.gmra.mrb[160].mxu1 %v8862_v17  ;;  %v5255_v17 = vmul.f32 %v12567_v52, %v3887_v25  ;;  %v3891_v16 = vld [vmem:[%s13272_s3 + $0x5d0] sm:$0xff] }
 0x323   : > { %v12644_v31 = vadd.f32 %v7928_v7, %v12394_v55  ;;  %8194 = vmatpush3.bf16.msra.mxu1 %v5381_v48  ;;  %6813 = vmatprep.mubr.bf16.mxu1 %v8865_v37  ;;  %v5238_v55 = vmul.f32 %v12518_v2, %v3870_v53  ;;  %v3889_v2 = vld [vmem:[%s13272_s3 + $0x5c0] sm:$0xff]  ;;  %v8868_v37 = vld [vmem:[%s10454_s22 + $0x114] ss:$60 sps:$4 sm:$0xff]   ;;  %v5239_v7 = vmul.f32 %v12508_v44, %v3871_v57  ;;  %v3892_v44 = vld [vmem:[%s13272_s3 + $0x5d8] sm:$0xff] }
 0x324   : > { %v12627_v14 = vpop.permute.xlu0 %4875  ;;  %8195 = vmatprep.subr.bf16.mxu1 %v5390_v60  ;;  %v5256_v60 = vmul.f32 %v12569_v6, %v3888_v45  ;;  %v3873_v48 = vld [vmem:[%s13272_s3 + $0x540] sm:$0xff]  ;;  %v5258_v45 = vmul.f32 %v12586_v63, %v3890_v0  ;;  %v3875_v1 = vld [vmem:[%s13272_s3 + $0x550] sm:$0xff]  ;;  %v5260_v57 = vmul.f32 %v12581_v9, %v3892_v44  ;;  %v8871_v0 = vld [vmem:[%s10454_s22 + $0x18c] ss:$60 sps:$4 sm:$0xff]  }
 0x325   : > { %v12630_v12 = vpop.permute.xlu1 %4880  ;;  %v7929_v38 = vpop.f32.mrb[56].mxu1  ;;  %v5383_v54 = vpack.c.bf16 %v5238_v55, %v5237_v49  ;;  %v5241_v55 = vmul.f32 %v12530_v5, %v3873_v48  ;;  %v3894_v5 = vld [vmem:[%s13272_s3 + $0x5e8] sm:$0xff] }
 0x326   : > { %v7930_v18 = vpop.f32.mrb[57].mxu1  ;;  %v5392_v53 = vpack.c.bf16 %v5256_v60, %v5255_v17  ;;  %v5259_v60 = vmul.f32 %v12579_v19, %v3891_v16  ;;  %v5262_v48 = vmul.f32 %v12630_v12, %v3894_v5 }
 0x327   : > { %v7931_v11 = vadd.f32 %v7930_v18, %v7929_v38  ;;  %v7932_v50 = vpop.f32.mrb[58].mxu1  ;;  %8196 = vmatpush3.bf16.msra.mxu1 %v5382_v10  ;;  %v5384_v10 = vpack.c.bf16 %v5240_v56, %v5239_v7  ;;  %v3876_v18 = vld [vmem:[%s13272_s3 + $0x558] sm:$0xff]  ;;  %v3878_v7 = vld [vmem:[%s13272_s3 + $0x568] sm:$0xff] }
 0x328   : > { %v12652_v26 = vpop.permute.xlu0 %4905  ;;  %v7933_v21 = vpop.f32.mrb[59].mxu1  ;;  %8197 = vmatprep.subr.bf16.mxu1 %v5391_v39  ;;  %v8870_v39 = vld [vmem:[%s10454_s22 + $0x110] ss:$60 sps:$4 sm:$0xff]  }
 0x329   : > { %v12654_v3 = vpop.permute.xlu1 %4910  ;;  %v12679_v52 = vadd.f32 %v7931_v11, %v12423_v42  ;;  %v7934_v13 = vadd.f32 %v7933_v21, %v7932_v50  ;;  %v5257_v42 = vmul.f32 %v12583_v27, %v3889_v2  ;;  %v5244_v21 = vmul.f32 %v12525_v24, %v3876_v18  ;;  %v3895_v24 = vld [vmem:[%s13272_s3 + $0x5f0] sm:$0xff]  ;;  %v8873_v18 = vld [vmem:[%s10454_s22 + $0x188] ss:$60 sps:$4 sm:$0xff]  }
 0x32a   : > { %6814 = vmatmul.mubr.bf16.gmra.mrb[164].mxu1 %v8867_v29 }
 0x32b   : > { %v12692_v25 = vadd.f32 %v7934_v13, %v12433_v23  ;;  %8198 = vmatpush3.bf16.msra.mxu1 %v5383_v54  ;;  %6821 = vmatprep.mubr.bf16.mxu1 %v8868_v37  ;;  %v5242_v23 = vmul.f32 %v12533_v32, %v3874_v46  ;;  %v5393_v17 = vpack.c.bf16 %v5258_v45, %v5257_v42  ;;  %v3893_v32 = vld [vmem:[%s13272_s3 + $0x5e0] sm:$0xff] }
 0x32c   : > { %v12673_v41 = vpop.permute.xlu0 %4895  ;;  %8199 = vmatprep.subr.bf16.mxu1 %v5392_v53  ;;  %v5243_v13 = vmul.f32 %v12523_v28, %v3875_v1  ;;  %v3877_v54 = vld [vmem:[%s13272_s3 + $0x560] sm:$0xff]  ;;  %v5394_v46 = vpack.c.bf16 %v5260_v57, %v5259_v60  ;;  %v3896_v28 = vld [vmem:[%s13272_s3 + $0x5f8] sm:$0xff]  ;;  %v5246_v42 = vmul.f32 %v12547_v43, %v3878_v7  ;;  %v3914_v7 = vld [vmem:[%s13272_s3 + $0x688] sm:$0xff] }
 0x32d   : > { %v12676_v6 = vpop.permute.xlu1 %4900  ;;  %v7935_v27 = vpop.f32.mrb[60].mxu1  ;;  %v5385_v56 = vpack.c.bf16 %v5242_v23, %v5241_v55  ;;  %v5245_v44 = vmul.f32 %v12544_v4, %v3877_v54  ;;  %v5264_v23 = vmul.f32 %v12608_v36, %v3896_v28  ;;  %v5263_v55 = vmul.f32 %v12606_v15, %v3895_v24  ;;  %v8874_v4 = vld [vmem:[%s10454_s22 + $0x204] ss:$60 sps:$4 sm:$0xff]   ;;  %v8877_v24 = vld [vmem:[%s10454_s22 + $0x27c] ss:$60 sps:$4 sm:$0xff]  }
 0x32e   : > { %v7936_v49 = vpop.f32.mrb[61].mxu1  ;;  %v8876_v54 = vld [vmem:[%s10454_s22 + $0x200] ss:$60 sps:$4 sm:$0xff]  }
 0x32f   : > { %v7937_v29 = vadd.f32 %v7936_v49, %v7935_v27  ;;  %v7938_v11 = vpop.f32.mrb[62].mxu1  ;;  %8200 = vmatpush3.bf16.msra.mxu1 %v5384_v10  ;;  %v3880_v27 = vld [vmem:[%s13272_s3 + $0x578] sm:$0xff]  ;;  %v3879_v10 = vld [vmem:[%s13272_s3 + $0x570] sm:$0xff]  ;;  %v5396_v5 = vpack.c.bf16 %v5264_v23, %v5263_v55 }
 0x330   : > { %v12700_v38 = vpop.permute.xlu0 %4925  ;;  %v7939_v2 = vpop.f32.mrb[63].mxu1  ;;  %8201 = vmatprep.subr.bf16.mxu1 %v5393_v17  ;;  %v5248_v36 = vmul.f32 %v12539_v35, %v3880_v27  ;;  %v5247_v15 = vmul.f32 %v12537_v33, %v3879_v10  ;;  %v3898_v33 = vld [vmem:[%s13272_s3 + $0x608] sm:$0xff]  ;;  %v3900_v10 = vld [vmem:[%s13272_s3 + $0x618] sm:$0xff] }
 0x331   : > { %v12702_v63 = vpop.permute.xlu1 %4930  ;;  %v12727_v19 = vadd.f32 %v7937_v29, %v12459_v62  ;;  %v7940_v37 = vadd.f32 %v7939_v2, %v7938_v11  ;;  %v5261_v62 = vmul.f32 %v12627_v14, %v3893_v32  ;;  %v5387_v11 = vpack.c.bf16 %v5246_v42, %v5245_v44 }
 0x332   : > { %6822 = vmatmul.mubr.bf16.gmra.mrb[168].mxu1 %v8870_v39 }
 0x333   : > { %v12740_v53 = vadd.f32 %v7940_v37, %v12468_v22  ;;  %8202 = vmatpush3.bf16.msra.mxu1 %v5385_v56  ;;  %6829 = vmatprep.mubr.bf16.mxu1 %v8871_v0  ;;  %v5386_v22 = vpack.c.bf16 %v5244_v21, %v5243_v13  ;;  %v5395_v49 = vpack.c.bf16 %v5262_v48, %v5261_v62  ;;  %v3913_v21 = vld [vmem:[%s13272_s3 + $0x680] sm:$0xff]  ;;  %v3915_v56 = vld [vmem:[%s13272_s3 + $0x690] sm:$0xff] }
 0x334   : > { %v12721_v50 = vpop.permute.xlu0 %4915  ;;  %8203 = vmatprep.subr.bf16.mxu1 %v5394_v46  ;;  %v5388_v37 = vpack.c.bf16 %v5248_v36, %v5247_v15 }
 0x335   : > { %v12724_v9 = vpop.permute.xlu1 %4920  ;;  %v7941_v14 = vpop.f32.mrb[64].mxu1 }
 0x336   : > { %v7942_v16 = vpop.f32.mrb[65].mxu1 }
 0x337   : > { %v7943_v1 = vadd.f32 %v7942_v16, %v7941_v14  ;;  %v7944_v57 = vpop.f32.mrb[66].mxu1  ;;  %8204 = vmatpush3.bf16.msra.mxu1 %v5386_v22  ;;  %v5266_v22 = vmul.f32 %v12676_v6, %v3898_v33  ;;  %v8880_v33 = vld [vmem:[%s10454_s22 + $0x2f4] ss:$60 sps:$4 sm:$0xff]  }
 0x338   : > { %v12748_v45 = vpop.permute.xlu0 %4945  ;;  %v7945_v60 = vpop.f32.mrb[67].mxu1  ;;  %8205 = vmatprep.subr.bf16.mxu1 %v5395_v49 }
 0x339   : > { %v12750_v12 = vpop.permute.xlu1 %4950  ;;  %v12769_v39 = vadd.f32 %v7943_v1, %v12497_v47  ;;  %v7946_v29 = vadd.f32 %v7945_v60, %v7944_v57  ;;  %v3897_v47 = vld [vmem:[%s13272_s3 + $0x600] sm:$0xff]  ;;  %v5268_v1 = vmul.f32 %v12654_v3, %v3900_v10 }
 0x33a   : > { %6830 = vmatmul.mubr.bf16.gmra.mrb[172].mxu1 %v8873_v18  ;;  %v5265_v62 = vmul.f32 %v12673_v41, %v3897_v47  ;;  %v3899_v41 = vld [vmem:[%s13272_s3 + $0x610] sm:$0xff]  ;;  %v3901_v3 = vld [vmem:[%s13272_s3 + $0x620] sm:$0xff] }
 0x33b   : > { %v12774_v32 = vadd.f32 %v7946_v29, %v12504_v40  ;;  %8206 = vmatpush3.bf16.msra.mxu1 %v5387_v11  ;;  %6837 = vmatprep.mubr.bf16.mxu1 %v8874_v4  ;;  %v3916_v40 = vld [vmem:[%s13272_s3 + $0x698] sm:$0xff]  ;;  %v5267_v57 = vmul.f32 %v12652_v26, %v3899_v41  ;;  %v3902_v29 = vld [vmem:[%s13272_s3 + $0x628] sm:$0xff]  ;;  %v3919_v26 = vld [vmem:[%s13272_s3 + $0x6b0] sm:$0xff] }
 0x33c   : > { %v12763_v43 = vpop.permute.xlu0 %4935  ;;  %8207 = vmatprep.subr.bf16.mxu1 %v5396_v5  ;;  %v5397_v4 = vpack.c.bf16 %v5266_v22, %v5265_v62  ;;  %v8879_v5 = vld [vmem:[%s10454_s22 + $0x278] ss:$60 sps:$4 sm:$0xff]   ;;  %v3906_v41 = vld [vmem:[%s13272_s3 + $0x648] sm:$0xff] }
 0x33d   : > { %v12766_v17 = vpop.permute.xlu1 %4940  ;;  %v7947_v35 = vpop.f32.mrb[68].mxu1 }
 0x33e   : > { %v7948_v13 = vpop.f32.mrb[69].mxu1 }
 0x33f   : > { %v7949_v46 = vadd.f32 %v7948_v13, %v7947_v35  ;;  %v7950_v48 = vpop.f32.mrb[70].mxu1  ;;  %8208 = vmatpush3.bf16.msra.mxu1 %v5388_v37  ;;  %v3918_v35 = vld [vmem:[%s13272_s3 + $0x6a8] sm:$0xff] }
 0x340   : > { %v4986_v0 = vpop.permute.xlu0 %4985  ;;  %v7951_v14 = vpop.f32.mrb[71].mxu1 }
 0x341   : > { %v4991_v2 = vpop.permute.xlu1 %4990  ;;  %v12799_v16 = vadd.f32 %v7949_v46, %v12513_v34  ;;  %v7952_v27 = vadd.f32 %v7951_v14, %v7950_v48  ;;  %v5283_v55 = vmul.f32 %v4986_v0, %v3915_v56  ;;  %v5269_v46 = vmul.f32 %v12721_v50, %v3901_v3 }
 0x342   : > { %v5284_v23 = vmul.f32 %v4991_v2, %v3916_v40  ;;  %6838 = vmatmul.mubr.bf16.gmra.mrb[176].mxu1 %v8876_v54  ;;  %v3920_v2 = vld [vmem:[%s13272_s3 + $0x6b8] sm:$0xff]  ;;  %v5270_v54 = vmul.f32 %v12724_v9, %v3902_v29  ;;  %v8883_v29 = vld [vmem:[%s10454_s22 + $0x36c] ss:$60 sps:$4 sm:$0xff]   ;;  %v5274_v3 = vmul.f32 %v12766_v17, %v3906_v41 }
 0x343   : > { %v12808_v6 = vadd.f32 %v7952_v27, %v12520_v58  ;;  %6845 = vmatprep.mubr.bf16.mxu1 %v8877_v24  ;;  %v3917_v58 = vld [vmem:[%s13272_s3 + $0x6a0] sm:$0xff]  ;;  %v3903_v24 = vld [vmem:[%s13272_s3 + $0x630] sm:$0xff] }
 0x344   : > { %v4976_v28 = vpop.permute.xlu0 %4975  ;;  %v5406_v36 = vpack.c.bf16 %v5284_v23, %v5283_v55  ;;  %v5271_v27 = vmul.f32 %v12700_v38, %v3903_v24  ;;  %v5399_v10 = vpack.c.bf16 %v5270_v54, %v5269_v46  ;;  %v3924_v38 = vld [vmem:[%s13272_s3 + $0x6d8] sm:$0xff]  ;;  %v3926_v24 = vld [vmem:[%s13272_s3 + $0x6e8] sm:$0xff] }
 0x345   : > { %v4981_v42 = vpop.permute.xlu1 %4980  ;;  %v5281_v44 = vmul.f32 %v4976_v28, %v3913_v21  ;;  %v7953_v60 = vpop.f32.mrb[72].mxu1  ;;  %v5398_v21 = vpack.c.bf16 %v5268_v1, %v5267_v57  ;;  %v3904_v28 = vld [vmem:[%s13272_s3 + $0x638] sm:$0xff]  ;;  %v3923_v57 = vld [vmem:[%s13272_s3 + $0x6d0] sm:$0xff] }
 0x346   : > { %v5282_v49 = vmul.f32 %v4981_v42, %v3914_v7  ;;  %v7954_v11 = vpop.f32.mrb[73].mxu1 }
 0x347   : > { %v7955_v0 = vadd.f32 %v7954_v11, %v7953_v60  ;;  %v7956_v47 = vpop.f32.mrb[74].mxu1 }
 0x348   : > { %v5405_v18 = vpack.c.bf16 %v5282_v49, %v5281_v44  ;;  %v5006_v34 = vpop.permute.xlu0 %5005  ;;  %v7957_v40 = vpop.f32.mrb[75].mxu1  ;;  %v5272_v44 = vmul.f32 %v12702_v63, %v3904_v28  ;;  %v3905_v49 = vld [vmem:[%s13272_s3 + $0x640] sm:$0xff]  ;;  %v8882_v63 = vld [vmem:[%s10454_s22 + $0x2f0] ss:$60 sps:$4 sm:$0xff]  }
 0x349   : > { %v12833_v56 = vadd.f32 %v7955_v0, %v12528_v30  ;;  %v7958_v7 = vadd.f32 %v7957_v40, %v7956_v47  ;;  %v5287_v48 = vmul.f32 %v5006_v34, %v3919_v26  ;;  %v5273_v26 = vmul.f32 %v12763_v43, %v3905_v49  ;;  %v3908_v0 = vld [vmem:[%s13272_s3 + $0x658] sm:$0xff]  ;;  %v3907_v47 = vld [vmem:[%s13272_s3 + $0x650] sm:$0xff] }
 0x34a   : > { %v5011_v15 = vpop.permute.xlu1 %5010  ;;  %8269 = vmatprep.subr.bf16.mxu0 %v5405_v18  ;;  %6846 = vmatmul.mubr.bf16.gmra.mrb[180].mxu1 %v8879_v5  ;;  %v5400_v11 = vpack.c.bf16 %v5272_v44, %v5271_v27  ;;  %v5276_v43 = vmul.f32 %v12750_v12, %v3908_v0  ;;  %v5275_v40 = vmul.f32 %v12748_v45, %v3907_v47  ;;  %v8885_v12 = vld [vmem:[%s10454_s22 + $0x368] ss:$60 sps:$4 sm:$0xff]  }
 0x34b   : > { %8270 = vmatpush3.bf16.msra.mxu0 %v5397_v4  ;;  %v5288_v14 = vmul.f32 %v5011_v15, %v3920_v2  ;;  %v12844_v30 = vadd.f32 %v7958_v7, %v12535_v20  ;;  %6853 = vmatprep.mubr.bf16.mxu1 %v8880_v33  ;;  %v3921_v20 = vld [vmem:[%s13272_s3 + $0x6c0] sm:$0xff]  ;;  %v3922_v4 = vld [vmem:[%s13272_s3 + $0x6c8] sm:$0xff] }
 0x34c   : > { %8271 = vmatprep.subr.bf16.mxu0 %v5406_v36  ;;  %v4996_v37 = vpop.permute.xlu0 %4995  ;;  %v3925_v7 = vld [vmem:[%s13272_s3 + $0x6e0] sm:$0xff]  ;;  %v5402_v27 = vpack.c.bf16 %v5276_v43, %v5275_v40  ;;  %v13280_v40 = vld [vmem:[#allocation3_spill] sm:$0xff] }
 0x34d   : > { %v5285_v13 = vmul.f32 %v4996_v37, %v3917_v58  ;;  %v7959_v42 = vpop.f32.mrb[76].mxu1  ;;  %v5408_v18 = vpack.c.bf16 %v5288_v14, %v5287_v48  ;;  %v3910_v48 = vld [vmem:[%s13272_s3 + $0x668] sm:$0xff] }
 0x34e   : > { %v5001_v62 = vpop.permute.xlu1 %5000  ;;  %v7960_v55 = vpop.f32.mrb[77].mxu1 }
 0x34f   : > { %v5286_v22 = vmul.f32 %v5001_v62, %v3918_v35  ;;  %8272 = vmatpush3.bf16.msra.mxu0 %v5398_v21  ;;  %v7961_v34 = vadd.f32 %v7960_v55, %v7959_v42  ;;  %v7962_v1 = vpop.f32.mrb[78].mxu1  ;;  %v5401_v21 = vpack.c.bf16 %v5274_v3, %v5273_v26  ;;  %v3909_v62 = vld [vmem:[%s13272_s3 + $0x660] sm:$0xff]  ;;  %v3912_v3 = vld [vmem:[%s13272_s3 + $0x678] sm:$0xff] }
 0x350   : > { %v5026_v9 = vpop.permute.xlu0 %5025  ;;  %v7963_v36 = vpop.f32.mrb[79].mxu1 }
 0x351   : > { %v5407_v50 = vpack.c.bf16 %v5286_v22, %v5285_v13  ;;  %v12869_v58 = vadd.f32 %v7961_v34, %v12542_v51  ;;  %v5291_v35 = vmul.f32 %v5026_v9, %v3923_v57  ;;  %v8886_v22 = vld [vmem:[%s10454_s22 + $0x3e4] ss:$60 sps:$4 sm:$0xff]   ;;  %v5563_v34 = vld [vmem:[%s10454_s22 + $0x458] sm:$0xff] }
 0x352   : > { %v5031_v23 = vpop.permute.xlu1 %5030  ;;  %6854 = vmatmul.mubr.bf16.gmra.mrb[184].mxu1 %v8882_v63  ;;  %v8888_v36 = vld [vmem:[%s10454_s22 + $0x3e0] ss:$60 sps:$4 sm:$0xff]  }
 0x353   : > { %8273 = vmatprep.subr.bf16.mxu0 %v5407_v50  ;;  %v5292_v2 = vmul.f32 %v5031_v23, %v3924_v38  ;;  %6861 = vmatprep.mubr.bf16.mxu1 %v8883_v29 }
 0x354   : > { %8274 = vmatpush3.bf16.msra.mxu0 %v5399_v10  ;;  %v5016_v60 = vpop.permute.xlu0 %5015 }
 0x355   : > { %8275 = vmatprep.subr.bf16.mxu0 %v5408_v18  ;;  %v5289_v15 = vmul.f32 %v5016_v60, %v3921_v20  ;;  %v7981_v33 = vpop.f32.mrb[80].mxu1  ;;  %v5410_v46 = vpack.c.bf16 %v5292_v2, %v5291_v35  ;;  %v3927_v20 = vld [vmem:[%s13272_s3 + $0x6f0] sm:$0xff]  ;;  %v13279_v35 = vld [vmem:[#allocation2_spill] sm:$0xff] }
 0x356   : > { %v5021_v5 = vpop.permute.xlu1 %5020  ;;  %v7982_v54 = vpop.f32.mrb[81].mxu1  ;;  %v3911_v60 = vld [vmem:[%s13272_s3 + $0x670] sm:$0xff] }
 0x357   : > { %v5290_v37 = vmul.f32 %v5021_v5, %v3922_v4  ;;  %v7983_v28 = vadd.f32 %v7982_v54, %v7981_v33  ;;  %v7984_v45 = vpop.f32.mrb[82].mxu1  ;;  %v7676_v5 = vcombine.high %v5563_v34, %v5563_v34  ;;  %v3929_v33 = vld [vmem:[%s13272_s3 + $0x700] sm:$0xff] }
 0x358   : > { %8276 = vmatpush3.bf16.msra.mxu0 %v5400_v11  ;;  %v4956_v51 = vpop.permute.xlu0 %4955  ;;  %v7985_v9 = vpop.f32.mrb[83].mxu1 }
 0x359   : > { %v5409_v17 = vpack.c.bf16 %v5290_v37, %v5289_v15  ;;  %v12896_v42 = vadd.f32 %v7983_v28, %v12562_v61  ;;  %v7986_v44 = vadd.f32 %v7985_v9, %v7984_v45  ;;  %v5277_v41 = vmul.f32 %v4956_v51, %v3909_v62  ;;  %v3928_v61 = vld [vmem:[%s13272_s3 + $0x6f8] sm:$0xff]  ;;  %v8893_v9 = vld [vmem:[%s10454_s22 + $0x2c] ss:$60 sps:$4 sm:$0xff]  }
 0x35a   : > { %v4961_v13 = vpop.permute.xlu1 %4960  ;;  %6862 = vmatmul.mubr.bf16.gmra.mrb[188].mxu1 %v8885_v12  ;;  %v8894_v12 = vld [vmem:[%s10454_s22 + $0x30] ss:$60 sps:$4 sm:$0xff]  }
 0x35b   : > { %8277 = vmatprep.subr.bf16.mxu0 %v5409_v17  ;;  %v5278_v10 = vmul.f32 %v4961_v13, %v3910_v48  ;;  %v12902_v49 = vadd.f32 %v7986_v44, %v12565_v59  ;;  %6869 = vmatprep.mubr.bf16.mxu1 %v8886_v22  ;;  %v3930_v13 = vld [vmem:[%s13272_s3 + $0x708] sm:$0xff] }
 0x35c   : > { %8278 = vmatpush3.bf16.msra.mxu0 %v5401_v21  ;;  %v5036_v14 = vpop.permute.xlu0 %5035 }
 0x35d   : > { %8279 = vmatprep.subr.bf16.mxu0 %v5410_v46  ;;  %v5293_v50 = vmul.f32 %v5036_v14, %v3925_v7  ;;  %v7987_v1 = vpop.f32.mrb[84].mxu1  ;;  %v5403_v57 = vpack.c.bf16 %v5278_v10, %v5277_v41  ;;  %v13281_v10 = vld [vmem:[#allocation4_spill] sm:$0xff] }
 0x35e   : > { %v5041_v23 = vpop.permute.xlu1 %5040  ;;  %v7988_v29 = vpop.f32.mrb[85].mxu1 }
 0x35f   : > { %v5294_v55 = vmul.f32 %v5041_v23, %v3926_v24  ;;  %v7989_v15 = vadd.f32 %v7988_v29, %v7987_v1  ;;  %v7990_v11 = vpop.f32.mrb[86].mxu1  ;;  %v7675_v24 = vcombine.low %v5563_v34, %v5563_v34  ;;  %v8902_v1 = vld [vmem:[%s10454_s22 + $0xa8] ss:$60 sps:$4 sm:$0xff]  }
 0x360   : > { %8280 = vmatpush3.bf16.msra.mxu0 %v5402_v27  ;;  %v5046_v18 = vpop.permute.xlu0 %5045  ;;  %v7991_v0 = vpop.f32.mrb[87].mxu1  ;;  %v8891_v29 = vld [vmem:[%s10454_s22 + $0x28] ss:$60 sps:$4 sm:$0xff]  }
 0x361   : > { %v5411_v38 = vpack.c.bf16 %v5294_v55, %v5293_v50  ;;  %v5295_v63 = vmul.f32 %v5046_v18, %v3927_v20  ;;  %v12916_v37 = vadd.f32 %v7989_v15, %v13279_v35  ;;  %v7992_v51 = vadd.f32 %v7991_v0, %v7990_v11  ;;  %v8900_v50 = vld [vmem:[%s10454_s22 + $0xac] ss:$60 sps:$4 sm:$0xff]   ;;  %v13282_v20 = vld [vmem:[#allocation5_spill] sm:$0xff]  ;;  %v8897_v11 = vld [vmem:[%s10454_s22 + $0xa4] ss:$60 sps:$4 sm:$0xff]  }
 0x362   : > { %v5051_v4 = vpop.permute.xlu1 %5050  ;;  %6870 = vmatmul.mubr.bf16.gmra.mrb[192].mxu1 %v8888_v36 }
 0x363   : > { %v5296_v59 = vmul.f32 %v5051_v4, %v3928_v61  ;;  %8281 = vmatprep.subr.bf16.mxu0 %v5411_v38  ;;  %v12922_v21 = vadd.f32 %v7992_v51, %v13280_v40  ;;  %6877 = vmatprep.mubr.bf16.mxu1 %v7676_v5  ;;  %v3932_v61 = vld [vmem:[%s13272_s3 + $0x718] sm:$0xff]  ;;  %v3931_v38 = vld [vmem:[%s13272_s3 + $0x710] sm:$0xff] }
 0x364   : > { %8282 = vmatpush3.bf16.msra.mxu0 %v5403_v57  ;;  %v4966_v26 = vpop.permute.xlu0 %4965  ;;  %v8899_v51 = vld [vmem:[%s10454_s22 + $0xa0] ss:$60 sps:$4 sm:$0xff]  }
 0x365   : > { %v5412_v47 = vpack.c.bf16 %v5296_v59, %v5295_v63  ;;  %v5279_v2 = vmul.f32 %v4966_v26, %v3911_v60  ;;  %v7993_v48 = vpop.f32.mrb[88].mxu1  ;;  %v8906_v59 = vld [vmem:[%s10454_s22 + $0x124] ss:$60 sps:$4 sm:$0xff]  }
 0x366   : > { %v4971_v17 = vpop.permute.xlu1 %4970  ;;  %v7994_v28 = vpop.f32.mrb[89].mxu1 }
 0x367   : > { %v5280_v43 = vmul.f32 %v4971_v17, %v3912_v3  ;;  %8283 = vmatprep.subr.bf16.mxu0 %v5412_v47  ;;  %v7995_v14 = vadd.f32 %v7994_v28, %v7993_v48  ;;  %v7996_v22 = vpop.f32.mrb[90].mxu1  ;;  %v8912_v17 = vld [vmem:[%s10454_s22 + $0x19c] ss:$60 sps:$4 sm:$0xff]  }
 0x368   : > { %v5056_v7 = vpop.permute.xlu0 %5055  ;;  %v7997_v44 = vpop.f32.mrb[91].mxu1 }
 0x369   : > { %v5404_v54 = vpack.c.bf16 %v5280_v43, %v5279_v2  ;;  %v5297_v46 = vmul.f32 %v5056_v7, %v3929_v33  ;;  %v12931_v41 = vadd.f32 %v7995_v14, %v13281_v10  ;;  %v7998_v23 = vadd.f32 %v7997_v44, %v7996_v22  ;;  %v8908_v2 = vld [vmem:[%s10454_s22 + $0x120] ss:$60 sps:$4 sm:$0xff]   ;;  %v8924_v10 = vld [vmem:[%s10454_s22 + $0x28c] ss:$60 sps:$4 sm:$0xff]  }
 0x36a   : > { %v5061_v62 = vpop.permute.xlu1 %5060  ;;  %6878 = vmatmul.mubr.bf16.gmra.mrb[196].mxu1 %v7675_v24  ;;  %v8903_v33 = vld [vmem:[%s10454_s22 + $0x11c] ss:$60 sps:$4 sm:$0xff]  }
 0x36b   : > { %v5298_v45 = vmul.f32 %v5061_v62, %v3930_v13  ;;  %8284 = vmatpush3.bf16.msra.mxu0 %v5404_v54  ;;  %v12934_v55 = vadd.f32 %v7998_v23, %v13282_v20  ;;  %6917 = vmatprep.mubr.bf16.mxu1 %v8893_v9  ;;  %v8905_v62 = vld [vmem:[%s10454_s22 + $0x118] ss:$60 sps:$4 sm:$0xff]   ;;  %v8915_v20 = vld [vmem:[%s10454_s22 + $0x20c] ss:$60 sps:$4 sm:$0xff]  }
 0x36c   : > { %v5066_v63 = vpop.permute.xlu0 %5065 }
 0x36d   : > { %v5413_v27 = vpack.c.bf16 %v5298_v45, %v5297_v46  ;;  %v7999_v34 = vpop.f32.mrb[92].mxu1  ;;  %v5299_v60 = vmul.f32 %v5066_v63, %v3931_v38  ;;  %v8914_v46 = vld [vmem:[%s10454_s22 + $0x198] ss:$60 sps:$4 sm:$0xff]  }
 0x36e   : > { %7030 = vmatmul.mubr.bf16.vlgmr.msra.gmra.mrb[228].mxu0 %v8894_v12  ;;  %v5071_v18 = vpop.permute.xlu1 %5070  ;;  %v8000_v57 = vpop.f32.mrb[93].mxu1  ;;  %v8918_v12 = vld [vmem:[%s10454_s22 + $0x214] ss:$60 sps:$4 sm:$0xff]  }
 0x36f   : > { %8595 = vmatprep.subr.bf16.mxu1 %v5413_v27  ;;  %7037 = vmatprep.mubr.bf16.mxu0 %v8900_v50  ;;  %v5300_v4 = vmul.f32 %v5071_v18, %v3932_v61  ;;  %v8001_v36 = vadd.f32 %v8000_v57, %v7999_v34  ;;  %v8002_v15 = vpop.f32.mrb[94].mxu1  ;;  %v8909_v45 = vld [vmem:[%s10454_s22 + $0x194] ss:$60 sps:$4 sm:$0xff]   ;;  %v8926_v34 = vld [vmem:[%s10454_s22 + $0x288] ss:$60 sps:$4 sm:$0xff]  }
 0x370   : > { %v8003_v3 = vpop.f32.mrb[95].mxu1  ;;  %v8920_v50 = vld [vmem:[%s10454_s22 + $0x210] ss:$60 sps:$4 sm:$0xff]   ;;  %v8917_v57 = vld [vmem:[%s10454_s22 + $0x208] ss:$60 sps:$4 sm:$0xff]  }
 0x371   : > { %v12947_v26 = vadd.f32 %v8001_v36, %v12633_v8  ;;  %v8004_v5 = vadd.f32 %v8003_v3, %v8002_v15  ;;  %v5414_v0 = vpack.c.bf16 %v5300_v4, %v5299_v60  ;;  %v8930_v4 = vld [vmem:[%s10454_s22 + $0x304] ss:$60 sps:$4 sm:$0xff]  }
 0x372   : > { %6918 = vmatmul.mubr.bf16.vlgmr.msra.gmra.mrb[200].mxu1 %v8891_v29  ;;  %v8921_v29 = vld [vmem:[%s10454_s22 + $0x284] ss:$60 sps:$4 sm:$0xff]  }
 0x373   : > { %v12950_v47 = vadd.f32 %v8004_v5, %v12644_v31  ;;  %8596 = vmatpush3.bf16.msra.mxu1 %v5413_v27  ;;  %6925 = vmatprep.mubr.bf16.mxu1 %v8897_v11  ;;  %v8911_v27 = vld [vmem:[%s10454_s22 + $0x190] ss:$60 sps:$4 sm:$0xff]   ;;  %v8932_v3 = vld [vmem:[%s10454_s22 + $0x300] ss:$60 sps:$4 sm:$0xff]  }
 0x374   : > { %8597 = vmatprep.subr.bf16.mxu1 %v5414_v0 }
 0x375   : > { %v8005_v35 = vpop.f32.mrb[96].mxu1 }
 0x376   : > { %7038 = vmatmul.mubr.bf16.gmra.mrb[232].mxu0 %v8902_v1  ;;  %v8006_v8 = vpop.f32.mrb[97].mxu1 }
 0x377   : > { %7045 = vmatprep.mubr.bf16.mxu0 %v8906_v59  ;;  %8598 = vmatpush3.bf16.msra.mxu1 %v5414_v0  ;;  %v8007_v43 = vadd.f32 %v8006_v8, %v8005_v35  ;;  %v8008_v40 = vpop.f32.mrb[98].mxu1  ;;  %v8923_v0 = vld [vmem:[%s10454_s22 + $0x280] ss:$60 sps:$4 sm:$0xff]  }
 0x378   : > { %v8009_v13 = vpop.f32.mrb[99].mxu1 }
 0x379   : > { %v12957_v31 = vadd.f32 %v8007_v43, %v12679_v52  ;;  %v8010_v7 = vadd.f32 %v8009_v13, %v8008_v40  ;;  %v8936_v40 = vld [vmem:[%s10454_s22 + $0x378] ss:$60 sps:$4 sm:$0xff]  }
 0x37a   : > { %6926 = vmatmul.mubr.bf16.gmra.mrb[204].mxu1 %v8899_v51  ;;  %v8927_v51 = vld [vmem:[%s10454_s22 + $0x2fc] ss:$60 sps:$4 sm:$0xff]  }
 0x37b   : > { %6933 = vmatprep.mubr.bf16.mxu1 %v8903_v33  ;;  %v12960_v54 = vadd.f32 %v8010_v7, %v12692_v25  ;;  %v8929_v7 = vld [vmem:[%s10454_s22 + $0x2f8] ss:$60 sps:$4 sm:$0xff]  }
 0x37d   : > { %v8011_v48 = vpop.f32.mrb[100].mxu1 }
 0x37e   : > { %7046 = vmatmul.mubr.bf16.gmra.mrb[236].mxu0 %v8908_v2  ;;  %v8012_v28 = vpop.f32.mrb[101].mxu1  ;;  %v8938_v2 = vld [vmem:[%s10454_s22 + $0x37c] ss:$60 sps:$4 sm:$0xff]  }
 0x37f   : > { %7053 = vmatprep.mubr.bf16.mxu0 %v8912_v17  ;;  %v8013_v24 = vadd.f32 %v8012_v28, %v8011_v48  ;;  %v8014_v52 = vpop.f32.mrb[102].mxu1 }
 0x380   : > { %v8015_v14 = vpop.f32.mrb[103].mxu1 }
 0x381   : > { %v12967_v22 = vadd.f32 %v8013_v24, %v12727_v19  ;;  %v8016_v9 = vadd.f32 %v8015_v14, %v8014_v52  ;;  %v8942_v24 = vld [vmem:[%s10454_s22 + $0x3f0] ss:$60 sps:$4 sm:$0xff]  }
 0x382   : > { %6934 = vmatmul.mubr.bf16.gmra.mrb[208].mxu1 %v8905_v62  ;;  %v8933_v62 = vld [vmem:[%s10454_s22 + $0x374] ss:$60 sps:$4 sm:$0xff]  }
 0x383   : > { %6941 = vmatprep.mubr.bf16.mxu1 %v8909_v45  ;;  %v12970_v25 = vadd.f32 %v8016_v9, %v12740_v53  ;;  %v8935_v14 = vld [vmem:[%s10454_s22 + $0x370] ss:$60 sps:$4 sm:$0xff]  }
 0x385   : > { %v8017_v44 = vpop.f32.mrb[104].mxu1 }
 0x386   : > { %7054 = vmatmul.mubr.bf16.gmra.mrb[240].mxu0 %v8914_v46  ;;  %v8018_v23 = vpop.f32.mrb[105].mxu1  ;;  %v8944_v46 = vld [vmem:[%s10454_s22 + $0x3f4] ss:$60 sps:$4 sm:$0xff]  }
 0x387   : > { %7061 = vmatprep.mubr.bf16.mxu0 %v8918_v12  ;;  %v8019_v61 = vadd.f32 %v8018_v23, %v8017_v44  ;;  %v8020_v19 = vpop.f32.mrb[106].mxu1  ;;  %v8939_v44 = vld [vmem:[%s10454_s22 + $0x3ec] ss:$60 sps:$4 sm:$0xff]  }
 0x388   : > { %v8021_v18 = vpop.f32.mrb[107].mxu1 }
 0x389   : > { %v12977_v38 = vadd.f32 %v8019_v61, %v12769_v39  ;;  %v8022_v63 = vadd.f32 %v8021_v18, %v8020_v19  ;;  %v5564_v19 = vld [vmem:[%s10454_s22 + $0x460] sm:$0xff] }
 0x38a   : > { %6942 = vmatmul.mubr.bf16.gmra.mrb[212].mxu1 %v8911_v27 }
 0x38b   : > { %6949 = vmatprep.mubr.bf16.mxu1 %v8915_v20  ;;  %v12980_v53 = vadd.f32 %v8022_v63, %v12774_v32 }
 0x38d   : > { %v8023_v1 = vpop.f32.mrb[108].mxu1 }
 0x38e   : > { %7062 = vmatmul.mubr.bf16.gmra.mrb[244].mxu0 %v8920_v50  ;;  %v8024_v60 = vpop.f32.mrb[109].mxu1 }
 0x38f   : > { %7069 = vmatprep.mubr.bf16.mxu0 %v8924_v10  ;;  %v8025_v59 = vadd.f32 %v8024_v60, %v8023_v1  ;;  %v8026_v39 = vpop.f32.mrb[110].mxu1 }
 0x390   : > { %v8027_v36 = vpop.f32.mrb[111].mxu1 }
 0x391   : > { %v12987_v15 = vadd.f32 %v8025_v59, %v12799_v16  ;;  %v8028_v11 = vadd.f32 %v8027_v36, %v8026_v39  ;;  %v7677_v36 = vcombine.low %v5564_v19, %v5564_v19 }
 0x392   : > { %6950 = vmatmul.mubr.bf16.gmra.mrb[216].mxu1 %v8917_v57  ;;  %v7678_v57 = vcombine.high %v5564_v19, %v5564_v19  ;;  %v8956_v19 = vld [vmem:[%s10454_s22 + $0x380] ss:$60 sps:$4 sm:$0xff]  }
 0x393   : > { %6957 = vmatprep.mubr.bf16.mxu1 %v8921_v29  ;;  %v12990_v32 = vadd.f32 %v8028_v11, %v12808_v6 }
 0x395   : > { %v8029_v5 = vpop.f32.mrb[112].mxu1 }
 0x396   : > { %7070 = vmatmul.mubr.bf16.gmra.mrb[248].mxu0 %v8926_v34  ;;  %v8030_v35 = vpop.f32.mrb[113].mxu1  ;;  %v8941_v34 = vld [vmem:[%s10454_s22 + $0x3e8] ss:$60 sps:$4 sm:$0xff]  }
 0x397   : > { %7077 = vmatprep.mubr.bf16.mxu0 %v8930_v4  ;;  %v8031_v17 = vadd.f32 %v8030_v35, %v8029_v5  ;;  %v8032_v16 = vpop.f32.mrb[114].mxu1 }
 0x398   : > { %v8033_v8 = vpop.f32.mrb[115].mxu1 }
 0x399   : > { %v12997_v33 = vadd.f32 %v8031_v17, %v12833_v56  ;;  %v8034_v43 = vadd.f32 %v8033_v8, %v8032_v16  ;;  %v8950_v17 = vld [vmem:[%s10454_s22 + $0xb0] ss:$60 sps:$4 sm:$0xff]   ;;  %v8951_v8 = vld [vmem:[%s10454_s22 + $0x128] ss:$60 sps:$4 sm:$0xff]  }
 0x39a   : > { %6958 = vmatmul.mubr.bf16.gmra.mrb[220].mxu1 %v8923_v0 }
 0x39b   : > { %6965 = vmatprep.mubr.bf16.mxu1 %v8927_v51  ;;  %v13000_v6 = vadd.f32 %v8034_v43, %v12844_v30  ;;  %v5565_v30 = vld [vmem:[%s10454_s22 + $0x468] sm:$0xff] }
 0x39c   : > { %v7680_v9 = vcombine.high %v5565_v30, %v5565_v30  ;;  %v7679_v18 = vcombine.low %v5565_v30, %v5565_v30 }
 0x39d   : > { %v8035_v13 = vpop.f32.mrb[116].mxu1 }
 0x39e   : > { %7078 = vmatmul.mubr.bf16.gmra.mrb[252].mxu0 %v8932_v3  ;;  %v8036_v48 = vpop.f32.mrb[117].mxu1  ;;  %v8949_v3 = vld [vmem:[%s10454_s22 + $0x38] ss:$60 sps:$4 sm:$0xff]  }
 0x39f   : > { %7085 = vmatprep.mubr.bf16.mxu0 %v8938_v2  ;;  %v8037_v12 = vadd.f32 %v8036_v48, %v8035_v13  ;;  %v8038_v56 = vpop.f32.mrb[118].mxu1  ;;  %v8952_v48 = vld [vmem:[%s10454_s22 + $0x1a0] ss:$60 sps:$4 sm:$0xff]  }
 0x3a0   : > { %v8039_v28 = vpop.f32.mrb[119].mxu1 }
 0x3a1   : > { %v13007_v45 = vadd.f32 %v8037_v12, %v12869_v58  ;;  %v8953_v12 = vld [vmem:[%s10454_s22 + $0x218] ss:$60 sps:$4 sm:$0xff]  }
 0x3a2   : > { %6966 = vmatmul.mubr.bf16.gmra.mrb[224].mxu1 %v8929_v7 }
 0x3a3   : > { %6973 = vmatprep.mubr.bf16.mxu1 %v8933_v62 }
 0x3a5   : > { %v8057_v52 = vpop.f32.mrb[120].mxu1 }
 0x3a6   : > { %7086 = vmatmul.mubr.bf16.gmra.mrb[0].mxu0 %v8936_v40  ;;  %v8058_v50 = vpop.f32.mrb[121].mxu1 }
 0x3a7   : > { %7093 = vmatprep.mubr.bf16.mxu0 %v8944_v46  ;;  %v8059_v27 = vadd.f32 %v8058_v50, %v8057_v52  ;;  %v8060_v10 = vpop.f32.mrb[122].mxu1  ;;  %v8955_v50 = vld [vmem:[%s10454_s22 + $0x308] ss:$60 sps:$4 sm:$0xff]  }
 0x3a8   : > { %v8061_v23 = vpop.f32.mrb[123].mxu1 }
 0x3a9   : > { %v13014_v20 = vadd.f32 %v8059_v27, %v12896_v42  ;;  %v8062_v58 = vadd.f32 %v8061_v23, %v8060_v10 }
 0x3aa   : > { %6974 = vmatmul.mubr.bf16.gmra.mrb[228].mxu1 %v8935_v14  ;;  %v8954_v14 = vld [vmem:[%s10454_s22 + $0x290] ss:$60 sps:$4 sm:$0xff]  }
 0x3ab   : > { %6981 = vmatprep.mubr.bf16.mxu1 %v8939_v44  ;;  %v13017_v61 = vadd.f32 %v8062_v58, %v12902_v49 }
 0x3ad   : > { %v8063_v63 = vpop.f32.mrb[124].mxu1 }
 0x3ae   : > { %7094 = vmatmul.mubr.bf16.gmra.mrb[4].mxu0 %v8942_v24  ;;  %v8064_v1 = vpop.f32.mrb[125].mxu1 }
 0x3af   : > { %7101 = vmatprep.mubr.bf16.mxu0 %v7680_v9  ;;  %v8065_v4 = vadd.f32 %v8064_v1, %v8063_v63  ;;  %v8066_v60 = vpop.f32.mrb[126].mxu1  ;;  %v8957_v63 = vld [vmem:[%s10454_s22 + $0x3f8] ss:$60 sps:$4 sm:$0xff]  }
 0x3b0   : > { %v8067_v29 = vpop.f32.mrb[127].mxu1 }
 0x3b1   : > { %v13022_v42 = vadd.f32 %v8065_v4, %v12916_v37  ;;  %v8068_v59 = vadd.f32 %v8067_v29, %v8066_v60  ;;  %v8958_v29 = vld [vmem:[%s10454_s22 + $0x470] ss:$0 sps:$4 sm:$0xff]   ;;  %s7303_s22 = sshll.u32 %s13284_s28, 3 }
 0x3b2   : > { %6982 = vmatmul.mubr.bf16.gmra.mrb[232].mxu1 %v8941_v34  ;;  %s13208_s30 = scalar_lea.vmem %s13274_s5, %s7303_s22 }
 0x3b3   : > { %6989 = vmatprep.mubr.bf16.mxu1 %v7678_v57  ;;  %v13025_v49 = vadd.f32 %v8068_v59, %v12922_v21 }
 0x3b5   : > { %v8069_v39 = vpop.f32.mrb[128].mxu1 }
 0x3b6   : > { %7102 = vmatmul.mubr.bf16.gmra.mrb[8].mxu0 %v7679_v18  ;;  %v8070_v11 = vpop.f32.mrb[129].mxu1 }
 0x3b7   : > { %v8071_v5 = vadd.f32 %v8070_v11, %v8069_v39  ;;  %v8072_v0 = vpop.f32.mrb[130].mxu1 }
 0x3b8   : > { %v8073_v2 = vpop.f32.mrb[131].mxu1 }
 0x3b9   : > { %v13029_v35 = vadd.f32 %v8071_v5, %v12931_v41  ;;  %v8074_v37 = vadd.f32 %v8073_v2, %v8072_v0 }
 0x3ba   : > { %6990 = vmatmul.mubr.bf16.gmra.mrb[236].mxu1 %v7677_v36 }
 0x3bb   : > { %8599 = vmatprep.mubr.msk.bf16.mxu1 %vm6294_vm2, %v8949_v3  ;;  %v13033_v21 = vadd.f32 %v8074_v37, %v12934_v55 }
 0x3bd   : > { %v8075_v51 = vpop.f32.mrb[132].mxu1 }
 0x3be   : > { %v8076_v16 = vpop.f32.mrb[133].mxu1 }
 0x3bf   : > { %v8077_v43 = vadd.f32 %v8076_v16, %v8075_v51  ;;  %v8078_v40 = vpop.f32.mrb[134].mxu1 }
 0x3c0   : > { %v8079_v13 = vpop.f32.mrb[135].mxu1 }
 0x3c1   : > { %v13038_v7 = vadd.f32 %v8077_v43, %v12947_v26  ;;  %v8080_v41 = vadd.f32 %v8079_v13, %v8078_v40 }
 0x3c2   : > { %8600 = vmatmul.mubr.msk.bf16.vlgmr.msra.gmra.mrb[240].mxu1 %vm6294_vm2, %v8950_v17 }
 0x3c3   : > { %8603 = vmatprep.mubr.msk.bf16.mxu1 %vm6294_vm2, %v8951_v8  ;;  %v13043_v55 = vadd.f32 %v8080_v41, %v12950_v47 }
 0x3c5   : > { %v8081_v46 = vpop.f32.mrb[136].mxu1 }
 0x3c6   : > { %v8082_v62 = vpop.f32.mrb[137].mxu1 }
 0x3c7   : > { %v8083_v56 = vadd.f32 %v8082_v62, %v8081_v46  ;;  %v8084_v28 = vpop.f32.mrb[138].mxu1 }
 0x3c8   : > { %v8085_v30 = vpop.f32.mrb[139].mxu1 }
 0x3c9   : > { %v13048_v26 = vadd.f32 %v8083_v56, %v12957_v31  ;;  %v8086_v24 = vadd.f32 %v8085_v30, %v8084_v28 }
 0x3ca   : > { %8604 = vmatmul.mubr.msk.bf16.gmra.mrb[244].mxu1 %vm6294_vm2, %v8952_v48 }
 0x3cb   : > { %8607 = vmatprep.mubr.msk.bf16.mxu1 %vm6294_vm2, %v8953_v12  ;;  %v13053_v47 = vadd.f32 %v8086_v24, %v12960_v54 }
 0x3cd   : > { %v8087_v52 = vpop.f32.mrb[140].mxu1 }
 0x3ce   : > { %v8088_v9 = vpop.f32.mrb[141].mxu1 }
 0x3cf   : > { %v8089_v44 = vadd.f32 %v8088_v9, %v8087_v52  ;;  %v8090_v27 = vpop.f32.mrb[142].mxu1 }
 0x3d0   : > { %v8091_v10 = vpop.f32.mrb[143].mxu1 }
 0x3d1   : > { %v13058_v31 = vadd.f32 %v8089_v44, %v12967_v22  ;;  %v8092_v23 = vadd.f32 %v8091_v10, %v8090_v27 }
 0x3d2   : > { %8608 = vmatmul.mubr.msk.bf16.gmra.mrb[248].mxu1 %vm6294_vm2, %v8954_v14 }
 0x3d3   : > { %8611 = vmatprep.mubr.msk.bf16.mxu1 %vm6294_vm2, %v8955_v50  ;;  %v13063_v54 = vadd.f32 %v8092_v23, %v12970_v25 }
 0x3d5   : > { %v8093_v58 = vpop.f32.mrb[144].mxu1 }
 0x3d6   : > { %v8094_v18 = vpop.f32.mrb[145].mxu1 }
 0x3d7   : > { %v8095_v34 = vadd.f32 %v8094_v18, %v8093_v58  ;;  %v8096_v1 = vpop.f32.mrb[146].mxu1 }
 0x3d8   : > { %v8097_v57 = vpop.f32.mrb[147].mxu1 }
 0x3d9   : > { %v13068_v4 = vadd.f32 %v8095_v34, %v12977_v38  ;;  %v8098_v22 = vadd.f32 %v8097_v57, %v8096_v1 }
 0x3da   : > { %8612 = vmatmul.mubr.msk.bf16.gmra.mrb[252].mxu1 %vm6294_vm2, %v8956_v19 }
 0x3db   : > { %8615 = vmatprep.mubr.msk.bf16.mxu1 %vm6294_vm2, %v8957_v63  ;;  %v13073_v60 = vadd.f32 %v8098_v22, %v12980_v53 }
 0x3dd   : > { %v8099_v25 = vpop.f32.mrb[148].mxu1 }
 0x3de   : > { %v8100_v59 = vpop.f32.mrb[149].mxu1 }
 0x3df   : > { %v8101_v39 = vadd.f32 %v8100_v59, %v8099_v25  ;;  %v8102_v36 = vpop.f32.mrb[150].mxu1 }
 0x3e0   : > { %v8103_v11 = vpop.f32.mrb[151].mxu1 }
 0x3e1   : > { %v13077_v3 = vadd.f32 %v8101_v39, %v12987_v15  ;;  %v8104_v5 = vadd.f32 %v8103_v11, %v8102_v36 }
 0x3e2   : > { %8616 = vmatmul.mubr.msk.bf16.gmra.mrb[0].mxu1 %vm6294_vm2, %v8958_v29 }
 0x3e3   : > { %v13081_v38 = vadd.f32 %v8104_v5, %v12990_v32 }
 0x3e5   : > { %v8105_v0 = vpop.f32.mrb[152].mxu1 }
 0x3e6   : > { %v8106_v2 = vpop.f32.mrb[153].mxu1 }
 0x3e7   : > { %v8107_v37 = vadd.f32 %v8106_v2, %v8105_v0  ;;  %v8108_v53 = vpop.f32.mrb[154].mxu1 }
 0x3e8   : > { %v8109_v51 = vpop.f32.mrb[155].mxu1 }
 0x3e9   : > { %v13084_v17 = vadd.f32 %v8107_v37, %v12997_v33  ;;  %v8110_v16 = vadd.f32 %v8109_v51, %v8108_v53 }
 0x3eb   : > { %v13087_v8 = vadd.f32 %v8110_v16, %v13000_v6 }
 0x3ed   : > { %v8111_v15 = vpop.f32.mrb[156].mxu1 }
 0x3ee   : > { %v8112_v43 = vpop.f32.mrb[157].mxu1 }
 0x3ef   : > { %v8113_v40 = vadd.f32 %v8112_v43, %v8111_v15  ;;  %v8114_v13 = vpop.f32.mrb[158].mxu1 }
 0x3f0   : > { %v8115_v41 = vpop.f32.mrb[159].mxu1 }
 0x3f1   : > { %v13090_v32 = vadd.f32 %v8113_v40, %v13007_v45 }
 0x3f5   : > { %v8133_v46 = vpop.f32.mrb[160].mxu1 }
 0x3f6   : > { %v8134_v48 = vpop.f32.mrb[161].mxu1 }
 0x3f7   : > { %v8135_v62 = vadd.f32 %v8134_v48, %v8133_v46  ;;  %v8136_v12 = vpop.f32.mrb[162].mxu1 }
 0x3f8   : > { %v8137_v56 = vpop.f32.mrb[163].mxu1 }
 0x3f9   : > { %v13093_v33 = vadd.f32 %v8135_v62, %v13014_v20  ;;  %v8138_v28 = vadd.f32 %v8137_v56, %v8136_v12 }
 0x3fb   : > { %v13096_v6 = vadd.f32 %v8138_v28, %v13017_v61 }
 0x3fd   : > { %v8139_v30 = vpop.f32.mrb[164].mxu1 }
 0x3fe   : > { %v8140_v24 = vpop.f32.mrb[165].mxu1 }
 0x3ff   : > { %v8141_v52 = vadd.f32 %v8140_v24, %v8139_v30  ;;  %v8142_v14 = vpop.f32.mrb[166].mxu1 }
 0x400   : > { %v8143_v9 = vpop.f32.mrb[167].mxu1 }
 0x401   : > { %v13099_v45 = vadd.f32 %v8141_v52, %v13022_v42  ;;  %v8144_v50 = vadd.f32 %v8143_v9, %v8142_v14 }
 0x403   : > { %v13102_v44 = vadd.f32 %v8144_v50, %v13025_v49 }
 0x405   : > { %v8145_v27 = vpop.f32.mrb[168].mxu1 }
 0x406   : > { %v8146_v10 = vpop.f32.mrb[169].mxu1 }
 0x407   : > { %v8147_v20 = vadd.f32 %v8146_v10, %v8145_v27  ;;  %v8148_v23 = vpop.f32.mrb[170].mxu1 }
 0x408   : > { %v8149_v58 = vpop.f32.mrb[171].mxu1 }
 0x409   : > { %v13105_v61 = vadd.f32 %v8147_v20, %v13029_v35  ;;  %v8150_v19 = vadd.f32 %v8149_v58, %v8148_v23 }
 0x40b   : > { %v13108_v18 = vadd.f32 %v8150_v19, %v13033_v21 }
 0x40d   : > { %v8151_v63 = vpop.f32.mrb[172].mxu1 }
 0x40e   : > { %v8152_v34 = vpop.f32.mrb[173].mxu1 }
 0x40f   : > { %v8153_v42 = vadd.f32 %v8152_v34, %v8151_v63  ;;  %v8154_v1 = vpop.f32.mrb[174].mxu1 }
 0x410   : > { %v8155_v57 = vpop.f32.mrb[175].mxu1 }
 0x411   : > { %v13111_v49 = vadd.f32 %v8153_v42, %v13038_v7  ;;  %v8156_v22 = vadd.f32 %v8155_v57, %v8154_v1 }
 0x413   : > { %v13114_v25 = vadd.f32 %v8156_v22, %v13043_v55 }
 0x415   : > { %v8157_v29 = vpop.f32.mrb[176].mxu1 }
 0x416   : > { %v8158_v59 = vpop.f32.mrb[177].mxu1 }
 0x417   : > { %v8159_v35 = vadd.f32 %v8158_v59, %v8157_v29  ;;  %v8160_v39 = vpop.f32.mrb[178].mxu1 }
 0x418   : > { %v8161_v36 = vpop.f32.mrb[179].mxu1 }
 0x419   : > { %v13117_v21 = vadd.f32 %v8159_v35, %v13048_v26  ;;  %v8162_v11 = vadd.f32 %v8161_v36, %v8160_v39 }
 0x41b   : > { %v13120_v5 = vadd.f32 %v8162_v11, %v13053_v47 }
 0x41d   : > { %v8163_v0 = vpop.f32.mrb[180].mxu1 }
 0x41e   : > { %v8164_v2 = vpop.f32.mrb[181].mxu1 }
 0x41f   : > { %v8165_v7 = vadd.f32 %v8164_v2, %v8163_v0  ;;  %v8166_v37 = vpop.f32.mrb[182].mxu1 }
 0x420   : > { %v8167_v53 = vpop.f32.mrb[183].mxu1 }
 0x421   : > { %v13123_v55 = vadd.f32 %v8165_v7, %v13058_v31  ;;  %v8168_v51 = vadd.f32 %v8167_v53, %v8166_v37 }
 0x423   : > { %v13126_v16 = vadd.f32 %v8168_v51, %v13063_v54 }
 0x425   : > { %v8169_v15 = vpop.f32.mrb[184].mxu1 }
 0x426   : > { %v8170_v43 = vpop.f32.mrb[185].mxu1 }
 0x427   : > { %v8171_v26 = vadd.f32 %v8170_v43, %v8169_v15  ;;  %v8172_v40 = vpop.f32.mrb[186].mxu1 }
 0x428   : > { %v8173_v13 = vpop.f32.mrb[187].mxu1 }
 0x429   : > { %v13129_v47 = vadd.f32 %v8171_v26, %v13068_v4  ;;  %v8174_v41 = vadd.f32 %v8173_v13, %v8172_v40 }
 0x42b   : > { %v13132_v46 = vadd.f32 %v8174_v41, %v13073_v60 }
 0x42d   : > { %v8175_v48 = vpop.f32.mrb[188].mxu1 }
 0x42e   : > { %v8176_v62 = vpop.f32.mrb[189].mxu1 }
 0x42f   : > { %v8177_v31 = vadd.f32 %v8176_v62, %v8175_v48  ;;  %v8178_v12 = vpop.f32.mrb[190].mxu1 }
 0x430   : > { %v8179_v56 = vpop.f32.mrb[191].mxu1 }
 0x431   : > { %v13135_v54 = vadd.f32 %v8177_v31, %v13077_v3  ;;  %v8180_v28 = vadd.f32 %v8179_v56, %v8178_v12 }
 0x433   : > { %v13138_v30 = vadd.f32 %v8180_v28, %v13081_v38 }
 0x435   : > { %v8181_v24 = vpop.f32.mrb[192].mxu1 }
 0x436   : > { %v8182_v52 = vpop.f32.mrb[193].mxu1 }
 0x437   : > { %v8183_v4 = vadd.f32 %v8182_v52, %v8181_v24  ;;  %v8184_v14 = vpop.f32.mrb[194].mxu1 }
 0x438   : > { %v8185_v9 = vpop.f32.mrb[195].mxu1 }
 0x439   : > { %v13141_v60 = vadd.f32 %v8183_v4, %v13084_v17  ;;  %v8186_v50 = vadd.f32 %v8185_v9, %v8184_v14 }
 0x43b   : > { %v13144_v27 = vadd.f32 %v8186_v50, %v13087_v8 }
 0x43d   : > { %v8187_v20 = vpop.f32.mrb[196].mxu1 }
 0x43e   : > { %v8188_v23 = vpop.f32.mrb[197].mxu1 }
 0x43f   : > { %v8189_v38 = vadd.f32 %v8188_v23, %v8187_v20  ;;  %v8190_v63 = vpop.f32.mrb[198].mxu1 }
 0x440   : > { %v8191_v42 = vpop.f32.mrb[199].mxu1 }
 0x441   : > { %v8285_v10 = vpop.f32.mrb[228].mxu0  ;;  %v13147_v57 = vadd.f32 %v8189_v38, %v13090_v32 }
 0x442   : > { %v8286_v3 = vpop.f32.mrb[229].mxu0 }
 0x443   : > { %v8287_v58 = vadd.f32 %v8286_v3, %v8285_v10  ;;  %v8288_v19 = vpop.f32.mrb[230].mxu0 }
 0x444   : > { %v8289_v34 = vpop.f32.mrb[231].mxu0 }
 0x445   : > { %v8290_v1 = vadd.f32 %v8289_v34, %v8288_v19  ;;  %v8209_v22 = vpop.f32.mrb[200].mxu1 }
 0x446   : > { %v8210_v59 = vpop.f32.mrb[201].mxu1 }
 0x447   : > { %v8211_v39 = vadd.f32 %v8210_v59, %v8209_v22  ;;  %v8212_v36 = vpop.f32.mrb[202].mxu1 }
 0x448   : > { %v8213_v0 = vpop.f32.mrb[203].mxu1 }
 0x449   : > { %v8291_v17 = vpop.f32.mrb[232].mxu0  ;;  %v6920_v7 = vadd.f32 %v8211_v39, %v13093_v33  ;;  %v8214_v37 = vadd.f32 %v8213_v0, %v8212_v36 }
 0x44a   : > { %v8292_v29 = vpop.f32.mrb[233].mxu0 }
 0x44b   : > { %v8293_v8 = vadd.f32 %v8292_v29, %v8291_v17  ;;  %v8294_v35 = vpop.f32.mrb[234].mxu0  ;;  %v6923_v53 = vadd.f32 %v8214_v37, %v13096_v6  ;;  %v13151_v51 = vadd.f32 %v8287_v58, %v6920_v7 }
 0x44c   : > { %v8295_v11 = vpop.f32.mrb[235].mxu0 }
 0x44d   : > { %v8296_v2 = vadd.f32 %v8295_v11, %v8294_v35  ;;  %v8215_v15 = vpop.f32.mrb[204].mxu1  ;;  %v13153_v26 = vadd.f32 %v8290_v1, %v6923_v53 }
 0x44e   : > { %v8216_v40 = vpop.f32.mrb[205].mxu1 }
 0x44f   : > { %v8217_v48 = vadd.f32 %v8216_v40, %v8215_v15  ;;  %v8218_v62 = vpop.f32.mrb[206].mxu1 }
 0x450   : > { %v8219_v12 = vpop.f32.mrb[207].mxu1 }
 0x451   : > { %v8297_v32 = vpop.f32.mrb[236].mxu0  ;;  %v6928_v33 = vadd.f32 %v8217_v48, %v13099_v45  ;;  %v8220_v28 = vadd.f32 %v8219_v12, %v8218_v62 }
 0x452   : > { %v8298_v43 = vpop.f32.mrb[237].mxu0 }
 0x453   : > { %v8299_v13 = vadd.f32 %v8298_v43, %v8297_v32  ;;  %v8300_v41 = vpop.f32.mrb[238].mxu0  ;;  %v6931_v6 = vadd.f32 %v8220_v28, %v13102_v44  ;;  %v13157_v24 = vadd.f32 %v8293_v8, %v6928_v33 }
 0x454   : > { %v8301_v31 = vpop.f32.mrb[239].mxu0 }
 0x455   : > { %v8302_v56 = vadd.f32 %v8301_v31, %v8300_v41  ;;  %v8221_v4 = vpop.f32.mrb[208].mxu1  ;;  %v13159_v9 = vadd.f32 %v8296_v2, %v6931_v6 }
 0x456   : > { %v8222_v50 = vpop.f32.mrb[209].mxu1 }
 0x457   : > { %v8223_v3 = vadd.f32 %v8222_v50, %v8221_v4  ;;  %v8224_v23 = vpop.f32.mrb[210].mxu1 }
 0x458   : > { %v8225_v19 = vpop.f32.mrb[211].mxu1 }
 0x459   : > { %v8303_v52 = vpop.f32.mrb[240].mxu0  ;;  %v6936_v45 = vadd.f32 %v8223_v3, %v13105_v61  ;;  %v8226_v63 = vadd.f32 %v8225_v19, %v8224_v23 }
 0x45a   : > { %v8304_v14 = vpop.f32.mrb[241].mxu0 }
 0x45b   : > { %v8305_v10 = vadd.f32 %v8304_v14, %v8303_v52  ;;  %v8306_v20 = vpop.f32.mrb[242].mxu0  ;;  %v6939_v44 = vadd.f32 %v8226_v63, %v13108_v18  ;;  %v13163_v34 = vadd.f32 %v8299_v13, %v6936_v45 }
 0x45c   : > { %v8307_v58 = vpop.f32.mrb[243].mxu0 }
 0x45d   : > { %v8308_v38 = vadd.f32 %v8307_v58, %v8306_v20  ;;  %v8227_v1 = vpop.f32.mrb[212].mxu1  ;;  %v13165_v22 = vadd.f32 %v8302_v56, %v6939_v44 }
 0x45e   : > { %v8228_v29 = vpop.f32.mrb[213].mxu1 }
 0x45f   : > { %v8229_v35 = vadd.f32 %v8228_v29, %v8227_v1  ;;  %v8230_v39 = vpop.f32.mrb[214].mxu1 }
 0x460   : > { %v8231_v11 = vpop.f32.mrb[215].mxu1 }
 0x461   : > { %v8309_v42 = vpop.f32.mrb[244].mxu0  ;;  %v6944_v61 = vadd.f32 %v8229_v35, %v13111_v49  ;;  %v8232_v2 = vadd.f32 %v8231_v11, %v8230_v39 }
 0x462   : > { %v8310_v17 = vpop.f32.mrb[245].mxu0 }
 0x463   : > { %v8311_v59 = vadd.f32 %v8310_v17, %v8309_v42  ;;  %v8312_v8 = vpop.f32.mrb[246].mxu0  ;;  %v6947_v18 = vadd.f32 %v8232_v2, %v13114_v25  ;;  %v13169_v7 = vadd.f32 %v8305_v10, %v6944_v61 }
 0x464   : > { %v8313_v36 = vpop.f32.mrb[247].mxu0 }
 0x465   : > { %v8314_v0 = vadd.f32 %v8313_v36, %v8312_v8  ;;  %v8233_v53 = vpop.f32.mrb[216].mxu1  ;;  %v13171_v15 = vadd.f32 %v8308_v38, %v6947_v18 }
 0x466   : > { %v8234_v43 = vpop.f32.mrb[217].mxu1 }
 0x467   : > { %v8235_v41 = vadd.f32 %v8234_v43, %v8233_v53  ;;  %v8236_v48 = vpop.f32.mrb[218].mxu1 }
 0x468   : > { %v8237_v31 = vpop.f32.mrb[219].mxu1 }
 0x469   : > { %v8315_v37 = vpop.f32.mrb[248].mxu0  ;;  %v6952_v49 = vadd.f32 %v8235_v41, %v13117_v21  ;;  %v8238_v56 = vadd.f32 %v8237_v31, %v8236_v48 }
 0x46a   : > { %v8316_v32 = vpop.f32.mrb[249].mxu0 }
 0x46b   : > { %v8317_v40 = vadd.f32 %v8316_v32, %v8315_v37  ;;  %v8318_v13 = vpop.f32.mrb[250].mxu0  ;;  %v6955_v25 = vadd.f32 %v8238_v56, %v13120_v5  ;;  %v13175_v33 = vadd.f32 %v8311_v59, %v6952_v49 }
 0x46c   : > { %v8319_v62 = vpop.f32.mrb[251].mxu0 }
 0x46d   : > { %v8320_v12 = vadd.f32 %v8319_v62, %v8318_v13  ;;  %v8239_v6 = vpop.f32.mrb[220].mxu1  ;;  %v13177_v4 = vadd.f32 %v8314_v0, %v6955_v25 }
 0x46e   : > { %v8240_v14 = vpop.f32.mrb[221].mxu1 }
 0x46f   : > { %v8241_v20 = vadd.f32 %v8240_v14, %v8239_v6  ;;  %v8242_v3 = vpop.f32.mrb[222].mxu1 }
 0x470   : > { %v8243_v58 = vpop.f32.mrb[223].mxu1 }
 0x471   : > { %v8321_v28 = vpop.f32.mrb[252].mxu0  ;;  %v6960_v21 = vadd.f32 %v8241_v20, %v13123_v55  ;;  %v8244_v38 = vadd.f32 %v8243_v58, %v8242_v3 }
 0x472   : > { %v8322_v52 = vpop.f32.mrb[253].mxu0 }
 0x473   : > { %v8323_v50 = vadd.f32 %v8322_v52, %v8321_v28  ;;  %v8324_v10 = vpop.f32.mrb[254].mxu0  ;;  %v6963_v5 = vadd.f32 %v8244_v38, %v13126_v16  ;;  %v13181_v45 = vadd.f32 %v8317_v40, %v6960_v21 }
 0x474   : > { %v8325_v23 = vpop.f32.mrb[255].mxu0 }
 0x475   : > { %v8326_v19 = vadd.f32 %v8325_v23, %v8324_v10  ;;  %v8245_v44 = vpop.f32.mrb[224].mxu1  ;;  %v13183_v1 = vadd.f32 %v8320_v12, %v6963_v5 }
 0x476   : > { %v8246_v17 = vpop.f32.mrb[225].mxu1 }
 0x477   : > { %v8247_v8 = vadd.f32 %v8246_v17, %v8245_v44  ;;  %v8248_v35 = vpop.f32.mrb[226].mxu1 }
 0x478   : > { %v8249_v36 = vpop.f32.mrb[227].mxu1 }
 0x479   : > { %v8327_v63 = vpop.f32.mrb[0].mxu0  ;;  %v6968_v55 = vadd.f32 %v8247_v8, %v13129_v47  ;;  %v8250_v0 = vadd.f32 %v8249_v36, %v8248_v35 }
 0x47a   : > { %v8328_v42 = vpop.f32.mrb[1].mxu0 }
 0x47b   : > { %v8329_v29 = vadd.f32 %v8328_v42, %v8327_v63  ;;  %v8330_v59 = vpop.f32.mrb[2].mxu0  ;;  %v6971_v16 = vadd.f32 %v8250_v0, %v13132_v46  ;;  %v13187_v61 = vadd.f32 %v8323_v50, %v6968_v55 }
 0x47c   : > { %v8331_v39 = vpop.f32.mrb[3].mxu0 }
 0x47d   : > { %v8332_v11 = vadd.f32 %v8331_v39, %v8330_v59  ;;  %v8251_v18 = vpop.f32.mrb[228].mxu1  ;;  %v13189_v53 = vadd.f32 %v8326_v19, %v6971_v16 }
 0x47e   : > { %v8252_v32 = vpop.f32.mrb[229].mxu1 }
 0x47f   : > { %v8253_v13 = vadd.f32 %v8252_v32, %v8251_v18  ;;  %v8254_v41 = vpop.f32.mrb[230].mxu1 }
 0x480   : > { %v8255_v62 = vpop.f32.mrb[231].mxu1 }
 0x481   : > { %v8333_v2 = vpop.f32.mrb[4].mxu0  ;;  %v6976_v47 = vadd.f32 %v8253_v13, %v13135_v54  ;;  %v8256_v12 = vadd.f32 %v8255_v62, %v8254_v41 }
 0x482   : > { %v8334_v37 = vpop.f32.mrb[5].mxu0 }
 0x483   : > { %v8335_v43 = vadd.f32 %v8334_v37, %v8333_v2  ;;  %v8336_v40 = vpop.f32.mrb[6].mxu0  ;;  %v6979_v46 = vadd.f32 %v8256_v12, %v13138_v30  ;;  %v13193_v49 = vadd.f32 %v8329_v29, %v6976_v47 }
 0x484   : > { %v8337_v48 = vpop.f32.mrb[7].mxu0 }
 0x485   : > { %v8338_v31 = vadd.f32 %v8337_v48, %v8336_v40  ;;  %v8257_v25 = vpop.f32.mrb[232].mxu1  ;;  %v13195_v6 = vadd.f32 %v8332_v11, %v6979_v46 }
 0x486   : > { %v8258_v52 = vpop.f32.mrb[233].mxu1 }
 0x487   : > { %v8259_v10 = vadd.f32 %v8258_v52, %v8257_v25  ;;  %v8260_v20 = vpop.f32.mrb[234].mxu1 }
 0x488   : > { %v8261_v23 = vpop.f32.mrb[235].mxu1 }
 0x489   : > { %v8339_v56 = vpop.f32.mrb[8].mxu0  ;;  %v6984_v54 = vadd.f32 %v8259_v10, %v13141_v60  ;;  %v8262_v58 = vadd.f32 %v8261_v23, %v8260_v20 }
 0x48a   : > { %v8340_v28 = vpop.f32.mrb[9].mxu0 }
 0x48b   : > { %v8341_v14 = vadd.f32 %v8340_v28, %v8339_v56  ;;  %v8342_v50 = vpop.f32.mrb[10].mxu0  ;;  %v6987_v30 = vadd.f32 %v8262_v58, %v13144_v27  ;;  %v13199_v19 = vadd.f32 %v8335_v43, %v6984_v54 }
 0x48c   : > { %v8343_v3 = vpop.f32.mrb[11].mxu0 }
 0x48d   : > { %v8263_v21 = vpop.f32.mrb[236].mxu1  ;;  %v13201_v38 = vadd.f32 %v8338_v31, %v6987_v30 }
 0x48e   : > { %v8264_v5 = vpop.f32.mrb[237].mxu1 }
 0x48f   : > { %v8265_v63 = vadd.f32 %v8264_v5, %v8263_v21  ;;  %v8266_v44 = vpop.f32.mrb[238].mxu1 }
 0x490   : > { %v8267_v42 = vpop.f32.mrb[239].mxu1 }
 0x491   : > { %v6992_v17 = vadd.f32 %v8265_v63, %v13147_v57 }
 0x493   : > { %v7104_v29 = vadd.f32 %v8341_v14, %v6992_v17 }
 0x495   : > { %v8601_v60 = vpop.f32.mrb[240].mxu1 }
 0x496   : > { %v7152_v27 = vadd.f32 %v8601_v60, %v13157_v24  ;;  %v7143_v59 = vpop.f32.mrb[241].mxu1 }
 0x497   : > { %v7144_v8 = vadd.f32 %v7143_v59, %v13151_v51  ;;  %v8602_v57 = vpop.f32.mrb[242].mxu1 }
 0x498   : > { %7224 = vst.msk [vmem:[%s13208_s30 + $0x10] sm:$0xff] %vm7221_vm3, %v7152_v27  ;;  %v7155_v35 = vadd.f32 %v8602_v57, %v13159_v9  ;;  %v7146_v39 = vpop.f32.mrb[243].mxu1 }
 0x499   : > { %7222 = vst.msk [vmem:[%s13208_s30] sm:$0xff] %vm7221_vm3, %v7144_v8  ;;  %v7147_v36 = vadd.f32 %v7146_v39, %v13153_v26 }
 0x49a   : > { %7225 = vst.msk [vmem:[%s13208_s30 + $0x18] sm:$0xff] %vm7221_vm3, %v7155_v35 }
 0x49b   : > { %7223 = vst.msk [vmem:[%s13208_s30 + $0x8] sm:$0xff] %vm7221_vm3, %v7147_v36 }
 0x49d   : > { %v8605_v24 = vpop.f32.mrb[244].mxu1 }
 0x49e   : > { %v7168_v51 = vadd.f32 %v8605_v24, %v13169_v7  ;;  %v7159_v11 = vpop.f32.mrb[245].mxu1 }
 0x49f   : > { %v7160_v55 = vadd.f32 %v7159_v11, %v13163_v34  ;;  %v8606_v0 = vpop.f32.mrb[246].mxu1 }
 0x4a0   : > { %7228 = vst.msk [vmem:[%s13208_s30 + $0x30] sm:$0xff] %vm7221_vm3, %v7168_v51  ;;  %v7171_v9 = vadd.f32 %v8606_v0, %v13171_v15  ;;  %v7162_v16 = vpop.f32.mrb[247].mxu1 }
 0x4a1   : > { %7226 = vst.msk [vmem:[%s13208_s30 + $0x20] sm:$0xff] %vm7221_vm3, %v7160_v55  ;;  %v7163_v26 = vadd.f32 %v7162_v16, %v13165_v22 }
 0x4a2   : > { %7229 = vst.msk [vmem:[%s13208_s30 + $0x38] sm:$0xff] %vm7221_vm3, %v7171_v9 }
 0x4a3   : > { %7227 = vst.msk [vmem:[%s13208_s30 + $0x28] sm:$0xff] %vm7221_vm3, %v7163_v26 }
 0x4a5   : > { %v8609_v7 = vpop.f32.mrb[248].mxu1 }
 0x4a6   : > { %v7184_v34 = vadd.f32 %v8609_v7, %v13181_v45  ;;  %v7175_v2 = vpop.f32.mrb[249].mxu1 }
 0x4a7   : > { %v7176_v18 = vadd.f32 %v7175_v2, %v13175_v33  ;;  %v8610_v37 = vpop.f32.mrb[250].mxu1 }
 0x4a8   : > { %7232 = vst.msk [vmem:[%s13208_s30 + $0x50] sm:$0xff] %vm7221_vm3, %v7184_v34  ;;  %v7187_v15 = vadd.f32 %v8610_v37, %v13183_v1  ;;  %v7178_v32 = vpop.f32.mrb[251].mxu1 }
 0x4a9   : > { %7230 = vst.msk [vmem:[%s13208_s30 + $0x40] sm:$0xff] %vm7221_vm3, %v7176_v18  ;;  %v7179_v22 = vadd.f32 %v7178_v32, %v13177_v4 }
 0x4aa   : > { %7233 = vst.msk [vmem:[%s13208_s30 + $0x58] sm:$0xff] %vm7221_vm3, %v7187_v15 }
 0x4ab   : > { %7231 = vst.msk [vmem:[%s13208_s30 + $0x48] sm:$0xff] %vm7221_vm3, %v7179_v22 }
 0x4ad   : > { %v8613_v45 = vpop.f32.mrb[252].mxu1 }
 0x4ae   : > { %v7200_v33 = vadd.f32 %v8613_v45, %v13193_v49  ;;  %v7191_v43 = vpop.f32.mrb[253].mxu1 }
 0x4af   : > { %v7192_v40 = vadd.f32 %v7191_v43, %v13187_v61  ;;  %v8614_v1 = vpop.f32.mrb[254].mxu1 }
 0x4b0   : > { %7236 = vst.msk [vmem:[%s13208_s30 + $0x70] sm:$0xff] %vm7221_vm3, %v7200_v33  ;;  %v7203_v13 = vadd.f32 %v8614_v1, %v13195_v6  ;;  %v7194_v41 = vpop.f32.mrb[255].mxu1 }
 0x4b1   : > { %7234 = vst.msk [vmem:[%s13208_s30 + $0x60] sm:$0xff] %vm7221_vm3, %v7192_v40  ;;  %v7195_v4 = vadd.f32 %v7194_v41, %v13189_v53 }
 0x4b2   : > { %7237 = vst.msk [vmem:[%s13208_s30 + $0x78] sm:$0xff] %vm7221_vm3, %v7203_v13 }
 0x4b3   : > { %7235 = vst.msk [vmem:[%s13208_s30 + $0x68] sm:$0xff] %vm7221_vm3, %v7195_v4 }
 0x4b5   : > { %v8617_v48 = vpop.f32.mrb[0].mxu1 }
 0x4b6   : > { %v7216_v62 = vadd.f32 %v8617_v48, %v7104_v29  ;;  %v7207_v31 = vpop.f32.mrb[1].mxu1 }
 0x4b7   : > { %v7208_v61 = vadd.f32 %v7207_v31, %v13199_v19  ;;  %v8618_v47 = vpop.f32.mrb[2].mxu1 }
 0x4b8   : > { %7240 = vst.msk [vmem:[%s13208_s30 + $0x90] sm:$0xff] %vm7221_vm3, %v7216_v62  ;;  %v7210_v12 = vpop.f32.mrb[3].mxu1 }
 0x4b9   : > { %7238 = vst.msk [vmem:[%s13208_s30 + $0x80] sm:$0xff] %vm7221_vm3, %v7208_v61  ;;  %v7211_v46 = vadd.f32 %v7210_v12, %v13201_v38 }
 0x4bb   : > { %7239 = vst.msk [vmem:[%s13208_s30 + $0x88] sm:$0xff] %vm7221_vm3, %v7211_v46 }
 0x4bc PF: > { %s15_s18 = sadd.s32 1, %s9877_s18  }
 0x4bd   : > { %p12_p4 = scmp.ge.s32.totalorder %s15_s18, 4  }
 0x4bf   :  { %14 = sbr.rel (!%p12_p4) target bundleno = 1 (0x1), region = 70 }

</bundles_post_ra>
